<compile_context>
chip_gen: v5e
topology: v5e:2x2
jax: 0.10.0
libtpu: 0.0.40
codegen_flags: <defaults>
</compile_context>

<pallas_src>
import functools

import jax
import jax.numpy as jnp
from jax import lax
from jax.experimental import pallas as pl
from jax.experimental.pallas import tpu as pltpu


# --------------------------- in-kernel building blocks ---------------------- #

def _im2col_3x3(xp, wo, ho, taps):
    """Concatenate 9 conv-tap windows of a zero-padded, spatially transposed
    (W_pad, H_pad, C) VMEM buffer into one (wo*ho, 9*C) bf16 im2col patch.

    `taps` is a tuple of (w_off, h_off, ch_off, ch_len), ordered (i, j) to match
    the HWIO weight flattened as (i*3 + j)*C + c.
    """
    wins = [xp[wof:wof + wo, hof:hof + ho, cof:cof + clen]
            for (wof, hof, cof, clen) in taps]
    patch = jnp.concatenate(wins, axis=-1)              # (wo, ho, 9*C)
    k = patch.shape[-1]
    return patch.reshape(wo * ho, k).astype(jnp.bfloat16)


def _pack_lane_dense(out, wo, ho, c):
    """(wo*ho, c) GEMM result, rows ordered (w, h) -> lane-dense (ho, wo*c)."""
    return jnp.concatenate([out[w * ho:(w + 1) * ho, :] for w in range(wo)],
                           axis=-1)


# ------------------------------ Pallas kernels ------------------------------ #

def _make_stem_kernel(h, w, cin, cout):
    taps = tuple((j, i, 0, cin) for i in range(3) for j in range(3))

    def kernel(x_ref, w_ref, o_ref, pb):
        # x_ref: (1, W, H, Cin) f32; zero pad happens in VMEM.
        pb[...] = jnp.zeros((w + 2, h + 2, cin), jnp.float32)
        pb[1:w + 1, 1:h + 1, :] = x_ref[0]
        out = jnp.dot(_im2col_3x3(pb[...], w, h, taps), w_ref[...],
                      preferred_element_type=jnp.float32)       # (w*h, cout)
        o_ref[0] = _pack_lane_dense(out, w, h, cout)            # (h, w*cout)

    return kernel


def _make_stride1_block_kernel(h, w, c):
    hp, wp = h + 2, w + 2
    taps = tuple((j, i, 0, c) for i in range(3) for j in range(3))

    def kernel(x_ref, s_ref, b_ref, w0_ref, b1_ref, w1_ref, o_ref, pb0, pb1):
        x2d = x_ref[0]                                          # (h, w*c) f32
        # BN0 + ReLU prologue (per-channel scale/bias tiled along the lane axis).
        a2d = jnp.maximum(x2d * s_ref[...] + b_ref[...], 0.0)
        # conv0 input: zero-padded, spatially transposed VMEM buffer.
        pb0[...] = jnp.zeros((wp, hp, c), jnp.float32)
        for col in range(w):
            pb0[col + 1, 1:h + 1, :] = a2d[:, col * c:(col + 1) * c]
        mid = jnp.dot(_im2col_3x3(pb0[...], w, h, taps), w0_ref[...],
                      preferred_element_type=jnp.float32)       # (w*h, c)
        mid = jnp.maximum(mid + b1_ref[...], 0.0)               # bn1 bias + ReLU
        # conv1 input: pad `mid` in VMEM (never leaves the chip).
        pb1[...] = jnp.zeros((wp, hp, c), jnp.float32)
        pb1[1:w + 1, 1:h + 1, :] = mid.reshape(w, h, c)
        out = jnp.dot(_im2col_3x3(pb1[...], w, h, taps), w1_ref[...],
                      preferred_element_type=jnp.float32)       # (w*h, c)
        # identity shortcut + lane-dense store.
        o_ref[0] = _pack_lane_dense(out, w, h, c) + x2d

    return kernel


def _make_stride2_block_kernel(hs, ws, cin, cout):
    # Taps into the space-to-depth'd activation buffer ps, where
    #   ps[1+w', 1+h', (p*2+q)*cin + c] = act(2h'+p, 2w'+q, c)
    # and row/col 0 is the zero pad (stride-2, padding=1 only reads one pad
    # pixel on the top/left).
    taps0 = tuple((1 + (j - 1) // 2, 1 + (i - 1) // 2,
                   (((i - 1) % 2) * 2 + ((j - 1) % 2)) * cin, cin)
                  for i in range(3) for j in range(3))
    taps1 = tuple((j, i, 0, cout) for i in range(3) for j in range(3))
    g = 4 * cin

    def kernel(x_ref, s_ref, b_ref, w0_ref, b1_ref, wsk_ref, bsk_ref, w1_ref,
               o_ref, ps, pb1):
        x2d = x_ref[0]                                          # (hs, ws*4*cin)
        a2d = jnp.maximum(x2d * s_ref[...] + b_ref[...], 0.0)   # BN0 + ReLU
        ps[...] = jnp.zeros((ws + 1, hs + 1, g), jnp.float32)
        for col in range(ws):
            ps[col + 1, 1:hs + 1, :] = a2d[:, col * g:(col + 1) * g]
        psv = ps[...]
        # conv0 (stride 2) as one GEMM, bn1 folded into the weights.
        mid = jnp.dot(_im2col_3x3(psv, ws, hs, taps0), w0_ref[...],
                      preferred_element_type=jnp.float32)       # (ws*hs, cout)
        mid = jnp.maximum(mid + b1_ref[...], 0.0)
        # 1x1 stride-2 skip conv (skip_bn folded); shares the prologue buffer.
        skp = psv[1:1 + ws, 1:1 + hs, 0:cin].reshape(ws * hs, cin)
        shortcut = jnp.dot(skp.astype(jnp.bfloat16), wsk_ref[...],
                           preferred_element_type=jnp.float32) + bsk_ref[...]
        # conv1 (stride 1) on VMEM-resident mid, residual add fused.
        pb1[...] = jnp.zeros((ws + 2, hs + 2, cout), jnp.float32)
        pb1[1:ws + 1, 1:hs + 1, :] = mid.reshape(ws, hs, cout)
        out = jnp.dot(_im2col_3x3(pb1[...], ws, hs, taps1), w1_ref[...],
                      preferred_element_type=jnp.float32) + shortcut
        o_ref[0] = _pack_lane_dense(out, ws, hs, cout)          # (hs, ws*cout)

    return kernel


def _head_kernel(x_ref, w_ref, b_ref, o_ref):
    # x_ref: (N, H3, W3*C) lane-dense.  mean over rows (h); the mean over w and
    # the final BN are folded into the tiled head weight.
    pooled = jnp.mean(x_ref[...], axis=1)                       # (N, W3*C)
    o_ref[...] = jnp.dot(pooled, w_ref[...],
                         preferred_element_type=jnp.float32) + b_ref[...]


# ----------------------------- pallas_call wrappers ------------------------- #

def _compiler_params():
    return pltpu.CompilerParams(dimension_semantics=("parallel",),
                                vmem_limit_bytes=32 * 1024 * 1024)


def _stem_call(x_t, w_stem):
    # x_t: (N, W, H, 3) f32 (spatially transposed NCHW input); out (N, H, W*16).
    n, w, h, cin = x_t.shape
    cout = w_stem.shape[1]
    flops = 2 * n * h * w * (9 * cin) * cout
    bytes_accessed = 4 * int(x_t.size) + 2 * int(w_stem.size) + 4 * n * h * w * cout
    return pl.pallas_call(
        _make_stem_kernel(h, w, cin, cout),
        grid=(n,),
        in_specs=[pl.BlockSpec((1, w, h, cin), lambda i: (i, 0, 0, 0)),
                  pl.BlockSpec((9 * cin, cout), lambda i: (0, 0))],
        out_specs=pl.BlockSpec((1, h, w * cout), lambda i: (i, 0, 0)),
        out_shape=jax.ShapeDtypeStruct((n, h, w * cout), jnp.float32),
        scratch_shapes=[pltpu.VMEM((w + 2, h + 2, cin), jnp.float32)],
        compiler_params=_compiler_params(),
        cost_estimate=pl.CostEstimate(flops=flops, transcendentals=0,
                                      bytes_accessed=bytes_accessed),
    )(x_t, w_stem)


def _stride1_block_call(x, p):
    n, h, wc = x.shape
    c = p["Cout"]
    w = wc // c
    flops = 2 * 2 * n * h * w * (9 * c) * c
    bytes_accessed = 8 * int(x.size) + 2 * (int(p["w0"].size) + int(p["w1"].size))
    return pl.pallas_call(
        _make_stride1_block_kernel(h, w, c),
        grid=(n,),
        in_specs=[pl.BlockSpec((1, h, wc), lambda i: (i, 0, 0)),
                  pl.BlockSpec((1, wc), lambda i: (0, 0)),
                  pl.BlockSpec((1, wc), lambda i: (0, 0)),
                  pl.BlockSpec((9 * c, c), lambda i: (0, 0)),
                  pl.BlockSpec((1, c), lambda i: (0, 0)),
                  pl.BlockSpec((9 * c, c), lambda i: (0, 0))],
        out_specs=pl.BlockSpec((1, h, wc), lambda i: (i, 0, 0)),
        out_shape=jax.ShapeDtypeStruct((n, h, wc), jnp.float32),
        scratch_shapes=[pltpu.VMEM((w + 2, h + 2, c), jnp.float32),
                        pltpu.VMEM((w + 2, h + 2, c), jnp.float32)],
        compiler_params=_compiler_params(),
        cost_estimate=pl.CostEstimate(flops=flops, transcendentals=0,
                                      bytes_accessed=bytes_accessed),
    )(x, p["s0t"], p["b0t"], p["w0"], p["b1"], p["w1"])


def _stride2_block_call(x, p):
    n, h, wc = x.shape
    cin, cout = p["Cin"], p["Cout"]
    w = wc // cin
    hs, ws = h // 2, w // 2
    # Wrapper space-to-depth (2x2 spatial -> 4 channel groups) so every
    # in-kernel window slice is a static contiguous slice (2 such ops total).
    xs = (x.reshape(n, hs, 2, ws, 2, cin)
           .transpose(0, 1, 3, 2, 4, 5)
           .reshape(n, hs, ws * 4 * cin))
    flops = 2 * n * hs * ws * ((9 * cin) * cout + (9 * cout) * cout + cin * cout)
    bytes_accessed = (4 * (int(xs.size) + n * hs * ws * cout)
                      + 2 * (int(p["w0"].size) + int(p["w1"].size)
                             + int(p["wsk"].size)))
    return pl.pallas_call(
        _make_stride2_block_kernel(hs, ws, cin, cout),
        grid=(n,),
        in_specs=[pl.BlockSpec((1, hs, ws * 4 * cin), lambda i: (i, 0, 0)),
                  pl.BlockSpec((1, ws * 4 * cin), lambda i: (0, 0)),
                  pl.BlockSpec((1, ws * 4 * cin), lambda i: (0, 0)),
                  pl.BlockSpec((9 * cin, cout), lambda i: (0, 0)),
                  pl.BlockSpec((1, cout), lambda i: (0, 0)),
                  pl.BlockSpec((cin, cout), lambda i: (0, 0)),
                  pl.BlockSpec((1, cout), lambda i: (0, 0)),
                  pl.BlockSpec((9 * cout, cout), lambda i: (0, 0))],
        out_specs=pl.BlockSpec((1, hs, ws * cout), lambda i: (i, 0, 0)),
        out_shape=jax.ShapeDtypeStruct((n, hs, ws * cout), jnp.float32),
        scratch_shapes=[pltpu.VMEM((ws + 1, hs + 1, 4 * cin), jnp.float32),
                        pltpu.VMEM((ws + 2, hs + 2, cout), jnp.float32)],
        compiler_params=_compiler_params(),
        cost_estimate=pl.CostEstimate(flops=flops, transcendentals=0,
                                      bytes_accessed=bytes_accessed),
    )(xs, p["s0t"], p["b0t"], p["w0"], p["b1"], p["wsk"], p["bsk"], p["w1"])


def _head_call(x, w_head, b_head):
    n = x.shape[0]
    ncls = w_head.shape[1]
    return pl.pallas_call(
        _head_kernel,
        out_shape=jax.ShapeDtypeStruct((n, ncls), jnp.float32),
    )(x, w_head, b_head)


# -------------------------------- forward pass ------------------------------ #

def preact_resnet_forward(x_nchw, params):
    # NCHW -> (N, W, H, C): a single wrapper transpose feeding the stem kernel's
    # spatially transposed VMEM layout (all zero padding happens in-kernel).
    x_t = jnp.transpose(x_nchw, (0, 3, 2, 1)).astype(jnp.float32)
    out = _stem_call(x_t, params["stem_w"])              # (N, H, W*16)
    for p in params["layers"]:
        if p["stride"] == 1:
            out = _stride1_block_call(out, p)
        else:
            out = _stride2_block_call(out, p)
    return _head_call(out, params["head_w"], params["head_b"])


# ------------------------------ parameter setup ----------------------------- #

def _bn_params(key, c):
    k1, k2, k3, k4 = jax.random.split(key, 4)
    gamma = 1.0 + 0.1 * jax.random.normal(k1, (c,), jnp.float32)
    beta = 0.1 * jax.random.normal(k2, (c,), jnp.float32)
    mean = 0.1 * jax.random.normal(k3, (c,), jnp.float32)
    var = 1.0 + 0.1 * jnp.abs(jax.random.normal(k4, (c,), jnp.float32))
    return (gamma, beta, mean, var)


def _conv_w(key, kh, kw, cin, cout):
    fan_in = kh * kw * cin
    return (jax.random.normal(key, (kh, kw, cin, cout), jnp.float32)
            * (2.0 / fan_in) ** 0.5)


def init_raw_params(key, num_units=(1, 1, 1), num_classes=10):
    keys = iter(jax.random.split(key, 128))
    params = {"conv0_w": _conv_w(next(keys), 3, 3, 3, 16)}
    strides = ([1] * num_units[0] + [2] + [1] * (num_units[1] - 1)
               + [2] + [1] * (num_units[2] - 1))
    channels = ([16] * num_units[0] + [32] * num_units[1] + [64] * num_units[2])
    in_planes = 16
    layers = []
    for stride, channel in zip(strides, channels):
        p = {"stride": stride,
             "bn0": _bn_params(next(keys), in_planes),
             "conv0_w": _conv_w(next(keys), 3, 3, in_planes, channel),
             "bn1": _bn_params(next(keys), channel),
             "conv1_w": _conv_w(next(keys), 3, 3, channel, channel)}
        if stride != 1:
            p["skip_w"] = _conv_w(next(keys), 1, 1, in_planes, channel)
            p["skip_bn"] = _bn_params(next(keys), channel)
        layers.append(p)
        in_planes = channel
    params["layers"] = layers
    params["bn"] = _bn_params(next(keys), 64)
    params["logit_w"] = 0.1 * jax.random.normal(next(keys), (64, num_classes),
                                                jnp.float32)
    params["logit_b"] = 0.1 * jax.random.normal(next(keys), (num_classes,),
                                                jnp.float32)
    return params


def _bn_fold(bn, eps=1e-5):
    gamma, beta, mean, var = bn
    scale = gamma / jnp.sqrt(var + eps)
    bias = beta - mean * scale
    return scale, bias


def prepare_params(raw, h, w):
    """Fold post-conv BNs into (bf16) weights, build lane-tiled BN0 vectors."""
    prep = {"stem_w": raw["conv0_w"].reshape(27, 16).astype(jnp.bfloat16)}
    layers = []
    cur_h, cur_w = h, w
    for lp in raw["layers"]:
        stride = lp["stride"]
        cin, cout = lp["conv0_w"].shape[2], lp["conv0_w"].shape[3]
        if stride == 1:
            assert cin == cout, "identity shortcut requires Cin == Cout"
            reps = cur_w
        else:
            reps = (cur_w // 2) * 4
        s0, b0 = _bn_fold(lp["bn0"])
        s1, b1 = _bn_fold(lp["bn1"])
        p = {"stride": stride, "Cin": cin, "Cout": cout,
             "s0t": jnp.tile(s0, reps).reshape(1, reps * cin),
             "b0t": jnp.tile(b0, reps).reshape(1, reps * cin),
             # bn1 scale folded into conv0 weights; bias applied as epilogue.
             "w0": (lp["conv0_w"] * s1[None, None, None, :]
                    ).reshape(9 * cin, cout).astype(jnp.bfloat16),
             "b1": b1.reshape(1, cout),
             "w1": lp["conv1_w"].reshape(9 * cout, cout).astype(jnp.bfloat16)}
        if stride != 1:
            ss, sb = _bn_fold(lp["skip_bn"])
            p["wsk"] = (lp["skip_w"][0, 0] * ss[None, :]).astype(jnp.bfloat16)
            p["bsk"] = sb.reshape(1, cout)
        layers.append(p)
        cur_h //= stride
        cur_w //= stride
    prep["layers"] = layers
    # Final BN commutes with the spatial mean (no ReLU in the reference between
    # bn and mean) -> fold into the head; also fold the mean over w into a
    # lane-tiled head weight matching the (h, w*C) lane-dense activation.
    sbn, bbn = _bn_fold(raw["bn"])
    w_eff = sbn[:, None] * raw["logit_w"]                     # (64, ncls)
    prep["head_w"] = jnp.tile(w_eff, (cur_w, 1)) / cur_w      # (cur_w*64, ncls)
    prep["head_b"] = (bbn @ raw["logit_w"] + raw["logit_b"]).reshape(1, -1)
    return prep


# --------------------------- pure-JAX reference ----------------------------- #

def _reference_forward(x_nchw, prep):
    """XLA conv reference with the same bf16 operand quantization as the kernels."""
    q = lambda t: t.astype(jnp.bfloat16).astype(jnp.float32)
    dn = ("NHWC", "HWIO", "NHWC")
    x = jnp.transpose(x_nchw, (0, 2, 3, 1)).astype(jnp.float32)
    w_stem = prep["stem_w"].astype(jnp.float32).reshape(3, 3, 3, 16)
    out = lax.conv_general_dilated(q(x), w_stem, (1, 1), ((1, 1), (1, 1)),
                                   dimension_numbers=dn)
    for p in prep["layers"]:
        cin, cout, s = p["Cin"], p["Cout"], p["stride"]
        s0, b0 = p["s0t"][0, :cin], p["b0t"][0, :cin]
        a = q(jnp.maximum(out * s0 + b0, 0.0))
        w0 = p["w0"].astype(jnp.float32).reshape(3, 3, cin, cout)
        w1 = p["w1"].astype(jnp.float32).reshape(3, 3, cout, cout)
        mid = lax.conv_general_dilated(a, w0, (s, s), ((1, 1), (1, 1)),
                                       dimension_numbers=dn) + p["b1"][0]
        mid = q(jnp.maximum(mid, 0.0))
        conv1 = lax.conv_general_dilated(mid, w1, (1, 1), ((1, 1), (1, 1)),
                                         dimension_numbers=dn)
        if s == 1:
            shortcut = out
        else:
            wsk = p["wsk"].astype(jnp.float32).reshape(1, 1, cin, cout)
            shortcut = lax.conv_general_dilated(a, wsk, (2, 2), ((0, 0), (0, 0)),
                                                dimension_numbers=dn) + p["bsk"][0]
        out = conv1 + shortcut
    w3, c = out.shape[2], out.shape[3]
    pooled = out.mean(axis=(1, 2))                            # (N, C)
    w_eff = prep["head_w"][:c, :] * w3
    return pooled @ w_eff + prep["head_b"]


# ---------------------------------- main ------------------------------------ #

if __name__ == "__main__":
    key = jax.random.PRNGKey(0)
    k_x, k_p = jax.random.split(key)

    # Small CIFAR-like input: batch=2, channels=3, spatial 16x16 (NCHW).
    x = jax.random.normal(k_x, (2, 3, 16, 16), jnp.float32)
    raw = init_raw_params(k_p, num_units=(1, 1, 1), num_classes=10)
    params = prepare_params(raw, 16, 16)

    forward = jax.jit(functools.partial(preact_resnet_forward, params=params))
    logits = forward(x)
    jax.block_until_ready(logits)

    assert logits.shape == (2, 10), logits.shape
    assert bool(jnp.all(jnp.isfinite(logits))), "non-finite logits"
    ref = _reference_forward(x, params)
    assert bool(jnp.allclose(logits, ref, rtol=2e-2, atol=2e-2)), (logits, ref)
    print("KERNEL_OK")
</pallas_src>

<mosaic_0001>
module attributes {stable_mosaic.version = 11 : i64} {
  func.func @kernel(%arg0: i32, %arg1: memref<1x16x256xf32, #tpu.memory_space<vmem>>, %arg2: memref<1x256xf32, #tpu.memory_space<vmem>>, %arg3: memref<1x256xf32, #tpu.memory_space<vmem>>, %arg4: memref<144x16xbf16, #tpu.memory_space<vmem>>, %arg5: memref<1x16xf32, #tpu.memory_space<vmem>>, %arg6: memref<144x16xbf16, #tpu.memory_space<vmem>>, %arg7: memref<1x16x256xf32, #tpu.memory_space<vmem>>, %arg8: memref<18x18x16xf32, #tpu.memory_space<vmem>>, %arg9: memref<18x18x16xf32, #tpu.memory_space<vmem>>) attributes {dimension_semantics = [#tpu.dimension_semantics<parallel>], iteration_bounds = array<i64: 2>, scalar_prefetch = 0 : i64, scratch_operands = 2 : i64, tpu.core_type = #tpu.core_type<tc>, window_params = [{transform_indices = @transform_0, window_bounds = array<i64: 1, 16, 256>}, {pipeline_mode = #tpu.pipeline_mode<synchronous>, transform_indices = @transform_1, window_bounds = array<i64: 1, 256>}, {pipeline_mode = #tpu.pipeline_mode<synchronous>, transform_indices = @transform_2, window_bounds = array<i64: 1, 256>}, {pipeline_mode = #tpu.pipeline_mode<synchronous>, transform_indices = @transform_3, window_bounds = array<i64: 144, 16>}, {pipeline_mode = #tpu.pipeline_mode<synchronous>, transform_indices = @transform_4, window_bounds = array<i64: 1, 16>}, {pipeline_mode = #tpu.pipeline_mode<synchronous>, transform_indices = @transform_5, window_bounds = array<i64: 144, 16>}, {transform_indices = @transform_6, window_bounds = array<i64: 1, 16, 256>}]} {
    %c0 = arith.constant 0 : index
    %c0_0 = arith.constant 0 : index
    %c0_1 = arith.constant 0 : index
    %0 = vector.load %arg1[%c0, %c0_0, %c0_1] : memref<1x16x256xf32, #tpu.memory_space<vmem>>, vector<1x16x256xf32>
    %1 = vector.shape_cast %0 : vector<1x16x256xf32> to vector<16x256xf32>
    %c0_2 = arith.constant 0 : index
    %c0_3 = arith.constant 0 : index
    %2 = vector.load %arg2[%c0_2, %c0_3] : memref<1x256xf32, #tpu.memory_space<vmem>>, vector<1x256xf32>
    %3 = vector.broadcast %2 : vector<1x256xf32> to vector<16x256xf32>
    %4 = arith.mulf %1, %3 : vector<16x256xf32>
    %c0_4 = arith.constant 0 : index
    %c0_5 = arith.constant 0 : index
    %5 = vector.load %arg3[%c0_4, %c0_5] : memref<1x256xf32, #tpu.memory_space<vmem>>, vector<1x256xf32>
    %6 = vector.broadcast %5 : vector<1x256xf32> to vector<16x256xf32>
    %7 = arith.addf %4, %6 : vector<16x256xf32>
    %cst = arith.constant 0.000000e+00 : f32
    %8 = vector.broadcast %cst : f32 to vector<16x256xf32>
    %9 = arith.maximumf %7, %8 : vector<16x256xf32>
    %cst_6 = arith.constant 0.000000e+00 : f32
    %10 = vector.broadcast %cst_6 : f32 to vector<18x18x16xf32>
    %c0_7 = arith.constant 0 : index
    %c0_8 = arith.constant 0 : index
    %c0_9 = arith.constant 0 : index
    %11 = vector.load %arg8[%c0_7, %c0_8, %c0_9] : memref<18x18x16xf32, #tpu.memory_space<vmem>>, vector<18x18x16xf32>
    tpu.vector_store %arg8[%c0_7, %c0_8, %c0_9], %10 {strides = array<i32>} : memref<18x18x16xf32, #tpu.memory_space<vmem>>, vector<18x18x16xf32>,
    %12 = vector.extract_strided_slice %9 {offsets = [0, 0], sizes = [16, 16], strides = [1, 1]} : vector<16x256xf32> to vector<16x16xf32>
    %c1 = arith.constant 1 : index
    %c1_10 = arith.constant 1 : index
    %c0_11 = arith.constant 0 : index
    %13 = vector.load %arg8[%c1, %c1_10, %c0_11] : memref<18x18x16xf32, #tpu.memory_space<vmem>>, vector<1x16x16xf32>
    %14 = vector.shape_cast %13 : vector<1x16x16xf32> to vector<16x16xf32>
    %15 = vector.shape_cast %12 : vector<16x16xf32> to vector<1x16x16xf32>
    tpu.vector_store %arg8[%c1, %c1_10, %c0_11], %15 {strides = array<i32>} : memref<18x18x16xf32, #tpu.memory_space<vmem>>, vector<1x16x16xf32>,
    %16 = vector.extract_strided_slice %9 {offsets = [0, 16], sizes = [16, 16], strides = [1, 1]} : vector<16x256xf32> to vector<16x16xf32>
    %c2 = arith.constant 2 : index
    %c1_12 = arith.constant 1 : index
    %c0_13 = arith.constant 0 : index
    %17 = vector.load %arg8[%c2, %c1_12, %c0_13] : memref<18x18x16xf32, #tpu.memory_space<vmem>>, vector<1x16x16xf32>
    %18 = vector.shape_cast %17 : vector<1x16x16xf32> to vector<16x16xf32>
    %19 = vector.shape_cast %16 : vector<16x16xf32> to vector<1x16x16xf32>
    tpu.vector_store %arg8[%c2, %c1_12, %c0_13], %19 {strides = array<i32>} : memref<18x18x16xf32, #tpu.memory_space<vmem>>, vector<1x16x16xf32>,
    %20 = vector.extract_strided_slice %9 {offsets = [0, 32], sizes = [16, 16], strides = [1, 1]} : vector<16x256xf32> to vector<16x16xf32>
    %c3 = arith.constant 3 : index
    %c1_14 = arith.constant 1 : index
    %c0_15 = arith.constant 0 : index
    %21 = vector.load %arg8[%c3, %c1_14, %c0_15] : memref<18x18x16xf32, #tpu.memory_space<vmem>>, vector<1x16x16xf32>
    %22 = vector.shape_cast %21 : vector<1x16x16xf32> to vector<16x16xf32>
    %23 = vector.shape_cast %20 : vector<16x16xf32> to vector<1x16x16xf32>
    tpu.vector_store %arg8[%c3, %c1_14, %c0_15], %23 {strides = array<i32>} : memref<18x18x16xf32, #tpu.memory_space<vmem>>, vector<1x16x16xf32>,
    %24 = vector.extract_strided_slice %9 {offsets = [0, 48], sizes = [16, 16], strides = [1, 1]} : vector<16x256xf32> to vector<16x16xf32>
    %c4 = arith.constant 4 : index
    %c1_16 = arith.constant 1 : index
    %c0_17 = arith.constant 0 : index
    %25 = vector.load %arg8[%c4, %c1_16, %c0_17] : memref<18x18x16xf32, #tpu.memory_space<vmem>>, vector<1x16x16xf32>
    %26 = vector.shape_cast %25 : vector<1x16x16xf32> to vector<16x16xf32>
    %27 = vector.shape_cast %24 : vector<16x16xf32> to vector<1x16x16xf32>
    tpu.vector_store %arg8[%c4, %c1_16, %c0_17], %27 {strides = array<i32>} : memref<18x18x16xf32, #tpu.memory_space<vmem>>, vector<1x16x16xf32>,
    %28 = vector.extract_strided_slice %9 {offsets = [0, 64], sizes = [16, 16], strides = [1, 1]} : vector<16x256xf32> to vector<16x16xf32>
    %c5 = arith.constant 5 : index
    %c1_18 = arith.constant 1 : index
    %c0_19 = arith.constant 0 : index
    %29 = vector.load %arg8[%c5, %c1_18, %c0_19] : memref<18x18x16xf32, #tpu.memory_space<vmem>>, vector<1x16x16xf32>
    %30 = vector.shape_cast %29 : vector<1x16x16xf32> to vector<16x16xf32>
    %31 = vector.shape_cast %28 : vector<16x16xf32> to vector<1x16x16xf32>
    tpu.vector_store %arg8[%c5, %c1_18, %c0_19], %31 {strides = array<i32>} : memref<18x18x16xf32, #tpu.memory_space<vmem>>, vector<1x16x16xf32>,
    %32 = vector.extract_strided_slice %9 {offsets = [0, 80], sizes = [16, 16], strides = [1, 1]} : vector<16x256xf32> to vector<16x16xf32>
    %c6 = arith.constant 6 : index
    %c1_20 = arith.constant 1 : index
    %c0_21 = arith.constant 0 : index
    %33 = vector.load %arg8[%c6, %c1_20, %c0_21] : memref<18x18x16xf32, #tpu.memory_space<vmem>>, vector<1x16x16xf32>
    %34 = vector.shape_cast %33 : vector<1x16x16xf32> to vector<16x16xf32>
    %35 = vector.shape_cast %32 : vector<16x16xf32> to vector<1x16x16xf32>
    tpu.vector_store %arg8[%c6, %c1_20, %c0_21], %35 {strides = array<i32>} : memref<18x18x16xf32, #tpu.memory_space<vmem>>, vector<1x16x16xf32>,
    %36 = vector.extract_strided_slice %9 {offsets = [0, 96], sizes = [16, 16], strides = [1, 1]} : vector<16x256xf32> to vector<16x16xf32>
    %c7 = arith.constant 7 : index
    %c1_22 = arith.constant 1 : index
    %c0_23 = arith.constant 0 : index
    %37 = vector.load %arg8[%c7, %c1_22, %c0_23] : memref<18x18x16xf32, #tpu.memory_space<vmem>>, vector<1x16x16xf32>
    %38 = vector.shape_cast %37 : vector<1x16x16xf32> to vector<16x16xf32>
    %39 = vector.shape_cast %36 : vector<16x16xf32> to vector<1x16x16xf32>
    tpu.vector_store %arg8[%c7, %c1_22, %c0_23], %39 {strides = array<i32>} : memref<18x18x16xf32, #tpu.memory_space<vmem>>, vector<1x16x16xf32>,
    %40 = vector.extract_strided_slice %9 {offsets = [0, 112], sizes = [16, 16], strides = [1, 1]} : vector<16x256xf32> to vector<16x16xf32>
    %c8 = arith.constant 8 : index
    %c1_24 = arith.constant 1 : index
    %c0_25 = arith.constant 0 : index
    %41 = vector.load %arg8[%c8, %c1_24, %c0_25] : memref<18x18x16xf32, #tpu.memory_space<vmem>>, vector<1x16x16xf32>
    %42 = vector.shape_cast %41 : vector<1x16x16xf32> to vector<16x16xf32>
    %43 = vector.shape_cast %40 : vector<16x16xf32> to vector<1x16x16xf32>
    tpu.vector_store %arg8[%c8, %c1_24, %c0_25], %43 {strides = array<i32>} : memref<18x18x16xf32, #tpu.memory_space<vmem>>, vector<1x16x16xf32>,
    %44 = vector.extract_strided_slice %9 {offsets = [0, 128], sizes = [16, 16], strides = [1, 1]} : vector<16x256xf32> to vector<16x16xf32>
    %c9 = arith.constant 9 : index
    %c1_26 = arith.constant 1 : index
    %c0_27 = arith.constant 0 : index
    %45 = vector.load %arg8[%c9, %c1_26, %c0_27] : memref<18x18x16xf32, #tpu.memory_space<vmem>>, vector<1x16x16xf32>
    %46 = vector.shape_cast %45 : vector<1x16x16xf32> to vector<16x16xf32>
    %47 = vector.shape_cast %44 : vector<16x16xf32> to vector<1x16x16xf32>
    tpu.vector_store %arg8[%c9, %c1_26, %c0_27], %47 {strides = array<i32>} : memref<18x18x16xf32, #tpu.memory_space<vmem>>, vector<1x16x16xf32>,
    %48 = vector.extract_strided_slice %9 {offsets = [0, 144], sizes = [16, 16], strides = [1, 1]} : vector<16x256xf32> to vector<16x16xf32>
    %c10 = arith.constant 10 : index
    %c1_28 = arith.constant 1 : index
    %c0_29 = arith.constant 0 : index
    %49 = vector.load %arg8[%c10, %c1_28, %c0_29] : memref<18x18x16xf32, #tpu.memory_space<vmem>>, vector<1x16x16xf32>
    %50 = vector.shape_cast %49 : vector<1x16x16xf32> to vector<16x16xf32>
    %51 = vector.shape_cast %48 : vector<16x16xf32> to vector<1x16x16xf32>
    tpu.vector_store %arg8[%c10, %c1_28, %c0_29], %51 {strides = array<i32>} : memref<18x18x16xf32, #tpu.memory_space<vmem>>, vector<1x16x16xf32>,
    %52 = vector.extract_strided_slice %9 {offsets = [0, 160], sizes = [16, 16], strides = [1, 1]} : vector<16x256xf32> to vector<16x16xf32>
    %c11 = arith.constant 11 : index
    %c1_30 = arith.constant 1 : index
    %c0_31 = arith.constant 0 : index
    %53 = vector.load %arg8[%c11, %c1_30, %c0_31] : memref<18x18x16xf32, #tpu.memory_space<vmem>>, vector<1x16x16xf32>
    %54 = vector.shape_cast %53 : vector<1x16x16xf32> to vector<16x16xf32>
    %55 = vector.shape_cast %52 : vector<16x16xf32> to vector<1x16x16xf32>
    tpu.vector_store %arg8[%c11, %c1_30, %c0_31], %55 {strides = array<i32>} : memref<18x18x16xf32, #tpu.memory_space<vmem>>, vector<1x16x16xf32>,
    %56 = vector.extract_strided_slice %9 {offsets = [0, 176], sizes = [16, 16], strides = [1, 1]} : vector<16x256xf32> to vector<16x16xf32>
    %c12 = arith.constant 12 : index
    %c1_32 = arith.constant 1 : index
    %c0_33 = arith.constant 0 : index
    %57 = vector.load %arg8[%c12, %c1_32, %c0_33] : memref<18x18x16xf32, #tpu.memory_space<vmem>>, vector<1x16x16xf32>
    %58 = vector.shape_cast %57 : vector<1x16x16xf32> to vector<16x16xf32>
    %59 = vector.shape_cast %56 : vector<16x16xf32> to vector<1x16x16xf32>
    tpu.vector_store %arg8[%c12, %c1_32, %c0_33], %59 {strides = array<i32>} : memref<18x18x16xf32, #tpu.memory_space<vmem>>, vector<1x16x16xf32>,
    %60 = vector.extract_strided_slice %9 {offsets = [0, 192], sizes = [16, 16], strides = [1, 1]} : vector<16x256xf32> to vector<16x16xf32>
    %c13 = arith.constant 13 : index
    %c1_34 = arith.constant 1 : index
    %c0_35 = arith.constant 0 : index
    %61 = vector.load %arg8[%c13, %c1_34, %c0_35] : memref<18x18x16xf32, #tpu.memory_space<vmem>>, vector<1x16x16xf32>
    %62 = vector.shape_cast %61 : vector<1x16x16xf32> to vector<16x16xf32>
    %63 = vector.shape_cast %60 : vector<16x16xf32> to vector<1x16x16xf32>
    tpu.vector_store %arg8[%c13, %c1_34, %c0_35], %63 {strides = array<i32>} : memref<18x18x16xf32, #tpu.memory_space<vmem>>, vector<1x16x16xf32>,
    %64 = vector.extract_strided_slice %9 {offsets = [0, 208], sizes = [16, 16], strides = [1, 1]} : vector<16x256xf32> to vector<16x16xf32>
    %c14 = arith.constant 14 : index
    %c1_36 = arith.constant 1 : index
    %c0_37 = arith.constant 0 : index
    %65 = vector.load %arg8[%c14, %c1_36, %c0_37] : memref<18x18x16xf32, #tpu.memory_space<vmem>>, vector<1x16x16xf32>
    %66 = vector.shape_cast %65 : vector<1x16x16xf32> to vector<16x16xf32>
    %67 = vector.shape_cast %64 : vector<16x16xf32> to vector<1x16x16xf32>
    tpu.vector_store %arg8[%c14, %c1_36, %c0_37], %67 {strides = array<i32>} : memref<18x18x16xf32, #tpu.memory_space<vmem>>, vector<1x16x16xf32>,
    %68 = vector.extract_strided_slice %9 {offsets = [0, 224], sizes = [16, 16], strides = [1, 1]} : vector<16x256xf32> to vector<16x16xf32>
    %c15 = arith.constant 15 : index
    %c1_38 = arith.constant 1 : index
    %c0_39 = arith.constant 0 : index
    %69 = vector.load %arg8[%c15, %c1_38, %c0_39] : memref<18x18x16xf32, #tpu.memory_space<vmem>>, vector<1x16x16xf32>
    %70 = vector.shape_cast %69 : vector<1x16x16xf32> to vector<16x16xf32>
    %71 = vector.shape_cast %68 : vector<16x16xf32> to vector<1x16x16xf32>
    tpu.vector_store %arg8[%c15, %c1_38, %c0_39], %71 {strides = array<i32>} : memref<18x18x16xf32, #tpu.memory_space<vmem>>, vector<1x16x16xf32>,
    %72 = vector.extract_strided_slice %9 {offsets = [0, 240], sizes = [16, 16], strides = [1, 1]} : vector<16x256xf32> to vector<16x16xf32>
    %c16 = arith.constant 16 : index
    %c1_40 = arith.constant 1 : index
    %c0_41 = arith.constant 0 : index
    %73 = vector.load %arg8[%c16, %c1_40, %c0_41] : memref<18x18x16xf32, #tpu.memory_space<vmem>>, vector<1x16x16xf32>
    %74 = vector.shape_cast %73 : vector<1x16x16xf32> to vector<16x16xf32>
    %75 = vector.shape_cast %72 : vector<16x16xf32> to vector<1x16x16xf32>
    tpu.vector_store %arg8[%c16, %c1_40, %c0_41], %75 {strides = array<i32>} : memref<18x18x16xf32, #tpu.memory_space<vmem>>, vector<1x16x16xf32>,
    %c0_42 = arith.constant 0 : index
    %c0_43 = arith.constant 0 : index
    %c0_44 = arith.constant 0 : index
    %76 = vector.load %arg8[%c0_42, %c0_43, %c0_44] : memref<18x18x16xf32, #tpu.memory_space<vmem>>, vector<18x18x16xf32>
    %77 = vector.extract_strided_slice %76 {offsets = [0, 0, 0], sizes = [16, 16, 16], strides = [1, 1, 1]} : vector<18x18x16xf32> to vector<16x16x16xf32>
    %78 = vector.extract_strided_slice %76 {offsets = [1, 0, 0], sizes = [16, 16, 16], strides = [1, 1, 1]} : vector<18x18x16xf32> to vector<16x16x16xf32>
    %79 = vector.extract_strided_slice %76 {offsets = [2, 0, 0], sizes = [16, 16, 16], strides = [1, 1, 1]} : vector<18x18x16xf32> to vector<16x16x16xf32>
    %80 = vector.extract_strided_slice %76 {offsets = [0, 1, 0], sizes = [16, 16, 16], strides = [1, 1, 1]} : vector<18x18x16xf32> to vector<16x16x16xf32>
    %81 = vector.extract_strided_slice %76 {offsets = [1, 1, 0], sizes = [16, 16, 16], strides = [1, 1, 1]} : vector<18x18x16xf32> to vector<16x16x16xf32>
    %82 = vector.extract_strided_slice %76 {offsets = [2, 1, 0], sizes = [16, 16, 16], strides = [1, 1, 1]} : vector<18x18x16xf32> to vector<16x16x16xf32>
    %83 = vector.extract_strided_slice %76 {offsets = [0, 2, 0], sizes = [16, 16, 16], strides = [1, 1, 1]} : vector<18x18x16xf32> to vector<16x16x16xf32>
    %84 = vector.extract_strided_slice %76 {offsets = [1, 2, 0], sizes = [16, 16, 16], strides = [1, 1, 1]} : vector<18x18x16xf32> to vector<16x16x16xf32>
    %85 = vector.extract_strided_slice %76 {offsets = [2, 2, 0], sizes = [16, 16, 16], strides = [1, 1, 1]} : vector<18x18x16xf32> to vector<16x16x16xf32>
    %86 = tpu.concatenate %77, %78, %79, %80, %81, %82, %83, %84, %85 in 2 : vector<16x16x16xf32>, vector<16x16x16xf32>, vector<16x16x16xf32>, vector<16x16x16xf32>, vector<16x16x16xf32>, vector<16x16x16xf32>, vector<16x16x16xf32>, vector<16x16x16xf32>, vector<16x16x16xf32> -> vector<16x16x144xf32>
    %87 = vector.shape_cast %86 : vector<16x16x144xf32> to vector<256x144xf32>
    %88 = arith.truncf %87 : vector<256x144xf32> to vector<256x144xbf16>
    %c0_45 = arith.constant 0 : index
    %c0_46 = arith.constant 0 : index
    %89 = vector.load %arg4[%c0_45, %c0_46] : memref<144x16xbf16, #tpu.memory_space<vmem>>, vector<144x16xbf16>
    %cst_47 = arith.constant dense<0.000000e+00> : vector<256x16xf32>
    %90 = tpu.matmul %88, %89, %cst_47 {dimension_numbers = #tpu.dot_dimension_numbers<[1], [0], [0], [1], [0, 0, 1, 1], [], []>} : vector<256x144xbf16>, vector<144x16xbf16>, vector<256x16xf32> -> vector<256x16xf32>
    %c0_48 = arith.constant 0 : index
    %c0_49 = arith.constant 0 : index
    %91 = vector.load %arg5[%c0_48, %c0_49] : memref<1x16xf32, #tpu.memory_space<vmem>>, vector<1x16xf32>
    %92 = vector.broadcast %91 : vector<1x16xf32> to vector<256x16xf32>
    %93 = arith.addf %90, %92 : vector<256x16xf32>
    %cst_50 = arith.constant 0.000000e+00 : f32
    %94 = vector.broadcast %cst_50 : f32 to vector<256x16xf32>
    %95 = arith.maximumf %93, %94 : vector<256x16xf32>
    %cst_51 = arith.constant 0.000000e+00 : f32
    %96 = vector.broadcast %cst_51 : f32 to vector<18x18x16xf32>
    %c0_52 = arith.constant 0 : index
    %c0_53 = arith.constant 0 : index
    %c0_54 = arith.constant 0 : index
    %97 = vector.load %arg9[%c0_52, %c0_53, %c0_54] : memref<18x18x16xf32, #tpu.memory_space<vmem>>, vector<18x18x16xf32>
    tpu.vector_store %arg9[%c0_52, %c0_53, %c0_54], %96 {strides = array<i32>} : memref<18x18x16xf32, #tpu.memory_space<vmem>>, vector<18x18x16xf32>,
    %98 = vector.shape_cast %95 : vector<256x16xf32> to vector<16x16x16xf32>
    %c1_55 = arith.constant 1 : index
    %c1_56 = arith.constant 1 : index
    %c0_57 = arith.constant 0 : index
    %99 = vector.load %arg9[%c1_55, %c1_56, %c0_57] : memref<18x18x16xf32, #tpu.memory_space<vmem>>, vector<16x16x16xf32>
    tpu.vector_store %arg9[%c1_55, %c1_56, %c0_57], %98 {strides = array<i32>} : memref<18x18x16xf32, #tpu.memory_space<vmem>>, vector<16x16x16xf32>,
    %c0_58 = arith.constant 0 : index
    %c0_59 = arith.constant 0 : index
    %c0_60 = arith.constant 0 : index
    %100 = vector.load %arg9[%c0_58, %c0_59, %c0_60] : memref<18x18x16xf32, #tpu.memory_space<vmem>>, vector<18x18x16xf32>
    %101 = vector.extract_strided_slice %100 {offsets = [0, 0, 0], sizes = [16, 16, 16], strides = [1, 1, 1]} : vector<18x18x16xf32> to vector<16x16x16xf32>
    %102 = vector.extract_strided_slice %100 {offsets = [1, 0, 0], sizes = [16, 16, 16], strides = [1, 1, 1]} : vector<18x18x16xf32> to vector<16x16x16xf32>
    %103 = vector.extract_strided_slice %100 {offsets = [2, 0, 0], sizes = [16, 16, 16], strides = [1, 1, 1]} : vector<18x18x16xf32> to vector<16x16x16xf32>
    %104 = vector.extract_strided_slice %100 {offsets = [0, 1, 0], sizes = [16, 16, 16], strides = [1, 1, 1]} : vector<18x18x16xf32> to vector<16x16x16xf32>
    %105 = vector.extract_strided_slice %100 {offsets = [1, 1, 0], sizes = [16, 16, 16], strides = [1, 1, 1]} : vector<18x18x16xf32> to vector<16x16x16xf32>
    %106 = vector.extract_strided_slice %100 {offsets = [2, 1, 0], sizes = [16, 16, 16], strides = [1, 1, 1]} : vector<18x18x16xf32> to vector<16x16x16xf32>
    %107 = vector.extract_strided_slice %100 {offsets = [0, 2, 0], sizes = [16, 16, 16], strides = [1, 1, 1]} : vector<18x18x16xf32> to vector<16x16x16xf32>
    %108 = vector.extract_strided_slice %100 {offsets = [1, 2, 0], sizes = [16, 16, 16], strides = [1, 1, 1]} : vector<18x18x16xf32> to vector<16x16x16xf32>
    %109 = vector.extract_strided_slice %100 {offsets = [2, 2, 0], sizes = [16, 16, 16], strides = [1, 1, 1]} : vector<18x18x16xf32> to vector<16x16x16xf32>
    %110 = tpu.concatenate %101, %102, %103, %104, %105, %106, %107, %108, %109 in 2 : vector<16x16x16xf32>, vector<16x16x16xf32>, vector<16x16x16xf32>, vector<16x16x16xf32>, vector<16x16x16xf32>, vector<16x16x16xf32>, vector<16x16x16xf32>, vector<16x16x16xf32>, vector<16x16x16xf32> -> vector<16x16x144xf32>
    %111 = vector.shape_cast %110 : vector<16x16x144xf32> to vector<256x144xf32>
    %112 = arith.truncf %111 : vector<256x144xf32> to vector<256x144xbf16>
    %c0_61 = arith.constant 0 : index
    %c0_62 = arith.constant 0 : index
    %113 = vector.load %arg6[%c0_61, %c0_62] : memref<144x16xbf16, #tpu.memory_space<vmem>>, vector<144x16xbf16>
    %cst_63 = arith.constant dense<0.000000e+00> : vector<256x16xf32>
    %114 = tpu.matmul %112, %113, %cst_63 {dimension_numbers = #tpu.dot_dimension_numbers<[1], [0], [0], [1], [0, 0, 1, 1], [], []>} : vector<256x144xbf16>, vector<144x16xbf16>, vector<256x16xf32> -> vector<256x16xf32>
    %115 = vector.extract_strided_slice %114 {offsets = [0, 0], sizes = [16, 16], strides = [1, 1]} : vector<256x16xf32> to vector<16x16xf32>
    %116 = vector.extract_strided_slice %114 {offsets = [16, 0], sizes = [16, 16], strides = [1, 1]} : vector<256x16xf32> to vector<16x16xf32>
    %117 = vector.extract_strided_slice %114 {offsets = [32, 0], sizes = [16, 16], strides = [1, 1]} : vector<256x16xf32> to vector<16x16xf32>
    %118 = vector.extract_strided_slice %114 {offsets = [48, 0], sizes = [16, 16], strides = [1, 1]} : vector<256x16xf32> to vector<16x16xf32>
    %119 = vector.extract_strided_slice %114 {offsets = [64, 0], sizes = [16, 16], strides = [1, 1]} : vector<256x16xf32> to vector<16x16xf32>
    %120 = vector.extract_strided_slice %114 {offsets = [80, 0], sizes = [16, 16], strides = [1, 1]} : vector<256x16xf32> to vector<16x16xf32>
    %121 = vector.extract_strided_slice %114 {offsets = [96, 0], sizes = [16, 16], strides = [1, 1]} : vector<256x16xf32> to vector<16x16xf32>
    %122 = vector.extract_strided_slice %114 {offsets = [112, 0], sizes = [16, 16], strides = [1, 1]} : vector<256x16xf32> to vector<16x16xf32>
    %123 = vector.extract_strided_slice %114 {offsets = [128, 0], sizes = [16, 16], strides = [1, 1]} : vector<256x16xf32> to vector<16x16xf32>
    %124 = vector.extract_strided_slice %114 {offsets = [144, 0], sizes = [16, 16], strides = [1, 1]} : vector<256x16xf32> to vector<16x16xf32>
    %125 = vector.extract_strided_slice %114 {offsets = [160, 0], sizes = [16, 16], strides = [1, 1]} : vector<256x16xf32> to vector<16x16xf32>
    %126 = vector.extract_strided_slice %114 {offsets = [176, 0], sizes = [16, 16], strides = [1, 1]} : vector<256x16xf32> to vector<16x16xf32>
    %127 = vector.extract_strided_slice %114 {offsets = [192, 0], sizes = [16, 16], strides = [1, 1]} : vector<256x16xf32> to vector<16x16xf32>
    %128 = vector.extract_strided_slice %114 {offsets = [208, 0], sizes = [16, 16], strides = [1, 1]} : vector<256x16xf32> to vector<16x16xf32>
    %129 = vector.extract_strided_slice %114 {offsets = [224, 0], sizes = [16, 16], strides = [1, 1]} : vector<256x16xf32> to vector<16x16xf32>
    %130 = vector.extract_strided_slice %114 {offsets = [240, 0], sizes = [16, 16], strides = [1, 1]} : vector<256x16xf32> to vector<16x16xf32>
    %131 = tpu.concatenate %115, %116, %117, %118, %119, %120, %121, %122, %123, %124, %125, %126, %127, %128, %129, %130 in 1 : vector<16x16xf32>, vector<16x16xf32>, vector<16x16xf32>, vector<16x16xf32>, vector<16x16xf32>, vector<16x16xf32>, vector<16x16xf32>, vector<16x16xf32>, vector<16x16xf32>, vector<16x16xf32>, vector<16x16xf32>, vector<16x16xf32>, vector<16x16xf32>, vector<16x16xf32>, vector<16x16xf32>, vector<16x16xf32> -> vector<16x256xf32>
    %132 = arith.addf %131, %1 : vector<16x256xf32>
    %c0_64 = arith.constant 0 : index
    %c0_65 = arith.constant 0 : index
    %c0_66 = arith.constant 0 : index
    %133 = vector.load %arg7[%c0_64, %c0_65, %c0_66] : memref<1x16x256xf32, #tpu.memory_space<vmem>>, vector<1x16x256xf32>
    %134 = vector.shape_cast %133 : vector<1x16x256xf32> to vector<16x256xf32>
    %135 = vector.shape_cast %132 : vector<16x256xf32> to vector<1x16x256xf32>
    tpu.vector_store %arg7[%c0_64, %c0_65, %c0_66], %135 {strides = array<i32>} : memref<1x16x256xf32, #tpu.memory_space<vmem>>, vector<1x16x256xf32>,
    return
  }
  func.func @transform_0(%arg0: i32) -> (i32, i32, i32) {
    %c0_i32 = arith.constant 0 : i32
    %c0_i32_0 = arith.constant 0 : i32
    %c0_i32_1 = arith.constant 0 : i32
    return %arg0, %c0_i32, %c0_i32_0 : i32, i32, i32
  }
  func.func @transform_1(%arg0: i32) -> (i32, i32) {
    %c0_i32 = arith.constant 0 : i32
    %c0_i32_0 = arith.constant 0 : i32
    %c0_i32_1 = arith.constant 0 : i32
    return %c0_i32, %c0_i32_0 : i32, i32
  }
  func.func @transform_2(%arg0: i32) -> (i32, i32) {
    %c0_i32 = arith.constant 0 : i32
    %c0_i32_0 = arith.constant 0 : i32
    %c0_i32_1 = arith.constant 0 : i32
    return %c0_i32, %c0_i32_0 : i32, i32
  }
  func.func @transform_3(%arg0: i32) -> (i32, i32) {
    %c0_i32 = arith.constant 0 : i32
    %c0_i32_0 = arith.constant 0 : i32
    %c0_i32_1 = arith.constant 0 : i32
    return %c0_i32, %c0_i32_0 : i32, i32
  }
  func.func @transform_4(%arg0: i32) -> (i32, i32) {
    %c0_i32 = arith.constant 0 : i32
    %c0_i32_0 = arith.constant 0 : i32
    %c0_i32_1 = arith.constant 0 : i32
    return %c0_i32, %c0_i32_0 : i32, i32
  }
  func.func @transform_5(%arg0: i32) -> (i32, i32) {
    %c0_i32 = arith.constant 0 : i32
    %c0_i32_0 = arith.constant 0 : i32
    %c0_i32_1 = arith.constant 0 : i32
    return %c0_i32, %c0_i32_0 : i32, i32
  }
  func.func @transform_6(%arg0: i32) -> (i32, i32, i32) {
    %c0_i32 = arith.constant 0 : i32
    %c0_i32_0 = arith.constant 0 : i32
    %c0_i32_1 = arith.constant 0 : i32
    return %arg0, %c0_i32, %c0_i32_0 : i32, i32, i32
  }
}

module attributes {stable_mosaic.version = 11 : i64} {
  func.func @kernel(%arg0: i32, %arg1: memref<1x16x16x3xf32, #tpu.memory_space<vmem>>, %arg2: memref<27x16xbf16, #tpu.memory_space<vmem>>, %arg3: memref<1x16x256xf32, #tpu.memory_space<vmem>>, %arg4: memref<18x18x3xf32, #tpu.memory_space<vmem>>) attributes {dimension_semantics = [#tpu.dimension_semantics<parallel>], iteration_bounds = array<i64: 2>, scalar_prefetch = 0 : i64, scratch_operands = 1 : i64, tpu.core_type = #tpu.core_type<tc>, window_params = [{transform_indices = @transform_0, window_bounds = array<i64: 1, 16, 16, 3>}, {pipeline_mode = #tpu.pipeline_mode<synchronous>, transform_indices = @transform_1, window_bounds = array<i64: 27, 16>}, {transform_indices = @transform_2, window_bounds = array<i64: 1, 16, 256>}]} {
    %cst = arith.constant 0.000000e+00 : f32
    %0 = vector.broadcast %cst : f32 to vector<18x18x3xf32>
    %c0 = arith.constant 0 : index
    %c0_0 = arith.constant 0 : index
    %c0_1 = arith.constant 0 : index
    %1 = vector.load %arg4[%c0, %c0_0, %c0_1] : memref<18x18x3xf32, #tpu.memory_space<vmem>>, vector<18x18x3xf32>
    tpu.vector_store %arg4[%c0, %c0_0, %c0_1], %0 {strides = array<i32>} : memref<18x18x3xf32, #tpu.memory_space<vmem>>, vector<18x18x3xf32>,
    %c0_2 = arith.constant 0 : index
    %c0_3 = arith.constant 0 : index
    %c0_4 = arith.constant 0 : index
    %c0_5 = arith.constant 0 : index
    %2 = vector.load %arg1[%c0_2, %c0_3, %c0_4, %c0_5] : memref<1x16x16x3xf32, #tpu.memory_space<vmem>>, vector<1x16x16x3xf32>
    %3 = vector.shape_cast %2 : vector<1x16x16x3xf32> to vector<16x16x3xf32>
    %c1 = arith.constant 1 : index
    %c1_6 = arith.constant 1 : index
    %c0_7 = arith.constant 0 : index
    %4 = vector.load %arg4[%c1, %c1_6, %c0_7] : memref<18x18x3xf32, #tpu.memory_space<vmem>>, vector<16x16x3xf32>
    tpu.vector_store %arg4[%c1, %c1_6, %c0_7], %3 {strides = array<i32>} : memref<18x18x3xf32, #tpu.memory_space<vmem>>, vector<16x16x3xf32>,
    %c0_8 = arith.constant 0 : index
    %c0_9 = arith.constant 0 : index
    %c0_10 = arith.constant 0 : index
    %5 = vector.load %arg4[%c0_8, %c0_9, %c0_10] : memref<18x18x3xf32, #tpu.memory_space<vmem>>, vector<18x18x3xf32>
    %6 = vector.extract_strided_slice %5 {offsets = [0, 0, 0], sizes = [16, 16, 3], strides = [1, 1, 1]} : vector<18x18x3xf32> to vector<16x16x3xf32>
    %7 = vector.extract_strided_slice %5 {offsets = [1, 0, 0], sizes = [16, 16, 3], strides = [1, 1, 1]} : vector<18x18x3xf32> to vector<16x16x3xf32>
    %8 = vector.extract_strided_slice %5 {offsets = [2, 0, 0], sizes = [16, 16, 3], strides = [1, 1, 1]} : vector<18x18x3xf32> to vector<16x16x3xf32>
    %9 = vector.extract_strided_slice %5 {offsets = [0, 1, 0], sizes = [16, 16, 3], strides = [1, 1, 1]} : vector<18x18x3xf32> to vector<16x16x3xf32>
    %10 = vector.extract_strided_slice %5 {offsets = [1, 1, 0], sizes = [16, 16, 3], strides = [1, 1, 1]} : vector<18x18x3xf32> to vector<16x16x3xf32>
    %11 = vector.extract_strided_slice %5 {offsets = [2, 1, 0], sizes = [16, 16, 3], strides = [1, 1, 1]} : vector<18x18x3xf32> to vector<16x16x3xf32>
    %12 = vector.extract_strided_slice %5 {offsets = [0, 2, 0], sizes = [16, 16, 3], strides = [1, 1, 1]} : vector<18x18x3xf32> to vector<16x16x3xf32>
    %13 = vector.extract_strided_slice %5 {offsets = [1, 2, 0], sizes = [16, 16, 3], strides = [1, 1, 1]} : vector<18x18x3xf32> to vector<16x16x3xf32>
    %14 = vector.extract_strided_slice %5 {offsets = [2, 2, 0], sizes = [16, 16, 3], strides = [1, 1, 1]} : vector<18x18x3xf32> to vector<16x16x3xf32>
    %15 = tpu.concatenate %6, %7, %8, %9, %10, %11, %12, %13, %14 in 2 : vector<16x16x3xf32>, vector<16x16x3xf32>, vector<16x16x3xf32>, vector<16x16x3xf32>, vector<16x16x3xf32>, vector<16x16x3xf32>, vector<16x16x3xf32>, vector<16x16x3xf32>, vector<16x16x3xf32> -> vector<16x16x27xf32>
    %16 = vector.shape_cast %15 : vector<16x16x27xf32> to vector<256x27xf32>
    %17 = arith.truncf %16 : vector<256x27xf32> to vector<256x27xbf16>
    %c0_11 = arith.constant 0 : index
    %c0_12 = arith.constant 0 : index
    %18 = vector.load %arg2[%c0_11, %c0_12] : memref<27x16xbf16, #tpu.memory_space<vmem>>, vector<27x16xbf16>
    %cst_13 = arith.constant dense<0.000000e+00> : vector<256x16xf32>
    %19 = tpu.matmul %17, %18, %cst_13 {dimension_numbers = #tpu.dot_dimension_numbers<[1], [0], [0], [1], [0, 0, 1, 1], [], []>} : vector<256x27xbf16>, vector<27x16xbf16>, vector<256x16xf32> -> vector<256x16xf32>
    %20 = vector.extract_strided_slice %19 {offsets = [0, 0], sizes = [16, 16], strides = [1, 1]} : vector<256x16xf32> to vector<16x16xf32>
    %21 = vector.extract_strided_slice %19 {offsets = [16, 0], sizes = [16, 16], strides = [1, 1]} : vector<256x16xf32> to vector<16x16xf32>
    %22 = vector.extract_strided_slice %19 {offsets = [32, 0], sizes = [16, 16], strides = [1, 1]} : vector<256x16xf32> to vector<16x16xf32>
    %23 = vector.extract_strided_slice %19 {offsets = [48, 0], sizes = [16, 16], strides = [1, 1]} : vector<256x16xf32> to vector<16x16xf32>
    %24 = vector.extract_strided_slice %19 {offsets = [64, 0], sizes = [16, 16], strides = [1, 1]} : vector<256x16xf32> to vector<16x16xf32>
    %25 = vector.extract_strided_slice %19 {offsets = [80, 0], sizes = [16, 16], strides = [1, 1]} : vector<256x16xf32> to vector<16x16xf32>
    %26 = vector.extract_strided_slice %19 {offsets = [96, 0], sizes = [16, 16], strides = [1, 1]} : vector<256x16xf32> to vector<16x16xf32>
    %27 = vector.extract_strided_slice %19 {offsets = [112, 0], sizes = [16, 16], strides = [1, 1]} : vector<256x16xf32> to vector<16x16xf32>
    %28 = vector.extract_strided_slice %19 {offsets = [128, 0], sizes = [16, 16], strides = [1, 1]} : vector<256x16xf32> to vector<16x16xf32>
    %29 = vector.extract_strided_slice %19 {offsets = [144, 0], sizes = [16, 16], strides = [1, 1]} : vector<256x16xf32> to vector<16x16xf32>
    %30 = vector.extract_strided_slice %19 {offsets = [160, 0], sizes = [16, 16], strides = [1, 1]} : vector<256x16xf32> to vector<16x16xf32>
    %31 = vector.extract_strided_slice %19 {offsets = [176, 0], sizes = [16, 16], strides = [1, 1]} : vector<256x16xf32> to vector<16x16xf32>
    %32 = vector.extract_strided_slice %19 {offsets = [192, 0], sizes = [16, 16], strides = [1, 1]} : vector<256x16xf32> to vector<16x16xf32>
    %33 = vector.extract_strided_slice %19 {offsets = [208, 0], sizes = [16, 16], strides = [1, 1]} : vector<256x16xf32> to vector<16x16xf32>
    %34 = vector.extract_strided_slice %19 {offsets = [224, 0], sizes = [16, 16], strides = [1, 1]} : vector<256x16xf32> to vector<16x16xf32>
    %35 = vector.extract_strided_slice %19 {offsets = [240, 0], sizes = [16, 16], strides = [1, 1]} : vector<256x16xf32> to vector<16x16xf32>
    %36 = tpu.concatenate %20, %21, %22, %23, %24, %25, %26, %27, %28, %29, %30, %31, %32, %33, %34, %35 in 1 : vector<16x16xf32>, vector<16x16xf32>, vector<16x16xf32>, vector<16x16xf32>, vector<16x16xf32>, vector<16x16xf32>, vector<16x16xf32>, vector<16x16xf32>, vector<16x16xf32>, vector<16x16xf32>, vector<16x16xf32>, vector<16x16xf32>, vector<16x16xf32>, vector<16x16xf32>, vector<16x16xf32>, vector<16x16xf32> -> vector<16x256xf32>
    %c0_14 = arith.constant 0 : index
    %c0_15 = arith.constant 0 : index
    %c0_16 = arith.constant 0 : index
    %37 = vector.load %arg3[%c0_14, %c0_15, %c0_16] : memref<1x16x256xf32, #tpu.memory_space<vmem>>, vector<1x16x256xf32>
    %38 = vector.shape_cast %37 : vector<1x16x256xf32> to vector<16x256xf32>
    %39 = vector.shape_cast %36 : vector<16x256xf32> to vector<1x16x256xf32>
    tpu.vector_store %arg3[%c0_14, %c0_15, %c0_16], %39 {strides = array<i32>} : memref<1x16x256xf32, #tpu.memory_space<vmem>>, vector<1x16x256xf32>,
    return
  }
  func.func @transform_0(%arg0: i32) -> (i32, i32, i32, i32) {
    %c0_i32 = arith.constant 0 : i32
    %c0_i32_0 = arith.constant 0 : i32
    %c0_i32_1 = arith.constant 0 : i32
    %c0_i32_2 = arith.constant 0 : i32
    return %arg0, %c0_i32, %c0_i32_0, %c0_i32_1 : i32, i32, i32, i32
  }
  func.func @transform_1(%arg0: i32) -> (i32, i32) {
    %c0_i32 = arith.constant 0 : i32
    %c0_i32_0 = arith.constant 0 : i32
    %c0_i32_1 = arith.constant 0 : i32
    return %c0_i32, %c0_i32_0 : i32, i32
  }
  func.func @transform_2(%arg0: i32) -> (i32, i32, i32) {
    %c0_i32 = arith.constant 0 : i32
    %c0_i32_0 = arith.constant 0 : i32
    %c0_i32_1 = arith.constant 0 : i32
    return %arg0, %c0_i32, %c0_i32_0 : i32, i32, i32
  }
}

module attributes {stable_mosaic.version = 11 : i64} {
  func.func @kernel(%arg0: i32, %arg1: memref<1x8x512xf32, #tpu.memory_space<vmem>>, %arg2: memref<1x512xf32, #tpu.memory_space<vmem>>, %arg3: memref<1x512xf32, #tpu.memory_space<vmem>>, %arg4: memref<144x32xbf16, #tpu.memory_space<vmem>>, %arg5: memref<1x32xf32, #tpu.memory_space<vmem>>, %arg6: memref<16x32xbf16, #tpu.memory_space<vmem>>, %arg7: memref<1x32xf32, #tpu.memory_space<vmem>>, %arg8: memref<288x32xbf16, #tpu.memory_space<vmem>>, %arg9: memref<1x8x256xf32, #tpu.memory_space<vmem>>, %arg10: memref<9x9x64xf32, #tpu.memory_space<vmem>>, %arg11: memref<10x10x32xf32, #tpu.memory_space<vmem>>) attributes {dimension_semantics = [#tpu.dimension_semantics<parallel>], iteration_bounds = array<i64: 2>, scalar_prefetch = 0 : i64, scratch_operands = 2 : i64, tpu.core_type = #tpu.core_type<tc>, window_params = [{transform_indices = @transform_0, window_bounds = array<i64: 1, 8, 512>}, {pipeline_mode = #tpu.pipeline_mode<synchronous>, transform_indices = @transform_1, window_bounds = array<i64: 1, 512>}, {pipeline_mode = #tpu.pipeline_mode<synchronous>, transform_indices = @transform_2, window_bounds = array<i64: 1, 512>}, {pipeline_mode = #tpu.pipeline_mode<synchronous>, transform_indices = @transform_3, window_bounds = array<i64: 144, 32>}, {pipeline_mode = #tpu.pipeline_mode<synchronous>, transform_indices = @transform_4, window_bounds = array<i64: 1, 32>}, {pipeline_mode = #tpu.pipeline_mode<synchronous>, transform_indices = @transform_5, window_bounds = array<i64: 16, 32>}, {pipeline_mode = #tpu.pipeline_mode<synchronous>, transform_indices = @transform_6, window_bounds = array<i64: 1, 32>}, {pipeline_mode = #tpu.pipeline_mode<synchronous>, transform_indices = @transform_7, window_bounds = array<i64: 288, 32>}, {transform_indices = @transform_8, window_bounds = array<i64: 1, 8, 256>}]} {
    %c0 = arith.constant 0 : index
    %c0_0 = arith.constant 0 : index
    %c0_1 = arith.constant 0 : index
    %0 = vector.load %arg1[%c0, %c0_0, %c0_1] : memref<1x8x512xf32, #tpu.memory_space<vmem>>, vector<1x8x512xf32>
    %1 = vector.shape_cast %0 : vector<1x8x512xf32> to vector<8x512xf32>
    %c0_2 = arith.constant 0 : index
    %c0_3 = arith.constant 0 : index
    %2 = vector.load %arg2[%c0_2, %c0_3] : memref<1x512xf32, #tpu.memory_space<vmem>>, vector<1x512xf32>
    %3 = vector.broadcast %2 : vector<1x512xf32> to vector<8x512xf32>
    %4 = arith.mulf %1, %3 : vector<8x512xf32>
    %c0_4 = arith.constant 0 : index
    %c0_5 = arith.constant 0 : index
    %5 = vector.load %arg3[%c0_4, %c0_5] : memref<1x512xf32, #tpu.memory_space<vmem>>, vector<1x512xf32>
    %6 = vector.broadcast %5 : vector<1x512xf32> to vector<8x512xf32>
    %7 = arith.addf %4, %6 : vector<8x512xf32>
    %cst = arith.constant 0.000000e+00 : f32
    %8 = vector.broadcast %cst : f32 to vector<8x512xf32>
    %9 = arith.maximumf %7, %8 : vector<8x512xf32>
    %cst_6 = arith.constant 0.000000e+00 : f32
    %10 = vector.broadcast %cst_6 : f32 to vector<9x9x64xf32>
    %c0_7 = arith.constant 0 : index
    %c0_8 = arith.constant 0 : index
    %c0_9 = arith.constant 0 : index
    %11 = vector.load %arg10[%c0_7, %c0_8, %c0_9] : memref<9x9x64xf32, #tpu.memory_space<vmem>>, vector<9x9x64xf32>
    tpu.vector_store %arg10[%c0_7, %c0_8, %c0_9], %10 {strides = array<i32>} : memref<9x9x64xf32, #tpu.memory_space<vmem>>, vector<9x9x64xf32>,
    %12 = vector.extract_strided_slice %9 {offsets = [0, 0], sizes = [8, 64], strides = [1, 1]} : vector<8x512xf32> to vector<8x64xf32>
    %c1 = arith.constant 1 : index
    %c1_10 = arith.constant 1 : index
    %c0_11 = arith.constant 0 : index
    %13 = vector.load %arg10[%c1, %c1_10, %c0_11] : memref<9x9x64xf32, #tpu.memory_space<vmem>>, vector<1x8x64xf32>
    %14 = vector.shape_cast %13 : vector<1x8x64xf32> to vector<8x64xf32>
    %15 = vector.shape_cast %12 : vector<8x64xf32> to vector<1x8x64xf32>
    tpu.vector_store %arg10[%c1, %c1_10, %c0_11], %15 {strides = array<i32>} : memref<9x9x64xf32, #tpu.memory_space<vmem>>, vector<1x8x64xf32>,
    %16 = vector.extract_strided_slice %9 {offsets = [0, 64], sizes = [8, 64], strides = [1, 1]} : vector<8x512xf32> to vector<8x64xf32>
    %c2 = arith.constant 2 : index
    %c1_12 = arith.constant 1 : index
    %c0_13 = arith.constant 0 : index
    %17 = vector.load %arg10[%c2, %c1_12, %c0_13] : memref<9x9x64xf32, #tpu.memory_space<vmem>>, vector<1x8x64xf32>
    %18 = vector.shape_cast %17 : vector<1x8x64xf32> to vector<8x64xf32>
    %19 = vector.shape_cast %16 : vector<8x64xf32> to vector<1x8x64xf32>
    tpu.vector_store %arg10[%c2, %c1_12, %c0_13], %19 {strides = array<i32>} : memref<9x9x64xf32, #tpu.memory_space<vmem>>, vector<1x8x64xf32>,
    %20 = vector.extract_strided_slice %9 {offsets = [0, 128], sizes = [8, 64], strides = [1, 1]} : vector<8x512xf32> to vector<8x64xf32>
    %c3 = arith.constant 3 : index
    %c1_14 = arith.constant 1 : index
    %c0_15 = arith.constant 0 : index
    %21 = vector.load %arg10[%c3, %c1_14, %c0_15] : memref<9x9x64xf32, #tpu.memory_space<vmem>>, vector<1x8x64xf32>
    %22 = vector.shape_cast %21 : vector<1x8x64xf32> to vector<8x64xf32>
    %23 = vector.shape_cast %20 : vector<8x64xf32> to vector<1x8x64xf32>
    tpu.vector_store %arg10[%c3, %c1_14, %c0_15], %23 {strides = array<i32>} : memref<9x9x64xf32, #tpu.memory_space<vmem>>, vector<1x8x64xf32>,
    %24 = vector.extract_strided_slice %9 {offsets = [0, 192], sizes = [8, 64], strides = [1, 1]} : vector<8x512xf32> to vector<8x64xf32>
    %c4 = arith.constant 4 : index
    %c1_16 = arith.constant 1 : index
    %c0_17 = arith.constant 0 : index
    %25 = vector.load %arg10[%c4, %c1_16, %c0_17] : memref<9x9x64xf32, #tpu.memory_space<vmem>>, vector<1x8x64xf32>
    %26 = vector.shape_cast %25 : vector<1x8x64xf32> to vector<8x64xf32>
    %27 = vector.shape_cast %24 : vector<8x64xf32> to vector<1x8x64xf32>
    tpu.vector_store %arg10[%c4, %c1_16, %c0_17], %27 {strides = array<i32>} : memref<9x9x64xf32, #tpu.memory_space<vmem>>, vector<1x8x64xf32>,
    %28 = vector.extract_strided_slice %9 {offsets = [0, 256], sizes = [8, 64], strides = [1, 1]} : vector<8x512xf32> to vector<8x64xf32>
    %c5 = arith.constant 5 : index
    %c1_18 = arith.constant 1 : index
    %c0_19 = arith.constant 0 : index
    %29 = vector.load %arg10[%c5, %c1_18, %c0_19] : memref<9x9x64xf32, #tpu.memory_space<vmem>>, vector<1x8x64xf32>
    %30 = vector.shape_cast %29 : vector<1x8x64xf32> to vector<8x64xf32>
    %31 = vector.shape_cast %28 : vector<8x64xf32> to vector<1x8x64xf32>
    tpu.vector_store %arg10[%c5, %c1_18, %c0_19], %31 {strides = array<i32>} : memref<9x9x64xf32, #tpu.memory_space<vmem>>, vector<1x8x64xf32>,
    %32 = vector.extract_strided_slice %9 {offsets = [0, 320], sizes = [8, 64], strides = [1, 1]} : vector<8x512xf32> to vector<8x64xf32>
    %c6 = arith.constant 6 : index
    %c1_20 = arith.constant 1 : index
    %c0_21 = arith.constant 0 : index
    %33 = vector.load %arg10[%c6, %c1_20, %c0_21] : memref<9x9x64xf32, #tpu.memory_space<vmem>>, vector<1x8x64xf32>
    %34 = vector.shape_cast %33 : vector<1x8x64xf32> to vector<8x64xf32>
    %35 = vector.shape_cast %32 : vector<8x64xf32> to vector<1x8x64xf32>
    tpu.vector_store %arg10[%c6, %c1_20, %c0_21], %35 {strides = array<i32>} : memref<9x9x64xf32, #tpu.memory_space<vmem>>, vector<1x8x64xf32>,
    %36 = vector.extract_strided_slice %9 {offsets = [0, 384], sizes = [8, 64], strides = [1, 1]} : vector<8x512xf32> to vector<8x64xf32>
    %c7 = arith.constant 7 : index
    %c1_22 = arith.constant 1 : index
    %c0_23 = arith.constant 0 : index
    %37 = vector.load %arg10[%c7, %c1_22, %c0_23] : memref<9x9x64xf32, #tpu.memory_space<vmem>>, vector<1x8x64xf32>
    %38 = vector.shape_cast %37 : vector<1x8x64xf32> to vector<8x64xf32>
    %39 = vector.shape_cast %36 : vector<8x64xf32> to vector<1x8x64xf32>
    tpu.vector_store %arg10[%c7, %c1_22, %c0_23], %39 {strides = array<i32>} : memref<9x9x64xf32, #tpu.memory_space<vmem>>, vector<1x8x64xf32>,
    %40 = vector.extract_strided_slice %9 {offsets = [0, 448], sizes = [8, 64], strides = [1, 1]} : vector<8x512xf32> to vector<8x64xf32>
    %c8 = arith.constant 8 : index
    %c1_24 = arith.constant 1 : index
    %c0_25 = arith.constant 0 : index
    %41 = vector.load %arg10[%c8, %c1_24, %c0_25] : memref<9x9x64xf32, #tpu.memory_space<vmem>>, vector<1x8x64xf32>
    %42 = vector.shape_cast %41 : vector<1x8x64xf32> to vector<8x64xf32>
    %43 = vector.shape_cast %40 : vector<8x64xf32> to vector<1x8x64xf32>
    tpu.vector_store %arg10[%c8, %c1_24, %c0_25], %43 {strides = array<i32>} : memref<9x9x64xf32, #tpu.memory_space<vmem>>, vector<1x8x64xf32>,
    %c0_26 = arith.constant 0 : index
    %c0_27 = arith.constant 0 : index
    %c0_28 = arith.constant 0 : index
    %44 = vector.load %arg10[%c0_26, %c0_27, %c0_28] : memref<9x9x64xf32, #tpu.memory_space<vmem>>, vector<9x9x64xf32>
    %45 = vector.extract_strided_slice %44 {offsets = [0, 0, 48], sizes = [8, 8, 16], strides = [1, 1, 1]} : vector<9x9x64xf32> to vector<8x8x16xf32>
    %46 = vector.extract_strided_slice %44 {offsets = [1, 0, 32], sizes = [8, 8, 16], strides = [1, 1, 1]} : vector<9x9x64xf32> to vector<8x8x16xf32>
    %47 = vector.extract_strided_slice %44 {offsets = [1, 0, 48], sizes = [8, 8, 16], strides = [1, 1, 1]} : vector<9x9x64xf32> to vector<8x8x16xf32>
    %48 = vector.extract_strided_slice %44 {offsets = [0, 1, 16], sizes = [8, 8, 16], strides = [1, 1, 1]} : vector<9x9x64xf32> to vector<8x8x16xf32>
    %49 = vector.extract_strided_slice %44 {offsets = [1, 1, 0], sizes = [8, 8, 16], strides = [1, 1, 1]} : vector<9x9x64xf32> to vector<8x8x16xf32>
    %50 = vector.extract_strided_slice %44 {offsets = [1, 1, 16], sizes = [8, 8, 16], strides = [1, 1, 1]} : vector<9x9x64xf32> to vector<8x8x16xf32>
    %51 = vector.extract_strided_slice %44 {offsets = [0, 1, 48], sizes = [8, 8, 16], strides = [1, 1, 1]} : vector<9x9x64xf32> to vector<8x8x16xf32>
    %52 = vector.extract_strided_slice %44 {offsets = [1, 1, 32], sizes = [8, 8, 16], strides = [1, 1, 1]} : vector<9x9x64xf32> to vector<8x8x16xf32>
    %53 = vector.extract_strided_slice %44 {offsets = [1, 1, 48], sizes = [8, 8, 16], strides = [1, 1, 1]} : vector<9x9x64xf32> to vector<8x8x16xf32>
    %54 = tpu.concatenate %45, %46, %47, %48, %49, %50, %51, %52, %53 in 2 : vector<8x8x16xf32>, vector<8x8x16xf32>, vector<8x8x16xf32>, vector<8x8x16xf32>, vector<8x8x16xf32>, vector<8x8x16xf32>, vector<8x8x16xf32>, vector<8x8x16xf32>, vector<8x8x16xf32> -> vector<8x8x144xf32>
    %55 = vector.shape_cast %54 : vector<8x8x144xf32> to vector<64x144xf32>
    %56 = arith.truncf %55 : vector<64x144xf32> to vector<64x144xbf16>
    %c0_29 = arith.constant 0 : index
    %c0_30 = arith.constant 0 : index
    %57 = vector.load %arg4[%c0_29, %c0_30] : memref<144x32xbf16, #tpu.memory_space<vmem>>, vector<144x32xbf16>
    %cst_31 = arith.constant dense<0.000000e+00> : vector<64x32xf32>
    %58 = tpu.matmul %56, %57, %cst_31 {dimension_numbers = #tpu.dot_dimension_numbers<[1], [0], [0], [1], [0, 0, 1, 1], [], []>} : vector<64x144xbf16>, vector<144x32xbf16>, vector<64x32xf32> -> vector<64x32xf32>
    %c0_32 = arith.constant 0 : index
    %c0_33 = arith.constant 0 : index
    %59 = vector.load %arg5[%c0_32, %c0_33] : memref<1x32xf32, #tpu.memory_space<vmem>>, vector<1x32xf32>
    %60 = vector.broadcast %59 : vector<1x32xf32> to vector<64x32xf32>
    %61 = arith.addf %58, %60 : vector<64x32xf32>
    %cst_34 = arith.constant 0.000000e+00 : f32
    %62 = vector.broadcast %cst_34 : f32 to vector<64x32xf32>
    %63 = arith.maximumf %61, %62 : vector<64x32xf32>
    %64 = vector.extract_strided_slice %44 {offsets = [1, 1, 0], sizes = [8, 8, 16], strides = [1, 1, 1]} : vector<9x9x64xf32> to vector<8x8x16xf32>
    %65 = vector.shape_cast %64 : vector<8x8x16xf32> to vector<64x16xf32>
    %66 = arith.truncf %65 : vector<64x16xf32> to vector<64x16xbf16>
    %c0_35 = arith.constant 0 : index
    %c0_36 = arith.constant 0 : index
    %67 = vector.load %arg6[%c0_35, %c0_36] : memref<16x32xbf16, #tpu.memory_space<vmem>>, vector<16x32xbf16>
    %cst_37 = arith.constant dense<0.000000e+00> : vector<64x32xf32>
    %68 = tpu.matmul %66, %67, %cst_37 {dimension_numbers = #tpu.dot_dimension_numbers<[1], [0], [0], [1], [0, 0, 1, 1], [], []>} : vector<64x16xbf16>, vector<16x32xbf16>, vector<64x32xf32> -> vector<64x32xf32>
    %c0_38 = arith.constant 0 : index
    %c0_39 = arith.constant 0 : index
    %69 = vector.load %arg7[%c0_38, %c0_39] : memref<1x32xf32, #tpu.memory_space<vmem>>, vector<1x32xf32>
    %70 = vector.broadcast %69 : vector<1x32xf32> to vector<64x32xf32>
    %71 = arith.addf %68, %70 : vector<64x32xf32>
    %cst_40 = arith.constant 0.000000e+00 : f32
    %72 = vector.broadcast %cst_40 : f32 to vector<10x10x32xf32>
    %c0_41 = arith.constant 0 : index
    %c0_42 = arith.constant 0 : index
    %c0_43 = arith.constant 0 : index
    %73 = vector.load %arg11[%c0_41, %c0_42, %c0_43] : memref<10x10x32xf32, #tpu.memory_space<vmem>>, vector<10x10x32xf32>
    tpu.vector_store %arg11[%c0_41, %c0_42, %c0_43], %72 {strides = array<i32>} : memref<10x10x32xf32, #tpu.memory_space<vmem>>, vector<10x10x32xf32>,
    %74 = vector.shape_cast %63 : vector<64x32xf32> to vector<8x8x32xf32>
    %c1_44 = arith.constant 1 : index
    %c1_45 = arith.constant 1 : index
    %c0_46 = arith.constant 0 : index
    %75 = vector.load %arg11[%c1_44, %c1_45, %c0_46] : memref<10x10x32xf32, #tpu.memory_space<vmem>>, vector<8x8x32xf32>
    tpu.vector_store %arg11[%c1_44, %c1_45, %c0_46], %74 {strides = array<i32>} : memref<10x10x32xf32, #tpu.memory_space<vmem>>, vector<8x8x32xf32>,
    %c0_47 = arith.constant 0 : index
    %c0_48 = arith.constant 0 : index
    %c0_49 = arith.constant 0 : index
    %76 = vector.load %arg11[%c0_47, %c0_48, %c0_49] : memref<10x10x32xf32, #tpu.memory_space<vmem>>, vector<10x10x32xf32>
    %77 = vector.extract_strided_slice %76 {offsets = [0, 0, 0], sizes = [8, 8, 32], strides = [1, 1, 1]} : vector<10x10x32xf32> to vector<8x8x32xf32>
    %78 = vector.extract_strided_slice %76 {offsets = [1, 0, 0], sizes = [8, 8, 32], strides = [1, 1, 1]} : vector<10x10x32xf32> to vector<8x8x32xf32>
    %79 = vector.extract_strided_slice %76 {offsets = [2, 0, 0], sizes = [8, 8, 32], strides = [1, 1, 1]} : vector<10x10x32xf32> to vector<8x8x32xf32>
    %80 = vector.extract_strided_slice %76 {offsets = [0, 1, 0], sizes = [8, 8, 32], strides = [1, 1, 1]} : vector<10x10x32xf32> to vector<8x8x32xf32>
    %81 = vector.extract_strided_slice %76 {offsets = [1, 1, 0], sizes = [8, 8, 32], strides = [1, 1, 1]} : vector<10x10x32xf32> to vector<8x8x32xf32>
    %82 = vector.extract_strided_slice %76 {offsets = [2, 1, 0], sizes = [8, 8, 32], strides = [1, 1, 1]} : vector<10x10x32xf32> to vector<8x8x32xf32>
    %83 = vector.extract_strided_slice %76 {offsets = [0, 2, 0], sizes = [8, 8, 32], strides = [1, 1, 1]} : vector<10x10x32xf32> to vector<8x8x32xf32>
    %84 = vector.extract_strided_slice %76 {offsets = [1, 2, 0], sizes = [8, 8, 32], strides = [1, 1, 1]} : vector<10x10x32xf32> to vector<8x8x32xf32>
    %85 = vector.extract_strided_slice %76 {offsets = [2, 2, 0], sizes = [8, 8, 32], strides = [1, 1, 1]} : vector<10x10x32xf32> to vector<8x8x32xf32>
    %86 = tpu.concatenate %77, %78, %79, %80, %81, %82, %83, %84, %85 in 2 : vector<8x8x32xf32>, vector<8x8x32xf32>, vector<8x8x32xf32>, vector<8x8x32xf32>, vector<8x8x32xf32>, vector<8x8x32xf32>, vector<8x8x32xf32>, vector<8x8x32xf32>, vector<8x8x32xf32> -> vector<8x8x288xf32>
    %87 = vector.shape_cast %86 : vector<8x8x288xf32> to vector<64x288xf32>
    %88 = arith.truncf %87 : vector<64x288xf32> to vector<64x288xbf16>
    %c0_50 = arith.constant 0 : index
    %c0_51 = arith.constant 0 : index
    %89 = vector.load %arg8[%c0_50, %c0_51] : memref<288x32xbf16, #tpu.memory_space<vmem>>, vector<288x32xbf16>
    %cst_52 = arith.constant dense<0.000000e+00> : vector<64x32xf32>
    %90 = tpu.matmul %88, %89, %cst_52 {dimension_numbers = #tpu.dot_dimension_numbers<[1], [0], [0], [1], [0, 0, 1, 1], [], []>} : vector<64x288xbf16>, vector<288x32xbf16>, vector<64x32xf32> -> vector<64x32xf32>
    %91 = arith.addf %90, %71 : vector<64x32xf32>
    %92 = vector.extract_strided_slice %91 {offsets = [0, 0], sizes = [8, 32], strides = [1, 1]} : vector<64x32xf32> to vector<8x32xf32>
    %93 = vector.extract_strided_slice %91 {offsets = [8, 0], sizes = [8, 32], strides = [1, 1]} : vector<64x32xf32> to vector<8x32xf32>
    %94 = vector.extract_strided_slice %91 {offsets = [16, 0], sizes = [8, 32], strides = [1, 1]} : vector<64x32xf32> to vector<8x32xf32>
    %95 = vector.extract_strided_slice %91 {offsets = [24, 0], sizes = [8, 32], strides = [1, 1]} : vector<64x32xf32> to vector<8x32xf32>
    %96 = vector.extract_strided_slice %91 {offsets = [32, 0], sizes = [8, 32], strides = [1, 1]} : vector<64x32xf32> to vector<8x32xf32>
    %97 = vector.extract_strided_slice %91 {offsets = [40, 0], sizes = [8, 32], strides = [1, 1]} : vector<64x32xf32> to vector<8x32xf32>
    %98 = vector.extract_strided_slice %91 {offsets = [48, 0], sizes = [8, 32], strides = [1, 1]} : vector<64x32xf32> to vector<8x32xf32>
    %99 = vector.extract_strided_slice %91 {offsets = [56, 0], sizes = [8, 32], strides = [1, 1]} : vector<64x32xf32> to vector<8x32xf32>
    %100 = tpu.concatenate %92, %93, %94, %95, %96, %97, %98, %99 in 1 : vector<8x32xf32>, vector<8x32xf32>, vector<8x32xf32>, vector<8x32xf32>, vector<8x32xf32>, vector<8x32xf32>, vector<8x32xf32>, vector<8x32xf32> -> vector<8x256xf32>
    %c0_53 = arith.constant 0 : index
    %c0_54 = arith.constant 0 : index
    %c0_55 = arith.constant 0 : index
    %101 = vector.load %arg9[%c0_53, %c0_54, %c0_55] : memref<1x8x256xf32, #tpu.memory_space<vmem>>, vector<1x8x256xf32>
    %102 = vector.shape_cast %101 : vector<1x8x256xf32> to vector<8x256xf32>
    %103 = vector.shape_cast %100 : vector<8x256xf32> to vector<1x8x256xf32>
    tpu.vector_store %arg9[%c0_53, %c0_54, %c0_55], %103 {strides = array<i32>} : memref<1x8x256xf32, #tpu.memory_space<vmem>>, vector<1x8x256xf32>,
    return
  }
  func.func @transform_0(%arg0: i32) -> (i32, i32, i32) {
    %c0_i32 = arith.constant 0 : i32
    %c0_i32_0 = arith.constant 0 : i32
    %c0_i32_1 = arith.constant 0 : i32
    return %arg0, %c0_i32, %c0_i32_0 : i32, i32, i32
  }
  func.func @transform_1(%arg0: i32) -> (i32, i32) {
    %c0_i32 = arith.constant 0 : i32
    %c0_i32_0 = arith.constant 0 : i32
    %c0_i32_1 = arith.constant 0 : i32
    return %c0_i32, %c0_i32_0 : i32, i32
  }
  func.func @transform_2(%arg0: i32) -> (i32, i32) {
    %c0_i32 = arith.constant 0 : i32
    %c0_i32_0 = arith.constant 0 : i32
    %c0_i32_1 = arith.constant 0 : i32
    return %c0_i32, %c0_i32_0 : i32, i32
  }
  func.func @transform_3(%arg0: i32) -> (i32, i32) {
    %c0_i32 = arith.constant 0 : i32
    %c0_i32_0 = arith.constant 0 : i32
    %c0_i32_1 = arith.constant 0 : i32
    return %c0_i32, %c0_i32_0 : i32, i32
  }
  func.func @transform_4(%arg0: i32) -> (i32, i32) {
    %c0_i32 = arith.constant 0 : i32
    %c0_i32_0 = arith.constant 0 : i32
    %c0_i32_1 = arith.constant 0 : i32
    return %c0_i32, %c0_i32_0 : i32, i32
  }
  func.func @transform_5(%arg0: i32) -> (i32, i32) {
    %c0_i32 = arith.constant 0 : i32
    %c0_i32_0 = arith.constant 0 : i32
    %c0_i32_1 = arith.constant 0 : i32
    return %c0_i32, %c0_i32_0 : i32, i32
  }
  func.func @transform_6(%arg0: i32) -> (i32, i32) {
    %c0_i32 = arith.constant 0 : i32
    %c0_i32_0 = arith.constant 0 : i32
    %c0_i32_1 = arith.constant 0 : i32
    return %c0_i32, %c0_i32_0 : i32, i32
  }
  func.func @transform_7(%arg0: i32) -> (i32, i32) {
    %c0_i32 = arith.constant 0 : i32
    %c0_i32_0 = arith.constant 0 : i32
    %c0_i32_1 = arith.constant 0 : i32
    return %c0_i32, %c0_i32_0 : i32, i32
  }
  func.func @transform_8(%arg0: i32) -> (i32, i32, i32) {
    %c0_i32 = arith.constant 0 : i32
    %c0_i32_0 = arith.constant 0 : i32
    %c0_i32_1 = arith.constant 0 : i32
    return %arg0, %c0_i32, %c0_i32_0 : i32, i32, i32
  }
}

module attributes {stable_mosaic.version = 11 : i64} {
  func.func @_head_kernel(%arg0: memref<2x4x256xf32, #tpu.memory_space<vmem>>, %arg1: memref<256x10xf32, #tpu.memory_space<vmem>>, %arg2: memref<1x10xf32, #tpu.memory_space<vmem>>, %arg3: memref<2x10xf32, #tpu.memory_space<vmem>>) attributes {dimension_semantics = [], scalar_prefetch = 0 : i64, scratch_operands = 0 : i64, tpu.core_type = #tpu.core_type<tc>} {
    %c0 = arith.constant 0 : index
    %c0_0 = arith.constant 0 : index
    %c0_1 = arith.constant 0 : index
    %0 = vector.load %arg0[%c0, %c0_0, %c0_1] : memref<2x4x256xf32, #tpu.memory_space<vmem>>, vector<2x4x256xf32>
    %cst = arith.constant dense<0.000000e+00> : vector<2x256xf32>
    %1 = vector.multi_reduction <add>, %0, %cst [1] : vector<2x4x256xf32> to vector<2x256xf32>
    %cst_2 = arith.constant 4.000000e+00 : f32
    %2 = vector.broadcast %cst_2 : f32 to vector<2x256xf32>
    %3 = arith.divf %1, %2 : vector<2x256xf32>
    %c0_3 = arith.constant 0 : index
    %c0_4 = arith.constant 0 : index
    %4 = vector.load %arg1[%c0_3, %c0_4] : memref<256x10xf32, #tpu.memory_space<vmem>>, vector<256x10xf32>
    %cst_5 = arith.constant dense<0.000000e+00> : vector<2x10xf32>
    %5 = tpu.matmul %3, %4, %cst_5 {dimension_numbers = #tpu.dot_dimension_numbers<[1], [0], [0], [1], [0, 0, 1, 1], [], []>} : vector<2x256xf32>, vector<256x10xf32>, vector<2x10xf32> -> vector<2x10xf32>
    %c0_6 = arith.constant 0 : index
    %c0_7 = arith.constant 0 : index
    %6 = vector.load %arg2[%c0_6, %c0_7] : memref<1x10xf32, #tpu.memory_space<vmem>>, vector<1x10xf32>
    %7 = vector.broadcast %6 : vector<1x10xf32> to vector<2x10xf32>
    %8 = arith.addf %5, %7 : vector<2x10xf32>
    %c0_8 = arith.constant 0 : index
    %c0_9 = arith.constant 0 : index
    %9 = vector.load %arg3[%c0_8, %c0_9] : memref<2x10xf32, #tpu.memory_space<vmem>>, vector<2x10xf32>
    tpu.vector_store %arg3[%c0_8, %c0_9], %8 {strides = array<i32>} : memref<2x10xf32, #tpu.memory_space<vmem>>, vector<2x10xf32>,
    return
  }
}

module attributes {stable_mosaic.version = 11 : i64} {
  func.func @kernel(%arg0: i32, %arg1: memref<1x4x512xf32, #tpu.memory_space<vmem>>, %arg2: memref<1x512xf32, #tpu.memory_space<vmem>>, %arg3: memref<1x512xf32, #tpu.memory_space<vmem>>, %arg4: memref<288x64xbf16, #tpu.memory_space<vmem>>, %arg5: memref<1x64xf32, #tpu.memory_space<vmem>>, %arg6: memref<32x64xbf16, #tpu.memory_space<vmem>>, %arg7: memref<1x64xf32, #tpu.memory_space<vmem>>, %arg8: memref<576x64xbf16, #tpu.memory_space<vmem>>, %arg9: memref<1x4x256xf32, #tpu.memory_space<vmem>>, %arg10: memref<5x5x128xf32, #tpu.memory_space<vmem>>, %arg11: memref<6x6x64xf32, #tpu.memory_space<vmem>>) attributes {dimension_semantics = [#tpu.dimension_semantics<parallel>], iteration_bounds = array<i64: 2>, scalar_prefetch = 0 : i64, scratch_operands = 2 : i64, tpu.core_type = #tpu.core_type<tc>, window_params = [{transform_indices = @transform_0, window_bounds = array<i64: 1, 4, 512>}, {pipeline_mode = #tpu.pipeline_mode<synchronous>, transform_indices = @transform_1, window_bounds = array<i64: 1, 512>}, {pipeline_mode = #tpu.pipeline_mode<synchronous>, transform_indices = @transform_2, window_bounds = array<i64: 1, 512>}, {pipeline_mode = #tpu.pipeline_mode<synchronous>, transform_indices = @transform_3, window_bounds = array<i64: 288, 64>}, {pipeline_mode = #tpu.pipeline_mode<synchronous>, transform_indices = @transform_4, window_bounds = array<i64: 1, 64>}, {pipeline_mode = #tpu.pipeline_mode<synchronous>, transform_indices = @transform_5, window_bounds = array<i64: 32, 64>}, {pipeline_mode = #tpu.pipeline_mode<synchronous>, transform_indices = @transform_6, window_bounds = array<i64: 1, 64>}, {pipeline_mode = #tpu.pipeline_mode<synchronous>, transform_indices = @transform_7, window_bounds = array<i64: 576, 64>}, {transform_indices = @transform_8, window_bounds = array<i64: 1, 4, 256>}]} {
    %c0 = arith.constant 0 : index
    %c0_0 = arith.constant 0 : index
    %c0_1 = arith.constant 0 : index
    %0 = vector.load %arg1[%c0, %c0_0, %c0_1] : memref<1x4x512xf32, #tpu.memory_space<vmem>>, vector<1x4x512xf32>
    %1 = vector.shape_cast %0 : vector<1x4x512xf32> to vector<4x512xf32>
    %c0_2 = arith.constant 0 : index
    %c0_3 = arith.constant 0 : index
    %2 = vector.load %arg2[%c0_2, %c0_3] : memref<1x512xf32, #tpu.memory_space<vmem>>, vector<1x512xf32>
    %3 = vector.broadcast %2 : vector<1x512xf32> to vector<4x512xf32>
    %4 = arith.mulf %1, %3 : vector<4x512xf32>
    %c0_4 = arith.constant 0 : index
    %c0_5 = arith.constant 0 : index
    %5 = vector.load %arg3[%c0_4, %c0_5] : memref<1x512xf32, #tpu.memory_space<vmem>>, vector<1x512xf32>
    %6 = vector.broadcast %5 : vector<1x512xf32> to vector<4x512xf32>
    %7 = arith.addf %4, %6 : vector<4x512xf32>
    %cst = arith.constant 0.000000e+00 : f32
    %8 = vector.broadcast %cst : f32 to vector<4x512xf32>
    %9 = arith.maximumf %7, %8 : vector<4x512xf32>
    %cst_6 = arith.constant 0.000000e+00 : f32
    %10 = vector.broadcast %cst_6 : f32 to vector<5x5x128xf32>
    %c0_7 = arith.constant 0 : index
    %c0_8 = arith.constant 0 : index
    %c0_9 = arith.constant 0 : index
    %11 = vector.load %arg10[%c0_7, %c0_8, %c0_9] : memref<5x5x128xf32, #tpu.memory_space<vmem>>, vector<5x5x128xf32>
    tpu.vector_store %arg10[%c0_7, %c0_8, %c0_9], %10 {strides = array<i32>} : memref<5x5x128xf32, #tpu.memory_space<vmem>>, vector<5x5x128xf32>,
    %12 = vector.extract_strided_slice %9 {offsets = [0, 0], sizes = [4, 128], strides = [1, 1]} : vector<4x512xf32> to vector<4x128xf32>
    %c1 = arith.constant 1 : index
    %c1_10 = arith.constant 1 : index
    %c0_11 = arith.constant 0 : index
    %13 = vector.load %arg10[%c1, %c1_10, %c0_11] : memref<5x5x128xf32, #tpu.memory_space<vmem>>, vector<1x4x128xf32>
    %14 = vector.shape_cast %13 : vector<1x4x128xf32> to vector<4x128xf32>
    %15 = vector.shape_cast %12 : vector<4x128xf32> to vector<1x4x128xf32>
    tpu.vector_store %arg10[%c1, %c1_10, %c0_11], %15 {strides = array<i32>} : memref<5x5x128xf32, #tpu.memory_space<vmem>>, vector<1x4x128xf32>,
    %16 = vector.extract_strided_slice %9 {offsets = [0, 128], sizes = [4, 128], strides = [1, 1]} : vector<4x512xf32> to vector<4x128xf32>
    %c2 = arith.constant 2 : index
    %c1_12 = arith.constant 1 : index
    %c0_13 = arith.constant 0 : index
    %17 = vector.load %arg10[%c2, %c1_12, %c0_13] : memref<5x5x128xf32, #tpu.memory_space<vmem>>, vector<1x4x128xf32>
    %18 = vector.shape_cast %17 : vector<1x4x128xf32> to vector<4x128xf32>
    %19 = vector.shape_cast %16 : vector<4x128xf32> to vector<1x4x128xf32>
    tpu.vector_store %arg10[%c2, %c1_12, %c0_13], %19 {strides = array<i32>} : memref<5x5x128xf32, #tpu.memory_space<vmem>>, vector<1x4x128xf32>,
    %20 = vector.extract_strided_slice %9 {offsets = [0, 256], sizes = [4, 128], strides = [1, 1]} : vector<4x512xf32> to vector<4x128xf32>
    %c3 = arith.constant 3 : index
    %c1_14 = arith.constant 1 : index
    %c0_15 = arith.constant 0 : index
    %21 = vector.load %arg10[%c3, %c1_14, %c0_15] : memref<5x5x128xf32, #tpu.memory_space<vmem>>, vector<1x4x128xf32>
    %22 = vector.shape_cast %21 : vector<1x4x128xf32> to vector<4x128xf32>
    %23 = vector.shape_cast %20 : vector<4x128xf32> to vector<1x4x128xf32>
    tpu.vector_store %arg10[%c3, %c1_14, %c0_15], %23 {strides = array<i32>} : memref<5x5x128xf32, #tpu.memory_space<vmem>>, vector<1x4x128xf32>,
    %24 = vector.extract_strided_slice %9 {offsets = [0, 384], sizes = [4, 128], strides = [1, 1]} : vector<4x512xf32> to vector<4x128xf32>
    %c4 = arith.constant 4 : index
    %c1_16 = arith.constant 1 : index
    %c0_17 = arith.constant 0 : index
    %25 = vector.load %arg10[%c4, %c1_16, %c0_17] : memref<5x5x128xf32, #tpu.memory_space<vmem>>, vector<1x4x128xf32>
    %26 = vector.shape_cast %25 : vector<1x4x128xf32> to vector<4x128xf32>
    %27 = vector.shape_cast %24 : vector<4x128xf32> to vector<1x4x128xf32>
    tpu.vector_store %arg10[%c4, %c1_16, %c0_17], %27 {strides = array<i32>} : memref<5x5x128xf32, #tpu.memory_space<vmem>>, vector<1x4x128xf32>,
    %c0_18 = arith.constant 0 : index
    %c0_19 = arith.constant 0 : index
    %c0_20 = arith.constant 0 : index
    %28 = vector.load %arg10[%c0_18, %c0_19, %c0_20] : memref<5x5x128xf32, #tpu.memory_space<vmem>>, vector<5x5x128xf32>
    %29 = vector.extract_strided_slice %28 {offsets = [0, 0, 96], sizes = [4, 4, 32], strides = [1, 1, 1]} : vector<5x5x128xf32> to vector<4x4x32xf32>
    %30 = vector.extract_strided_slice %28 {offsets = [1, 0, 64], sizes = [4, 4, 32], strides = [1, 1, 1]} : vector<5x5x128xf32> to vector<4x4x32xf32>
    %31 = vector.extract_strided_slice %28 {offsets = [1, 0, 96], sizes = [4, 4, 32], strides = [1, 1, 1]} : vector<5x5x128xf32> to vector<4x4x32xf32>
    %32 = vector.extract_strided_slice %28 {offsets = [0, 1, 32], sizes = [4, 4, 32], strides = [1, 1, 1]} : vector<5x5x128xf32> to vector<4x4x32xf32>
    %33 = vector.extract_strided_slice %28 {offsets = [1, 1, 0], sizes = [4, 4, 32], strides = [1, 1, 1]} : vector<5x5x128xf32> to vector<4x4x32xf32>
    %34 = vector.extract_strided_slice %28 {offsets = [1, 1, 32], sizes = [4, 4, 32], strides = [1, 1, 1]} : vector<5x5x128xf32> to vector<4x4x32xf32>
    %35 = vector.extract_strided_slice %28 {offsets = [0, 1, 96], sizes = [4, 4, 32], strides = [1, 1, 1]} : vector<5x5x128xf32> to vector<4x4x32xf32>
    %36 = vector.extract_strided_slice %28 {offsets = [1, 1, 64], sizes = [4, 4, 32], strides = [1, 1, 1]} : vector<5x5x128xf32> to vector<4x4x32xf32>
    %37 = vector.extract_strided_slice %28 {offsets = [1, 1, 96], sizes = [4, 4, 32], strides = [1, 1, 1]} : vector<5x5x128xf32> to vector<4x4x32xf32>
    %38 = tpu.concatenate %29, %30, %31, %32, %33, %34, %35, %36, %37 in 2 : vector<4x4x32xf32>, vector<4x4x32xf32>, vector<4x4x32xf32>, vector<4x4x32xf32>, vector<4x4x32xf32>, vector<4x4x32xf32>, vector<4x4x32xf32>, vector<4x4x32xf32>, vector<4x4x32xf32> -> vector<4x4x288xf32>
    %39 = vector.shape_cast %38 : vector<4x4x288xf32> to vector<16x288xf32>
    %40 = arith.truncf %39 : vector<16x288xf32> to vector<16x288xbf16>
    %c0_21 = arith.constant 0 : index
    %c0_22 = arith.constant 0 : index
    %41 = vector.load %arg4[%c0_21, %c0_22] : memref<288x64xbf16, #tpu.memory_space<vmem>>, vector<288x64xbf16>
    %cst_23 = arith.constant dense<0.000000e+00> : vector<16x64xf32>
    %42 = tpu.matmul %40, %41, %cst_23 {dimension_numbers = #tpu.dot_dimension_numbers<[1], [0], [0], [1], [0, 0, 1, 1], [], []>} : vector<16x288xbf16>, vector<288x64xbf16>, vector<16x64xf32> -> vector<16x64xf32>
    %c0_24 = arith.constant 0 : index
    %c0_25 = arith.constant 0 : index
    %43 = vector.load %arg5[%c0_24, %c0_25] : memref<1x64xf32, #tpu.memory_space<vmem>>, vector<1x64xf32>
    %44 = vector.broadcast %43 : vector<1x64xf32> to vector<16x64xf32>
    %45 = arith.addf %42, %44 : vector<16x64xf32>
    %cst_26 = arith.constant 0.000000e+00 : f32
    %46 = vector.broadcast %cst_26 : f32 to vector<16x64xf32>
    %47 = arith.maximumf %45, %46 : vector<16x64xf32>
    %48 = vector.extract_strided_slice %28 {offsets = [1, 1, 0], sizes = [4, 4, 32], strides = [1, 1, 1]} : vector<5x5x128xf32> to vector<4x4x32xf32>
    %49 = vector.shape_cast %48 : vector<4x4x32xf32> to vector<16x32xf32>
    %50 = arith.truncf %49 : vector<16x32xf32> to vector<16x32xbf16>
    %c0_27 = arith.constant 0 : index
    %c0_28 = arith.constant 0 : index
    %51 = vector.load %arg6[%c0_27, %c0_28] : memref<32x64xbf16, #tpu.memory_space<vmem>>, vector<32x64xbf16>
    %cst_29 = arith.constant dense<0.000000e+00> : vector<16x64xf32>
    %52 = tpu.matmul %50, %51, %cst_29 {dimension_numbers = #tpu.dot_dimension_numbers<[1], [0], [0], [1], [0, 0, 1, 1], [], []>} : vector<16x32xbf16>, vector<32x64xbf16>, vector<16x64xf32> -> vector<16x64xf32>
    %c0_30 = arith.constant 0 : index
    %c0_31 = arith.constant 0 : index
    %53 = vector.load %arg7[%c0_30, %c0_31] : memref<1x64xf32, #tpu.memory_space<vmem>>, vector<1x64xf32>
    %54 = vector.broadcast %53 : vector<1x64xf32> to vector<16x64xf32>
    %55 = arith.addf %52, %54 : vector<16x64xf32>
    %cst_32 = arith.constant 0.000000e+00 : f32
    %56 = vector.broadcast %cst_32 : f32 to vector<6x6x64xf32>
    %c0_33 = arith.constant 0 : index
    %c0_34 = arith.constant 0 : index
    %c0_35 = arith.constant 0 : index
    %57 = vector.load %arg11[%c0_33, %c0_34, %c0_35] : memref<6x6x64xf32, #tpu.memory_space<vmem>>, vector<6x6x64xf32>
    tpu.vector_store %arg11[%c0_33, %c0_34, %c0_35], %56 {strides = array<i32>} : memref<6x6x64xf32, #tpu.memory_space<vmem>>, vector<6x6x64xf32>,
    %58 = vector.shape_cast %47 : vector<16x64xf32> to vector<4x4x64xf32>
    %c1_36 = arith.constant 1 : index
    %c1_37 = arith.constant 1 : index
    %c0_38 = arith.constant 0 : index
    %59 = vector.load %arg11[%c1_36, %c1_37, %c0_38] : memref<6x6x64xf32, #tpu.memory_space<vmem>>, vector<4x4x64xf32>
    tpu.vector_store %arg11[%c1_36, %c1_37, %c0_38], %58 {strides = array<i32>} : memref<6x6x64xf32, #tpu.memory_space<vmem>>, vector<4x4x64xf32>,
    %c0_39 = arith.constant 0 : index
    %c0_40 = arith.constant 0 : index
    %c0_41 = arith.constant 0 : index
    %60 = vector.load %arg11[%c0_39, %c0_40, %c0_41] : memref<6x6x64xf32, #tpu.memory_space<vmem>>, vector<6x6x64xf32>
    %61 = vector.extract_strided_slice %60 {offsets = [0, 0, 0], sizes = [4, 4, 64], strides = [1, 1, 1]} : vector<6x6x64xf32> to vector<4x4x64xf32>
    %62 = vector.extract_strided_slice %60 {offsets = [1, 0, 0], sizes = [4, 4, 64], strides = [1, 1, 1]} : vector<6x6x64xf32> to vector<4x4x64xf32>
    %63 = vector.extract_strided_slice %60 {offsets = [2, 0, 0], sizes = [4, 4, 64], strides = [1, 1, 1]} : vector<6x6x64xf32> to vector<4x4x64xf32>
    %64 = vector.extract_strided_slice %60 {offsets = [0, 1, 0], sizes = [4, 4, 64], strides = [1, 1, 1]} : vector<6x6x64xf32> to vector<4x4x64xf32>
    %65 = vector.extract_strided_slice %60 {offsets = [1, 1, 0], sizes = [4, 4, 64], strides = [1, 1, 1]} : vector<6x6x64xf32> to vector<4x4x64xf32>
    %66 = vector.extract_strided_slice %60 {offsets = [2, 1, 0], sizes = [4, 4, 64], strides = [1, 1, 1]} : vector<6x6x64xf32> to vector<4x4x64xf32>
    %67 = vector.extract_strided_slice %60 {offsets = [0, 2, 0], sizes = [4, 4, 64], strides = [1, 1, 1]} : vector<6x6x64xf32> to vector<4x4x64xf32>
    %68 = vector.extract_strided_slice %60 {offsets = [1, 2, 0], sizes = [4, 4, 64], strides = [1, 1, 1]} : vector<6x6x64xf32> to vector<4x4x64xf32>
    %69 = vector.extract_strided_slice %60 {offsets = [2, 2, 0], sizes = [4, 4, 64], strides = [1, 1, 1]} : vector<6x6x64xf32> to vector<4x4x64xf32>
    %70 = tpu.concatenate %61, %62, %63, %64, %65, %66, %67, %68, %69 in 2 : vector<4x4x64xf32>, vector<4x4x64xf32>, vector<4x4x64xf32>, vector<4x4x64xf32>, vector<4x4x64xf32>, vector<4x4x64xf32>, vector<4x4x64xf32>, vector<4x4x64xf32>, vector<4x4x64xf32> -> vector<4x4x576xf32>
    %71 = vector.shape_cast %70 : vector<4x4x576xf32> to vector<16x576xf32>
    %72 = arith.truncf %71 : vector<16x576xf32> to vector<16x576xbf16>
    %c0_42 = arith.constant 0 : index
    %c0_43 = arith.constant 0 : index
    %73 = vector.load %arg8[%c0_42, %c0_43] : memref<576x64xbf16, #tpu.memory_space<vmem>>, vector<576x64xbf16>
    %cst_44 = arith.constant dense<0.000000e+00> : vector<16x64xf32>
    %74 = tpu.matmul %72, %73, %cst_44 {dimension_numbers = #tpu.dot_dimension_numbers<[1], [0], [0], [1], [0, 0, 1, 1], [], []>} : vector<16x576xbf16>, vector<576x64xbf16>, vector<16x64xf32> -> vector<16x64xf32>
    %75 = arith.addf %74, %55 : vector<16x64xf32>
    %76 = vector.extract_strided_slice %75 {offsets = [0, 0], sizes = [4, 64], strides = [1, 1]} : vector<16x64xf32> to vector<4x64xf32>
    %77 = vector.extract_strided_slice %75 {offsets = [4, 0], sizes = [4, 64], strides = [1, 1]} : vector<16x64xf32> to vector<4x64xf32>
    %78 = vector.extract_strided_slice %75 {offsets = [8, 0], sizes = [4, 64], strides = [1, 1]} : vector<16x64xf32> to vector<4x64xf32>
    %79 = vector.extract_strided_slice %75 {offsets = [12, 0], sizes = [4, 64], strides = [1, 1]} : vector<16x64xf32> to vector<4x64xf32>
    %80 = tpu.concatenate %76, %77, %78, %79 in 1 : vector<4x64xf32>, vector<4x64xf32>, vector<4x64xf32>, vector<4x64xf32> -> vector<4x256xf32>
    %c0_45 = arith.constant 0 : index
    %c0_46 = arith.constant 0 : index
    %c0_47 = arith.constant 0 : index
    %81 = vector.load %arg9[%c0_45, %c0_46, %c0_47] : memref<1x4x256xf32, #tpu.memory_space<vmem>>, vector<1x4x256xf32>
    %82 = vector.shape_cast %81 : vector<1x4x256xf32> to vector<4x256xf32>
    %83 = vector.shape_cast %80 : vector<4x256xf32> to vector<1x4x256xf32>
    tpu.vector_store %arg9[%c0_45, %c0_46, %c0_47], %83 {strides = array<i32>} : memref<1x4x256xf32, #tpu.memory_space<vmem>>, vector<1x4x256xf32>,
    return
  }
  func.func @transform_0(%arg0: i32) -> (i32, i32, i32) {
    %c0_i32 = arith.constant 0 : i32
    %c0_i32_0 = arith.constant 0 : i32
    %c0_i32_1 = arith.constant 0 : i32
    return %arg0, %c0_i32, %c0_i32_0 : i32, i32, i32
  }
  func.func @transform_1(%arg0: i32) -> (i32, i32) {
    %c0_i32 = arith.constant 0 : i32
    %c0_i32_0 = arith.constant 0 : i32
    %c0_i32_1 = arith.constant 0 : i32
    return %c0_i32, %c0_i32_0 : i32, i32
  }
  func.func @transform_2(%arg0: i32) -> (i32, i32) {
    %c0_i32 = arith.constant 0 : i32
    %c0_i32_0 = arith.constant 0 : i32
    %c0_i32_1 = arith.constant 0 : i32
    return %c0_i32, %c0_i32_0 : i32, i32
  }
  func.func @transform_3(%arg0: i32) -> (i32, i32) {
    %c0_i32 = arith.constant 0 : i32
    %c0_i32_0 = arith.constant 0 : i32
    %c0_i32_1 = arith.constant 0 : i32
    return %c0_i32, %c0_i32_0 : i32, i32
  }
  func.func @transform_4(%arg0: i32) -> (i32, i32) {
    %c0_i32 = arith.constant 0 : i32
    %c0_i32_0 = arith.constant 0 : i32
    %c0_i32_1 = arith.constant 0 : i32
    return %c0_i32, %c0_i32_0 : i32, i32
  }
  func.func @transform_5(%arg0: i32) -> (i32, i32) {
    %c0_i32 = arith.constant 0 : i32
    %c0_i32_0 = arith.constant 0 : i32
    %c0_i32_1 = arith.constant 0 : i32
    return %c0_i32, %c0_i32_0 : i32, i32
  }
  func.func @transform_6(%arg0: i32) -> (i32, i32) {
    %c0_i32 = arith.constant 0 : i32
    %c0_i32_0 = arith.constant 0 : i32
    %c0_i32_1 = arith.constant 0 : i32
    return %c0_i32, %c0_i32_0 : i32, i32
  }
  func.func @transform_7(%arg0: i32) -> (i32, i32) {
    %c0_i32 = arith.constant 0 : i32
    %c0_i32_0 = arith.constant 0 : i32
    %c0_i32_1 = arith.constant 0 : i32
    return %c0_i32, %c0_i32_0 : i32, i32
  }
  func.func @transform_8(%arg0: i32) -> (i32, i32, i32) {
    %c0_i32 = arith.constant 0 : i32
    %c0_i32_0 = arith.constant 0 : i32
    %c0_i32_1 = arith.constant 0 : i32
    return %arg0, %c0_i32, %c0_i32_0 : i32, i32, i32
  }
}

</mosaic_0001>

<bundles_post_ra>
// kernel: preact_resnet_forward.5
= control target key start
LH: loop header
LB: loop body
LE: loop exit
PB: predicated region body
PF: predicated region fallthrough
CT: control target
= control target key end

     0   :  { %s2751_s9 = smov 0   ;;  %s4416_s0 = inlined_call_operand.vmem [shape: f32[2,16,16,3], index: 0, kind: input, shape index: {}]   ;;  %s4417_s1 = inlined_call_operand.vmem [shape: bf16[27,16], index: 1, kind: input, shape index: {}]   ;;  %s4418_s2 = inlined_call_operand.vmem [shape: f32[2,16,256], index: 2, kind: output, shape index: {}]  }
   0x1 LB: > { %s1968_s10 = sadd.s32 4294967295, %s2717_s9   ;;  %p1972_p0 = scmp.ge.s32.totalorder %s2717_s9, 1  ;;  %s2717_s9 = sphi %s2751_s9, %s12_s9  }
   0x2   : > { %p112_p1 = scmp.lt.s32.totalorder %s2717_s9, 3 }
   0x4   : > { %p113_p2 = pnand %p1972_p0, %p112_p1 }
   0x6   : > { %116 = sbr.rel (%p113_p2) target bundleno = 837 (0x345), region = 28 }
   0xb   : > { %p134_p3 = scmp.lt.s32.totalorder %s1968_s10, 1  ;;  %vm145_vm0 = vcmask 23552   ;;  %vm148_vm1 = vcmask 17408   ;;  %v2719_v0 = vmov 0.0   ;;  %s2720_s15 = smov 3   ;;  %vm564_vm2 = vcmask 1046528  }
   0xc   : > { %162 = vst.msk [vmem:[#allocation2 + $0x78] sm:$0xff] %vm145_vm0, %v2719_v0  ;;  %s2721_s16 = smov 6   ;;  %s2722_s17 = smov 9   ;;  %vm1356_vm3 = vcmask 48128   ;;  %vm1389_vm4 = vcmask 72704   ;;  %vm945_vm5 = vcmask 1045504  }
   0xd   : > { %s4546_s10 = smov (!%p134_p3, %s1968_s10), 1  ;;  %163 = vst.msk [vmem:[#allocation2 + $0x80] sm:$0xff] %vm145_vm0, %v2719_v0  ;;  %s2723_s18 = smov 12   ;;  %vm1422_vm6 = vcmask 97280   ;;  %vm1455_vm7 = vcmask 121856   ;;  %vm1488_vm8 = vcmask 146432  }
   0xe   : > { %164 = vst.msk [vmem:[#allocation2 + $0x88] sm:$0x3] %vm148_vm1, %v2719_v0  ;;  %s2003_s11 = sshll.u32 %s4546_s10, 8  ;;  %s2724_s19 = smov 15   ;;  %vm1667_vm9 = vcmask 1044480   ;;  %vm1554_vm10 = vcmask 195584  }
   0xf   : > { %146 = vst.msk [vmem:[#allocation2] sm:$0xff] %vm145_vm0, %v2719_v0  ;;  %s2773_s14 = scalar_lea.vmem %s4416_s0, %s2003_s11  ;;  %s2725_s20 = smov 18   ;;  %vm1521_vm11 = vcmask 171008   ;;  %vm1618_vm12 = vcmask 220160   ;;  %vm1874_vm13 = vcmask 130048   ;;  %vm1880_vm14 = vcmask 392192  }
  0x10   : > { %147 = vst.msk [vmem:[#allocation2 + $0x8] sm:$0xff] %vm145_vm0, %v2719_v0  ;;  %v209_v1 = vld [vmem:[%s2773_s14 + $0x40] sm:$0xff]  ;;  %v210_v2 = vld [vmem:[%s2773_s14 + $0x48] sm:$0xff]  ;;  %v211_v10 = vld [vmem:[%s2773_s14 + $0x50] sm:$0xff]  ;;  %s2726_s21 = smov 24   ;;  %s2727_s22 = smov 21  }
  0x11   : > { %149 = vst.msk [vmem:[#allocation2 + $0x10] sm:$0x3] %vm148_vm1, %v2719_v0  ;;  %v205_v6 = vld [vmem:[%s2773_s14 + $0x20] sm:$0xff]  ;;  %v206_v7 = vld [vmem:[%s2773_s14 + $0x28] sm:$0xff]  ;;  %v212_v11 = vld [vmem:[%s2773_s14 + $0x58] sm:$0xff]  ;;  %s2729_s29 = smov 16  }
  0x12   : > { %242 = vst.msk [vmem:[#allocation2 + $0x79] sm:$0xff] %vm145_vm0, %v209_v1  ;;  %v201_v8 = vld [vmem:[%s2773_s14] sm:$0xff]  ;;  %v202_v9 = vld [vmem:[%s2773_s14 + $0x8] sm:$0xff]  ;;  %v207_v12 = vld [vmem:[%s2773_s14 + $0x30] sm:$0xff]  ;;  %s2730_s30 = smov 32   ;;  %s2731_s3 = smov 64  }
  0x13   : > { %243 = vst.msk [vmem:[#allocation2 + $0x81] sm:$0xff] %vm145_vm0, %v210_v2  ;;  %v208_v13 = vld [vmem:[%s2773_s14 + $0x38] sm:$0xff]  ;;  %v203_v14 = vld [vmem:[%s2773_s14 + $0x10] sm:$0xff]  ;;  %v217_v17 = vld [vmem:[%s2773_s14 + $0x80] sm:$0xff]  ;;  %s2732_s4 = smov 48   ;;  %s2733_s5 = smov 80  }
  0x14   : > { %150 = vst.msk [vmem:[#allocation2 + $0x18] sm:$0xff] %vm145_vm0, %v2719_v0  ;;  %v204_v15 = vld [vmem:[%s2773_s14 + $0x18] sm:$0xff]  ;;  %v218_v19 = vld [vmem:[%s2773_s14 + $0x88] sm:$0xff]  ;;  %v215_v22 = vld [vmem:[%s2773_s14 + $0x70] sm:$0xff]  ;;  %s2734_s6 = smov 112   ;;  %s2735_s7 = smov 96  }
  0x15   : > { %151 = vst.msk [vmem:[#allocation2 + $0x20] sm:$0xff] %vm145_vm0, %v2719_v0  ;;  %v216_v24 = vld [vmem:[%s2773_s14 + $0x78] sm:$0xff]  ;;  %v213_v27 = vld [vmem:[%s2773_s14 + $0x60] sm:$0xff]  ;;  %v214_v29 = vld [vmem:[%s2773_s14 + $0x68] sm:$0xff]  ;;  %vm1877_vm15 = vcmask 261120   ;;  %s2004_s8 = sshll.u32 %s4546_s10, 5 }
  0x16   : > { %152 = vst.msk [vmem:[#allocation2 + $0x28] sm:$0x3] %vm148_vm1, %v2719_v0  ;;  %v223_v32 = vld [vmem:[%s2773_s14 + $0xb0] sm:$0xff]  ;;  %v224_v34 = vld [vmem:[%s2773_s14 + $0xb8] sm:$0xff]  ;;  %v221_v37 = vld [vmem:[%s2773_s14 + $0xa0] sm:$0xff]  ;;  %s4381_s13 = scalar_lea.vmem %s4418_s2, %s2004_s8 }
  0x17   : > { %153 = vst.msk [vmem:[#allocation2 + $0x30] sm:$0xff] %vm145_vm0, %v2719_v0  ;;  %v222_v39 = vld [vmem:[%s2773_s14 + $0xa8] sm:$0xff]  ;;  %v219_v42 = vld [vmem:[%s2773_s14 + $0x90] sm:$0xff]  ;;  %v220_v44 = vld [vmem:[%s2773_s14 + $0x98] sm:$0xff] }
  0x18   : > { %154 = vst.msk [vmem:[#allocation2 + $0x38] sm:$0xff] %vm145_vm0, %v2719_v0  ;;  %v229_v46 = vld [vmem:[%s2773_s14 + $0xe0] sm:$0xff]  ;;  %v230_v49 = vld [vmem:[%s2773_s14 + $0xe8] sm:$0xff]  ;;  %v227_v50 = vld [vmem:[%s2773_s14 + $0xd0] sm:$0xff] }
  0x19   : > { %v2793_v3 = vld [vmem:[#allocation2 + $0x78] sm:$0xff]  ;;  %155 = vst.msk [vmem:[#allocation2 + $0x40] sm:$0x3] %vm148_vm1, %v2719_v0  ;;  %v225_v55 = vld [vmem:[%s2773_s14 + $0xc0] sm:$0xff]  ;;  %v226_v58 = vld [vmem:[%s2773_s14 + $0xc8] sm:$0xff] }
  0x1a   : > { %v2797_v4 = vld [vmem:[#allocation2 + $0x80] sm:$0xff]  ;;  %156 = vst.msk [vmem:[#allocation2 + $0x48] sm:$0xff] %vm145_vm0, %v2719_v0  ;;  %v228_v53 = vld [vmem:[%s2773_s14 + $0xd8] sm:$0xff]  ;;  %v231_v60 = vld [vmem:[%s2773_s14 + $0xf0] sm:$0xff] }
  0x1b   : > { %v2803_v5 = vpack.i.bf16 %v2797_v4, %v2793_v3  ;;  %157 = vst.msk [vmem:[#allocation2 + $0x50] sm:$0xff] %vm145_vm0, %v2719_v0  ;;  %v232_v61 = vld [vmem:[%s2773_s14 + $0xf8] sm:$0xff] }
  0x1c   : > { %158 = vst.msk [vmem:[#allocation2 + $0x58] sm:$0x3] %vm148_vm1, %v2719_v0 }
  0x1d   : > { %2059 = vrot.lane.b32.xlu2 %v2803_v5, %s2720_s15  ;;  %159 = vst.msk [vmem:[#allocation2 + $0x60] sm:$0xff] %vm145_vm0, %v2719_v0 }
  0x1e   : > { %160 = vst.msk [vmem:[#allocation2 + $0x68] sm:$0xff] %vm145_vm0, %v2719_v0 }
  0x1f   : > { %161 = vst.msk [vmem:[#allocation2 + $0x70] sm:$0x3] %vm148_vm1, %v2719_v0 }
  0x20   : > { %165 = vst.msk [vmem:[#allocation2 + $0x90] sm:$0xff] %vm145_vm0, %v2719_v0 }
  0x21   : > { %166 = vst.msk [vmem:[#allocation2 + $0x98] sm:$0xff] %vm145_vm0, %v2719_v0 }
  0x22   : > { %167 = vst.msk [vmem:[#allocation2 + $0xa0] sm:$0x3] %vm148_vm1, %v2719_v0 }
  0x23   : > { %168 = vst.msk [vmem:[#allocation2 + $0xa8] sm:$0xff] %vm145_vm0, %v2719_v0 }
  0x24   : > { %169 = vst.msk [vmem:[#allocation2 + $0xb0] sm:$0xff] %vm145_vm0, %v2719_v0 }
  0x25   : > { %170 = vst.msk [vmem:[#allocation2 + $0xb8] sm:$0x3] %vm148_vm1, %v2719_v0 }
  0x26   : > { %171 = vst.msk [vmem:[#allocation2 + $0xc0] sm:$0xff] %vm145_vm0, %v2719_v0 }
  0x27   : > { %172 = vst.msk [vmem:[#allocation2 + $0xc8] sm:$0xff] %vm145_vm0, %v2719_v0 }
  0x28   : > { %173 = vst.msk [vmem:[#allocation2 + $0xd0] sm:$0x3] %vm148_vm1, %v2719_v0 }
  0x29   : > { %174 = vst.msk [vmem:[#allocation2 + $0xd8] sm:$0xff] %vm145_vm0, %v2719_v0 }
  0x2a   : > { %175 = vst.msk [vmem:[#allocation2 + $0xe0] sm:$0xff] %vm145_vm0, %v2719_v0 }
  0x2b   : > { %176 = vst.msk [vmem:[#allocation2 + $0xe8] sm:$0x3] %vm148_vm1, %v2719_v0 }
  0x2c   : > { %177 = vst.msk [vmem:[#allocation2 + $0xf0] sm:$0xff] %vm145_vm0, %v2719_v0 }
  0x2d   : > { %178 = vst.msk [vmem:[#allocation2 + $0xf8] sm:$0xff] %vm145_vm0, %v2719_v0 }
  0x2e   : > { %179 = vst.msk [vmem:[#allocation2 + $0x100] sm:$0x3] %vm148_vm1, %v2719_v0 }
  0x2f   : > { %180 = vst.msk [vmem:[#allocation2 + $0x108] sm:$0xff] %vm145_vm0, %v2719_v0 }
  0x30   : > { %181 = vst.msk [vmem:[#allocation2 + $0x110] sm:$0xff] %vm145_vm0, %v2719_v0 }
  0x31   : > { %182 = vst.msk [vmem:[#allocation2 + $0x118] sm:$0x3] %vm148_vm1, %v2719_v0 }
  0x32   : > { %183 = vst.msk [vmem:[#allocation2 + $0x120] sm:$0xff] %vm145_vm0, %v2719_v0 }
  0x33   : > { %184 = vst.msk [vmem:[#allocation2 + $0x128] sm:$0xff] %vm145_vm0, %v2719_v0 }
  0x34   : > { %185 = vst.msk [vmem:[#allocation2 + $0x130] sm:$0x3] %vm148_vm1, %v2719_v0 }
  0x35   : > { %186 = vst.msk [vmem:[#allocation2 + $0x138] sm:$0xff] %vm145_vm0, %v2719_v0 }
  0x36   : > { %187 = vst.msk [vmem:[#allocation2 + $0x140] sm:$0xff] %vm145_vm0, %v2719_v0 }
  0x37   : > { %188 = vst.msk [vmem:[#allocation2 + $0x148] sm:$0x3] %vm148_vm1, %v2719_v0 }
  0x38   : > { %189 = vst.msk [vmem:[#allocation2 + $0x150] sm:$0xff] %vm145_vm0, %v2719_v0 }
  0x39   : > { %190 = vst.msk [vmem:[#allocation2 + $0x158] sm:$0xff] %vm145_vm0, %v2719_v0 }
  0x3a   : > { %191 = vst.msk [vmem:[#allocation2 + $0x160] sm:$0x3] %vm148_vm1, %v2719_v0 }
  0x3b   : > { %192 = vst.msk [vmem:[#allocation2 + $0x168] sm:$0xff] %vm145_vm0, %v2719_v0 }
  0x3c   : > { %193 = vst.msk [vmem:[#allocation2 + $0x170] sm:$0xff] %vm145_vm0, %v2719_v0 }
  0x3d   : > { %194 = vst.msk [vmem:[#allocation2 + $0x178] sm:$0x3] %vm148_vm1, %v2719_v0 }
  0x3e   : > { %195 = vst.msk [vmem:[#allocation2 + $0x180] sm:$0xff] %vm145_vm0, %v2719_v0 }
  0x3f   : > { %196 = vst.msk [vmem:[#allocation2 + $0x188] sm:$0xff] %vm145_vm0, %v2719_v0 }
  0x40   : > { %197 = vst.msk [vmem:[#allocation2 + $0x190] sm:$0x3] %vm148_vm1, %v2719_v0 }
  0x41   : > { %198 = vst.msk [vmem:[#allocation2 + $0x198] sm:$0xff] %vm145_vm0, %v2719_v0 }
  0x42   : > { %199 = vst.msk [vmem:[#allocation2 + $0x1a0] sm:$0xff] %vm145_vm0, %v2719_v0 }
  0x43   : > { %200 = vst.msk [vmem:[#allocation2 + $0x1a8] sm:$0x3] %vm148_vm1, %v2719_v0  ;;  %vm1889_vm1 = vcmask 785408  }
  0x44   : > { %238 = vst.msk [vmem:[#allocation2 + $0x49] sm:$0xff] %vm145_vm0, %v205_v6 }
  0x45   : > { %239 = vst.msk [vmem:[#allocation2 + $0x51] sm:$0xff] %vm145_vm0, %v206_v7 }
  0x46   : > { %234 = vst.msk [vmem:[#allocation2 + $0x19] sm:$0xff] %vm145_vm0, %v201_v8 }
  0x47   : > { %235 = vst.msk [vmem:[#allocation2 + $0x21] sm:$0xff] %vm145_vm0, %v202_v9 }
  0x48   : > { %244 = vst.msk [vmem:[#allocation2 + $0x91] sm:$0xff] %vm145_vm0, %v211_v10 }
  0x49   : > { %245 = vst.msk [vmem:[#allocation2 + $0x99] sm:$0xff] %vm145_vm0, %v212_v11 }
  0x4a   : > { %240 = vst.msk [vmem:[#allocation2 + $0x61] sm:$0xff] %vm145_vm0, %v207_v12 }
  0x4b   : > { %v2906_v16 = vld [vmem:[#allocation2 + $0x48] sm:$0xff]  ;;  %241 = vst.msk [vmem:[#allocation2 + $0x69] sm:$0xff] %vm145_vm0, %v208_v13 }
  0x4c   : > { %v2910_v18 = vld [vmem:[#allocation2 + $0x50] sm:$0xff]  ;;  %236 = vst.msk [vmem:[#allocation2 + $0x31] sm:$0xff] %vm145_vm0, %v203_v14 }
  0x4d   : > { %v2916_v20 = vpack.i.bf16 %v2910_v18, %v2906_v16  ;;  %v2918_v21 = vld [vmem:[#allocation2 + $0x18] sm:$0xff]  ;;  %237 = vst.msk [vmem:[#allocation2 + $0x39] sm:$0xff] %vm145_vm0, %v204_v15 }
  0x4e   : > { %v2922_v23 = vld [vmem:[#allocation2 + $0x20] sm:$0xff]  ;;  %250 = vst.msk [vmem:[#allocation2 + $0xd9] sm:$0xff] %vm145_vm0, %v217_v17 }
  0x4f   : > { %4457 = vst [vmem:[#allocation3_spill] sm:$0xff] %v2922_v23  ;;  %2049 = vrot.lane.b32.xlu1 %v2916_v20, %s2720_s15  ;;  %v2038_v25 = vpack.i.bf16 %v2922_v23, %v2918_v21  ;;  %v2930_v26 = vld [vmem:[#allocation2 + $0x90] sm:$0xff] }
  0x50   : > { %4458 = vst [vmem:[#allocation4_spill] sm:$0xff] %v2930_v26  ;;  %v2934_v28 = vld [vmem:[#allocation2 + $0x98] sm:$0xff] }
  0x51   : > { %251 = vst.msk [vmem:[#allocation2 + $0xe1] sm:$0xff] %vm145_vm0, %v218_v19  ;;  %2039 = vrot.lane.b32.xlu0 %v2038_v25, %s2720_s15  ;;  %v2941_v30 = vpack.i.bf16 %v2934_v28, %v2930_v26  ;;  %v2943_v31 = vld [vmem:[#allocation2 + $0x60] sm:$0xff]  ;;  %v3086_v25 = vld [vmem:[#allocation2 + $0x8] sm:$0xff] }
  0x52   : > { %4459 = vst [vmem:[#allocation5_spill] sm:$0xff] %v2934_v28  ;;  %v2947_v33 = vld [vmem:[#allocation2 + $0x68] sm:$0xff] }
  0x53   : > { %248 = vst.msk [vmem:[#allocation2 + $0xc1] sm:$0xff] %vm145_vm0, %v215_v22  ;;  %2064 = vrot.lane.b32.xlu2 %v2941_v30, %s2720_s15  ;;  %v2955_v35 = vpack.i.bf16 %v2947_v33, %v2943_v31  ;;  %v2957_v36 = vld [vmem:[#allocation2 + $0x30] sm:$0xff] }
  0x54   : > { %249 = vst.msk [vmem:[#allocation2 + $0xc9] sm:$0xff] %vm145_vm0, %v216_v24  ;;  %v2961_v38 = vld [vmem:[#allocation2 + $0x38] sm:$0xff] }
  0x55   : > { %246 = vst.msk [vmem:[#allocation2 + $0xa9] sm:$0xff] %vm145_vm0, %v213_v27  ;;  %v2967_v40 = vpack.i.bf16 %v2961_v38, %v2957_v36  ;;  %v2969_v41 = vld [vmem:[#allocation2 + $0xd8] sm:$0xff]  ;;  %v3088_v27 = vld [vmem:[#allocation2 + $0x10] sm:$0x3] }
  0x56   : > { %247 = vst.msk [vmem:[#allocation2 + $0xb1] sm:$0xff] %vm145_vm0, %v214_v29  ;;  %v566_v29 = vrot.slane %v3086_v25, 1 }
  0x57   : > { %256 = vst.msk [vmem:[#allocation2 + $0x121] sm:$0xff] %vm145_vm0, %v223_v32  ;;  %2054 = vrot.lane.b32.xlu1 %v2955_v35, %s2720_s15 }
  0x58   : > { %257 = vst.msk [vmem:[#allocation2 + $0x129] sm:$0xff] %vm145_vm0, %v224_v34  ;;  %v2973_v43 = vld [vmem:[#allocation2 + $0xe0] sm:$0xff] }
  0x59   : > { %254 = vst.msk [vmem:[#allocation2 + $0x109] sm:$0xff] %vm145_vm0, %v221_v37  ;;  %v2981_v45 = vpack.i.bf16 %v2973_v43, %v2969_v41  ;;  %2044 = vrot.lane.b32.xlu0 %v2967_v40, %s2720_s15 }
  0x5a   : > { %255 = vst.msk [vmem:[#allocation2 + $0x111] sm:$0xff] %vm145_vm0, %v222_v39  ;;  %v2985_v47 = vld [vmem:[#allocation2 + $0xc0] sm:$0xff]  ;;  %v3101_v39 = vld [vmem:[#allocation2 + $0x198] sm:$0xff] }
  0x5b   : > { %v2987_v48 = vld [vmem:[#allocation2 + $0xc8] sm:$0xff]  ;;  %252 = vst.msk [vmem:[#allocation2 + $0xf1] sm:$0xff] %vm145_vm0, %v219_v42  ;;  %2079 = vrot.lane.b32.xlu2 %v2981_v45, %s2720_s15  ;;  %v580_v42 = vrot.slane %v2906_v16, 1 }
  0x5c   : > { %253 = vst.msk [vmem:[#allocation2 + $0xf9] sm:$0xff] %vm145_vm0, %v220_v44  ;;  %v2995_v51 = vld [vmem:[#allocation2 + $0xa8] sm:$0xff]  ;;  %v2073_v54 = vpack.i.bf16 %v2987_v48, %v2985_v47  ;;  %v581_v44 = vrot.slane %v2910_v18, 1 }
  0x5d   : > { %4460 = vst [vmem:[#allocation6_spill] sm:$0xff] %v2995_v51  ;;  %v2997_v52 = vld [vmem:[#allocation2 + $0xb0] sm:$0xff] }
  0x5e   : > { %4461 = vst [vmem:[#allocation7_spill] sm:$0xff] %v2997_v52  ;;  %v3007_v56 = vld [vmem:[#allocation2 + $0x120] sm:$0xff]  ;;  %v2068_v59 = vpack.i.bf16 %v2997_v52, %v2995_v51 }
  0x5f   : > { %262 = vst.msk [vmem:[#allocation2 + $0x169] sm:$0xff] %vm145_vm0, %v229_v46  ;;  %v3009_v57 = vld [vmem:[#allocation2 + $0x128] sm:$0xff]  ;;  %2074 = vrot.lane.b32.xlu1 %v2073_v54, %s2720_s15  ;;  %v3109_v46 = vld [vmem:[#allocation2 + $0x40] sm:$0x3] }
  0x60   : > { %263 = vst.msk [vmem:[#allocation2 + $0x171] sm:$0xff] %vm145_vm0, %v230_v49  ;;  %v2093_v62 = vpack.i.bf16 %v3009_v57, %v3007_v56  ;;  %v3023_v63 = vld [vmem:[#allocation2 + $0x108] sm:$0xff] }
  0x61   : > { %4462 = vst [vmem:[#allocation8_spill] sm:$0xff] %v3007_v56  ;;  %v3025_v0 = vld [vmem:[#allocation2 + $0x110] sm:$0xff]  ;;  %2069 = vrot.lane.b32.xlu0 %v2068_v59, %s2720_s15 }
  0x62   : > { %4463 = vst [vmem:[#allocation9_spill] sm:$0xff] %v3009_v57  ;;  %v3030_v1 = vld [vmem:[#allocation2 + $0xf0] sm:$0xff]  ;;  %v2088_v6 = vpack.i.bf16 %v3025_v0, %v3023_v63 }
  0x63   : > { %260 = vst.msk [vmem:[#allocation2 + $0x151] sm:$0xff] %vm145_vm0, %v227_v50  ;;  %v3032_v2 = vld [vmem:[#allocation2 + $0xf8] sm:$0xff]  ;;  %2094 = vrot.lane.b32.xlu2 %v2093_v62, %s2720_s15  ;;  %v575_v50 = vrot.slane %v2957_v36, 1 }
  0x64   : > { %261 = vst.msk [vmem:[#allocation2 + $0x159] sm:$0xff] %vm145_vm0, %v228_v53  ;;  %v2083_v9 = vpack.i.bf16 %v3032_v2, %v3030_v1  ;;  %v576_v53 = vrot.slane %v2961_v38, 1 }
  0x65   : > { %258 = vst.msk [vmem:[#allocation2 + $0x139] sm:$0xff] %vm145_vm0, %v225_v55  ;;  %v582_v55 = vsel %vm564_vm2, %v580_v42, %v581_v44 }
  0x66   : > { %259 = vst.msk [vmem:[#allocation2 + $0x141] sm:$0xff] %vm145_vm0, %v226_v58  ;;  %v3037_v7 = vld [vmem:[#allocation2 + $0x168] sm:$0xff] }
  0x67   : > { %264 = vst.msk [vmem:[#allocation2 + $0x181] sm:$0xff] %vm145_vm0, %v231_v60  ;;  %v3039_v8 = vld [vmem:[#allocation2 + $0x170] sm:$0xff]  ;;  %2089 = vrot.lane.b32.xlu1 %v2088_v6, %s2720_s15  ;;  %v3121_v60 = vld [vmem:[#allocation2 + $0xa0] sm:$0x3] }
  0x68   : > { %265 = vst.msk [vmem:[#allocation2 + $0x189] sm:$0xff] %vm145_vm0, %v232_v61  ;;  %v2108_v10 = vpack.i.bf16 %v3039_v8, %v3037_v7  ;;  %v570_v61 = vrot.slane %v2918_v21, 1 }
  0x69   : > { %4464 = vst [vmem:[#allocation10_spill] sm:$0xff] %v3037_v7  ;;  %2084 = vrot.lane.b32.xlu0 %v2083_v9, %s2720_s15 }
  0x6a   : > { %4465 = vst [vmem:[#allocation11_spill] sm:$0xff] %v3039_v8  ;;  %v3046_v11 = vld [vmem:[#allocation2 + $0x150] sm:$0xff] }
  0x6b   : > { %v3048_v12 = vld [vmem:[#allocation2 + $0x158] sm:$0xff]  ;;  %2109 = vrot.lane.b32.xlu2 %v2108_v10, %s2720_s15  ;;  %4466 = vst [vmem:[#allocation12_spill] sm:$0xff] %v3088_v27 }
  0x6c   : > { %v3051_v13 = vld [vmem:[#allocation2 + $0x138] sm:$0xff]  ;;  %v2103_v15 = vpack.i.bf16 %v3048_v12, %v3046_v11  ;;  %4468 = vst [vmem:[#allocation14_spill] sm:$0xff] %v3109_v46 }
  0x6d   : > { %v3053_v14 = vld [vmem:[#allocation2 + $0x140] sm:$0xff]  ;;  %4470 = vst [vmem:[#allocation16_spill] sm:$0xff] %v3121_v60 }
  0x6e   : > { %v2098_v17 = vpack.i.bf16 %v3053_v14, %v3051_v13  ;;  %v3062_v19 = vld [vmem:[#allocation2 + $0x180] sm:$0xff] }
  0x6f   : > { %2104 = vrot.lane.b32.xlu1 %v2103_v15, %s2720_s15  ;;  %v3064_v22 = vld [vmem:[#allocation2 + $0x188] sm:$0xff] }
  0x70   : > { %v2113_v24 = vpack.i.bf16 %v3064_v22, %v3062_v19 }
  0x71   : > { %2099 = vrot.lane.b32.xlu0 %v2098_v17, %s2720_s15 }
  0x73   : > { %2124 = vrot.lane.b32.xlu2 %v2916_v20, %s2721_s16  ;;  %v3084_v20 = vld [vmem:[#allocation2] sm:$0xff] }
  0x77   : > { %2119 = vrot.lane.b32.xlu1 %v2967_v40, %s2721_s16  ;;  %v3103_v40 = vld [vmem:[#allocation2 + $0x1a0] sm:$0xff]  ;;  %v3143_v42 = vpop.permute.xlu2 %2059 }
  0x78   : > { %v2193_v49 = vpack.i.bf16 %v3103_v40, %v3101_v39 }
  0x79   : > { %2114 = vrot.lane.b32.xlu0 %v2113_v24, %s2720_s15 }
  0x7b   : > { %2139 = vrot.lane.b32.xlu2 %v2941_v30, %s2721_s16  ;;  %v568_v30 = vrot.slane %v3088_v27, 1 }
  0x7d   : > { %v569_v34 = vsel %vm564_vm2, %v566_v29, %v568_v30  ;;  %v3135_v30 = vld [vmem:[#allocation2 + $0x88] sm:$0x3] }
  0x7e   : > { %4471 = vst [vmem:[#allocation17_spill] sm:$0xff] %v3135_v30 }
  0x7f   : > { %2134 = vrot.lane.b32.xlu1 %v2803_v5, %s2721_s16  ;;  %v565_v5 = vrot.slane %v3084_v20, 1 }
  0x81   : > { %2129 = vrot.lane.b32.xlu0 %v2955_v35, %s2721_s16  ;;  %v567_v32 = vsel %vm564_vm2, %v565_v5, %v566_v29  ;;  %v3098_v35 = vld [vmem:[#allocation2 + $0x58] sm:$0x3]  ;;  %v596_v5 = vrot.slane %v2934_v28, 1  ;;  %v598_v29 = vrot.slane %v3121_v60, 1 }
  0x82   : > { %4467 = vst [vmem:[#allocation13_spill] sm:$0xff] %v3098_v35  ;;  %v2198_v37 = vpack.i.bf16 %v569_v34, %v567_v32 }
  0x83   : > { %2154 = vrot.lane.b32.xlu2 %v2981_v45, %s2721_s16  ;;  %v583_v45 = vrot.slane %v3098_v35, 1 }
  0x85   : > { %v584_v58 = vsel %vm564_vm2, %v581_v44, %v583_v45  ;;  %v590_v44 = vrot.slane %v2793_v3, 1  ;;  %v591_v45 = vrot.slane %v2797_v4, 1 }
  0x87   : > { %2149 = vrot.lane.b32.xlu1 %v2073_v54, %s2721_s16  ;;  %v3116_v54 = vld [vmem:[#allocation2 + $0x28] sm:$0x3] }
  0x88   : > { %4469 = vst [vmem:[#allocation15_spill] sm:$0xff] %v3116_v54 }
  0x89   : > { %2144 = vrot.lane.b32.xlu0 %v2068_v59, %s2721_s16  ;;  %v578_v59 = vrot.slane %v3109_v46, 1 }
  0x8b   : > { %2169 = vrot.lane.b32.xlu2 %v2093_v62, %s2721_s16  ;;  %v571_v62 = vrot.slane %v2922_v23, 1 }
  0x8d   : > { %v572_v32 = vsel %vm564_vm2, %v570_v61, %v571_v62  ;;  %v586_v61 = vrot.slane %v2947_v33, 1 }
  0x8f   : > { %2164 = vrot.lane.b32.xlu1 %v2088_v6, %s2721_s16  ;;  %v573_v6 = vrot.slane %v3116_v54, 1  ;;  %v3205_v54 = vld [vmem:[#allocation2 + $0x118] sm:$0x3] }
  0x90   : > { %4477 = vst [vmem:[#allocation23_spill] sm:$0xff] %v3205_v54  ;;  %v623_v35 = vrot.slane %v3205_v54, 1 }
  0x91   : > { %2159 = vrot.lane.b32.xlu0 %v2083_v9, %s2721_s16  ;;  %v3127_v9 = vpack.i.bf16 %v584_v58, %v582_v55  ;;  %v574_v34 = vsel %vm564_vm2, %v571_v62, %v573_v6  ;;  %v3154_v58 = vld [vmem:[#allocation2 + $0xe8] sm:$0x3] }
  0x92   : > { %v3152_v55 = vpack.i.bf16 %v574_v34, %v572_v32  ;;  %4473 = vst [vmem:[#allocation19_spill] sm:$0xff] %v3154_v58  ;;  %v3170_v32 = vld [vmem:[#allocation2 + $0xd0] sm:$0x3] }
  0x93   : > { %2184 = vrot.lane.b32.xlu2 %v2108_v10, %s2721_s16  ;;  %v577_v10 = vsel %vm564_vm2, %v575_v50, %v576_v53  ;;  %v599_v50 = vsel %vm564_vm2, %v596_v5, %v598_v29  ;;  %v613_v29 = vrot.slane %v3154_v58, 1  ;;  %4474 = vst [vmem:[#allocation20_spill] sm:$0xff] %v3170_v32 }
  0x97   : > { %2179 = vrot.lane.b32.xlu1 %v2103_v15, %s2721_s16  ;;  %v579_v15 = vsel %vm564_vm2, %v576_v53, %v578_v59  ;;  %v593_v53 = vrot.slane %v3135_v30, 1  ;;  %v585_v59 = vrot.slane %v2943_v31, 1  ;;  %v608_v30 = vrot.slane %v3170_v32, 1 }
  0x99   : > { %2174 = vrot.lane.b32.xlu0 %v2098_v17, %s2721_s16  ;;  %v595_v17 = vrot.slane %v2930_v26, 1  ;;  %v587_v34 = vsel %vm564_vm2, %v585_v59, %v586_v61 }
  0x9b   : > { %2199 = vrot.lane.b32.xlu2 %v2198_v37, %s2722_s17  ;;  %v3141_v37 = vpack.i.bf16 %v579_v15, %v577_v10  ;;  %v592_v10 = vsel %vm564_vm2, %v590_v44, %v591_v45  ;;  %v594_v15 = vsel %vm564_vm2, %v591_v45, %v593_v53  ;;  %v605_v45 = vrot.slane %v2985_v47, 1  ;;  %v3180_v53 = vld [vmem:[#allocation2 + $0xb8] sm:$0x3] }
  0x9c   : > { %v3176_v44 = vpack.i.bf16 %v594_v15, %v592_v10  ;;  %4475 = vst [vmem:[#allocation21_spill] sm:$0xff] %v3180_v53  ;;  %v600_v10 = vrot.slane %v2995_v51, 1  ;;  %v601_v15 = vrot.slane %v2997_v52, 1  ;;  %v603_v60 = vrot.slane %v3180_v53, 1 }
  0x9e   : > { %v602_v53 = vsel %vm564_vm2, %v600_v10, %v601_v15 }
  0x9f   : > { %2194 = vrot.lane.b32.xlu1 %v2193_v49, %s2721_s16  ;;  %v3147_v49 = vld [vmem:[#allocation2 + $0x70] sm:$0x3] }
  0xa0   : > { %4472 = vst [vmem:[#allocation18_spill] sm:$0xff] %v3147_v49  ;;  %v588_v62 = vrot.slane %v3147_v49, 1 }
  0xa1   : > { %2189 = vrot.lane.b32.xlu0 %v2113_v24, %s2721_s16  ;;  %v597_v24 = vsel %vm564_vm2, %v595_v17, %v596_v5  ;;  %v610_v17 = vrot.slane %v2969_v41, 1  ;;  %v611_v5 = vrot.slane %v2973_v43, 1 }
  0xa2   : > { %v3161_v6 = vpack.i.bf16 %v599_v50, %v597_v24  ;;  %v589_v24 = vsel %vm564_vm2, %v586_v61, %v588_v62  ;;  %v606_v50 = vrot.slane %v2987_v48, 1  ;;  %v3189_v62 = vld [vmem:[#allocation2 + $0x130] sm:$0x3] }
  0xa3   : > { %2214 = vrot.lane.b32.xlu2 %v3127_v9, %s2722_s17  ;;  %v612_v58 = vsel %vm564_vm2, %v610_v17, %v611_v5  ;;  %v614_v49 = vsel %vm564_vm2, %v611_v5, %v613_v29  ;;  %v3185_v59 = vpack.i.bf16 %v589_v24, %v587_v34  ;;  %4476 = vst [vmem:[#allocation22_spill] sm:$0xff] %v3189_v62  ;;  %v625_v34 = vrot.slane %v3007_v56, 1  ;;  %v3240_v56 = vld [vmem:[#allocation2 + $0x160] sm:$0x3] }
  0xa4   : > { %v3196_v17 = vpack.i.bf16 %v614_v49, %v612_v58  ;;  %v607_v5 = vsel %vm564_vm2, %v605_v45, %v606_v50  ;;  %v609_v29 = vsel %vm564_vm2, %v606_v50, %v608_v30  ;;  %v626_v24 = vrot.slane %v3009_v57, 1  ;;  %v3215_v50 = vld [vmem:[#allocation2 + $0x100] sm:$0x3]  ;;  %4483 = vst [vmem:[#allocation29_spill] sm:$0xff] %v3240_v56 }
  0xa5   : > { %v628_v32 = vrot.slane %v3189_v62, 1  ;;  %v604_v49 = vsel %vm564_vm2, %v601_v15, %v603_v60  ;;  %v3211_v58 = vpack.i.bf16 %v609_v29, %v607_v5  ;;  %v620_v30 = vrot.slane %v3023_v63, 1  ;;  %4479 = vst [vmem:[#allocation25_spill] sm:$0xff] %v3215_v50  ;;  %v3224_v15 = vld [vmem:[#allocation2 + $0x178] sm:$0x3] }
  0xa6   : > { %v621_v45 = vrot.slane %v3025_v0, 1  ;;  %v627_v62 = vsel %vm564_vm2, %v625_v34, %v626_v24  ;;  %v3220_v10 = vpack.i.bf16 %v604_v49, %v602_v53  ;;  %4481 = vst [vmem:[#allocation27_spill] sm:$0xff] %v3224_v15  ;;  %v615_v5 = vrot.slane %v3030_v1, 1 }
  0xa7   : > { %2209 = vrot.lane.b32.xlu1 %v3141_v37, %s2722_s17  ;;  %4478 = vst [vmem:[#allocation24_spill] sm:$0xff] %v3211_v58  ;;  %v629_v46 = vsel %vm564_vm2, %v626_v24, %v628_v32  ;;  %v616_v29 = vrot.slane %v3032_v2, 1  ;;  %v618_v27 = vrot.slane %v3215_v50, 1  ;;  %v640_v24 = vrot.slane %v3037_v7, 1 }
  0xa8   : > { %4480 = vst [vmem:[#allocation26_spill] sm:$0xff] %v3220_v10  ;;  %v3231_v34 = vpack.i.bf16 %v629_v46, %v627_v62  ;;  %v622_v32 = vsel %vm564_vm2, %v620_v30, %v621_v45  ;;  %v624_v53 = vsel %vm564_vm2, %v621_v45, %v623_v35  ;;  %v641_v49 = vrot.slane %v3039_v8, 1  ;;  %v3249_v30 = vld [vmem:[#allocation2 + $0x148] sm:$0x3] }
  0xa9   : > { %2204 = vrot.lane.b32.xlu0 %v3152_v55, %s2722_s17  ;;  %v643_v54 = vrot.slane %v3224_v15, 1  ;;  %v617_v50 = vsel %vm564_vm2, %v615_v5, %v616_v29  ;;  %v619_v46 = vsel %vm564_vm2, %v616_v29, %v618_v27  ;;  %v3246_v62 = vpack.i.bf16 %v624_v53, %v622_v32  ;;  %4484 = vst [vmem:[#allocation30_spill] sm:$0xff] %v3249_v30 }
  0xaa   : > { %4482 = vst [vmem:[#allocation28_spill] sm:$0xff] %v3231_v34  ;;  %v635_v35 = vrot.slane %v3046_v11, 1  ;;  %v642_v45 = vsel %vm564_vm2, %v640_v24, %v641_v49  ;;  %v636_v7 = vrot.slane %v3048_v12, 1  ;;  %v638_v8 = vrot.slane %v3240_v56, 1 }
  0xab   : > { %2229 = vrot.lane.b32.xlu2 %v3161_v6, %s2722_s17  ;;  %v644_v15 = vsel %vm564_vm2, %v641_v49, %v643_v54  ;;  %v3255_v5 = vpack.i.bf16 %v619_v46, %v617_v50  ;;  %v630_v29 = vrot.slane %v3051_v13, 1  ;;  %v631_v32 = vrot.slane %v3053_v14, 1 }
  0xac   : > { %v633_v53 = vrot.slane %v3249_v30, 1  ;;  %v3264_v24 = vpack.i.bf16 %v644_v15, %v642_v45  ;;  %v637_v54 = vsel %vm564_vm2, %v635_v35, %v636_v7  ;;  %v639_v49 = vsel %vm564_vm2, %v636_v7, %v638_v8 }
  0xad   : > { %v3187_v61 = vpop.permute.xlu2 %2064  ;;  %v632_v46 = vsel %vm564_vm2, %v630_v29, %v631_v32  ;;  %v3278_v15 = vpack.i.bf16 %v639_v49, %v637_v54 }
  0xae   : > { %4485 = vst [vmem:[#allocation31_spill] sm:$0xff] %v3264_v24  ;;  %v634_v56 = vsel %vm564_vm2, %v631_v32, %v633_v53 }
  0xaf   : > { %2224 = vrot.lane.b32.xlu1 %v3176_v44, %s2722_s17  ;;  %v3280_v45 = vpack.i.bf16 %v634_v56, %v632_v46 }
  0xb1   : > { %2219 = vrot.lane.b32.xlu0 %v3185_v59, %s2722_s17 }
  0xb3   : > { %2244 = vrot.lane.b32.xlu2 %v3196_v17, %s2722_s17 }
  0xb5   : > { %v3222_v60 = vpop.permute.xlu2 %2079 }
  0xb7   : > { %2239 = vrot.lane.b32.xlu1 %v3211_v58, %s2722_s17 }
  0xb9   : > { %2234 = vrot.lane.b32.xlu0 %v3220_v10, %s2722_s17 }
  0xbb   : > { %2259 = vrot.lane.b32.xlu2 %v3231_v34, %s2722_s17 }
  0xbd   : > { %v3257_v27 = vpop.permute.xlu2 %2094 }
  0xbf   : > { %2254 = vrot.lane.b32.xlu1 %v3246_v62, %s2722_s17 }
  0xc1   : > { %2249 = vrot.lane.b32.xlu0 %v3255_v5, %s2722_s17  ;;  %v3270_v50 = vpop.permute.xlu1 %2049 }
  0xc3   : > { %v3274_v57 = vpop.permute.xlu0 %2039  ;;  %2274 = vrot.lane.b32.xlu2 %v3264_v24, %s2722_s17 }
  0xc5   : > { %v3282_v35 = vpop.permute.xlu2 %2109 }
  0xc7   : > { %2269 = vrot.lane.b32.xlu1 %v3278_v15, %s2722_s17 }
  0xc9   : > { %2264 = vrot.lane.b32.xlu0 %v3280_v45, %s2722_s17  ;;  %v3288_v7 = vpop.permute.xlu1 %2054 }
  0xcb   : > { %v3290_v8 = vpop.permute.xlu0 %2044  ;;  %2289 = vrot.lane.b32.xlu2 %v3127_v9, %s2723_s18 }
  0xcd   : > { %v3294_v29 = vpop.permute.xlu2 %2124 }
  0xcf   : > { %2284 = vrot.lane.b32.xlu1 %v3141_v37, %s2723_s18 }
  0xd1   : > { %2279 = vrot.lane.b32.xlu0 %v3152_v55, %s2723_s18  ;;  %v3300_v56 = vpop.permute.xlu1 %2074 }
  0xd3   : > { %v3302_v32 = vpop.permute.xlu0 %2069  ;;  %2304 = vrot.lane.b32.xlu2 %v3161_v6, %s2723_s18 }
  0xd5   : > { %v3306_v53 = vpop.permute.xlu2 %2139 }
  0xd6   : > { %4486 = vst [vmem:[#allocation32_spill] sm:$0xff] %v3306_v53 }
  0xd7   : > { %2299 = vrot.lane.b32.xlu1 %v3176_v44, %s2723_s18 }
  0xd9   : > { %2294 = vrot.lane.b32.xlu0 %v3185_v59, %s2723_s18  ;;  %v2090_v54 = vpop.permute.xlu1 %2089 }
  0xda   : > { %v2092_v30 = vunpack.i.h.bf16 %v2090_v54  ;;  %v2091_v51 = vunpack.i.l.bf16 %v2090_v54 }
  0xdb   : > { %v3312_v49 = vpop.permute.xlu0 %2084  ;;  %2319 = vrot.lane.b32.xlu2 %v3196_v17, %s2723_s18 }
  0xdd   : > { %v3316_v55 = vpop.permute.xlu2 %2154 }
  0xde   : > { %4487 = vst [vmem:[#allocation33_spill] sm:$0xff] %v3316_v55  ;;  %v1345_v55 = vsel %vm145_vm0, %v3032_v2, %v2092_v30 }
  0xdf   : > { %2314 = vrot.lane.b32.xlu1 %v3211_v58, %s2723_s18  ;;  %v1344_v58 = vsel %vm145_vm0, %v3030_v1, %v2091_v51  ;;  %v316_v51 = vld [vmem:[#allocation2 + $0x190] sm:$0x3]  ;;  %v2062_v1 = vunpack.i.h.bf16 %v3143_v42 }
  0xe1   : > { %2309 = vrot.lane.b32.xlu0 %v3220_v10, %s2723_s18  ;;  %v2105_v46 = vpop.permute.xlu1 %2104 }
  0xe3   : > { %v3322_v52 = vpop.permute.xlu0 %2099  ;;  %2334 = vrot.lane.b32.xlu2 %v3231_v34, %s2723_s18  ;;  %v2107_v34 = vunpack.i.h.bf16 %v2105_v46 }
  0xe4   : > { %4488 = vst [vmem:[#allocation34_spill] sm:$0xff] %v3322_v52  ;;  %v2106_v52 = vunpack.i.l.bf16 %v2105_v46 }
  0xe5   : > { %v2170_v23 = vpop.permute.xlu2 %2169  ;;  %v1351_v46 = vsel %vm145_vm0, %v3053_v14, %v2107_v34  ;;  %v2041_v34 = vunpack.i.l.bf16 %v3274_v57 }
  0xe6   : > { %v2172_v53 = vunpack.i.h.bf16 %v2170_v23  ;;  %v2171_v26 = vunpack.i.l.bf16 %v2170_v23 }
  0xe7   : > { %2329 = vrot.lane.b32.xlu1 %v3246_v62, %s2723_s18 }
  0xe8   : > { %v3333_v54 = vsel %vm1356_vm3, %v1344_v58, %v2171_v26  ;;  %v3336_v10 = vsel %vm1356_vm3, %v1345_v55, %v2172_v53  ;;  %v2061_v26 = vunpack.i.l.bf16 %v3143_v42  ;;  %v742_v58 = vrot.slane %v3062_v19, 1 }
  0xe9   : > { %4489 = vst [vmem:[#allocation35_spill] sm:$0xff] %v3333_v54  ;;  %2324 = vrot.lane.b32.xlu0 %v3255_v5, %s2723_s18  ;;  %v2120_v23 = vpop.permute.xlu1 %2119  ;;  %v743_v55 = vrot.slane %v3064_v22, 1  ;;  %v745_v54 = vrot.slane %v316_v51, 1 }
  0xea   : > { %4490 = vst [vmem:[#allocation36_spill] sm:$0xff] %v3336_v10  ;;  %v1350_v10 = vsel %vm145_vm0, %v3051_v13, %v2106_v52  ;;  %v3364_v51 = vsel %vm145_vm0, %v2943_v31, %v2061_v26  ;;  %v3368_v52 = vsel %vm145_vm0, %v2947_v33, %v2062_v1  ;;  %v2067_v13 = vunpack.i.h.bf16 %v3187_v61 }
  0xeb   : > { %v3340_v28 = vpop.permute.xlu0 %2114  ;;  %2349 = vrot.lane.b32.xlu2 %v3264_v24, %s2723_s18  ;;  %v2066_v31 = vunpack.i.l.bf16 %v3187_v61  ;;  %v2122_v26 = vunpack.i.h.bf16 %v2120_v23  ;;  %v2082_v1 = vunpack.i.h.bf16 %v3222_v60  ;;  %v2051_v61 = vunpack.i.l.bf16 %v3270_v50 }
  0xed   : > { %v2185_v2 = vpop.permute.xlu2 %2184 }
  0xee   : > { %v2187_v30 = vunpack.i.h.bf16 %v2185_v2  ;;  %v2186_v53 = vunpack.i.l.bf16 %v2185_v2  ;;  %v744_v2 = vsel %vm564_vm2, %v742_v58, %v743_v55  ;;  %v2096_v58 = vunpack.i.l.bf16 %v3257_v27 }
  0xef   : > { %2344 = vrot.lane.b32.xlu1 %v3278_v15, %s2723_s18 }
  0xf0   : > { %v3356_v42 = vsel %vm1356_vm3, %v1350_v10, %v2186_v53  ;;  %v3359_v19 = vsel %vm1356_vm3, %v1351_v46, %v2187_v30  ;;  %v2042_v10 = vunpack.i.h.bf16 %v3274_v57  ;;  %v746_v30 = vsel %vm564_vm2, %v743_v55, %v745_v54 }
  0xf1   : > { %4491 = vst [vmem:[#allocation37_spill] sm:$0xff] %v3356_v42  ;;  %2339 = vrot.lane.b32.xlu0 %v3280_v45, %s2723_s18  ;;  %v2135_v14 = vpop.permute.xlu1 %2134  ;;  %v2121_v53 = vunpack.i.l.bf16 %v2120_v23  ;;  %v2081_v46 = vunpack.i.l.bf16 %v3222_v60  ;;  %v2097_v57 = vunpack.i.h.bf16 %v3257_v27  ;;  %v2052_v54 = vunpack.i.h.bf16 %v3270_v50 }
  0xf2   : > { %4492 = vst [vmem:[#allocation38_spill] sm:$0xff] %v3359_v19  ;;  %v3388_v55 = vpack.i.bf16 %v746_v30, %v744_v2  ;;  %v1325_v22 = vsel %vm145_vm0, %v3086_v25, %v2042_v10  ;;  %v2112_v42 = vunpack.i.h.bf16 %v3282_v35  ;;  %v2111_v50 = vunpack.i.l.bf16 %v3282_v35 }
  0xf3   : > { %v3378_v33 = vpop.permute.xlu0 %2129  ;;  %2364 = vrot.lane.b32.xlu2 %v3127_v9, %s2724_s19  ;;  %v1324_v9 = vsel %vm145_vm0, %v3084_v20, %v2041_v34  ;;  %v1358_v19 = vsel %vm1356_vm3, %v1325_v22, %v2122_v26  ;;  %v2057_v2 = vunpack.i.h.bf16 %v3288_v7  ;;  %v3409_v30 = vsel %vm145_vm0, %v2797_v4, %v2067_v13 }
  0xf4   : > { %v1357_v27 = vsel %vm1356_vm3, %v1324_v9, %v2121_v53  ;;  %v3413_v22 = vsel %vm145_vm0, %v2793_v3, %v2066_v31  ;;  %v2056_v35 = vunpack.i.l.bf16 %v3288_v7  ;;  %v3428_v4 = vsel %vm145_vm0, %v3025_v0, %v2097_v57 }
  0xf5   : > { %v2200_v23 = vpop.permute.xlu2 %2199  ;;  %v3432_v3 = vsel %vm145_vm0, %v3023_v63, %v2096_v58  ;;  %v3440_v7 = vsel %vm145_vm0, %v2961_v38, %v2052_v54  ;;  %v2136_v13 = vunpack.i.l.bf16 %v2135_v14  ;;  %v3448_v0 = vsel %vm145_vm0, %v3048_v12, %v2112_v42 }
  0xf6   : > { %v2202_v24 = vunpack.i.h.bf16 %v2200_v23  ;;  %v2201_v60 = vunpack.i.l.bf16 %v2200_v23  ;;  %v3452_v63 = vsel %vm145_vm0, %v3046_v11, %v2111_v50  ;;  %v1331_v31 = vsel %vm145_vm0, %v2910_v18, %v2057_v2 }
  0xf7   : > { %2359 = vrot.lane.b32.xlu1 %v3141_v37, %s2724_s19  ;;  %v3417_v37 = vsel %vm145_vm0, %v2987_v48, %v2082_v1  ;;  %v3436_v48 = vsel %vm145_vm0, %v2957_v36, %v2051_v61  ;;  %v2046_v53 = vunpack.i.l.bf16 %v3290_v8  ;;  %v3457_v1 = vld [vmem:[#allocation2 + $0x1a8] sm:$0x3]  ;;  %v2086_v42 = vunpack.i.l.bf16 %v3312_v49 }
  0xf8   : > { %v3402_v10 = vsel %vm1389_vm4, %v1357_v27, %v2201_v60  ;;  %v3405_v34 = vsel %vm1389_vm4, %v1358_v19, %v2202_v24  ;;  %v3424_v24 = vsel %vm145_vm0, %v2985_v47, %v2081_v46  ;;  %v2137_v19 = vunpack.i.h.bf16 %v2135_v14  ;;  %4493 = vst [vmem:[#allocation39_spill] sm:$0xff] %v3457_v1 }
  0xf9   : > { %2354 = vrot.lane.b32.xlu0 %v3388_v55, %s2723_s18  ;;  %v2150_v26 = vpop.permute.xlu1 %2149  ;;  %v1330_v14 = vsel %vm145_vm0, %v2906_v16, %v2056_v35  ;;  %v2087_v46 = vunpack.i.h.bf16 %v3312_v49  ;;  %v4494_v54 = vrot.slane %v3103_v40, 1  ;;  %v4495_v16 = vrot.slane %v3101_v39, 1 }
  0xfa   : > { %v1364_v58 = vsel %vm1356_vm3, %v1331_v31, %v2137_v19  ;;  %v1363_v18 = vsel %vm1356_vm3, %v1330_v14, %v2136_v13  ;;  %v847_v61 = vrot.slane %v3457_v1, 1  ;;  %v1326_v49 = vsel %vm145_vm0, %v2918_v21, %v2046_v53 }
  0xfb   : > { %v3442_v47 = vpop.permute.xlu0 %2144  ;;  %2379 = vrot.lane.b32.xlu2 %v3161_v6, %s2724_s19  ;;  %v2047_v6 = vunpack.i.h.bf16 %v3290_v8  ;;  %v3473_v8 = vsel %vm564_vm2, %v4495_v16, %v4494_v54  ;;  %v2127_v23 = vunpack.i.h.bf16 %v3294_v29  ;;  %v2072_v39 = vunpack.i.h.bf16 %v3302_v32 }
  0xfc   : > { %v2071_v27 = vunpack.i.l.bf16 %v3302_v32  ;;  %v4496_v21 = vmov %v4494_v54  ;;  %v1343_v35 = vsel %vm145_vm0, %v2973_v43, %v2087_v46  ;;  %v1342_v32 = vsel %vm145_vm0, %v2969_v41, %v2086_v42 }
  0xfd   : > { %v2215_v12 = vpop.permute.xlu2 %2214  ;;  %v3493_v2 = vsel %vm564_vm2, %v4496_v21, %v847_v61  ;;  %v2152_v31 = vunpack.i.h.bf16 %v2150_v26  ;;  %v2151_v53 = vunpack.i.l.bf16 %v2150_v26  ;;  %v2077_v40 = vunpack.i.h.bf16 %v3300_v56  ;;  %v4499_v26 = vld [vmem:[#allocation32_spill] sm:$0xff] }
  0xfe   : > { %v2217_v57 = vunpack.i.h.bf16 %v2215_v12  ;;  %v2216_v11 = vunpack.i.l.bf16 %v2215_v12  ;;  %v2076_v14 = vunpack.i.l.bf16 %v3300_v56  ;;  %v4497_v12 = vld [vmem:[#allocation5_spill] sm:$0xff]  ;;  %v2142_v42 = vunpack.i.h.bf16 %v4499_v26 }
  0xff   : > { %2374 = vrot.lane.b32.xlu1 %v3176_v44, %s2724_s19  ;;  %v2126_v44 = vunpack.i.l.bf16 %v3294_v29  ;;  %v956_v29 = vrot.slane %v2957_v36, 2  ;;  %vm1886_vm2 = vcmask 654336  }
 0x100   : > { %v3480_v9 = vsel %vm1389_vm4, %v1363_v18, %v2216_v11  ;;  %v3483_v60 = vsel %vm1389_vm4, %v1364_v58, %v2217_v57  ;;  %v1337_v57 = vsel %vm145_vm0, %v4497_v12, %v2072_v39  ;;  %v4498_v11 = vld [vmem:[#allocation4_spill] sm:$0xff]  ;;  %v2141_v18 = vunpack.i.l.bf16 %v4499_v26 }
 0x101   : > { %2369 = vrot.lane.b32.xlu0 %v3185_v59, %s2724_s19  ;;  %v2165_v50 = vpop.permute.xlu1 %2164  ;;  %v1336_v41 = vsel %vm145_vm0, %v4498_v11, %v2071_v27  ;;  %v1370_v21 = vsel %vm1356_vm3, %v1337_v57, %v2152_v31  ;;  %v4501_v39 = vld [vmem:[#allocation24_spill] sm:$0xff]  ;;  %v4504_v57 = vld [vmem:[#allocation6_spill] sm:$0xff] }
 0x102   : > { %v2167_v19 = vunpack.i.h.bf16 %v2165_v50  ;;  %v2166_v13 = vunpack.i.l.bf16 %v2165_v50  ;;  %v1369_v50 = vsel %vm1356_vm3, %v1336_v41, %v2151_v53  ;;  %v4503_v53 = vld [vmem:[#allocation7_spill] sm:$0xff]  ;;  %v3541_v11 = vsel %vm145_vm0, %v4504_v57, %v2076_v14 }
 0x103   : > { %v3501_v59 = vpop.permute.xlu0 %2159  ;;  %2394 = vrot.lane.b32.xlu2 %v3196_v17, %s2724_s19  ;;  %v4500_v17 = vld [vmem:[#allocation34_spill] sm:$0xff]  ;;  %v3537_v31 = vsel %vm145_vm0, %v4503_v53, %v2077_v40  ;;  %v3548_v41 = vsel %vm1356_vm3, %v3368_v52, %v2142_v42 }
 0x104   : > { %v1375_v43 = vsel %vm1356_vm3, %v1342_v32, %v2166_v13  ;;  %v1376_v46 = vsel %vm1356_vm3, %v1343_v35, %v2167_v19  ;;  %v2102_v54 = vunpack.i.h.bf16 %v4500_v17  ;;  %v2101_v56 = vunpack.i.l.bf16 %v4500_v17  ;;  %v4502_v35 = vld [vmem:[#allocation3_spill] sm:$0xff]  ;;  %v4507_v17 = vld [vmem:[#allocation8_spill] sm:$0xff] }
 0x105   : > { %v2230_v58 = vpop.permute.xlu2 %2229  ;;  %v1327_v27 = vsel %vm145_vm0, %v4502_v35, %v2047_v6  ;;  %v3524_v19 = vsel %vm1356_vm3, %v1326_v49, %v2126_v44  ;;  %v2117_v6 = vunpack.i.h.bf16 %v3340_v28  ;;  %v4505_v49 = vld [vmem:[#allocation26_spill] sm:$0xff] }
 0x106   : > { %v2232_v16 = vunpack.i.h.bf16 %v2230_v58  ;;  %v2231_v61 = vunpack.i.l.bf16 %v2230_v58  ;;  %v3533_v12 = vsel %vm1356_vm3, %v1327_v27, %v2127_v23  ;;  %v3552_v23 = vsel %vm1356_vm3, %v3364_v51, %v2141_v18  ;;  %v4506_v58 = vld [vmem:[#allocation9_spill] sm:$0xff] }
 0x107   : > { %2389 = vrot.lane.b32.xlu1 %v4501_v39, %s2724_s19  ;;  %v1349_v14 = vsel %vm145_vm0, %v4506_v58, %v2102_v54  ;;  %v4509_v39 = vld [vmem:[#allocation33_spill] sm:$0xff]  ;;  %v4510_v54 = vld [vmem:[#allocation11_spill] sm:$0xff]  ;;  %v4511_v58 = vld [vmem:[#allocation12_spill] sm:$0xff] }
 0x108   : > { %v3527_v13 = vsel %vm1389_vm4, %v1369_v50, %v2231_v61  ;;  %v3530_v32 = vsel %vm1389_vm4, %v1370_v21, %v2232_v16  ;;  %v1348_v16 = vsel %vm145_vm0, %v4507_v17, %v2101_v56  ;;  %v2116_v61 = vunpack.i.l.bf16 %v3340_v28  ;;  %v4508_v21 = vld [vmem:[#allocation28_spill] sm:$0xff] }
 0x109   : > { %2384 = vrot.lane.b32.xlu0 %v4505_v49, %s2724_s19  ;;  %v2180_v44 = vpop.permute.xlu1 %2179  ;;  %v2157_v35 = vunpack.i.h.bf16 %v4509_v39  ;;  %v2156_v27 = vunpack.i.l.bf16 %v4509_v39  ;;  %v1355_v53 = vsel %vm145_vm0, %v4510_v54, %v2117_v6  ;;  %v949_v6 = vrot.slane %v4511_v58, 2  ;;  %v2678_v39 = vld [vmem:[#allocation2 + $0x48] sm:$0xff]  ;;  %v2679_v54 = vld [vmem:[#allocation2 + $0x50] sm:$0xff] }
 0x10a   : > { %v2182_v40 = vunpack.i.h.bf16 %v2180_v44  ;;  %v2181_v26 = vunpack.i.l.bf16 %v2180_v44 }
 0x10b   : > { %v2175_v50 = vpop.permute.xlu0 %2174  ;;  %2409 = vrot.lane.b32.xlu2 %v4508_v21, %s2724_s19  ;;  %v3618_v36 = vsel %vm1356_vm3, %v3537_v31, %v2157_v35 }
 0x10c   : > { %v1381_v52 = vsel %vm1356_vm3, %v1348_v16, %v2181_v26  ;;  %v1382_v42 = vsel %vm1356_vm3, %v1349_v14, %v2182_v40  ;;  %v2177_v51 = vunpack.i.h.bf16 %v2175_v50  ;;  %v2176_v18 = vunpack.i.l.bf16 %v2175_v50  ;;  %v4512_v14 = vld [vmem:[#allocation10_spill] sm:$0xff] }
 0x10d   : > { %v2245_v56 = vpop.permute.xlu2 %2244  ;;  %v946_v40 = vrot.slane %v3084_v20, 2  ;;  %v947_v26 = vrot.slane %v3086_v25, 2  ;;  %v1354_v17 = vsel %vm145_vm0, %v4512_v14, %v2116_v61  ;;  %v2132_v16 = vunpack.i.h.bf16 %v3378_v33  ;;  %v4514_v14 = vld [vmem:[#allocation13_spill] sm:$0xff] }
 0x10e   : > { %v3569_v28 = vsel %vm1356_vm3, %v3428_v4, %v2177_v51  ;;  %v3573_v57 = vsel %vm1356_vm3, %v3432_v3, %v2176_v18  ;;  %v2247_v49 = vunpack.i.h.bf16 %v2245_v56  ;;  %v2246_v44 = vunpack.i.l.bf16 %v2245_v56  ;;  %v4513_v51 = vld [vmem:[#allocation31_spill] sm:$0xff] }
 0x10f   : > { %2404 = vrot.lane.b32.xlu1 %v3246_v62, %s2724_s19  ;;  %v2131_v62 = vunpack.i.l.bf16 %v3378_v33  ;;  %v2147_v25 = vunpack.i.h.bf16 %v3442_v47  ;;  %v2146_v50 = vunpack.i.l.bf16 %v3442_v47  ;;  %v950_v18 = vsel %vm945_vm5, %v947_v26, %v949_v6 }
 0x110   : > { %v3583_v4 = vsel %vm1389_vm4, %v1375_v43, %v2246_v44  ;;  %v3586_v3 = vsel %vm1389_vm4, %v1376_v46, %v2247_v49  ;;  %v948_v46 = vsel %vm945_vm5, %v946_v40, %v947_v26  ;;  %v961_v33 = vrot.slane %v2678_v39, 2  ;;  %v4515_v40 = vld [vmem:[#allocation14_spill] sm:$0xff]  ;;  %v2683_v39 = vld [vmem:[#allocation2 + $0x98] sm:$0xff] }
 0x111   : > { %2399 = vrot.lane.b32.xlu0 %v3255_v5, %s2724_s19  ;;  %v2195_v20 = vpop.permute.xlu1 %2194  ;;  %v962_v56 = vrot.slane %v2679_v54, 2  ;;  %v959_v1 = vrot.slane %v4515_v40, 2  ;;  %vm1883_vm0 = vcmask 523264  }
 0x112   : > { %v2197_v61 = vunpack.i.h.bf16 %v2195_v20  ;;  %v2196_v21 = vunpack.i.l.bf16 %v2195_v20  ;;  %v964_v20 = vrot.slane %v4514_v14, 2  ;;  %v4517_v14 = vld [vmem:[#allocation16_spill] sm:$0xff] }
 0x113   : > { %v2190_v43 = vpop.permute.xlu0 %2189  ;;  %2424 = vrot.lane.b32.xlu2 %v4513_v51, %s2724_s19  ;;  %v957_v51 = vrot.slane %v2961_v38, 2  ;;  %v1362_v38 = vsel %vm1356_vm3, %v3440_v7, %v2132_v16  ;;  %v3638_v7 = vsel %vm1356_vm3, %v3413_v22, %v2146_v50  ;;  %v2681_v22 = vld [vmem:[#allocation2 + $0x20] sm:$0xff] }
 0x114   : > { %v1387_v5 = vsel %vm1356_vm3, %v1354_v17, %v2196_v21  ;;  %v1388_v49 = vsel %vm1356_vm3, %v1355_v53, %v2197_v61  ;;  %v2192_v44 = vunpack.i.h.bf16 %v2190_v43  ;;  %v2191_v47 = vunpack.i.l.bf16 %v2190_v43 }
 0x115   : > { %v2260_v58 = vpop.permute.xlu2 %2259  ;;  %v3614_v61 = vsel %vm1356_vm3, %v3541_v11, %v2156_v27  ;;  %v3628_v21 = vsel %vm1356_vm3, %v3409_v30, %v2147_v25  ;;  %v965_v35 = vsel %vm945_vm5, %v962_v56, %v964_v20  ;;  %v2680_v30 = vld [vmem:[#allocation2 + $0x18] sm:$0xff]  ;;  %v952_v50 = vrot.slane %v2681_v22, 2 }
 0x116   : > { %v3606_v26 = vsel %vm1356_vm3, %v3448_v0, %v2192_v44  ;;  %v3610_v6 = vsel %vm1356_vm3, %v3452_v63, %v2191_v47  ;;  %v2262_v53 = vunpack.i.h.bf16 %v2260_v58  ;;  %v2261_v17 = vunpack.i.l.bf16 %v2260_v58 }
 0x117   : > { %2419 = vrot.lane.b32.xlu1 %v3278_v15, %s2724_s19  ;;  %v2438_v0 = vpack.i.bf16 %v950_v18, %v948_v46  ;;  %v1361_v63 = vsel %vm1356_vm3, %v3436_v48, %v2131_v62  ;;  %v963_v48 = vsel %vm945_vm5, %v961_v33, %v962_v56  ;;  %v951_v27 = vrot.slane %v2680_v30, 2  ;;  %v2682_v46 = vld [vmem:[#allocation2 + $0x90] sm:$0xff] }
 0x118   : > { %v3631_v11 = vsel %vm1389_vm4, %v1381_v52, %v2261_v17  ;;  %v3634_v31 = vsel %vm1389_vm4, %v1382_v42, %v2262_v53  ;;  %v958_v62 = vsel %vm945_vm5, %v956_v29, %v957_v51  ;;  %v960_v42 = vsel %vm945_vm5, %v957_v51, %v959_v1 }
 0x119   : > { %2414 = vrot.lane.b32.xlu0 %v3280_v45, %s2724_s19  ;;  %v2210_v15 = vpop.permute.xlu1 %2209  ;;  %v4516_v45 = vld [vmem:[#allocation15_spill] sm:$0xff]  ;;  %v976_v18 = vrot.slane %v2682_v46, 2  ;;  %v977_v33 = vrot.slane %v2683_v39, 2  ;;  %v2162_v44 = vunpack.i.h.bf16 %v3501_v59  ;;  %v2161_v47 = vunpack.i.l.bf16 %v3501_v59  ;;  %v4525_v59 = vld [vmem:[#allocation21_spill] sm:$0xff] }
 0x11a   : > { %v2212_v16 = vunpack.i.h.bf16 %v2210_v15  ;;  %v2211_v52 = vunpack.i.l.bf16 %v2210_v15  ;;  %v954_v43 = vrot.slane %v4516_v45, 2  ;;  %v979_v20 = vrot.slane %v4517_v14, 2 }
 0x11b   : > { %v2205_v25 = vpop.permute.xlu0 %2204  ;;  %2439 = vrot.lane.b32.xlu2 %v2438_v0, %s2725_s20  ;;  %v3669_v0 = vpack.i.bf16 %v965_v35, %v963_v48  ;;  %v3674_v15 = vsel %vm945_vm5, %v951_v27, %v952_v50  ;;  %v2684_v35 = vld [vmem:[#allocation2 + $0x78] sm:$0xff] }
 0x11c   : > { %v3649_v54 = vsel %vm1389_vm4, %v1361_v63, %v2211_v52  ;;  %v3652_v56 = vsel %vm1389_vm4, %v1362_v38, %v2212_v16  ;;  %v2207_v29 = vunpack.i.h.bf16 %v2205_v25  ;;  %v2206_v1 = vunpack.i.l.bf16 %v2205_v25  ;;  %v2685_v16 = vld [vmem:[#allocation2 + $0x80] sm:$0xff] }
 0x11d   : > { %v2275_v58 = vpop.permute.xlu2 %2274  ;;  %v4518_v38 = vpack.i.bf16 %v3493_v2, %v3473_v8  ;;  %v3671_v63 = vpack.i.bf16 %v960_v42, %v958_v62  ;;  %v3683_v30 = vsel %vm945_vm5, %v952_v50, %v954_v43  ;;  %v978_v8 = vsel %vm945_vm5, %v976_v18, %v977_v33  ;;  %v2686_v25 = vld [vmem:[#allocation2 + $0x60] sm:$0xff]  ;;  %v2687_v50 = vld [vmem:[#allocation2 + $0x68] sm:$0xff]  ;;  %v2688_v18 = vld [vmem:[#allocation2 + $0xd8] sm:$0xff] }
 0x11e   : > { %v3659_v51 = vsel %vm1389_vm4, %v3533_v12, %v2207_v29  ;;  %v3663_v40 = vsel %vm1389_vm4, %v3524_v19, %v2206_v1  ;;  %v2277_v53 = vunpack.i.h.bf16 %v2275_v58  ;;  %v2276_v17 = vunpack.i.l.bf16 %v2275_v58  ;;  %v4521_v1 = vld [vmem:[#allocation19_spill] sm:$0xff] }
 0x11f   : > { %2434 = vrot.lane.b32.xlu1 %v4518_v38, %s2724_s19  ;;  %v980_v48 = vsel %vm945_vm5, %v977_v33, %v979_v20  ;;  %v971_v27 = vrot.slane %v2684_v35, 2  ;;  %v972_v52 = vrot.slane %v2685_v16, 2  ;;  %v966_v22 = vrot.slane %v2686_v25, 2  ;;  %v2689_v33 = vld [vmem:[#allocation2 + $0xe0] sm:$0xff] }
 0x120   : > { %v3677_v12 = vsel %vm1389_vm4, %v1387_v5, %v2276_v17  ;;  %v3680_v19 = vsel %vm1389_vm4, %v1388_v49, %v2277_v53  ;;  %v4519_v5 = vld [vmem:[#allocation17_spill] sm:$0xff]  ;;  %v967_v45 = vrot.slane %v2687_v50, 2  ;;  %v991_v39 = vrot.slane %v2688_v18, 2 }
 0x121   : > { %2429 = vrot.lane.b32.xlu0 %v3388_v55, %s2724_s19  ;;  %v2225_v2 = vpop.permute.xlu1 %2224  ;;  %v974_v62 = vrot.slane %v4519_v5, 2  ;;  %v4520_v55 = vld [vmem:[#allocation18_spill] sm:$0xff]  ;;  %v992_v29 = vrot.slane %v2689_v33, 2  ;;  %v994_v58 = vrot.slane %v4521_v1, 2  ;;  %v2443_v38 = vpack.i.bf16 %v3683_v30, %v3674_v15 }
 0x122   : > { %v2227_v42 = vunpack.i.h.bf16 %v2225_v2  ;;  %v2226_v49 = vunpack.i.l.bf16 %v2225_v2  ;;  %v969_v46 = vrot.slane %v4520_v55, 2  ;;  %v3704_v35 = vpack.i.bf16 %v980_v48, %v978_v8 }
 0x123   : > { %v2220_v43 = vpop.permute.xlu0 %2219  ;;  %2454 = vrot.lane.b32.xlu2 %v3669_v0, %s2725_s20  ;;  %v973_v16 = vsel %vm945_vm5, %v971_v27, %v972_v52  ;;  %v975_v5 = vsel %vm945_vm5, %v972_v52, %v974_v62  ;;  %v968_v8 = vsel %vm945_vm5, %v966_v22, %v967_v45  ;;  %v2690_v27 = vld [vmem:[#allocation2 + $0xc0] sm:$0xff]  ;;  %v2691_v52 = vld [vmem:[#allocation2 + $0xc8] sm:$0xff]  ;;  %v3729_v50 = vsel %vm945_vm5, %v991_v39, %v992_v29 }
 0x124   : > { %v3696_v14 = vsel %vm1389_vm4, %v3638_v7, %v2226_v49  ;;  %v3700_v20 = vsel %vm1389_vm4, %v3628_v21, %v2227_v42  ;;  %v2222_v53 = vunpack.i.h.bf16 %v2220_v43  ;;  %v2221_v17 = vunpack.i.l.bf16 %v2220_v43 }
 0x125   : > { %v2290_v2 = vpop.permute.xlu2 %2289  ;;  %v970_v48 = vsel %vm945_vm5, %v967_v45, %v969_v46  ;;  %v986_v25 = vrot.slane %v2690_v27, 2  ;;  %v987_v62 = vrot.slane %v2691_v52, 2  ;;  %v3732_v43 = vsel %vm945_vm5, %v992_v29, %v994_v58  ;;  %v2692_v46 = vld [vmem:[#allocation2 + $0xa8] sm:$0xff] }
 0x126   : > { %v3710_v7 = vsel %vm1389_vm4, %v3548_v41, %v2222_v53  ;;  %v3714_v21 = vsel %vm1389_vm4, %v3552_v23, %v2221_v17  ;;  %v2292_v42 = vunpack.i.h.bf16 %v2290_v2  ;;  %v2291_v49 = vunpack.i.l.bf16 %v2290_v2  ;;  %v2695_v27 = vld [vmem:[#allocation2 + $0x128] sm:$0xff] }
 0x127   : > { %2449 = vrot.lane.b32.xlu1 %v3671_v63, %s2725_s20  ;;  %v1374_v22 = vsel %vm1356_vm3, %v3417_v37, %v2162_v44  ;;  %v981_v18 = vrot.slane %v2692_v46, 2  ;;  %v1373_v39 = vsel %vm1356_vm3, %v3424_v24, %v2161_v47  ;;  %v3744_v58 = vpack.i.bf16 %v975_v5, %v973_v16 }
 0x128   : > { %v3722_v41 = vsel %vm1422_vm6, %v3649_v54, %v2291_v49  ;;  %v3726_v23 = vsel %vm1422_vm6, %v3652_v56, %v2292_v42  ;;  %v4522_v54 = vld [vmem:[#allocation20_spill] sm:$0xff]  ;;  %v2693_v56 = vld [vmem:[#allocation2 + $0xb0] sm:$0xff]  ;;  %v3748_v37 = vpack.i.bf16 %v970_v48, %v968_v8  ;;  %v3752_v44 = vpack.i.bf16 %v3732_v43, %v3729_v50  ;;  %v2694_v8 = vld [vmem:[#allocation2 + $0x120] sm:$0xff] }
 0x129   : > { %2444 = vrot.lane.b32.xlu0 %v2443_v38, %s2725_s20  ;;  %v2240_v45 = vpop.permute.xlu1 %2239  ;;  %v989_v55 = vrot.slane %v4522_v54, 2  ;;  %v982_v33 = vrot.slane %v2693_v56, 2  ;;  %v988_v17 = vsel %vm945_vm5, %v986_v25, %v987_v62  ;;  %v984_v38 = vrot.slane %v4525_v59, 2 }
 0x12a   : > { %v2242_v29 = vunpack.i.h.bf16 %v2240_v45  ;;  %v2241_v1 = vunpack.i.l.bf16 %v2240_v45  ;;  %4523 = vst [vmem:[#allocation5_spill] sm:$0xff] %v3748_v37  ;;  %v1006_v48 = vrot.slane %v2694_v8, 2  ;;  %v1007_v52 = vrot.slane %v2695_v27, 2  ;;  %v2698_v27 = vld [vmem:[#allocation2 + $0xf0] sm:$0xff] }
 0x12b   : > { %v2235_v53 = vpop.permute.xlu0 %2234  ;;  %2469 = vrot.lane.b32.xlu2 %v3704_v35, %s2725_s20  ;;  %4524 = vst [vmem:[#allocation4_spill] sm:$0xff] %v3752_v44  ;;  %v990_v42 = vsel %vm945_vm5, %v987_v62, %v989_v55  ;;  %v983_v49 = vsel %vm945_vm5, %v981_v18, %v982_v33  ;;  %v985_v62 = vsel %vm945_vm5, %v982_v33, %v984_v38  ;;  %v4526_v55 = vld [vmem:[#allocation22_spill] sm:$0xff]  ;;  %v4528_v33 = vld [vmem:[#allocation23_spill] sm:$0xff]  ;;  %vm1892_vm3 = vcmask 916480  }
 0x12c   : > { %v1406_v24 = vsel %vm1389_vm4, %v1373_v39, %v2241_v1  ;;  %v1407_v47 = vsel %vm1389_vm4, %v1374_v22, %v2242_v29  ;;  %v2237_v2 = vunpack.i.h.bf16 %v2235_v53  ;;  %v2236_v16 = vunpack.i.l.bf16 %v2235_v53  ;;  %v2696_v18 = vld [vmem:[#allocation2 + $0x108] sm:$0xff]  ;;  %v2697_v39 = vld [vmem:[#allocation2 + $0x110] sm:$0xff] }
 0x12d   : > { %v2305_v5 = vpop.permute.xlu2 %2304  ;;  %v1009_v46 = vrot.slane %v4526_v55, 2  ;;  %v1001_v56 = vrot.slane %v2696_v18, 2  ;;  %v1002_v29 = vrot.slane %v2697_v39, 2  ;;  %v3782_v53 = vpack.i.bf16 %v990_v42, %v988_v17  ;;  %v2699_v17 = vld [vmem:[#allocation2 + $0xf8] sm:$0xff]  ;;  %v4529_v39 = vld [vmem:[#allocation25_spill] sm:$0xff] }
 0x12e   : > { %v3762_v25 = vsel %vm1389_vm4, %v3618_v36, %v2237_v2  ;;  %v3766_v45 = vsel %vm1389_vm4, %v3614_v61, %v2236_v16  ;;  %v2307_v22 = vunpack.i.h.bf16 %v2305_v5  ;;  %v2306_v54 = vunpack.i.l.bf16 %v2305_v5 }
 0x12f   : > { %2464 = vrot.lane.b32.xlu1 %v3744_v58, %s2725_s20  ;;  %4527 = vst [vmem:[#allocation32_spill] sm:$0xff] %v3782_v53  ;;  %v1004_v59 = vrot.slane %v4528_v33, 2  ;;  %v3785_v16 = vpack.i.bf16 %v985_v62, %v983_v49  ;;  %v1008_v5 = vsel %vm945_vm5, %v1006_v48, %v1007_v52  ;;  %v1003_v8 = vsel %vm945_vm5, %v1001_v56, %v1002_v29  ;;  %v2701_v56 = vld [vmem:[#allocation2 + $0x170] sm:$0xff] }
 0x130   : > { %v3774_v36 = vsel %vm1422_vm6, %v3696_v14, %v2306_v54  ;;  %v3778_v61 = vsel %vm1422_vm6, %v3700_v20, %v2307_v22  ;;  %v1010_v20 = vsel %vm945_vm5, %v1007_v52, %v1009_v46  ;;  %v996_v22 = vrot.slane %v2698_v27, 2  ;;  %v2700_v52 = vld [vmem:[#allocation2 + $0x168] sm:$0xff]  ;;  %v4530_v27 = vld [vmem:[#allocation36_spill] sm:$0xff] }
 0x131   : > { %2459 = vrot.lane.b32.xlu0 %v3748_v37, %s2725_s20  ;;  %v2255_v1 = vpop.permute.xlu1 %2254  ;;  %v997_v42 = vrot.slane %v2699_v17, 2  ;;  %v1005_v18 = vsel %vm945_vm5, %v1002_v29, %v1004_v59  ;;  %v1021_v46 = vrot.slane %v2700_v52, 2  ;;  %v1022_v33 = vrot.slane %v2701_v56, 2  ;;  %v4532_v59 = vld [vmem:[#allocation27_spill] sm:$0xff] }
 0x132   : > { %v2257_v38 = vunpack.i.h.bf16 %v2255_v1  ;;  %v2256_v2 = vunpack.i.l.bf16 %v2255_v1  ;;  %v999_v1 = vrot.slane %v4529_v39, 2  ;;  %v3808_v29 = vpack.i.bf16 %v1010_v20, %v1008_v5 }
 0x133   : > { %v2250_v14 = vpop.permute.xlu0 %2249  ;;  %2484 = vrot.lane.b32.xlu2 %v3752_v44, %s2725_s20  ;;  %v4531_v44 = vld [vmem:[#allocation35_spill] sm:$0xff]  ;;  %v1023_v20 = vsel %vm945_vm5, %v1021_v46, %v1022_v33 }
 0x134   : > { %v1412_v54 = vsel %vm1389_vm4, %v3573_v57, %v2256_v2  ;;  %v1413_v49 = vsel %vm1389_vm4, %v3569_v28, %v2257_v38  ;;  %v2252_v62 = vunpack.i.h.bf16 %v2250_v14  ;;  %v2251_v48 = vunpack.i.l.bf16 %v2250_v14 }
 0x135   : > { %v2320_v55 = vpop.permute.xlu2 %2319  ;;  %v1024_v2 = vrot.slane %v4532_v59, 2  ;;  %v1000_v5 = vsel %vm945_vm5, %v997_v42, %v999_v1 }
 0x136   : > { %v3800_v17 = vsel %vm1389_vm4, %v4530_v27, %v2252_v62  ;;  %v3804_v57 = vsel %vm1389_vm4, %v4531_v44, %v2251_v48  ;;  %v2322_v28 = vunpack.i.h.bf16 %v2320_v55  ;;  %v2321_v38 = vunpack.i.l.bf16 %v2320_v55 }
 0x137   : > { %2479 = vrot.lane.b32.xlu1 %v3782_v53, %s2725_s20  ;;  %v3819_v62 = vpack.i.bf16 %v1005_v18, %v1003_v8  ;;  %v998_v48 = vsel %vm945_vm5, %v996_v22, %v997_v42  ;;  %v4535_v8 = vld [vmem:[#allocation29_spill] sm:$0xff] }
 0x138   : > { %v3812_v14 = vsel %vm1422_vm6, %v1406_v24, %v2321_v38  ;;  %v3815_v39 = vsel %vm1422_vm6, %v1407_v47, %v2322_v28  ;;  %v1025_v24 = vsel %vm945_vm5, %v1022_v33, %v1024_v2  ;;  %v2702_v47 = vld [vmem:[#allocation2 + $0x150] sm:$0xff]  ;;  %v2703_v28 = vld [vmem:[#allocation2 + $0x158] sm:$0xff]  ;;  %v1019_v18 = vrot.slane %v4535_v8, 2  ;;  %v2705_v33 = vld [vmem:[#allocation2 + $0x140] sm:$0xff] }
 0x139   : > { %4533 = vst [vmem:[#allocation34_spill] sm:$0xff] %v3812_v14  ;;  %2474 = vrot.lane.b32.xlu0 %v3785_v16, %s2725_s20  ;;  %v2270_v44 = vpop.permute.xlu1 %2269  ;;  %v1016_v27 = vrot.slane %v2702_v47, 2  ;;  %v1017_v38 = vrot.slane %v2703_v28, 2  ;;  %v3832_v59 = vpack.i.bf16 %v1000_v5, %v998_v48  ;;  %v2704_v14 = vld [vmem:[#allocation2 + $0x138] sm:$0xff]  ;;  %v1012_v2 = vrot.slane %v2705_v33, 2  ;;  %v4536_v47 = vld [vmem:[#allocation30_spill] sm:$0xff] }
 0x13a   : > { %4534 = vst [vmem:[#allocation24_spill] sm:$0xff] %v3815_v39  ;;  %v2272_v55 = vunpack.i.h.bf16 %v2270_v44  ;;  %v2271_v52 = vunpack.i.l.bf16 %v2270_v44  ;;  %v1011_v39 = vrot.slane %v2704_v14, 2  ;;  %v1014_v37 = vrot.slane %v4536_v47, 2  ;;  %v4537_v28 = vld [vmem:[#allocation38_spill] sm:$0xff]  ;;  %v4538_v53 = vld [vmem:[#allocation37_spill] sm:$0xff] }
 0x13b   : > { %v2265_v56 = vpop.permute.xlu0 %2264  ;;  %2499 = vrot.lane.b32.xlu2 %v3808_v29, %s2725_s20  ;;  %v3845_v48 = vpack.i.bf16 %v1025_v24, %v1023_v20  ;;  %v1018_v5 = vsel %vm945_vm5, %v1016_v27, %v1017_v38 }
 0x13c   : > { %v1418_v22 = vsel %vm1389_vm4, %v3610_v6, %v2271_v52  ;;  %v1419_v42 = vsel %vm1389_vm4, %v3606_v26, %v2272_v55  ;;  %v2267_v1 = vunpack.i.h.bf16 %v2265_v56  ;;  %v2266_v46 = vunpack.i.l.bf16 %v2265_v56 }
 0x13d   : > { %v2335_v44 = vpop.permute.xlu2 %2334  ;;  %v1020_v56 = vsel %vm945_vm5, %v1017_v38, %v1019_v18  ;;  %v1015_v20 = vsel %vm945_vm5, %v1012_v2, %v1014_v37 }
 0x13e   : > { %v3837_v8 = vsel %vm1389_vm4, %v4537_v28, %v2267_v1  ;;  %v3841_v6 = vsel %vm1389_vm4, %v4538_v53, %v2266_v46  ;;  %v2337_v26 = vunpack.i.h.bf16 %v2335_v44  ;;  %v2336_v55 = vunpack.i.l.bf16 %v2335_v44 }
 0x13f   : > { %2494 = vrot.lane.b32.xlu1 %v3819_v62, %s2725_s20  ;;  %v1013_v44 = vsel %vm945_vm5, %v1011_v39, %v1012_v2 }
 0x140   : > { %v3848_v14 = vsel %vm1422_vm6, %v1412_v54, %v2336_v55  ;;  %v3851_v52 = vsel %vm1422_vm6, %v1413_v49, %v2337_v26  ;;  %v3861_v54 = vpack.i.bf16 %v1020_v56, %v1018_v5  ;;  %v3867_v33 = vpack.i.bf16 %v1015_v20, %v1013_v44 }
 0x141   : > { %2489 = vrot.lane.b32.xlu0 %v3832_v59, %s2725_s20  ;;  %v2285_v53 = vpop.permute.xlu1 %2284 }
 0x142   : > { %v2287_v1 = vunpack.i.h.bf16 %v2285_v53  ;;  %v2286_v46 = vunpack.i.l.bf16 %v2285_v53 }
 0x143   : > { %v2280_v24 = vpop.permute.xlu0 %2279  ;;  %2514 = vrot.lane.b32.xlu2 %v3845_v48, %s2725_s20 }
 0x144   : > { %v1425_v49 = vsel %vm1422_vm6, %v3663_v40, %v2286_v46  ;;  %v1426_v27 = vsel %vm1422_vm6, %v3659_v51, %v2287_v1  ;;  %v2282_v38 = vunpack.i.h.bf16 %v2280_v24  ;;  %v2281_v18 = vunpack.i.l.bf16 %v2280_v24 }
 0x145   : > { %v2350_v47 = vpop.permute.xlu2 %2349  ;;  %v2518_v1 = vpack.i.bf16 %v3729_v50, %v3674_v15 }
 0x146   : > { %v3871_v37 = vsel %vm1422_vm6, %v3405_v34, %v2282_v38  ;;  %v3875_v39 = vsel %vm1422_vm6, %v3402_v10, %v2281_v18  ;;  %v2352_v2 = vunpack.i.h.bf16 %v2350_v47  ;;  %v2351_v28 = vunpack.i.l.bf16 %v2350_v47 }
 0x147   : > { %2509 = vrot.lane.b32.xlu1 %v3861_v54, %s2725_s20  ;;  %v2523_v10 = vpack.i.bf16 %v1013_v44, %v3732_v43 }
 0x148   : > { %v3880_v51 = vsel %vm1422_vm6, %v1418_v22, %v2351_v28  ;;  %v3883_v40 = vsel %vm1422_vm6, %v1419_v42, %v2352_v2 }
 0x149   : > { %2504 = vrot.lane.b32.xlu0 %v3867_v33, %s2725_s20  ;;  %v2300_v34 = vpop.permute.xlu1 %2299 }
 0x14a   : > { %v2302_v26 = vunpack.i.h.bf16 %v2300_v34  ;;  %v2301_v55 = vunpack.i.l.bf16 %v2300_v34 }
 0x14b   : > { %v2295_v5 = vpop.permute.xlu0 %2294  ;;  %2529 = vrot.lane.b32.xlu2 %v3832_v59, %s2726_s21 }
 0x14c   : > { %v1431_v22 = vsel %vm1422_vm6, %v3714_v21, %v2301_v55  ;;  %v1432_v42 = vsel %vm1422_vm6, %v3710_v7, %v2302_v26  ;;  %v2297_v56 = vunpack.i.h.bf16 %v2295_v5  ;;  %v2296_v53 = vunpack.i.l.bf16 %v2295_v5 }
 0x14d   : > { %v2365_v46 = vpop.permute.xlu2 %2364 }
 0x14e   : > { %v3898_v24 = vsel %vm1422_vm6, %v3483_v60, %v2297_v56  ;;  %v3902_v43 = vsel %vm1422_vm6, %v3480_v9, %v2296_v53  ;;  %v2367_v44 = vunpack.i.h.bf16 %v2365_v46  ;;  %v2366_v21 = vunpack.i.l.bf16 %v2365_v46 }
 0x14f   : > { %2524 = vrot.lane.b32.xlu1 %v2523_v10, %s2727_s22 }
 0x150   : > { %v3906_v7 = vsel %vm1455_vm7, %v1425_v49, %v2366_v21  ;;  %v3909_v15 = vsel %vm1455_vm7, %v1426_v27, %v2367_v44  ;;  %v2533_v27 = vpack.i.bf16 %v3683_v30, %v1015_v20 }
 0x151   : > { %2519 = vrot.lane.b32.xlu0 %v2518_v1, %s2727_s22  ;;  %v2315_v50 = vpop.permute.xlu1 %2314 }
 0x152   : > { %v2317_v60 = vunpack.i.h.bf16 %v2315_v50  ;;  %v2316_v38 = vunpack.i.l.bf16 %v2315_v50 }
 0x153   : > { %v2310_v18 = vpop.permute.xlu0 %2309  ;;  %2544 = vrot.lane.b32.xlu2 %v3671_v63, %s2726_s21 }
 0x154   : > { %v1437_v9 = vsel %vm1422_vm6, %v3766_v45, %v2316_v38  ;;  %v1438_v47 = vsel %vm1422_vm6, %v3762_v25, %v2317_v60  ;;  %v2312_v49 = vunpack.i.h.bf16 %v2310_v18  ;;  %v2311_v2 = vunpack.i.l.bf16 %v2310_v18 }
 0x155   : > { %v2380_v28 = vpop.permute.xlu2 %2379 }
 0x156   : > { %v3921_v34 = vsel %vm1422_vm6, %v3530_v32, %v2312_v49  ;;  %v3925_v26 = vsel %vm1422_vm6, %v3527_v13, %v2311_v2  ;;  %v2382_v55 = vunpack.i.h.bf16 %v2380_v28  ;;  %v2381_v5 = vunpack.i.l.bf16 %v2380_v28 }
 0x157   : > { %2539 = vrot.lane.b32.xlu1 %v3861_v54, %s2726_s21 }
 0x158   : > { %v3930_v25 = vsel %vm1455_vm7, %v1431_v22, %v2381_v5  ;;  %v3933_v45 = vsel %vm1455_vm7, %v1432_v42, %v2382_v55 }
 0x159   : > { %2534 = vrot.lane.b32.xlu0 %v2533_v27, %s2727_s22  ;;  %v2330_v30 = vpop.permute.xlu1 %2329 }
 0x15a   : > { %v2332_v32 = vunpack.i.h.bf16 %v2330_v30  ;;  %v2331_v20 = vunpack.i.l.bf16 %v2330_v30 }
 0x15b   : > { %v2325_v10 = vpop.permute.xlu0 %2324  ;;  %2559 = vrot.lane.b32.xlu2 %v3832_v59, %s2727_s22 }
 0x15c   : > { %v1443_v13 = vsel %vm1422_vm6, %v3804_v57, %v2331_v20  ;;  %v1444_v56 = vsel %vm1422_vm6, %v3800_v17, %v2332_v32  ;;  %v2327_v22 = vunpack.i.h.bf16 %v2325_v10  ;;  %v2326_v53 = vunpack.i.l.bf16 %v2325_v10 }
 0x15d   : > { %v2395_v1 = vpop.permute.xlu2 %2394 }
 0x15e   : > { %v3944_v42 = vsel %vm1422_vm6, %v3586_v3, %v2327_v22  ;;  %v3948_v46 = vsel %vm1422_vm6, %v3583_v4, %v2326_v53  ;;  %v2397_v44 = vunpack.i.h.bf16 %v2395_v1  ;;  %v2396_v21 = vunpack.i.l.bf16 %v2395_v1  ;;  %v2706_v53 = vld [vmem:[#allocation2 + $0x1a0] sm:$0xff] }
 0x15f   : > { %2554 = vrot.lane.b32.xlu1 %v3704_v35, %s2726_s21  ;;  %v1224_v1 = vrot.slane %v2706_v53, 2 }
 0x160   : > { %v3953_v57 = vsel %vm1455_vm7, %v1437_v9, %v2396_v21  ;;  %v3956_v17 = vsel %vm1455_vm7, %v1438_v47, %v2397_v44  ;;  %v2707_v44 = vld [vmem:[#allocation2 + $0x198] sm:$0xff] }
 0x161   : > { %2549 = vrot.lane.b32.xlu0 %v3744_v58, %s2727_s22  ;;  %v2345_v3 = vpop.permute.xlu1 %2344 }
 0x162   : > { %v2347_v59 = vunpack.i.h.bf16 %v2345_v3  ;;  %v2346_v50 = vunpack.i.l.bf16 %v2345_v3 }
 0x163   : > { %v2340_v60 = vpop.permute.xlu0 %2339  ;;  %2574 = vrot.lane.b32.xlu2 %v3845_v48, %s2726_s21 }
 0x164   : > { %v1449_v4 = vsel %vm1422_vm6, %v3841_v6, %v2346_v50  ;;  %v1450_v38 = vsel %vm1422_vm6, %v3837_v8, %v2347_v59  ;;  %v2342_v18 = vunpack.i.h.bf16 %v2340_v60  ;;  %v2341_v9 = vunpack.i.l.bf16 %v2340_v60  ;;  %v2708_v50 = vld [vmem:[#allocation2 + $0x180] sm:$0xff] }
 0x165   : > { %v2410_v47 = vpop.permute.xlu2 %2409  ;;  %v1122_v60 = vrot.slane %v2708_v50, 2 }
 0x166   : > { %v3968_v49 = vsel %vm1422_vm6, %v3634_v31, %v2342_v18  ;;  %v3972_v2 = vsel %vm1422_vm6, %v3631_v11, %v2341_v9  ;;  %v2412_v27 = vunpack.i.h.bf16 %v2410_v47  ;;  %v2411_v28 = vunpack.i.l.bf16 %v2410_v47 }
 0x167   : > { %2569 = vrot.lane.b32.xlu1 %v3861_v54, %s2727_s22 }
 0x168   : > { %v3977_v6 = vsel %vm1455_vm7, %v1443_v13, %v2411_v28  ;;  %v3980_v8 = vsel %vm1455_vm7, %v1444_v56, %v2412_v27 }
 0x169   : > { %2564 = vrot.lane.b32.xlu0 %v3819_v62, %s2726_s21  ;;  %v2360_v31 = vpop.permute.xlu1 %2359 }
 0x16a   : > { %v2362_v55 = vunpack.i.h.bf16 %v2360_v31  ;;  %v2361_v5 = vunpack.i.l.bf16 %v2360_v31 }
 0x16b   : > { %v2355_v30 = vpop.permute.xlu0 %2354  ;;  %2589 = vrot.lane.b32.xlu2 %v3704_v35, %s2727_s22 }
 0x16c   : > { %v3988_v11 = vsel %vm1455_vm7, %v3875_v39, %v2361_v5  ;;  %v3992_v54 = vsel %vm1455_vm7, %v3871_v37, %v2362_v55  ;;  %v2357_v32 = vunpack.i.h.bf16 %v2355_v30  ;;  %v2356_v20 = vunpack.i.l.bf16 %v2355_v30  ;;  %v4539_v55 = vld [vmem:[#allocation39_spill] sm:$0xff] }
 0x16d   : > { %v2425_v10 = vpop.permute.xlu2 %2424  ;;  %v1226_v5 = vrot.slane %v4539_v55, 2  ;;  %v4541_v55 = vld [vmem:[#allocation5_spill] sm:$0xff] }
 0x16e   : > { %v3996_v13 = vsel %vm1422_vm6, %v3680_v19, %v2357_v32  ;;  %v4000_v56 = vsel %vm1422_vm6, %v3677_v12, %v2356_v20  ;;  %v2427_v35 = vunpack.i.h.bf16 %v2425_v10  ;;  %v2426_v22 = vunpack.i.l.bf16 %v2425_v10 }
 0x16f   : > { %2584 = vrot.lane.b32.xlu1 %v3669_v0, %s2726_s21  ;;  %v1223_v12 = vrot.slane %v2707_v44, 2 }
 0x170   : > { %v4005_v39 = vsel %vm1455_vm7, %v1449_v4, %v2426_v22  ;;  %v4008_v37 = vsel %vm1455_vm7, %v1450_v38, %v2427_v35  ;;  %v2709_v4 = vld [vmem:[#allocation2 + $0x188] sm:$0xff]  ;;  %v2710_v38 = vld [vmem:[#allocation2 + $0x190] sm:$0x3] }
 0x171   : > { %2579 = vrot.lane.b32.xlu0 %v3671_v63, %s2727_s22  ;;  %v2375_v19 = vpop.permute.xlu1 %2374  ;;  %v1123_v18 = vrot.slane %v2709_v4, 2  ;;  %v1125_v9 = vrot.slane %v2710_v38, 2 }
 0x172   : > { %v2377_v21 = vunpack.i.h.bf16 %v2375_v19  ;;  %v2376_v3 = vunpack.i.l.bf16 %v2375_v19 }
 0x173   : > { %v2370_v59 = vpop.permute.xlu0 %2369  ;;  %2604 = vrot.lane.b32.xlu2 %v3808_v29, %s2726_s21  ;;  %v1124_v20 = vsel %vm945_vm5, %v1122_v60, %v1123_v18  ;;  %v1126_v10 = vsel %vm945_vm5, %v1123_v18, %v1125_v9 }
 0x174   : > { %v1462_v63 = vsel %vm1455_vm7, %v3902_v43, %v2376_v3  ;;  %v1463_v47 = vsel %vm1455_vm7, %v3898_v24, %v2377_v21  ;;  %v2372_v27 = vunpack.i.h.bf16 %v2370_v59  ;;  %v2371_v28 = vunpack.i.l.bf16 %v2370_v59 }
 0x175   : > { %v4018_v31 = vpop.permute.xlu2 %2439  ;;  %v4032_v43 = vsel %vm945_vm5, %v1223_v12, %v1224_v1  ;;  %v1227_v24 = vsel %vm945_vm5, %v1224_v1, %v1226_v5 }
 0x176   : > { %v4023_v30 = vsel %vm1455_vm7, %v3726_v23, %v2372_v27  ;;  %v4027_v32 = vsel %vm1455_vm7, %v3722_v41, %v2371_v28  ;;  %v2653_v35 = vpack.i.bf16 %v1227_v24, %v4032_v43 }
 0x177   : > { %2599 = vrot.lane.b32.xlu1 %v3819_v62, %s2727_s22  ;;  %v2613_v62 = vpack.i.bf16 %v1126_v10, %v1124_v20 }
 0x179   : > { %2594 = vrot.lane.b32.xlu0 %v3785_v16, %s2726_s21  ;;  %v2390_v23 = vpop.permute.xlu1 %2389 }
 0x17a   : > { %v2392_v41 = vunpack.i.h.bf16 %v2390_v23  ;;  %v2391_v22 = vunpack.i.l.bf16 %v2390_v23 }
 0x17b   : > { %v2385_v19 = vpop.permute.xlu0 %2384  ;;  %2619 = vrot.lane.b32.xlu2 %v3669_v0, %s2727_s22 }
 0x17c   : > { %v1468_v53 = vsel %vm1455_vm7, %v3925_v26, %v2391_v22  ;;  %v1469_v1 = vsel %vm1455_vm7, %v3921_v34, %v2392_v41  ;;  %v2387_v44 = vunpack.i.h.bf16 %v2385_v19  ;;  %v2386_v12 = vunpack.i.l.bf16 %v2385_v19 }
 0x17d   : > { %v2455_v21 = vpop.permute.xlu2 %2454 }
 0x17e   : > { %v4048_v3 = vsel %vm1455_vm7, %v3778_v61, %v2387_v44  ;;  %v4052_v59 = vsel %vm1455_vm7, %v3774_v36, %v2386_v12  ;;  %v2457_v50 = vunpack.i.h.bf16 %v2455_v21  ;;  %v2456_v0 = vunpack.i.l.bf16 %v2455_v21  ;;  %v4540_v36 = vld [vmem:[#allocation32_spill] sm:$0xff] }
 0x17f   : > { %2614 = vrot.lane.b32.xlu1 %v2613_v62, %s2726_s21 }
 0x180   : > { %v4056_v26 = vsel %vm1488_vm8, %v1462_v63, %v2456_v0  ;;  %v4059_v34 = vsel %vm1488_vm8, %v1463_v47, %v2457_v50 }
 0x181   : > { %2609 = vrot.lane.b32.xlu0 %v3845_v48, %s2727_s22  ;;  %v2405_v61 = vpop.permute.xlu1 %2404 }
 0x182   : > { %v2407_v60 = vunpack.i.h.bf16 %v2405_v61  ;;  %v2406_v4 = vunpack.i.l.bf16 %v2405_v61 }
 0x183   : > { %v4063_v18 = vpop.permute.xlu0 %2399  ;;  %2634 = vrot.lane.b32.xlu2 %v4540_v36, %s2726_s21 }
 0x184   : > { %v4069_v38 = vsel %vm1455_vm7, %v3948_v46, %v2406_v4  ;;  %v4073_v9 = vsel %vm1455_vm7, %v3944_v42, %v2407_v60  ;;  %v4542_v60 = vld [vmem:[#allocation4_spill] sm:$0xff] }
 0x185   : > { %v2470_v63 = vpop.permute.xlu2 %2469 }
 0x186   : > { %v2472_v47 = vunpack.i.h.bf16 %v2470_v63  ;;  %v2471_v27 = vunpack.i.l.bf16 %v2470_v63  ;;  %v2728_v63 = vmov 65535  }
 0x187   : > { %2629 = vrot.lane.b32.xlu1 %v3785_v16, %s2727_s22 }
 0x188   : > { %v4078_v48 = vsel %vm1488_vm8, %v1468_v53, %v2471_v27  ;;  %v4081_v28 = vsel %vm1488_vm8, %v1469_v1, %v2472_v47  ;;  %v1668_v47 = vsel %vm1667_vm9, 4294967295, %v2728_v63  ;;  %v4543_v63 = vld [vmem:[#allocation24_spill] sm:$0xff] }
 0x189   : > { %2624 = vrot.lane.b32.xlu0 %v4541_v55, %s2726_s21  ;;  %v4085_v46 = vpop.permute.xlu1 %2419 }
 0x18b   : > { %v2415_v5 = vpop.permute.xlu0 %2414  ;;  %2649 = vrot.lane.b32.xlu2 %v2613_v62, %s2727_s22 }
 0x18c   : > { %v2417_v42 = vunpack.i.h.bf16 %v2415_v5  ;;  %v2416_v43 = vunpack.i.l.bf16 %v2415_v5 }
 0x18d   : > { %v4088_v24 = vpop.permute.xlu2 %2484 }
 0x18e   : > { %v4092_v16 = vsel %vm1455_vm7, %v3851_v52, %v2417_v42  ;;  %v4096_v20 = vsel %vm1455_vm7, %v3848_v14, %v2416_v43 }
 0x18f   : > { %2644 = vrot.lane.b32.xlu1 %v3867_v33, %s2726_s21 }
 0x191   : > { %2639 = vrot.lane.b32.xlu0 %v3808_v29, %s2727_s22  ;;  %v2435_v10 = vpop.permute.xlu1 %2434 }
 0x192   : > { %v2437_v23 = vunpack.i.h.bf16 %v2435_v10  ;;  %v2436_v41 = vunpack.i.l.bf16 %v2435_v10 }
 0x193   : > { %v2430_v22 = vpop.permute.xlu0 %2429  ;;  %2664 = vrot.lane.b32.xlu2 %v3744_v58, %s2726_s21 }
 0x194   : > { %v1486_v52 = vsel %vm1455_vm7, %v4000_v56, %v2436_v41  ;;  %v1487_v14 = vsel %vm1455_vm7, %v3996_v13, %v2437_v23  ;;  %v2432_v19 = vunpack.i.h.bf16 %v2430_v22  ;;  %v2431_v62 = vunpack.i.l.bf16 %v2430_v22 }
 0x195   : > { %v4108_v53 = vpop.permute.xlu2 %2499 }
 0x196   : > { %v4112_v29 = vsel %vm1455_vm7, %v3883_v40, %v2432_v19  ;;  %v4116_v33 = vsel %vm1455_vm7, %v3880_v51, %v2431_v62 }
 0x197   : > { %2659 = vrot.lane.b32.xlu1 %v4541_v55, %s2727_s22  ;;  %v1669_v55 = vsel %vm945_vm5, %v1668_v47, 0 }
 0x199   : > { %2654 = vrot.lane.b32.xlu0 %v2653_v35, %s2726_s21  ;;  %v2450_v58 = vpop.permute.xlu1 %2449 }
 0x19a   : > { %v2452_v56 = vunpack.i.h.bf16 %v2450_v58  ;;  %v2451_v13 = vunpack.i.l.bf16 %v2450_v58 }
 0x19b   : > { %v2445_v1 = vpop.permute.xlu0 %2444 }
 0x19c   : > { %v4123_v44 = vsel %vm1488_vm8, %v4027_v32, %v2451_v13  ;;  %v4127_v40 = vsel %vm1488_vm8, %v4023_v30, %v2452_v56  ;;  %v2447_v12 = vunpack.i.h.bf16 %v2445_v1  ;;  %v2446_v51 = vunpack.i.l.bf16 %v2445_v1  ;;  %v1983_v32 = vld [vmem:[%s4417_s1 + $0x8] sm:$0xf]  ;;  %v2006_v30 = vld [vmem:[%s4417_s1 + $0x8] sm:$0x30] }
 0x19d   : > { %v2515_v21 = vpop.permute.xlu2 %2514  ;;  %v1984_v4 = vor.u32 %v2006_v30, %v1983_v32  ;;  %v2401_v32 = vunpack.i.l.bf16 %v4063_v18 }
 0x19e   : > { %v4131_v50 = vsel %vm1488_vm8, %v3906_v7, %v2446_v51  ;;  %v4135_v35 = vsel %vm1488_vm8, %v3909_v15, %v2447_v12  ;;  %v2517_v0 = vunpack.i.h.bf16 %v2515_v21  ;;  %v2516_v61 = vunpack.i.l.bf16 %v2515_v21 }
 0x19f   : > { %2674 = vrot.lane.b32.xlu1 %v4542_v60, %s2726_s21  ;;  %v1671_v43 = vand.u32 %v1984_v4, %v1669_v55 }
 0x1a0   : > { %v4146_v7 = vsel %vm1488_vm8, %v1486_v52, %v2516_v61  ;;  %v4149_v15 = vsel %vm1488_vm8, %v1487_v14, %v2517_v0 }
 0x1a1   : > { %2669 = vrot.lane.b32.xlu0 %v4540_v36, %s2727_s22  ;;  %v2465_v27 = vpop.permute.xlu1 %2464  ;;  %2008 = vmatpush.bf16.msra.mxu2 %v1671_v43  ;;  %v2005_v36 = vld [vmem:[%s4417_s1] sm:$0xff] }
 0x1a2   : > { %v2467_v5 = vunpack.i.h.bf16 %v2465_v27  ;;  %v2466_v42 = vunpack.i.l.bf16 %v2465_v27  ;;  %1679 = vmatpush.bf16.msra.mxu0 %v1671_v43  ;;  %2009 = vmatpush.bf16.msra.mxu3 %v1671_v43 }
 0x1a3   : > { %v4154_v10 = vpop.permute.xlu0 %2459  ;;  %2007 = vmatpush.bf16.msra.mxu1 %v1671_v43 }
 0x1a4   : > { %v4158_v23 = vsel %vm1488_vm8, %v4052_v59, %v2466_v42  ;;  %v4162_v41 = vsel %vm1488_vm8, %v4048_v3, %v2467_v5  ;;  %v4544_v42 = vld [vmem:[#allocation34_spill] sm:$0xff] }
 0x1a5   : > { %2011 = vmatpush.bf16.msra.mxu2 %v2005_v36  ;;  %v2530_v19 = vpop.permute.xlu2 %2529  ;;  %v1472_v43 = vsel %vm1455_vm7, %v4544_v42, %v2401_v32 }
 0x1a6   : > { %1680 = vmatpush.bf16.msra.mxu0 %v2005_v36  ;;  %2012 = vmatpush.bf16.msra.mxu3 %v2005_v36  ;;  %v2532_v30 = vunpack.i.h.bf16 %v2530_v19  ;;  %v2531_v27 = vunpack.i.l.bf16 %v2530_v19  ;;  %v2421_v19 = vunpack.i.l.bf16 %v4085_v46 }
 0x1a7   : > { %2010 = vmatpush.bf16.msra.mxu1 %v2005_v36 }
 0x1a9   : > { %v2480_v22 = vpop.permute.xlu1 %2479 }
 0x1aa   : > { %v2482_v61 = vunpack.i.h.bf16 %v2480_v22  ;;  %v2481_v60 = vunpack.i.l.bf16 %v2480_v22 }
 0x1ab   : > { %v2475_v52 = vpop.permute.xlu0 %2474 }
 0x1ac   : > { %v2477_v59 = vunpack.i.h.bf16 %v2475_v52  ;;  %v2476_v14 = vunpack.i.l.bf16 %v2475_v52  ;;  %v1505_v22 = vsel %vm1488_vm8, %v1472_v43, %v2481_v60  ;;  %v2442_v60 = vunpack.i.h.bf16 %v4018_v31 }
 0x1ad   : > { %v2545_v21 = vpop.permute.xlu2 %2544 }
 0x1ae   : > { %v4169_v3 = vsel %vm1488_vm8, %v3953_v57, %v2476_v14  ;;  %v4173_v62 = vsel %vm1488_vm8, %v3956_v17, %v2477_v59  ;;  %v2402_v17 = vunpack.i.h.bf16 %v4063_v18  ;;  %v2441_v59 = vunpack.i.l.bf16 %v4018_v31 }
 0x1af   : > { %v2422_v14 = vunpack.i.h.bf16 %v4085_v46  ;;  %v1480_v46 = vsel %vm1455_vm7, %v3972_v2, %v2421_v19  ;;  %v1490_v2 = vsel %vm1488_vm8, %v3992_v54, %v2442_v60  ;;  %v2461_v54 = vunpack.i.l.bf16 %v4154_v10 }
 0x1b1   : > { %v2495_v58 = vpop.permute.xlu1 %2494 }
 0x1b2   : > { %v2497_v56 = vunpack.i.h.bf16 %v2495_v58  ;;  %v2496_v13 = vunpack.i.l.bf16 %v2495_v58 }
 0x1b3   : > { %v4175_v1 = vpop.permute.xlu0 %2489 }
 0x1b4   : > { %v4179_v12 = vsel %vm1488_vm8, %v4096_v20, %v2496_v13  ;;  %v4183_v51 = vsel %vm1488_vm8, %v4092_v16, %v2497_v56  ;;  %v1473_v20 = vsel %vm1455_vm7, %v4543_v63, %v2402_v17  ;;  %v2501_v56 = vunpack.i.l.bf16 %v4108_v53 }
 0x1b5   : > { %v4193_v47 = vpop.permute.xlu2 %2559  ;;  %v1506_v55 = vsel %vm1488_vm8, %v1473_v20, %v2482_v61  ;;  %v1489_v20 = vsel %vm1488_vm8, %v3988_v11, %v2441_v59 }
 0x1b9   : > { %v4185_v57 = vpop.permute.xlu1 %2509 }
 0x1bb   : > { %v4187_v0 = vpop.permute.xlu0 %2504 }
 0x1c1   : > { %v2525_v4 = vpop.permute.xlu1 %2524 }
 0x1c2   : > { %v2526_v16 = vunpack.i.l.bf16 %v2525_v4  ;;  %v2527_v17 = vunpack.i.h.bf16 %v2525_v4  ;;  %v1513_v4 = vsel %vm1488_vm8, %v1480_v46, %v2501_v56 }
 0x1c3   : > { %v2520_v5 = vpop.permute.xlu0 %2519 }
 0x1c4   : > { %v1539_v18 = vsel %vm1521_vm11, %v1506_v55, %v2526_v16  ;;  %v2522_v36 = vunpack.i.h.bf16 %v2520_v5  ;;  %v2521_v61 = vunpack.i.l.bf16 %v2520_v5  ;;  %v1481_v16 = vsel %vm1455_vm7, %v3968_v49, %v2422_v14 }
 0x1c5   : > { %v1572_v52 = vsel %vm1554_vm10, %v1539_v18, %v2532_v30  ;;  %v2502_v30 = vunpack.i.h.bf16 %v4108_v53  ;;  %v2547_v55 = vunpack.i.h.bf16 %v2545_v21  ;;  %v2546_v5 = vunpack.i.l.bf16 %v2545_v21  ;;  %v2575_v53 = vpop.permute.xlu2 %2574 }
 0x1c6   : > { %v1538_v58 = vsel %vm1521_vm11, %v1505_v22, %v2522_v36  ;;  %v1546_v43 = vsel %vm1521_vm11, %v1513_v4, %v2527_v17  ;;  %v1522_v11 = vsel %vm1521_vm11, %v1489_v20, %v2521_v61  ;;  %v1497_v20 = vsel %vm1488_vm8, %v3930_v25, %v2461_v54 }
 0x1c7   : > { %v1571_v13 = vsel %vm1554_vm10, %v1538_v58, %v2531_v27  ;;  %v1514_v49 = vsel %vm1488_vm8, %v1481_v16, %v2502_v30  ;;  %v1555_v59 = vsel %vm1554_vm10, %v1522_v11, %v2546_v5  ;;  %v2487_v16 = vunpack.i.h.bf16 %v4088_v24 }
 0x1c8   : > { %v1595_v32 = vpack.c.bf16 %v1572_v52, %v1571_v13  ;;  %v2462_v13 = vunpack.i.h.bf16 %v4154_v10  ;;  %v2486_v10 = vunpack.i.l.bf16 %v4088_v24  ;;  %v2507_v5 = vunpack.i.h.bf16 %v4187_v0 }
 0x1c9   : > { %v2540_v63 = vpop.permute.xlu1 %2539  ;;  %v2561_v11 = vunpack.i.l.bf16 %v4193_v47  ;;  %v2577_v24 = vunpack.i.h.bf16 %v2575_v53 }
 0x1ca   : > { %1993 = vmatmul.msk.bf16.vlgmr.msra.gmra.mxu2 %vm1618_vm12, %v1595_v32  ;;  %v2541_v27 = vunpack.i.l.bf16 %v2540_v63  ;;  %v2542_v31 = vunpack.i.h.bf16 %v2540_v63  ;;  %v1498_v46 = vsel %vm1488_vm8, %v3933_v45, %v2462_v13  ;;  %v2562_v45 = vunpack.i.h.bf16 %v4193_v47 }
 0x1cb   : > { %v2535_v42 = vpop.permute.xlu0 %2534 }
 0x1cc   : > { %v2537_v18 = vunpack.i.h.bf16 %v2535_v42  ;;  %v2536_v36 = vunpack.i.l.bf16 %v2535_v42  ;;  %v1579_v22 = vsel %vm1554_vm10, %v1546_v43, %v2541_v27 }
 0x1cd   : > { %v4238_v27 = vpop.permute.xlu2 %2589 }
 0x1ce   : > { %v1523_v52 = vsel %vm1521_vm11, %v1490_v2, %v2537_v18  ;;  %v1547_v21 = vsel %vm1521_vm11, %v1514_v49, %v2536_v36  ;;  %v2576_v18 = vunpack.i.l.bf16 %v2575_v53 }
 0x1cf   : > { %v1556_v14 = vsel %vm1554_vm10, %v1523_v52, %v2547_v55  ;;  %v1580_v19 = vsel %vm1554_vm10, %v1547_v21, %v2542_v31  ;;  %v2506_v31 = vunpack.i.l.bf16 %v4187_v0  ;;  %v1508_v0 = vsel %vm1488_vm8, %v4073_v9, %v2487_v16 }
 0x1d0   : > { %v1587_v58 = vpack.c.bf16 %v1556_v14, %v1555_v59  ;;  %v1599_v56 = vpack.c.bf16 %v1580_v19, %v1579_v22  ;;  %v1507_v22 = vsel %vm1488_vm8, %v4069_v38, %v2486_v10  ;;  %v1516_v21 = vsel %vm1488_vm8, %v4008_v37, %v2507_v5 }
 0x1d1   : > { %v2555_v17 = vpop.permute.xlu1 %2554  ;;  %v1515_v52 = vsel %vm1488_vm8, %v4005_v39, %v2506_v31  ;;  %v1541_v38 = vsel %vm1521_vm11, %v1508_v0, %v2562_v45  ;;  %v2492_v10 = vunpack.i.h.bf16 %v4175_v1 }
 0x1d2   : > { %1985 = vmatmul.msk.bf16.vlgmr.msra.gmra.mxu0 %vm1618_vm12, %v1587_v58  ;;  %1997 = vmatmul.msk.bf16.vlgmr.msra.gmra.mxu3 %vm1618_vm12, %v1599_v56  ;;  %v2557_v61 = vunpack.i.h.bf16 %v2555_v17  ;;  %v2556_v32 = vunpack.i.l.bf16 %v2555_v17  ;;  %v1540_v58 = vsel %vm1521_vm11, %v1507_v22, %v2561_v11 }
 0x1d3   : > { %v2550_v60 = vpop.permute.xlu0 %2549 }
 0x1d4   : > { %v2552_v30 = vunpack.i.h.bf16 %v2550_v60  ;;  %v2551_v63 = vunpack.i.l.bf16 %v2550_v60 }
 0x1d5   : > { %v2605_v17 = vpop.permute.xlu2 %2604 }
 0x1d6   : > { %v1530_v4 = vsel %vm1521_vm11, %v1497_v20, %v2551_v63  ;;  %v1531_v55 = vsel %vm1521_vm11, %v1498_v46, %v2552_v30  ;;  %v2606_v45 = vunpack.i.l.bf16 %v2605_v17 }
 0x1d7   : > { %v1563_v42 = vsel %vm1554_vm10, %v1530_v4, %v2556_v32  ;;  %v1564_v25 = vsel %vm1554_vm10, %v1531_v55, %v2557_v61  ;;  %v2491_v4 = vunpack.i.l.bf16 %v4175_v1 }
 0x1d8   : > { %v1591_v43 = vpack.c.bf16 %v1564_v25, %v1563_v42  ;;  %v2592_v42 = vunpack.i.h.bf16 %v4238_v27  ;;  %v2591_v25 = vunpack.i.l.bf16 %v4238_v27 }
 0x1d9   : > { %v2570_v36 = vpop.permute.xlu1 %2569  ;;  %v1509_v1 = vsel %vm1488_vm8, %v3977_v6, %v2491_v4 }
 0x1da   : > { %1989 = vmatmul.msk.bf16.vlgmr.msra.gmra.mxu1 %vm1618_vm12, %v1591_v43  ;;  %v2572_v2 = vunpack.i.h.bf16 %v2570_v36  ;;  %v2571_v49 = vunpack.i.l.bf16 %v2570_v36  ;;  %v2607_v43 = vunpack.i.h.bf16 %v2605_v17  ;;  %v1532_v0 = vsel %vm1521_vm11, %v4158_v23, %v2591_v25 }
 0x1db   : > { %v2565_v47 = vpop.permute.xlu0 %2564 }
 0x1dc   : > { %v1548_v53 = vsel %vm1521_vm11, %v1515_v52, %v2571_v49  ;;  %v1549_v59 = vsel %vm1521_vm11, %v1516_v21, %v2572_v2  ;;  %v2567_v14 = vunpack.i.h.bf16 %v2565_v47  ;;  %v2566_v19 = vunpack.i.l.bf16 %v2565_v47 }
 0x1dd   : > { %v1581_v56 = vsel %vm1554_vm10, %v1548_v53, %v2576_v18  ;;  %v1582_v9 = vsel %vm1554_vm10, %v1549_v59, %v2577_v24  ;;  %v1510_v18 = vsel %vm1488_vm8, %v3980_v8, %v2492_v10  ;;  %v1533_v52 = vsel %vm1521_vm11, %v4162_v41, %v2592_v42 }
 0x1de   : > { %v1573_v39 = vsel %vm1554_vm10, %v1540_v58, %v2566_v19  ;;  %v1574_v13 = vsel %vm1554_vm10, %v1541_v38, %v2567_v14  ;;  %v1600_v37 = vpack.c.bf16 %v1582_v9, %v1581_v56  ;;  %v2512_v14 = vunpack.i.h.bf16 %v4185_v57 }
 0x1df   : > { %v1596_v54 = vpack.c.bf16 %v1574_v13, %v1573_v39  ;;  %v2511_v19 = vunpack.i.l.bf16 %v4185_v57 }
 0x1e1   : > { %1994 = vmatmul.msk.bf16.gmra.mxu2 %vm1618_vm12, %v1596_v54  ;;  %v2585_v61 = vpop.permute.xlu1 %2584  ;;  %v1517_v13 = vsel %vm1488_vm8, %v4116_v33, %v2511_v19 }
 0x1e2   : > { %1998 = vmatmul.msk.bf16.gmra.mxu3 %vm1618_vm12, %v1600_v37  ;;  %v2587_v32 = vunpack.i.h.bf16 %v2585_v61  ;;  %v2586_v60 = vunpack.i.l.bf16 %v2585_v61  ;;  %v1518_v37 = vsel %vm1488_vm8, %v4112_v29, %v2512_v14 }
 0x1e3   : > { %v2580_v30 = vpop.permute.xlu0 %2579 }
 0x1e4   : > { %v2582_v63 = vunpack.i.h.bf16 %v2580_v30  ;;  %v2581_v20 = vunpack.i.l.bf16 %v2580_v30 }
 0x1e6   : > { %v1524_v46 = vsel %vm1521_vm11, %v4131_v50, %v2581_v20  ;;  %v1525_v16 = vsel %vm1521_vm11, %v4135_v35, %v2582_v63  ;;  %v2620_v50 = vpop.permute.xlu2 %2619 }
 0x1e7   : > { %v1557_v55 = vsel %vm1554_vm10, %v1524_v46, %v2586_v60  ;;  %v1558_v5 = vsel %vm1554_vm10, %v1525_v16, %v2587_v32  ;;  %v2622_v60 = vunpack.i.h.bf16 %v2620_v50  ;;  %v2621_v30 = vunpack.i.l.bf16 %v2620_v50 }
 0x1e8   : > { %v1588_v31 = vpack.c.bf16 %v1558_v5, %v1557_v55 }
 0x1e9   : > { %v2600_v11 = vpop.permute.xlu1 %2599  ;;  %v1527_v42 = vsel %vm1521_vm11, %v4127_v40, %v2622_v60 }
 0x1ea   : > { %1986 = vmatmul.msk.bf16.gmra.mxu0 %vm1618_vm12, %v1588_v31  ;;  %v2602_v35 = vunpack.i.h.bf16 %v2600_v11  ;;  %v2601_v24 = vunpack.i.l.bf16 %v2600_v11  ;;  %v1526_v31 = vsel %vm1521_vm11, %v4123_v44, %v2621_v30 }
 0x1eb   : > { %v2595_v36 = vpop.permute.xlu0 %2594 }
 0x1ec   : > { %v1542_v2 = vsel %vm1521_vm11, %v1509_v1, %v2601_v24  ;;  %v1543_v49 = vsel %vm1521_vm11, %v1510_v18, %v2602_v35  ;;  %v2597_v27 = vunpack.i.h.bf16 %v2595_v36  ;;  %v2596_v22 = vunpack.i.l.bf16 %v2595_v36 }
 0x1ed   : > { %v1575_v21 = vsel %vm1554_vm10, %v1542_v2, %v2606_v45  ;;  %v1576_v6 = vsel %vm1554_vm10, %v1543_v49, %v2607_v43 }
 0x1ee   : > { %v1565_v47 = vsel %vm1554_vm10, %v1532_v0, %v2596_v22  ;;  %v1566_v8 = vsel %vm1554_vm10, %v1533_v52, %v2597_v27  ;;  %v1597_v53 = vpack.c.bf16 %v1576_v6, %v1575_v21  ;;  %v2635_v56 = vpop.permute.xlu2 %2634 }
 0x1ef   : > { %v1592_v59 = vpack.c.bf16 %v1566_v8, %v1565_v47  ;;  %v2637_v63 = vunpack.i.h.bf16 %v2635_v56  ;;  %v2636_v20 = vunpack.i.l.bf16 %v2635_v56 }
 0x1f1   : > { %1990 = vmatmul.msk.bf16.gmra.mxu1 %vm1618_vm12, %v1592_v59  ;;  %1995 = vmatmul.msk.bf16.gmra.mxu2 %vm1618_vm12, %v1597_v53  ;;  %v2615_v23 = vpop.permute.xlu1 %2614 }
 0x1f2   : > { %v2617_v41 = vunpack.i.h.bf16 %v2615_v23  ;;  %v2616_v58 = vunpack.i.l.bf16 %v2615_v23 }
 0x1f3   : > { %v2610_v38 = vpop.permute.xlu0 %2609 }
 0x1f4   : > { %v2612_v9 = vunpack.i.h.bf16 %v2610_v38  ;;  %v2611_v39 = vunpack.i.l.bf16 %v2610_v38 }
 0x1f6   : > { %v1550_v54 = vsel %vm1521_vm11, %v1517_v13, %v2611_v39  ;;  %v1551_v57 = vsel %vm1521_vm11, %v1518_v37, %v2612_v9  ;;  %v2650_v45 = vpop.permute.xlu2 %2649 }
 0x1f7   : > { %v1583_v17 = vsel %vm1554_vm10, %v1550_v54, %v2616_v58  ;;  %v1584_v61 = vsel %vm1554_vm10, %v1551_v57, %v2617_v41  ;;  %v2652_v52 = vunpack.i.h.bf16 %v2650_v45  ;;  %v2651_v21 = vunpack.i.l.bf16 %v2650_v45 }
 0x1f8   : > { %v1601_v32 = vpack.c.bf16 %v1584_v61, %v1583_v17 }
 0x1f9   : > { %v2630_v46 = vpop.permute.xlu1 %2629  ;;  %v1552_v41 = vsel %vm1521_vm11, %v4146_v7, %v2651_v21  ;;  %v1553_v58 = vsel %vm1521_vm11, %v4149_v15, %v2652_v52 }
 0x1fa   : > { %1999 = vmatmul.msk.bf16.gmra.mxu3 %vm1618_vm12, %v1601_v32  ;;  %v2632_v33 = vunpack.i.h.bf16 %v2630_v46  ;;  %v2631_v16 = vunpack.i.l.bf16 %v2630_v46 }
 0x1fb   : > { %v2625_v10 = vpop.permute.xlu0 %2624 }
 0x1fc   : > { %v1534_v29 = vsel %vm1521_vm11, %v4078_v48, %v2631_v16  ;;  %v1535_v4 = vsel %vm1521_vm11, %v4081_v28, %v2632_v33  ;;  %v2627_v55 = vunpack.i.h.bf16 %v2625_v10  ;;  %v2626_v5 = vunpack.i.l.bf16 %v2625_v10 }
 0x1fd   : > { %v1567_v25 = vsel %vm1554_vm10, %v1534_v29, %v2636_v20  ;;  %v1568_v43 = vsel %vm1554_vm10, %v1535_v4, %v2637_v63 }
 0x1fe   : > { %v1559_v11 = vsel %vm1554_vm10, %v1526_v31, %v2626_v5  ;;  %v1560_v48 = vsel %vm1554_vm10, %v1527_v42, %v2627_v55  ;;  %v1593_v50 = vpack.c.bf16 %v1568_v43, %v1567_v25  ;;  %v2665_v49 = vpop.permute.xlu2 %2664 }
 0x1ff   : > { %v1589_v35 = vpack.c.bf16 %v1560_v48, %v1559_v11  ;;  %v2667_v47 = vunpack.i.h.bf16 %v2665_v49  ;;  %v2666_v8 = vunpack.i.l.bf16 %v2665_v49 }
 0x201   : > { %1987 = vmatmul.msk.bf16.gmra.mxu0 %vm1618_vm12, %v1589_v35  ;;  %1991 = vmatmul.msk.bf16.gmra.mxu1 %vm1618_vm12, %v1593_v50  ;;  %v2645_v28 = vpop.permute.xlu1 %2644 }
 0x202   : > { %v2647_v44 = vunpack.i.h.bf16 %v2645_v28  ;;  %v2646_v24 = vunpack.i.l.bf16 %v2645_v28 }
 0x203   : > { %v2640_v1 = vpop.permute.xlu0 %2639 }
 0x204   : > { %v2642_v40 = vunpack.i.h.bf16 %v2640_v1  ;;  %v2641_v18 = vunpack.i.l.bf16 %v2640_v1 }
 0x206   : > { %v1544_v36 = vsel %vm1521_vm11, %v4179_v12, %v2641_v18  ;;  %v1545_v2 = vsel %vm1521_vm11, %v4183_v51, %v2642_v40 }
 0x207   : > { %v1577_v27 = vsel %vm1554_vm10, %v1544_v36, %v2646_v24  ;;  %v1578_v22 = vsel %vm1554_vm10, %v1545_v2, %v2647_v44 }
 0x208   : > { %v1598_v0 = vpack.c.bf16 %v1578_v22, %v1577_v27 }
 0x209   : > { %v2660_v6 = vpop.permute.xlu1 %2659 }
 0x20a   : > { %1996 = vmatmul.msk.bf16.gmra.mxu2 %vm1618_vm12, %v1598_v0  ;;  %v2662_v53 = vunpack.i.h.bf16 %v2660_v6  ;;  %v2661_v59 = vunpack.i.l.bf16 %v2660_v6 }
 0x20b   : > { %v2655_v14 = vpop.permute.xlu0 %2654 }
 0x20c   : > { %v1528_v12 = vsel %vm1521_vm11, %v4056_v26, %v2661_v59  ;;  %v1529_v51 = vsel %vm1521_vm11, %v4059_v34, %v2662_v53  ;;  %v2657_v19 = vunpack.i.h.bf16 %v2655_v14  ;;  %v2656_v23 = vunpack.i.l.bf16 %v2655_v14 }
 0x20d   : > { %v1561_v38 = vsel %vm1554_vm10, %v1528_v12, %v2666_v8  ;;  %v1562_v56 = vsel %vm1554_vm10, %v1529_v51, %v2667_v47 }
 0x20e   : > { %v1585_v9 = vsel %vm1554_vm10, %v1552_v41, %v2656_v23  ;;  %v1586_v39 = vsel %vm1554_vm10, %v1553_v58, %v2657_v19  ;;  %v1590_v26 = vpack.c.bf16 %v1562_v56, %v1561_v38 }
 0x20f   : > { %v1602_v13 = vpack.c.bf16 %v1586_v39, %v1585_v9 }
 0x211   : > { %2000 = vmatmul.msk.bf16.gmra.mxu3 %vm1618_vm12, %v1602_v13  ;;  %1988 = vmatmul.msk.bf16.gmra.mxu0 %vm1618_vm12, %v1590_v26  ;;  %v2675_v34 = vpop.permute.xlu1 %2674 }
 0x212   : > { %v2677_v7 = vunpack.i.h.bf16 %v2675_v34  ;;  %v2676_v54 = vunpack.i.l.bf16 %v2675_v34 }
 0x213   : > { %v2670_v37 = vpop.permute.xlu0 %2669 }
 0x214   : > { %v2672_v57 = vunpack.i.h.bf16 %v2670_v37  ;;  %v2671_v15 = vunpack.i.l.bf16 %v2670_v37 }
 0x216   : > { %v1536_v17 = vsel %vm1521_vm11, %v4169_v3, %v2671_v15  ;;  %v1537_v61 = vsel %vm1521_vm11, %v4173_v62, %v2672_v57 }
 0x217   : > { %v1569_v32 = vsel %vm1554_vm10, %v1536_v17, %v2676_v54  ;;  %v1570_v60 = vsel %vm1554_vm10, %v1537_v61, %v2677_v7 }
 0x218   : > { %v1594_v30 = vpack.c.bf16 %v1570_v60, %v1569_v32 }
 0x21a   : > { %1992 = vmatmul.msk.bf16.gmra.mxu1 %vm1618_vm12, %v1594_v30 }
 0x24d   : > { %v4352_v3 = vpop.f32.mrf.mxu2 }
 0x24f   : > { %v4347_v63 = vpop.f32.mrf.mxu0 }
 0x255   : > { %v4355_v10 = vpop.f32.mrf.mxu2  ;;  %v1742_v31 = vpop.f32.mrf.mxu3 }
 0x257   : > { %v4349_v20 = vpop.f32.mrf.mxu0  ;;  %v1702_v46 = vpop.f32.mrf.mxu1 }
 0x25d   : > { %v1744_v45 = vpop.f32.mrf.mxu3 }
 0x25f   : > { %v1704_v62 = vpop.f32.mrf.mxu1 }
 0x264   : > { %v1727_v4 = vpop.f32.mrf.mxu2 }
 0x265   : > { %v1747_v28 = vpop.f32.mrf.mxu3 }
 0x267   : > { %v1687_v33 = vpop.f32.mrf.mxu0 }
 0x268   : > { %1764 = vrot.lane.b32.xlu2 %v1687_v33, %s2729_s29 }
 0x26c   : > { %v1729_v25 = vpop.f32.mrf.mxu2 }
 0x26d   : > { %v1749_v1 = vpop.f32.mrf.mxu3 }
 0x26e   : > { %v1707_v29 = vpop.f32.mrf.mxu1 }
 0x26f   : > { %v1689_v16 = vpop.f32.mrf.mxu0 }
 0x270   : > { %1766 = vrot.lane.b32.xlu0 %v1689_v16, %s2729_s29 }
 0x274   : > { %v1732_v48 = vpop.f32.mrf.mxu2 }
 0x276   : > { %v1709_v5 = vpop.f32.mrf.mxu1 }
 0x27c   : > { %v1734_v44 = vpop.f32.mrf.mxu2 }
 0x27d   : > { %v1752_v18 = vpop.f32.mrf.mxu3 }
 0x27e   : > { %v1692_v55 = vpop.f32.mrf.mxu0  ;;  %v1712_v43 = vpop.f32.mrf.mxu1 }
 0x27f   : > { %1772 = vrot.lane.b32.xlu1 %v1692_v55, %s2730_s30 }
 0x285   : > { %v1754_v2 = vpop.f32.mrf.mxu3 }
 0x286   : > { %v1694_v42 = vpop.f32.mrf.mxu0  ;;  %v1714_v50 = vpop.f32.mrf.mxu1 }
 0x287   : > { %1774 = vrot.lane.b32.xlu2 %v1694_v42, %s2730_s30 }
 0x28d   : > { %v1737_v40 = vpop.f32.mrf.mxu2 }
 0x28e   : > { %v1697_v11 = vpop.f32.mrf.mxu0 }
 0x28f   : > { %1788 = vrot.lane.b32.xlu2 %v1702_v46, %s2731_s3  ;;  %1780 = vrot.lane.b32.xlu0 %v1697_v11, %s2732_s4 }
 0x294   : > { %v1757_v49 = vpop.f32.mrf.mxu3 }
 0x295   : > { %v1739_v36 = vpop.f32.mrf.mxu2 }
 0x296   : > { %v1699_v35 = vpop.f32.mrf.mxu0 }
 0x297   : > { %1798 = vrot.lane.b32.xlu2 %v1709_v5, %s2733_s5  ;;  %1790 = vrot.lane.b32.xlu0 %v1704_v62, %s2731_s3  ;;  %v1717_v24 = vpop.f32.mrf.mxu1 }
 0x298   : > { %1782 = vrot.lane.b32.xlu1 %v1699_v35, %s2732_s4 }
 0x29c   : > { %v1759_v27 = vpop.f32.mrf.mxu3 }
 0x29f   : > { %1812 = vrot.lane.b32.xlu2 %v1717_v24, %s2734_s6  ;;  %1804 = vrot.lane.b32.xlu0 %v1712_v43, %s2735_s7  ;;  %v1719_v22 = vpop.f32.mrf.mxu1 }
 0x2a0   : > { %1796 = vrot.lane.b32.xlu1 %v1707_v29, %s2733_s5 }
 0x2a7   : > { %1828 = vrot.lane.b32.xlu2 %v1732_v48, %s2730_s30  ;;  %1820 = vrot.lane.b32.xlu0 %v1727_v4, %s2729_s29 }
 0x2a8   : > { %1806 = vrot.lane.b32.xlu1 %v1714_v50, %s2735_s7 }
 0x2af   : > { %1838 = vrot.lane.b32.xlu2 %v1739_v36, %s2732_s4  ;;  %1830 = vrot.lane.b32.xlu0 %v1734_v44, %s2730_s30 }
 0x2b0   : > { %1822 = vrot.lane.b32.xlu1 %v1729_v25, %s2729_s29 }
 0x2b7   : > { %1852 = vrot.lane.b32.xlu2 %v1747_v28, %s2733_s5  ;;  %1844 = vrot.lane.b32.xlu0 %v1742_v31, %s2731_s3 }
 0x2b8   : > { %1836 = vrot.lane.b32.xlu1 %v1737_v40, %s2732_s4 }
 0x2bf   : > { %1862 = vrot.lane.b32.xlu2 %v1754_v2, %s2735_s7  ;;  %1854 = vrot.lane.b32.xlu0 %v1749_v1, %s2733_s5 }
 0x2c0   : > { %1846 = vrot.lane.b32.xlu1 %v1744_v45, %s2731_s3 }
 0x2c2   : > { %v1765_v0 = vpop.permute.xlu2 %1764 }
 0x2c3   : > { %v1875_v51 = vsel %vm1874_vm13, %v4347_v63, %v1765_v0 }
 0x2c7   : > { %1870 = vrot.lane.b32.xlu2 %v1759_v27, %s2734_s6  ;;  %1814 = vrot.lane.b32.xlu0 %v1719_v22, %s2734_s6 }
 0x2c8   : > { %1860 = vrot.lane.b32.xlu1 %v1752_v18, %s2735_s7 }
 0x2d0   : > { %1868 = vrot.lane.b32.xlu1 %v1757_v49, %s2734_s6 }
 0x2e1   : > { %v1775_v52 = vpop.permute.xlu2 %1774 }
 0x2e2   : > { %v1767_v6 = vpop.permute.xlu0 %1766 }
 0x2e3   : > { %v1876_v60 = vsel %vm1874_vm13, %v4349_v20, %v1767_v6 }
 0x2e4   : > { %v1879_v63 = vsel %vm1877_vm15, %v1876_v60, %v1775_v52 }
 0x2e9   : > { %v1789_v21 = vpop.permute.xlu2 %1788 }
 0x2f1   : > { %v1799_v47 = vpop.permute.xlu2 %1798  ;;  %v1773_v53 = vpop.permute.xlu1 %1772 }
 0x2f2   : > { %v1878_v23 = vsel %vm1877_vm15, %v1875_v51, %v1773_v53 }
 0x2f9   : > { %v1813_v59 = vpop.permute.xlu2 %1812 }
 0x301   : > { %v1781_v8 = vpop.permute.xlu0 %1780  ;;  %v1829_v19 = vpop.permute.xlu2 %1828 }
 0x302   : > { %v1881_v41 = vsel %vm1880_vm14, %v1878_v23, %v1781_v8 }
 0x303   : > { %v1884_v38 = vsel %vm1883_vm0, %v1881_v41, %v1789_v21 }
 0x309   : > { %v1791_v14 = vpop.permute.xlu0 %1790  ;;  %v1839_v13 = vpop.permute.xlu2 %1838 }
 0x30a   : > { %v1783_v12 = vpop.permute.xlu1 %1782 }
 0x30b   : > { %v1882_v33 = vsel %vm1880_vm14, %v1879_v63, %v1783_v12 }
 0x311   : > { %v1805_v58 = vpop.permute.xlu0 %1804  ;;  %v1853_v7 = vpop.permute.xlu2 %1852 }
 0x312   : > { %v1797_v56 = vpop.permute.xlu1 %1796 }
 0x313   : > { %v1887_v9 = vsel %vm1886_vm2, %v1884_v38, %v1797_v56 }
 0x314   : > { %v1890_v39 = vsel %vm1889_vm1, %v1887_v9, %v1805_v58 }
 0x315   : > { %v1893_v26 = vsel %vm1892_vm3, %v1890_v39, %v1813_v59 }
 0x316   : > { %1909 = vst [vmem:[%s4381_s13] sm:$0xff] %v1893_v26 }
 0x319   : > { %v1821_v34 = vpop.permute.xlu0 %1820  ;;  %v1863_v61 = vpop.permute.xlu2 %1862 }
 0x31a   : > { %v1807_v37 = vpop.permute.xlu1 %1806  ;;  %v1895_v31 = vsel %vm1874_vm13, %v4352_v3, %v1821_v34 }
 0x31b   : > { %v1897_v45 = vsel %vm1877_vm15, %v1895_v31, %v1829_v19 }
 0x321   : > { %v1831_v54 = vpop.permute.xlu0 %1830  ;;  %v1871_v55 = vpop.permute.xlu2 %1870 }
 0x322   : > { %v1823_v57 = vpop.permute.xlu1 %1822 }
 0x323   : > { %v1896_v32 = vsel %vm1874_vm13, %v4355_v10, %v1823_v57  ;;  %v1885_v10 = vsel %vm1883_vm0, %v1882_v33, %v1791_v14 }
 0x324   : > { %v1898_v30 = vsel %vm1877_vm15, %v1896_v32, %v1831_v54  ;;  %v1888_v42 = vsel %vm1886_vm2, %v1885_v10, %v1799_v47 }
 0x325   : > { %v1900_v16 = vsel %vm1880_vm14, %v1898_v30, %v1839_v13  ;;  %v1891_v25 = vsel %vm1889_vm1, %v1888_v42, %v1807_v37 }
 0x329   : > { %v1845_v15 = vpop.permute.xlu0 %1844 }
 0x32a   : > { %v1837_v17 = vpop.permute.xlu1 %1836 }
 0x32b   : > { %v1899_v50 = vsel %vm1880_vm14, %v1897_v45, %v1837_v17 }
 0x32c   : > { %v1901_v35 = vsel %vm1883_vm0, %v1899_v50, %v1845_v15 }
 0x32d   : > { %v1903_v28 = vsel %vm1886_vm2, %v1901_v35, %v1853_v7 }
 0x331   : > { %v1855_v46 = vpop.permute.xlu0 %1854 }
 0x332   : > { %v1847_v62 = vpop.permute.xlu1 %1846 }
 0x333   : > { %v1902_v29 = vsel %vm1883_vm0, %v1900_v16, %v1847_v62 }
 0x334   : > { %v1904_v4 = vsel %vm1886_vm2, %v1902_v29, %v1855_v46 }
 0x335   : > { %v1906_v20 = vsel %vm1889_vm1, %v1904_v4, %v1863_v61 }
 0x336   : > { %v1908_v5 = vsel %vm1892_vm3, %v1906_v20, %v1871_v55 }
 0x337   : > { %1912 = vst [vmem:[%s4381_s13 + $0x18] sm:$0xff] %v1908_v5 }
 0x339   : > { %v1815_v43 = vpop.permute.xlu0 %1814 }
 0x33a   : > { %v1894_v11 = vsel %vm1892_vm3, %v1891_v25, %v1815_v43  ;;  %v1861_v48 = vpop.permute.xlu1 %1860 }
 0x33b   : > { %1911 = vst [vmem:[%s4381_s13 + $0x10] sm:$0xff] %v1894_v11  ;;  %v1905_v3 = vsel %vm1889_vm1, %v1903_v28, %v1861_v48 }
 0x342   : > { %v1869_v44 = vpop.permute.xlu1 %1868 }
 0x343   : > { %v1907_v24 = vsel %vm1892_vm3, %v1905_v3, %v1869_v44 }
 0x344   : > { %1910 = vst [vmem:[%s4381_s13 + $0x8] sm:$0xff] %v1907_v24 }
 0x345 PF: > { %s12_s9 = sadd.s32 1, %s2717_s9  }
 0x346   : > { %p9_p4 = scmp.ge.s32.totalorder %s12_s9, 4  }
 0x348   :  { %11 = sbr.rel (!%p9_p4) target bundleno = 1 (0x1), region = 59 }

// kernel: preact_resnet_forward.6
= control target key start
LH: loop header
LB: loop body
LE: loop exit
PB: predicated region body
PF: predicated region fallthrough
CT: control target
= control target key end

     0   :  { %s5294_s21 = smov 0   ;;  %s8212_s0 = inlined_call_operand.vmem [shape: f32[2,16,256], index: 0, kind: input, shape index: {}]   ;;  %s8213_s1 = inlined_call_operand.vmem [shape: f32[1,256], index: 1, kind: input, shape index: {}]   ;;  %s8214_s2 = inlined_call_operand.vmem [shape: f32[1,256], index: 2, kind: input, shape index: {}]   ;;  %s8215_s3 = inlined_call_operand.vmem [shape: bf16[144,16], index: 3, kind: input, shape index: {}]   ;;  %s8216_s4 = inlined_call_operand.vmem [shape: f32[1,16], index: 4, kind: input, shape index: {}]   ;;  %s8217_s5 = inlined_call_operand.vmem [shape: bf16[144,16], index: 5, kind: input, shape index: {}]   ;;  %s8218_s6 = inlined_call_operand.vmem [shape: f32[2,16,256], index: 6, kind: output, shape index: {}]  }
   0x1 LB: > { %s3899_s22 = sadd.s32 4294967295, %s5249_s21   ;;  %p3903_p0 = scmp.ge.s32.totalorder %s5249_s21, 1  ;;  %s5249_s21 = sphi %s5294_s21, %s16_s21  }
   0x2   : > { %p212_p1 = scmp.lt.s32.totalorder %s5249_s21, 3 }
   0x4   : > { %p213_p2 = pnand %p3903_p0, %p212_p1 }
   0x6   : > { %216 = sbr.rel (%p213_p2) target bundleno = 1410 (0x582), region = 44 }
   0xb   : > { %p242_p3 = scmp.lt.s32.totalorder %s3899_s22, 1  ;;  %v257_v0 = vld [vmem:[%s8213_s1] sm:$0x3]  ;;  %s5251_s7 = smov 80   ;;  %vm281_vm0 = vcmask 130048   ;;  %vm284_vm1 = vcmask 123904  }
   0xc   : > { %v267_v1 = vld [vmem:[%s8214_s2] sm:$0x3]  ;;  %v259_v2 = vperm.slane %v257_v0, 0  ;;  %s5252_s8 = smov 96   ;;  %s5253_s9 = smov 112   ;;  %v260_v12 = vperm.slane %v257_v0, 1 }
   0xd   : > { %s8421_s22 = smov (!%p242_p3, %s3899_s22), 1  ;;  %v269_v3 = vperm.slane %v267_v1, 0  ;;  %s5254_s10 = smov 64   ;;  %v270_v15 = vperm.slane %v267_v1, 1  ;;  %v5258_v22 = vmov 0.0   ;;  %v4024_v30 = vld [vmem:[%s8215_s3 + $0x40] sm:$0xff] }
   0xe   : > { %s4014_s27 = sshll.u32 %s8421_s22, 5  ;;  %s5255_s11 = smov 48   ;;  %310 = vst.msk [vmem:[#allocation2 + $0xd8] sm:$0xff] %vm281_vm0, %v5258_v22  ;;  %1949 = vmatpush.bf16.msra.mxu1 %v4024_v30  ;;  %vm1152_vm2 = vcmask 1045504   ;;  %vm771_vm3 = vcmask 1046528   ;;  %vm1499_vm4 = vcmask 261120  }
   0xf   : > { %s5316_s30 = scalar_lea.vmem %s8212_s0, %s4014_s27  ;;  %s5256_s12 = smov 32   ;;  %311 = vst.msk [vmem:[#allocation2 + $0xe0] sm:$0xff] %vm281_vm0, %v5258_v22  ;;  %vm1532_vm5 = vcmask 392192   ;;  %vm1598_vm6 = vcmask 654336   ;;  %vm1565_vm7 = vcmask 523264   ;;  %vm1631_vm8 = vcmask 785408  }
  0x10   : > { %v253_v4 = vld [vmem:[%s5316_s30] sm:$0xff]  ;;  %v255_v5 = vld [vmem:[%s5316_s30 + $0x10] sm:$0xff]  ;;  %v254_v13 = vld [vmem:[%s5316_s30 + $0x8] sm:$0xff]  ;;  %s5257_s13 = smov 16   ;;  %312 = vst.msk [vmem:[#allocation2 + $0xe8] sm:$0x3] %vm284_vm1, %v5258_v22 }
  0x11   : > { %v263_v6 = vmul.f32 %v259_v2, %v253_v4  ;;  %v265_v8 = vmul.f32 %v259_v2, %v255_v5  ;;  %v264_v14 = vmul.f32 %v260_v12, %v254_v13  ;;  %v256_v17 = vld [vmem:[%s5316_s30 + $0x18] sm:$0xff]  ;;  %282 = vst.msk [vmem:[#allocation2] sm:$0xff] %vm281_vm0, %v5258_v22  ;;  %vm1664_vm9 = vcmask 916480  }
  0x12   : > { %v266_v18 = vmul.f32 %v260_v12, %v256_v17  ;;  %283 = vst.msk [vmem:[#allocation2 + $0x8] sm:$0xff] %vm281_vm0, %v5258_v22 }
  0x13   : > { %v273_v7 = vadd.f32 %v269_v3, %v263_v6  ;;  %v275_v10 = vadd.f32 %v269_v3, %v265_v8  ;;  %v274_v16 = vadd.f32 %v270_v15, %v264_v14  ;;  %285 = vst.msk [vmem:[#allocation2 + $0x10] sm:$0x3] %vm284_vm1, %v5258_v22 }
  0x14   : > { %v276_v20 = vadd.f32 %v270_v15, %v266_v18  ;;  %286 = vst.msk [vmem:[#allocation2 + $0x18] sm:$0xff] %vm281_vm0, %v5258_v22 }
  0x15   : > { %v5320_v9 = vmax.f32 %v273_v7, 0.0  ;;  %v5328_v11 = vmax.f32 %v275_v10, 0.0  ;;  %v278_v19 = vmax.f32 %v274_v16, 0.0  ;;  %287 = vst.msk [vmem:[#allocation2 + $0x20] sm:$0xff] %vm281_vm0, %v5258_v22 }
  0x16   : > { %v280_v21 = vmax.f32 %v276_v20, 0.0  ;;  %288 = vst.msk [vmem:[#allocation2 + $0x28] sm:$0x3] %vm284_vm1, %v5258_v22 }
  0x17   : > { %360 = vrot.lane.b32.xlu2 %v5320_v9, %s5251_s7  ;;  %351 = vrot.lane.b32.xlu1 %v5320_v9, %s5252_s8  ;;  %406 = vst.msk [vmem:[#allocation2 + $0xd9] sm:$0xff] %vm281_vm0, %v278_v19 }
  0x18   : > { %342 = vrot.lane.b32.xlu0 %v5320_v9, %s5253_s9  ;;  %407 = vst.msk [vmem:[#allocation2 + $0xe1] sm:$0xff] %vm281_vm0, %v280_v21 }
  0x19   : > { %289 = vst.msk [vmem:[#allocation2 + $0x30] sm:$0xff] %vm281_vm0, %v5258_v22 }
  0x1a   : > { %290 = vst.msk [vmem:[#allocation2 + $0x38] sm:$0xff] %vm281_vm0, %v5258_v22 }
  0x1b   : > { %291 = vst.msk [vmem:[#allocation2 + $0x40] sm:$0x3] %vm284_vm1, %v5258_v22 }
  0x1c   : > { %292 = vst.msk [vmem:[#allocation2 + $0x48] sm:$0xff] %vm281_vm0, %v5258_v22 }
  0x1d   : > { %293 = vst.msk [vmem:[#allocation2 + $0x50] sm:$0xff] %vm281_vm0, %v5258_v22 }
  0x1e   : > { %294 = vst.msk [vmem:[#allocation2 + $0x58] sm:$0x3] %vm284_vm1, %v5258_v22  ;;  %v5438_v23 = vld [vmem:[#allocation2 + $0xd8] sm:$0xff] }
  0x1f   : > { %362 = vrot.lane.b32.xlu2 %v5328_v11, %s5251_s7  ;;  %353 = vrot.lane.b32.xlu1 %v5328_v11, %s5252_s8  ;;  %295 = vst.msk [vmem:[#allocation2 + $0x60] sm:$0xff] %vm281_vm0, %v5258_v22  ;;  %v5440_v24 = vld [vmem:[#allocation2 + $0xe0] sm:$0xff] }
  0x20   : > { %344 = vrot.lane.b32.xlu0 %v5328_v11, %s5253_s9  ;;  %296 = vst.msk [vmem:[#allocation2 + $0x68] sm:$0xff] %vm281_vm0, %v5258_v22  ;;  %v5450_v25 = vpack.i.bf16 %v5440_v24, %v5438_v23 }
  0x21   : > { %297 = vst.msk [vmem:[#allocation2 + $0x70] sm:$0x3] %vm284_vm1, %v5258_v22 }
  0x22   : > { %298 = vst.msk [vmem:[#allocation2 + $0x78] sm:$0xff] %vm281_vm0, %v5258_v22 }
  0x23   : > { %299 = vst.msk [vmem:[#allocation2 + $0x80] sm:$0xff] %vm281_vm0, %v5258_v22 }
  0x24   : > { %300 = vst.msk [vmem:[#allocation2 + $0x88] sm:$0x3] %vm284_vm1, %v5258_v22 }
  0x25   : > { %301 = vst.msk [vmem:[#allocation2 + $0x90] sm:$0xff] %vm281_vm0, %v5258_v22 }
  0x26   : > { %302 = vst.msk [vmem:[#allocation2 + $0x98] sm:$0xff] %vm281_vm0, %v5258_v22 }
  0x27   : > { %371 = vrot.lane.b32.xlu1 %v5328_v11, %s5254_s10  ;;  %378 = vrot.lane.b32.xlu2 %v5320_v9, %s5255_s11  ;;  %303 = vst.msk [vmem:[#allocation2 + $0xa0] sm:$0x3] %vm284_vm1, %v5258_v22 }
  0x28   : > { %369 = vrot.lane.b32.xlu0 %v5320_v9, %s5254_s10  ;;  %304 = vst.msk [vmem:[#allocation2 + $0xa8] sm:$0xff] %vm281_vm0, %v5258_v22 }
  0x29   : > { %305 = vst.msk [vmem:[#allocation2 + $0xb0] sm:$0xff] %vm281_vm0, %v5258_v22 }
  0x2a   : > { %306 = vst.msk [vmem:[#allocation2 + $0xb8] sm:$0x3] %vm284_vm1, %v5258_v22 }
  0x2b   : > { %307 = vst.msk [vmem:[#allocation2 + $0xc0] sm:$0xff] %vm281_vm0, %v5258_v22 }
  0x2c   : > { %308 = vst.msk [vmem:[#allocation2 + $0xc8] sm:$0xff] %vm281_vm0, %v5258_v22 }
  0x2d   : > { %309 = vst.msk [vmem:[#allocation2 + $0xd0] sm:$0x3] %vm284_vm1, %v5258_v22 }
  0x2e   : > { %313 = vst.msk [vmem:[#allocation2 + $0xf0] sm:$0xff] %vm281_vm0, %v5258_v22 }
  0x2f   : > { %387 = vrot.lane.b32.xlu1 %v5320_v9, %s5256_s12  ;;  %389 = vrot.lane.b32.xlu2 %v5328_v11, %s5256_s12  ;;  %314 = vst.msk [vmem:[#allocation2 + $0xf8] sm:$0xff] %vm281_vm0, %v5258_v22 }
  0x30   : > { %380 = vrot.lane.b32.xlu0 %v5328_v11, %s5255_s11  ;;  %315 = vst.msk [vmem:[#allocation2 + $0x100] sm:$0x3] %vm284_vm1, %v5258_v22 }
  0x31   : > { %316 = vst.msk [vmem:[#allocation2 + $0x108] sm:$0xff] %vm281_vm0, %v5258_v22 }
  0x32   : > { %317 = vst.msk [vmem:[#allocation2 + $0x110] sm:$0xff] %vm281_vm0, %v5258_v22 }
  0x33   : > { %318 = vst.msk [vmem:[#allocation2 + $0x118] sm:$0x3] %vm284_vm1, %v5258_v22 }
  0x34   : > { %319 = vst.msk [vmem:[#allocation2 + $0x120] sm:$0xff] %vm281_vm0, %v5258_v22 }
  0x35   : > { %320 = vst.msk [vmem:[#allocation2 + $0x128] sm:$0xff] %vm281_vm0, %v5258_v22 }
  0x36   : > { %321 = vst.msk [vmem:[#allocation2 + $0x130] sm:$0x3] %vm284_vm1, %v5258_v22 }
  0x37   : > { %398 = vrot.lane.b32.xlu1 %v5328_v11, %s5257_s13  ;;  %410 = vrot.lane.b32.xlu2 %v278_v19, %s5253_s9  ;;  %322 = vst.msk [vmem:[#allocation2 + $0x138] sm:$0xff] %vm281_vm0, %v5258_v22 }
  0x38   : > { %396 = vrot.lane.b32.xlu0 %v5320_v9, %s5257_s13  ;;  %323 = vst.msk [vmem:[#allocation2 + $0x140] sm:$0xff] %vm281_vm0, %v5258_v22 }
  0x39   : > { %324 = vst.msk [vmem:[#allocation2 + $0x148] sm:$0x3] %vm284_vm1, %v5258_v22 }
  0x3a   : > { %325 = vst.msk [vmem:[#allocation2 + $0x150] sm:$0xff] %vm281_vm0, %v5258_v22 }
  0x3b   : > { %326 = vst.msk [vmem:[#allocation2 + $0x158] sm:$0xff] %vm281_vm0, %v5258_v22 }
  0x3c   : > { %327 = vst.msk [vmem:[#allocation2 + $0x160] sm:$0x3] %vm284_vm1, %v5258_v22 }
  0x3d   : > { %328 = vst.msk [vmem:[#allocation2 + $0x168] sm:$0xff] %vm281_vm0, %v5258_v22 }
  0x3e   : > { %329 = vst.msk [vmem:[#allocation2 + $0x170] sm:$0xff] %vm281_vm0, %v5258_v22 }
  0x3f   : > { %419 = vrot.lane.b32.xlu1 %v278_v19, %s5252_s8  ;;  %421 = vrot.lane.b32.xlu2 %v280_v21, %s5252_s8  ;;  %330 = vst.msk [vmem:[#allocation2 + $0x178] sm:$0x3] %vm284_vm1, %v5258_v22 }
  0x40   : > { %412 = vrot.lane.b32.xlu0 %v280_v21, %s5253_s9  ;;  %331 = vst.msk [vmem:[#allocation2 + $0x180] sm:$0xff] %vm281_vm0, %v5258_v22 }
  0x41   : > { %332 = vst.msk [vmem:[#allocation2 + $0x188] sm:$0xff] %vm281_vm0, %v5258_v22 }
  0x42   : > { %333 = vst.msk [vmem:[#allocation2 + $0x190] sm:$0x3] %vm284_vm1, %v5258_v22 }
  0x43   : > { %334 = vst.msk [vmem:[#allocation2 + $0x198] sm:$0xff] %vm281_vm0, %v5258_v22 }
  0x44   : > { %335 = vst.msk [vmem:[#allocation2 + $0x1a0] sm:$0xff] %vm281_vm0, %v5258_v22 }
  0x45   : > { %336 = vst.msk [vmem:[#allocation2 + $0x1a8] sm:$0x3] %vm284_vm1, %v5258_v22 }
  0x46   : > { %2063 = vst.msk [vmem:[#allocation3] sm:$0xff] %vm281_vm0, %v5258_v22 }
  0x47   : > { %430 = vrot.lane.b32.xlu1 %v280_v21, %s5251_s7  ;;  %437 = vrot.lane.b32.xlu2 %v278_v19, %s5254_s10  ;;  %2064 = vst.msk [vmem:[#allocation3 + $0x8] sm:$0xff] %vm281_vm0, %v5258_v22 }
  0x48   : > { %428 = vrot.lane.b32.xlu0 %v278_v19, %s5251_s7  ;;  %2065 = vst.msk [vmem:[#allocation3 + $0x10] sm:$0x3] %vm284_vm1, %v5258_v22 }
  0x49   : > { %2066 = vst.msk [vmem:[#allocation3 + $0x18] sm:$0xff] %vm281_vm0, %v5258_v22 }
  0x4a   : > { %2067 = vst.msk [vmem:[#allocation3 + $0x20] sm:$0xff] %vm281_vm0, %v5258_v22 }
  0x4b   : > { %2068 = vst.msk [vmem:[#allocation3 + $0x28] sm:$0x3] %vm284_vm1, %v5258_v22 }
  0x4c   : > { %2069 = vst.msk [vmem:[#allocation3 + $0x30] sm:$0xff] %vm281_vm0, %v5258_v22 }
  0x4d   : > { %2070 = vst.msk [vmem:[#allocation3 + $0x38] sm:$0xff] %vm281_vm0, %v5258_v22 }
  0x4e   : > { %2071 = vst.msk [vmem:[#allocation3 + $0x40] sm:$0x3] %vm284_vm1, %v5258_v22 }
  0x4f   : > { %446 = vrot.lane.b32.xlu1 %v278_v19, %s5255_s11  ;;  %448 = vrot.lane.b32.xlu2 %v280_v21, %s5255_s11  ;;  %2072 = vst.msk [vmem:[#allocation3 + $0x48] sm:$0xff] %vm281_vm0, %v5258_v22 }
  0x50   : > { %439 = vrot.lane.b32.xlu0 %v280_v21, %s5254_s10  ;;  %2073 = vst.msk [vmem:[#allocation3 + $0x50] sm:$0xff] %vm281_vm0, %v5258_v22 }
  0x51   : > { %2074 = vst.msk [vmem:[#allocation3 + $0x58] sm:$0x3] %vm284_vm1, %v5258_v22 }
  0x52   : > { %2075 = vst.msk [vmem:[#allocation3 + $0x60] sm:$0xff] %vm281_vm0, %v5258_v22 }
  0x53   : > { %2076 = vst.msk [vmem:[#allocation3 + $0x68] sm:$0xff] %vm281_vm0, %v5258_v22 }
  0x54   : > { %2077 = vst.msk [vmem:[#allocation3 + $0x70] sm:$0x3] %vm284_vm1, %v5258_v22 }
  0x55   : > { %2078 = vst.msk [vmem:[#allocation3 + $0x78] sm:$0xff] %vm281_vm0, %v5258_v22 }
  0x56   : > { %2079 = vst.msk [vmem:[#allocation3 + $0x80] sm:$0xff] %vm281_vm0, %v5258_v22 }
  0x57   : > { %457 = vrot.lane.b32.xlu1 %v280_v21, %s5256_s12  ;;  %464 = vrot.lane.b32.xlu2 %v278_v19, %s5257_s13  ;;  %2080 = vst.msk [vmem:[#allocation3 + $0x88] sm:$0x3] %vm284_vm1, %v5258_v22 }
  0x58   : > { %455 = vrot.lane.b32.xlu0 %v278_v19, %s5256_s12  ;;  %2081 = vst.msk [vmem:[#allocation3 + $0x90] sm:$0xff] %vm281_vm0, %v5258_v22 }
  0x59   : > { %2082 = vst.msk [vmem:[#allocation3 + $0x98] sm:$0xff] %vm281_vm0, %v5258_v22 }
  0x5a   : > { %2083 = vst.msk [vmem:[#allocation3 + $0xa0] sm:$0x3] %vm284_vm1, %v5258_v22 }
  0x5b   : > { %2084 = vst.msk [vmem:[#allocation3 + $0xa8] sm:$0xff] %vm281_vm0, %v5258_v22 }
  0x5c   : > { %2085 = vst.msk [vmem:[#allocation3 + $0xb0] sm:$0xff] %vm281_vm0, %v5258_v22 }
  0x5d   : > { %2086 = vst.msk [vmem:[#allocation3 + $0xb8] sm:$0x3] %vm284_vm1, %v5258_v22 }
  0x5e   : > { %2087 = vst.msk [vmem:[#allocation3 + $0xc0] sm:$0xff] %vm281_vm0, %v5258_v22 }
  0x5f   : > { %2088 = vst.msk [vmem:[#allocation3 + $0xc8] sm:$0xff] %vm281_vm0, %v5258_v22 }
  0x60   : > { %466 = vrot.lane.b32.xlu0 %v280_v21, %s5257_s13  ;;  %2089 = vst.msk [vmem:[#allocation3 + $0xd0] sm:$0x3] %vm284_vm1, %v5258_v22 }
  0x61   : > { %2090 = vst.msk [vmem:[#allocation3 + $0xd8] sm:$0xff] %vm281_vm0, %v5258_v22 }
  0x62   : > { %2091 = vst.msk [vmem:[#allocation3 + $0xe0] sm:$0xff] %vm281_vm0, %v5258_v22 }
  0x63   : > { %2092 = vst.msk [vmem:[#allocation3 + $0xe8] sm:$0x3] %vm284_vm1, %v5258_v22 }
  0x64   : > { %2093 = vst.msk [vmem:[#allocation3 + $0xf0] sm:$0xff] %vm281_vm0, %v5258_v22 }
  0x65   : > { %2094 = vst.msk [vmem:[#allocation3 + $0xf8] sm:$0xff] %vm281_vm0, %v5258_v22 }
  0x66   : > { %2095 = vst.msk [vmem:[#allocation3 + $0x100] sm:$0x3] %vm284_vm1, %v5258_v22 }
  0x67   : > { %2096 = vst.msk [vmem:[#allocation3 + $0x108] sm:$0xff] %vm281_vm0, %v5258_v22 }
  0x68   : > { %4056 = vrot.lane.b32.xlu0 %v5450_v25, %s5257_s13  ;;  %2097 = vst.msk [vmem:[#allocation3 + $0x110] sm:$0xff] %vm281_vm0, %v5258_v22 }
  0x69   : > { %2098 = vst.msk [vmem:[#allocation3 + $0x118] sm:$0x3] %vm284_vm1, %v5258_v22 }
  0x6a   : > { %2099 = vst.msk [vmem:[#allocation3 + $0x120] sm:$0xff] %vm281_vm0, %v5258_v22 }
  0x6b   : > { %2100 = vst.msk [vmem:[#allocation3 + $0x128] sm:$0xff] %vm281_vm0, %v5258_v22 }
  0x6c   : > { %2101 = vst.msk [vmem:[#allocation3 + $0x130] sm:$0x3] %vm284_vm1, %v5258_v22 }
  0x6d   : > { %2102 = vst.msk [vmem:[#allocation3 + $0x138] sm:$0xff] %vm281_vm0, %v5258_v22 }
  0x6e   : > { %2103 = vst.msk [vmem:[#allocation3 + $0x140] sm:$0xff] %vm281_vm0, %v5258_v22 }
  0x6f   : > { %2104 = vst.msk [vmem:[#allocation3 + $0x148] sm:$0x3] %vm284_vm1, %v5258_v22 }
  0x70   : > { %2105 = vst.msk [vmem:[#allocation3 + $0x150] sm:$0xff] %vm281_vm0, %v5258_v22  ;;  %4061 = vrot.lane.b32.xlu0 %v5450_v25, %s5256_s12 }
  0x71   : > { %v361_v26 = vpop.permute.xlu2 %360  ;;  %2106 = vst.msk [vmem:[#allocation3 + $0x158] sm:$0xff] %vm281_vm0, %v5258_v22 }
  0x72   : > { %2107 = vst.msk [vmem:[#allocation3 + $0x160] sm:$0x3] %vm284_vm1, %v5258_v22 }
  0x73   : > { %2108 = vst.msk [vmem:[#allocation3 + $0x168] sm:$0xff] %vm281_vm0, %v5258_v22 }
  0x74   : > { %2109 = vst.msk [vmem:[#allocation3 + $0x170] sm:$0xff] %vm281_vm0, %v5258_v22 }
  0x75   : > { %2110 = vst.msk [vmem:[#allocation3 + $0x178] sm:$0x3] %vm284_vm1, %v5258_v22 }
  0x76   : > { %2111 = vst.msk [vmem:[#allocation3 + $0x180] sm:$0xff] %vm281_vm0, %v5258_v22 }
  0x77   : > { %2112 = vst.msk [vmem:[#allocation3 + $0x188] sm:$0xff] %vm281_vm0, %v5258_v22 }
  0x78   : > { %2113 = vst.msk [vmem:[#allocation3 + $0x190] sm:$0x3] %vm284_vm1, %v5258_v22 }
  0x79   : > { %v363_v27 = vpop.permute.xlu2 %362  ;;  %2114 = vst.msk [vmem:[#allocation3 + $0x198] sm:$0xff] %vm281_vm0, %v5258_v22 }
  0x7a   : > { %2115 = vst.msk [vmem:[#allocation3 + $0x1a0] sm:$0xff] %vm281_vm0, %v5258_v22 }
  0x7b   : > { %2116 = vst.msk [vmem:[#allocation3 + $0x1a8] sm:$0x3] %vm284_vm1, %v5258_v22 }
  0x7c   : > { %367 = vst.msk [vmem:[#allocation2 + $0x61] sm:$0xff] %vm281_vm0, %v361_v26 }
  0x7d   : > { %338 = vst.msk [vmem:[#allocation2 + $0x19] sm:$0xff] %vm281_vm0, %v5320_v9 }
  0x7e   : > { %339 = vst.msk [vmem:[#allocation2 + $0x21] sm:$0xff] %vm281_vm0, %v5328_v11 }
  0x7f   : > { %368 = vst.msk [vmem:[#allocation2 + $0x69] sm:$0xff] %vm281_vm0, %v363_v27 }
  0x81   : > { %v379_v31 = vpop.permute.xlu2 %378 }
  0x82   : > { %385 = vst.msk [vmem:[#allocation2 + $0x91] sm:$0xff] %vm281_vm0, %v379_v31 }
  0x83   : > { %v5619_v41 = vld [vmem:[#allocation2 + $0x60] sm:$0xff] }
  0x84   : > { %v5611_v38 = vld [vmem:[#allocation2 + $0x18] sm:$0xff]  ;;  %v1173_v50 = vrot.slane %v5619_v41, 2  ;;  %v792_v51 = vrot.slane %v5619_v41, 1 }
  0x85   : > { %v5614_v39 = vld [vmem:[#allocation2 + $0x20] sm:$0xff] }
  0x86   : > { %v4050_v40 = vpack.i.bf16 %v5614_v39, %v5611_v38  ;;  %v5622_v42 = vld [vmem:[#allocation2 + $0x68] sm:$0xff]  ;;  %v5627_v44 = vld [vmem:[#allocation2 + $0x70] sm:$0x3] }
  0x87   : > { %v5638_v52 = vpack.i.bf16 %v5622_v42, %v5619_v41  ;;  %v1174_v56 = vrot.slane %v5622_v42, 2  ;;  %v1176_v57 = vrot.slane %v5627_v44, 2  ;;  %v793_v6 = vrot.slane %v5622_v42, 1 }
  0x88   : > { %4051 = vrot.lane.b32.xlu1 %v4050_v40, %s5257_s13  ;;  %v795_v7 = vrot.slane %v5627_v44, 1 }
  0x89   : > { %v352_v28 = vpop.permute.xlu1 %351  ;;  %v390_v34 = vpop.permute.xlu2 %389  ;;  %v5659_v12 = vld [vmem:[#allocation2 + $0x90] sm:$0xff]  ;;  %v5663_v14 = vsel %vm1152_vm2, %v1173_v50, %v1174_v56  ;;  %v5666_v15 = vsel %vm1152_vm2, %v1174_v56, %v1176_v57 }
  0x8a   : > { %v343_v29 = vpop.permute.xlu0 %342  ;;  %358 = vst.msk [vmem:[#allocation2 + $0x49] sm:$0xff] %vm281_vm0, %v352_v28 }
  0x8b   : > { %349 = vst.msk [vmem:[#allocation2 + $0x31] sm:$0xff] %vm281_vm0, %v343_v29 }
  0x8c   : > { %395 = vst.msk [vmem:[#allocation2 + $0xb1] sm:$0xff] %vm281_vm0, %v390_v34 }
  0x90   : > { %4076 = vrot.lane.b32.xlu1 %v5638_v52, %s5257_s13 }
  0x91   : > { %v354_v32 = vpop.permute.xlu1 %353  ;;  %v411_v37 = vpop.permute.xlu2 %410  ;;  %v5624_v43 = vld [vmem:[#allocation2 + $0x48] sm:$0xff] }
  0x92   : > { %v345_v33 = vpop.permute.xlu0 %344  ;;  %359 = vst.msk [vmem:[#allocation2 + $0x51] sm:$0xff] %vm281_vm0, %v354_v32  ;;  %v479_v45 = vld [vmem:[#allocation2 + $0x30] sm:$0xff]  ;;  %v1168_v62 = vrot.slane %v5624_v43, 2  ;;  %v794_v32 = vsel %vm771_vm3, %v792_v51, %v793_v6  ;;  %v5717_v51 = vpack.i.bf16 %v5666_v15, %v5663_v14 }
  0x93   : > { %350 = vst.msk [vmem:[#allocation2 + $0x39] sm:$0xff] %vm281_vm0, %v345_v33  ;;  %v1163_v59 = vrot.slane %v479_v45, 2  ;;  %v782_v11 = vrot.slane %v479_v45, 1  ;;  %v796_v33 = vsel %vm771_vm3, %v793_v6, %v795_v7 }
  0x94   : > { %417 = vst.msk [vmem:[#allocation2 + $0xf1] sm:$0xff] %vm281_vm0, %v411_v37 }
  0x95   : > { %8283 = vst [vmem:[#allocation6_spill] sm:$0xff] %v5717_v51 }
  0x99   : > { %v372_v35 = vpop.permute.xlu1 %371  ;;  %v5631_v48 = vld [vmem:[#allocation2 + $0x50] sm:$0xff]  ;;  %v422_v49 = vpop.permute.xlu2 %421  ;;  %v484_v19 = vld [vmem:[#allocation2 + $0x58] sm:$0x3] }
  0x9a   : > { %v370_v36 = vpop.permute.xlu0 %369  ;;  %377 = vst.msk [vmem:[#allocation2 + $0x81] sm:$0xff] %vm281_vm0, %v372_v35  ;;  %v5642_v53 = vpack.i.bf16 %v5631_v48, %v5624_v43  ;;  %v480_v54 = vld [vmem:[#allocation2 + $0x38] sm:$0xff]  ;;  %v481_v55 = vld [vmem:[#allocation2 + $0x40] sm:$0x3]  ;;  %v1169_v13 = vrot.slane %v5631_v48, 2  ;;  %v1171_v40 = vrot.slane %v484_v19, 2 }
  0x9b   : > { %376 = vst.msk [vmem:[#allocation2 + $0x79] sm:$0xff] %vm281_vm0, %v370_v36  ;;  %v5647_v58 = vpack.i.bf16 %v480_v54, %v479_v45  ;;  %v1164_v60 = vrot.slane %v480_v54, 2  ;;  %v1166_v61 = vrot.slane %v481_v55, 2  ;;  %v783_v63 = vrot.slane %v480_v54, 1 }
  0x9c   : > { %427 = vst.msk [vmem:[#allocation2 + $0x111] sm:$0xff] %vm281_vm0, %v422_v49  ;;  %4071 = vrot.lane.b32.xlu0 %v5642_v53, %s5257_s13  ;;  %v785_v0 = vrot.slane %v481_v55, 1  ;;  %v1170_v54 = vsel %vm1152_vm2, %v1168_v62, %v1169_v13  ;;  %v1183_v55 = vrot.slane %v5659_v12, 2 }
  0x9d   : > { %4066 = vrot.lane.b32.xlu2 %v5647_v58, %s5257_s13  ;;  %v1165_v1 = vsel %vm1152_vm2, %v1163_v59, %v1164_v60  ;;  %v1167_v2 = vsel %vm1152_vm2, %v1164_v60, %v1166_v61  ;;  %v784_v20 = vsel %vm771_vm3, %v782_v11, %v783_v63  ;;  %v1172_v59 = vsel %vm1152_vm2, %v1169_v13, %v1171_v40 }
  0x9e   : > { %v1698_v8 = vpack.c.bf16 %v1167_v2, %v1165_v1  ;;  %v786_v21 = vsel %vm771_vm3, %v783_v63, %v785_v0  ;;  %v5709_v49 = vpack.i.bf16 %v1167_v2, %v1165_v1  ;;  %v787_v60 = vrot.slane %v5624_v43, 1 }
  0x9f   : > { %v5695_v42 = vpack.i.bf16 %v786_v21, %v784_v20  ;;  %v788_v61 = vrot.slane %v5631_v48, 1  ;;  %v790_v63 = vrot.slane %v484_v19, 1  ;;  %v5744_v13 = vpack.i.bf16 %v1172_v59, %v1170_v54  ;;  %v496_v19 = vld [vmem:[#allocation2 + $0xb8] sm:$0x3] }
  0xa0   : > { %3944 = vmatmul.msk.bf16.vlgmr.msra.gmra.mxu1 %vm281_vm0, %v1698_v8  ;;  %8281 = vst [vmem:[#allocation4_spill] sm:$0xff] %v5709_v49 }
  0xa1   : > { %v388_v46 = vpop.permute.xlu1 %387  ;;  %v490_v5 = vld [vmem:[#allocation2 + $0x88] sm:$0x3]  ;;  %v438_v30 = vpop.permute.xlu2 %437  ;;  %v789_v6 = vsel %vm771_vm3, %v787_v60, %v788_v61  ;;  %v791_v7 = vsel %vm771_vm3, %v788_v61, %v790_v63  ;;  %8284 = vst [vmem:[#allocation7_spill] sm:$0xff] %v5744_v13 }
  0xa2   : > { %v381_v47 = vpop.permute.xlu0 %380  ;;  %394 = vst.msk [vmem:[#allocation2 + $0xa9] sm:$0xff] %vm281_vm0, %v388_v46  ;;  %v488_v3 = vld [vmem:[#allocation2 + $0x78] sm:$0xff]  ;;  %v489_v4 = vld [vmem:[#allocation2 + $0x80] sm:$0xff]  ;;  %v1181_v16 = vrot.slane %v490_v5, 2  ;;  %v800_v31 = vrot.slane %v490_v5, 1  ;;  %v5705_v46 = vpack.i.bf16 %v796_v33, %v794_v32 }
  0xa3   : > { %386 = vst.msk [vmem:[#allocation2 + $0x99] sm:$0xff] %vm281_vm0, %v381_v47  ;;  %v1178_v9 = vrot.slane %v488_v3, 2  ;;  %v1179_v10 = vrot.slane %v489_v4, 2  ;;  %v797_v22 = vrot.slane %v488_v3, 1  ;;  %v798_v25 = vrot.slane %v489_v4, 1 }
  0xa4   : > { %v5673_v26 = vpack.i.bf16 %v489_v4, %v488_v3  ;;  %444 = vst.msk [vmem:[#allocation2 + $0x139] sm:$0xff] %vm281_vm0, %v438_v30  ;;  %v802_v3 = vrot.slane %v5659_v12, 1 }
  0xa5   : > { %v5687_v35 = vsel %vm1152_vm2, %v1178_v9, %v1179_v10  ;;  %v5690_v36 = vsel %vm1152_vm2, %v1179_v10, %v1181_v16  ;;  %v799_v37 = vsel %vm771_vm3, %v797_v22, %v798_v25  ;;  %v801_v41 = vsel %vm771_vm3, %v798_v25, %v800_v31  ;;  %v503_v25 = vld [vmem:[#allocation2 + $0xf0] sm:$0xff] }
  0xa6   : > { %v5703_v45 = vpack.i.bf16 %v801_v41, %v799_v37  ;;  %4081 = vrot.lane.b32.xlu2 %v5673_v26, %s5257_s13  ;;  %v5713_v50 = vpack.i.bf16 %v5690_v36, %v5687_v35 }
  0xa8   : > { %8282 = vst [vmem:[#allocation5_spill] sm:$0xff] %v5713_v50 }
  0xa9   : > { %v399_v17 = vpop.permute.xlu1 %398  ;;  %v5676_v28 = vld [vmem:[#allocation2 + $0xa8] sm:$0xff]  ;;  %v5678_v29 = vld [vmem:[#allocation2 + $0xb0] sm:$0xff]  ;;  %v449_v48 = vpop.permute.xlu2 %448 }
  0xaa   : > { %v397_v18 = vpop.permute.xlu0 %396  ;;  %404 = vst.msk [vmem:[#allocation2 + $0xc9] sm:$0xff] %vm281_vm0, %v399_v17  ;;  %v492_v27 = vld [vmem:[#allocation2 + $0x98] sm:$0xff]  ;;  %v5701_v44 = vpack.i.bf16 %v5678_v29, %v5676_v28  ;;  %v493_v47 = vld [vmem:[#allocation2 + $0xa0] sm:$0x3]  ;;  %v1700_v17 = vpack.c.bf16 %v1172_v59, %v1170_v54  ;;  %v1188_v21 = vrot.slane %v5676_v28, 2  ;;  %v1189_v22 = vrot.slane %v5678_v29, 2 }
  0xab   : > { %403 = vst.msk [vmem:[#allocation2 + $0xc1] sm:$0xff] %vm281_vm0, %v397_v18  ;;  %v5684_v34 = vpack.i.bf16 %v492_v27, %v5659_v12  ;;  %v1184_v56 = vrot.slane %v492_v27, 2  ;;  %v1186_v57 = vrot.slane %v493_v47, 2  ;;  %v803_v4 = vrot.slane %v492_v27, 1 }
  0xac   : > { %4091 = vrot.lane.b32.xlu1 %v5701_v44, %s5257_s13  ;;  %v805_v8 = vrot.slane %v493_v47, 1  ;;  %454 = vst.msk [vmem:[#allocation2 + $0x159] sm:$0xff] %vm281_vm0, %v449_v48  ;;  %v5742_v12 = vpack.i.bf16 %v791_v7, %v789_v6  ;;  %v1191_v27 = vrot.slane %v496_v19, 2  ;;  %v5767_v60 = vsel %vm1152_vm2, %v1188_v21, %v1189_v22 }
  0xad   : > { %4086 = vrot.lane.b32.xlu0 %v5684_v34, %s5257_s13  ;;  %v5727_v2 = vsel %vm1152_vm2, %v1183_v55, %v1184_v56  ;;  %v5730_v62 = vsel %vm1152_vm2, %v1184_v56, %v1186_v57  ;;  %v804_v10 = vsel %vm771_vm3, %v802_v3, %v803_v4  ;;  %v808_v48 = vrot.slane %v5678_v29, 1 }
  0xae   : > { %v806_v11 = vsel %vm771_vm3, %v803_v4, %v805_v8  ;;  %v5748_v16 = vpack.i.bf16 %v5730_v62, %v5727_v2  ;;  %v810_v6 = vrot.slane %v496_v19, 1  ;;  %v822_v21 = vrot.slane %v503_v25, 1 }
  0xaf   : > { %v5750_v18 = vpack.i.bf16 %v806_v11, %v804_v10 }
  0xb0   : > { %8285 = vst [vmem:[#allocation8_spill] sm:$0xff] %v5748_v16  ;;  %3945 = vmatmul.msk.bf16.gmra.mxu1 %vm281_vm0, %v1700_v17  ;;  %v811_v11 = vsel %vm771_vm3, %v808_v48, %v810_v6  ;;  %v1203_v17 = vrot.slane %v503_v25, 2 }
  0xb1   : > { %v420_v0 = vpop.permute.xlu1 %419  ;;  %v499_v20 = vld [vmem:[#allocation2 + $0xd0] sm:$0x3]  ;;  %v465_v59 = vpop.permute.xlu2 %464 }
  0xb2   : > { %v413_v1 = vpop.permute.xlu0 %412  ;;  %426 = vst.msk [vmem:[#allocation2 + $0x109] sm:$0xff] %vm281_vm0, %v420_v0  ;;  %v497_v43 = vld [vmem:[#allocation2 + $0xc0] sm:$0xff]  ;;  %v498_v5 = vld [vmem:[#allocation2 + $0xc8] sm:$0xff]  ;;  %v1196_v32 = vrot.slane %v499_v20, 2  ;;  %v815_v55 = vrot.slane %v499_v20, 1 }
  0xb3   : > { %418 = vst.msk [vmem:[#allocation2 + $0xf9] sm:$0xff] %vm281_vm0, %v413_v1  ;;  %v5737_v9 = vpack.i.bf16 %v498_v5, %v497_v43  ;;  %v1193_v30 = vrot.slane %v497_v43, 2  ;;  %v1194_v31 = vrot.slane %v498_v5, 2  ;;  %v812_v47 = vrot.slane %v497_v43, 1 }
  0xb4   : > { %v813_v54 = vrot.slane %v498_v5, 1  ;;  %v5779_v1 = vsel %vm1152_vm2, %v1189_v22, %v1191_v27  ;;  %471 = vst.msk [vmem:[#allocation2 + $0x181] sm:$0xff] %vm281_vm0, %v465_v59  ;;  %v807_v5 = vrot.slane %v5676_v28, 1 }
  0xb5   : > { %4096 = vrot.lane.b32.xlu2 %v5737_v9, %s5257_s13  ;;  %v5770_v61 = vsel %vm1152_vm2, %v1193_v30, %v1194_v31  ;;  %v5773_v63 = vsel %vm1152_vm2, %v1194_v31, %v1196_v32  ;;  %v5802_v29 = vpack.i.bf16 %v5779_v1, %v5767_v60 }
  0xb6   : > { %v814_v4 = vsel %vm771_vm3, %v812_v47, %v813_v54  ;;  %v816_v43 = vsel %vm771_vm3, %v813_v54, %v815_v55  ;;  %v5794_v8 = vpack.i.bf16 %v5773_v63, %v5770_v61  ;;  %v809_v10 = vsel %vm771_vm3, %v807_v5, %v808_v48 }
  0xb7   : > { %v5790_v7 = vpack.i.bf16 %v816_v43, %v814_v4  ;;  %8287 = vst [vmem:[#allocation10_spill] sm:$0xff] %v5802_v29  ;;  %v508_v43 = vld [vmem:[#allocation2 + $0x118] sm:$0x3]  ;;  %v1702_v48 = vpack.c.bf16 %v5666_v15, %v5663_v14 }
  0xb8   : > { %8286 = vst [vmem:[#allocation9_spill] sm:$0xff] %v5794_v8  ;;  %v1211_v15 = vrot.slane %v508_v43, 2 }
  0xb9   : > { %v431_v33 = vpop.permute.xlu1 %430  ;;  %v5757_v40 = vld [vmem:[#allocation2 + $0x108] sm:$0xff]  ;;  %v5759_v41 = vld [vmem:[#allocation2 + $0x110] sm:$0xff] }
  0xba   : > { %v429_v37 = vpop.permute.xlu0 %428  ;;  %436 = vst.msk [vmem:[#allocation2 + $0x129] sm:$0xff] %vm281_vm0, %v431_v33  ;;  %v5764_v56 = vpack.i.bf16 %v5759_v41, %v5757_v40  ;;  %v504_v57 = vld [vmem:[#allocation2 + $0xf8] sm:$0xff]  ;;  %v505_v28 = vld [vmem:[#allocation2 + $0x100] sm:$0x3]  ;;  %v5807_v33 = vpack.i.bf16 %v811_v11, %v809_v10  ;;  %v827_v6 = vrot.slane %v5757_v40, 1  ;;  %v828_v10 = vrot.slane %v5759_v41, 1 }
  0xbb   : > { %435 = vst.msk [vmem:[#allocation2 + $0x121] sm:$0xff] %vm281_vm0, %v429_v37  ;;  %v5776_v0 = vpack.i.bf16 %v504_v57, %v503_v25  ;;  %v1204_v19 = vrot.slane %v504_v57, 2  ;;  %v1206_v20 = vrot.slane %v505_v28, 2  ;;  %v823_v22 = vrot.slane %v504_v57, 1  ;;  %v512_v11 = vld [vmem:[#allocation2 + $0x138] sm:$0xff] }
  0xbc   : > { %v825_v27 = vrot.slane %v505_v28, 1  ;;  %v830_v28 = vrot.slane %v508_v43, 1  ;;  %v1209_v14 = vrot.slane %v5759_v41, 2 }
  0xbd   : > { %4101 = vrot.lane.b32.xlu1 %v5776_v0, %s5257_s13  ;;  %4106 = vrot.lane.b32.xlu2 %v5764_v56, %s5257_s13  ;;  %v5805_v32 = vsel %vm1152_vm2, %v1203_v17, %v1204_v19  ;;  %v5811_v54 = vsel %vm1152_vm2, %v1204_v19, %v1206_v20  ;;  %v824_v55 = vsel %vm771_vm3, %v822_v21, %v823_v22 }
  0xbe   : > { %v826_v25 = vsel %vm771_vm3, %v823_v22, %v825_v27  ;;  %v5822_v4 = vpack.i.bf16 %v5811_v54, %v5805_v32  ;;  %v831_v3 = vsel %vm771_vm3, %v828_v10, %v830_v28 }
  0xbf   : > { %v5818_v59 = vpack.i.bf16 %v826_v25, %v824_v55 }
  0xc0   : > { %8288 = vst [vmem:[#allocation11_spill] sm:$0xff] %v5822_v4  ;;  %3946 = vmatmul.msk.bf16.gmra.mxu1 %vm281_vm0, %v1702_v48  ;;  %v829_v48 = vsel %vm771_vm3, %v827_v6, %v828_v10 }
  0xc1   : > { %v447_v30 = vpop.permute.xlu1 %446  ;;  %v511_v5 = vld [vmem:[#allocation2 + $0x130] sm:$0x3]  ;;  %v5859_v28 = vpack.i.bf16 %v831_v3, %v829_v48 }
  0xc2   : > { %v440_v31 = vpop.permute.xlu0 %439  ;;  %453 = vst.msk [vmem:[#allocation2 + $0x151] sm:$0xff] %vm281_vm0, %v447_v30  ;;  %v509_v37 = vld [vmem:[#allocation2 + $0x120] sm:$0xff]  ;;  %v510_v47 = vld [vmem:[#allocation2 + $0x128] sm:$0xff]  ;;  %v835_v20 = vrot.slane %v511_v5, 1  ;;  %v1216_v10 = vrot.slane %v511_v5, 2 }
  0xc3   : > { %445 = vst.msk [vmem:[#allocation2 + $0x141] sm:$0xff] %vm281_vm0, %v440_v31  ;;  %v5816_v57 = vpack.i.bf16 %v510_v47, %v509_v37  ;;  %v832_v17 = vrot.slane %v509_v37, 1  ;;  %v833_v19 = vrot.slane %v510_v47, 1  ;;  %v1208_v31 = vrot.slane %v5757_v40, 2 }
  0xc4   : > { %v1213_v6 = vrot.slane %v509_v37, 2  ;;  %v1214_v29 = vrot.slane %v510_v47, 2  ;;  %v837_v37 = vrot.slane %v512_v11, 1 }
  0xc5   : > { %4111 = vrot.lane.b32.xlu0 %v5816_v57, %s5257_s13  ;;  %v834_v40 = vsel %vm771_vm3, %v832_v17, %v833_v19  ;;  %v836_v41 = vsel %vm771_vm3, %v833_v19, %v835_v20  ;;  %v5850_v43 = vsel %vm1152_vm2, %v1208_v31, %v1209_v14 }
  0xc6   : > { %v5862_v19 = vsel %vm1152_vm2, %v1213_v6, %v1214_v29  ;;  %v5865_v20 = vsel %vm1152_vm2, %v1214_v29, %v1216_v10 }
  0xc7   : > { %v5877_v29 = vpack.i.bf16 %v5865_v20, %v5862_v19 }
  0xc9   : > { %v458_v21 = vpop.permute.xlu1 %457  ;;  %v5831_v27 = vld [vmem:[#allocation2 + $0x150] sm:$0xff]  ;;  %v5833_v30 = vld [vmem:[#allocation2 + $0x158] sm:$0xff]  ;;  %8290 = vst [vmem:[#allocation13_spill] sm:$0xff] %v5877_v29 }
  0xca   : > { %v456_v22 = vpop.permute.xlu0 %455  ;;  %463 = vst.msk [vmem:[#allocation2 + $0x171] sm:$0xff] %vm281_vm0, %v458_v21  ;;  %v5840_v55 = vpack.i.bf16 %v5833_v30, %v5831_v27  ;;  %v513_v25 = vld [vmem:[#allocation2 + $0x140] sm:$0xff]  ;;  %v5855_v21 = vsel %vm1152_vm2, %v1209_v14, %v1211_v15  ;;  %v514_v17 = vld [vmem:[#allocation2 + $0x148] sm:$0x3]  ;;  %v1218_v14 = vrot.slane %v512_v11, 2  ;;  %v1223_v50 = vrot.slane %v5831_v27, 2 }
  0xcb   : > { %462 = vst.msk [vmem:[#allocation2 + $0x169] sm:$0xff] %vm281_vm0, %v456_v22  ;;  %v5845_v4 = vpack.i.bf16 %v513_v25, %v512_v11  ;;  %v5867_v22 = vpack.i.bf16 %v836_v41, %v834_v40  ;;  %v5871_v31 = vpack.i.bf16 %v5855_v21, %v5850_v43  ;;  %v838_v47 = vrot.slane %v513_v25, 1 }
  0xcc   : > { %4121 = vrot.lane.b32.xlu2 %v5840_v55, %s5257_s13  ;;  %v840_v5 = vrot.slane %v514_v17, 1  ;;  %v1219_v15 = vrot.slane %v513_v25, 2  ;;  %v1221_v3 = vrot.slane %v514_v17, 2  ;;  %v1224_v49 = vrot.slane %v5833_v30, 2 }
  0xcd   : > { %4116 = vrot.lane.b32.xlu1 %v5845_v4, %s5257_s13  ;;  %8289 = vst [vmem:[#allocation12_spill] sm:$0xff] %v5871_v31  ;;  %v839_v8 = vsel %vm771_vm3, %v837_v37, %v838_v47 }
  0xce   : > { %v841_v6 = vsel %vm771_vm3, %v838_v47, %v840_v5  ;;  %v5881_v10 = vsel %vm1152_vm2, %v1218_v14, %v1219_v15  ;;  %v5884_v11 = vsel %vm1152_vm2, %v1219_v15, %v1221_v3  ;;  %v517_v47 = vld [vmem:[#allocation2 + $0x160] sm:$0x3]  ;;  %v1704_v14 = vpack.c.bf16 %v5690_v36, %v5687_v35 }
  0xcf   : > { %8291 = vst [vmem:[#allocation14_spill] sm:$0xff] %v5881_v10  ;;  %v5886_v17 = vpack.i.bf16 %v841_v6, %v839_v8  ;;  %v5890_v37 = vpack.i.bf16 %v5884_v11, %v5881_v10  ;;  %v842_v15 = vrot.slane %v5831_v27, 1  ;;  %v843_v8 = vrot.slane %v5833_v30, 1 }
  0xd0   : > { %8292 = vst [vmem:[#allocation15_spill] sm:$0xff] %v5884_v11  ;;  %v845_v3 = vrot.slane %v517_v47, 1  ;;  %3947 = vmatmul.msk.bf16.gmra.mxu1 %vm281_vm0, %v1704_v14  ;;  %v1226_v16 = vrot.slane %v517_v47, 2 }
  0xd1   : > { %8293 = vst [vmem:[#allocation16_spill] sm:$0xff] %v5890_v37  ;;  %v520_v5 = vld [vmem:[#allocation2 + $0x178] sm:$0x3]  ;;  %v844_v51 = vsel %vm771_vm3, %v842_v15, %v843_v8 }
  0xd2   : > { %v467_v48 = vpop.permute.xlu0 %466  ;;  %v518_v40 = vld [vmem:[#allocation2 + $0x168] sm:$0xff]  ;;  %v519_v41 = vld [vmem:[#allocation2 + $0x170] sm:$0xff]  ;;  %v850_v31 = vrot.slane %v520_v5, 1  ;;  %v846_v35 = vsel %vm771_vm3, %v843_v8, %v845_v3  ;;  %v1231_v14 = vrot.slane %v520_v5, 2  ;;  %v5915_v8 = vsel %vm1152_vm2, %v1223_v50, %v1224_v49 }
  0xd3   : > { %472 = vst.msk [vmem:[#allocation2 + $0x189] sm:$0xff] %vm281_vm0, %v467_v48  ;;  %v4125_v25 = vpack.i.bf16 %v519_v41, %v518_v40  ;;  %v521_v48 = vld [vmem:[#allocation2 + $0x180] sm:$0xff]  ;;  %v847_v6 = vrot.slane %v518_v40, 1  ;;  %v848_v29 = vrot.slane %v519_v41, 1  ;;  %v1228_v11 = vrot.slane %v518_v40, 2 }
  0xd4   : > { %4136 = vrot.lane.b32.xlu2 %v5647_v58, %s5256_s12  ;;  %v1329_v27 = vrot.slane %v521_v48, 2  ;;  %v5922_v5 = vsel %vm1152_vm2, %v1224_v49, %v1226_v16 }
  0xd5   : > { %4126 = vrot.lane.b32.xlu0 %v4125_v25, %s5257_s13  ;;  %v849_v36 = vsel %vm771_vm3, %v847_v6, %v848_v29  ;;  %v851_v13 = vsel %vm771_vm3, %v848_v29, %v850_v31  ;;  %v1229_v31 = vrot.slane %v519_v41, 2  ;;  %v5917_v29 = vpack.i.bf16 %v846_v35, %v844_v51 }
  0xd6   : > { %v5919_v30 = vpack.i.bf16 %v851_v13, %v849_v36  ;;  %v5942_v49 = vpack.i.bf16 %v5922_v5, %v5915_v8  ;;  %v1706_v35 = vpack.c.bf16 %v5730_v62, %v5727_v2  ;;  %v5976_v2 = vld [vmem:[#allocation2 + $0x8] sm:$0xff] }
  0xd7   : > { %v5928_v10 = vsel %vm1152_vm2, %v1229_v31, %v1231_v14  ;;  %v777_v14 = vrot.slane %v5611_v38, 1  ;;  %v502_v38 = vld [vmem:[#allocation2 + $0xe8] sm:$0x3] }
  0xda   : > { %v522_v37 = vld [vmem:[#allocation2 + $0x188] sm:$0xff]  ;;  %v523_v15 = vld [vmem:[#allocation2 + $0x190] sm:$0x3] }
  0xdb   : > { %v5900_v58 = vpack.i.bf16 %v522_v37, %v521_v48  ;;  %v1330_v47 = vrot.slane %v522_v37, 2  ;;  %v950_v3 = vrot.slane %v522_v37, 1  ;;  %v952_v6 = vrot.slane %v523_v15, 1 }
  0xdc   : > { %4151 = vrot.lane.b32.xlu2 %v5673_v26, %s5256_s12  ;;  %v949_v26 = vrot.slane %v521_v48, 1  ;;  %v1332_v40 = vrot.slane %v523_v15, 2  ;;  %v526_v48 = vld [vmem:[#allocation2 + $0x1a8] sm:$0x3] }
  0xdd   : > { %4131 = vrot.lane.b32.xlu1 %v5900_v58, %s5257_s13  ;;  %4141 = vrot.lane.b32.xlu0 %v5642_v53, %s5256_s12  ;;  %v5925_v53 = vsel %vm1152_vm2, %v1228_v11, %v1229_v31  ;;  %v953_v51 = vsel %vm771_vm3, %v950_v3, %v952_v6  ;;  %v5933_v13 = vsel %vm1152_vm2, %v1329_v27, %v1330_v47  ;;  %v1199_v6 = vrot.slane %v5440_v24, 2 }
  0xde   : > { %v951_v50 = vsel %vm771_vm3, %v949_v26, %v950_v3  ;;  %v5938_v37 = vsel %vm1152_vm2, %v1330_v47, %v1332_v40  ;;  %v5948_v11 = vpack.i.bf16 %v5928_v10, %v5925_v53  ;;  %v8294_v3 = vpack.c.bf16 %v5773_v63, %v5770_v61 }
  0xdf   : > { %v5935_v41 = vpack.i.bf16 %v953_v51, %v951_v50  ;;  %v1201_v40 = vrot.slane %v502_v38, 2  ;;  %v817_v61 = vrot.slane %v5438_v23, 1  ;;  %v818_v63 = vrot.slane %v5440_v24, 1 }
  0xe0   : > { %3948 = vmatmul.msk.bf16.gmra.mxu1 %vm281_vm0, %v1706_v35  ;;  %v820_v50 = vrot.slane %v502_v38, 1 }
  0xe1   : > { %v6030_v35 = vsel %vm1152_vm2, %v1199_v6, %v1201_v40 }
  0xe4   : > { %4166 = vrot.lane.b32.xlu2 %v5737_v9, %s5256_s12  ;;  %v773_v9 = vrot.slane %v5976_v2, 1 }
  0xe5   : > { %4146 = vrot.lane.b32.xlu1 %v5638_v52, %s5256_s12  ;;  %4156 = vrot.lane.b32.xlu0 %v5684_v34, %s5256_s12  ;;  %v1708_v52 = vpack.c.bf16 %v5779_v1, %v5767_v60  ;;  %v5974_v34 = vld [vmem:[#allocation2] sm:$0xff] }
  0xe6   : > { %v772_v62 = vrot.slane %v5974_v34, 1  ;;  %v5988_v60 = vld [vmem:[#allocation2 + $0x1a0] sm:$0xff] }
  0xe8   : > { %v774_v1 = vsel %vm771_vm3, %v772_v62, %v773_v9  ;;  %v821_v62 = vsel %vm771_vm3, %v818_v63, %v820_v50  ;;  %v8307_v50 = vld [vmem:[#allocation14_spill] sm:$0xff] }
  0xec   : > { %4176 = vrot.lane.b32.xlu2 %v5764_v56, %s5256_s12 }
  0xed   : > { %4161 = vrot.lane.b32.xlu1 %v5701_v44, %s5256_s12  ;;  %4181 = vrot.lane.b32.xlu0 %v5816_v57, %s5256_s12  ;;  %v5979_v44 = vld [vmem:[#allocation2 + $0x10] sm:$0x3] }
  0xee   : > { %v775_v56 = vrot.slane %v5979_v44, 1 }
  0xf0   : > { %3949 = vmatmul.msk.bf16.gmra.mxu1 %vm281_vm0, %v1708_v52  ;;  %v776_v57 = vsel %vm771_vm3, %v773_v9, %v775_v56  ;;  %v819_v52 = vsel %vm771_vm3, %v817_v61, %v818_v63  ;;  %v6049_v56 = vpop.permute.xlu0 %4056 }
  0xf1   : > { %v4210_v36 = vpack.i.bf16 %v776_v57, %v774_v1  ;;  %v6040_v9 = vpack.i.bf16 %v821_v62, %v819_v52  ;;  %v8308_v52 = vld [vmem:[#allocation15_spill] sm:$0xff] }
  0xf2   : > { %v1720_v62 = vpack.c.bf16 %v8308_v52, %v8307_v50 }
  0xf4   : > { %4191 = vrot.lane.b32.xlu2 %v5840_v55, %s5256_s12  ;;  %v5992_v55 = vld [vmem:[#allocation2 + $0x28] sm:$0x3] }
  0xf5   : > { %4171 = vrot.lane.b32.xlu1 %v5776_v0, %s5256_s12  ;;  %4196 = vrot.lane.b32.xlu0 %v4125_v25, %s5256_s12  ;;  %v5986_v0 = vld [vmem:[#allocation2 + $0x198] sm:$0xff]  ;;  %v780_v27 = vrot.slane %v5992_v55, 1 }
  0xf6   : > { %v4205_v25 = vpack.i.bf16 %v5988_v60, %v5986_v0 }
  0xf7   : > { %v6000_v47 = vpop.permute.xlu2 %4066 }
  0xfa   : > { %v6057_v57 = vpop.permute.xlu1 %4051 }
  0xfc   : > { %4206 = vrot.lane.b32.xlu2 %v4205_v25, %s5256_s12  ;;  %v6061_v25 = vpop.permute.xlu0 %4061 }
  0xfd   : > { %4186 = vrot.lane.b32.xlu1 %v5845_v4, %s5256_s12  ;;  %v778_v4 = vrot.slane %v5614_v39, 1  ;;  %4211 = vrot.lane.b32.xlu0 %v4210_v36, %s5255_s11  ;;  %8297 = vst [vmem:[#allocation19_spill] sm:$0xff] %v6061_v25 }
  0xff   : > { %v779_v15 = vsel %vm771_vm3, %v777_v14, %v778_v4  ;;  %v781_v31 = vsel %vm771_vm3, %v778_v4, %v780_v27  ;;  %v1714_v14 = vpack.c.bf16 %v5811_v54, %v5805_v32 }
 0x100   : > { %v4215_v26 = vpack.i.bf16 %v781_v31, %v779_v15  ;;  %3950 = vmatmul.msk.bf16.gmra.mxu1 %vm281_vm0, %v8294_v3  ;;  %v6015_v39 = vpop.permute.xlu2 %4081  ;;  %v1716_v3 = vpack.c.bf16 %v5855_v21, %v5850_v43  ;;  %v1718_v21 = vpack.c.bf16 %v5865_v20, %v5862_v19 }
 0x102   : > { %v6074_v4 = vpop.permute.xlu1 %4076 }
 0x104   : > { %4221 = vrot.lane.b32.xlu2 %v5695_v42, %s5255_s11 }
 0x105   : > { %4201 = vrot.lane.b32.xlu1 %v5900_v58, %s5256_s12  ;;  %4226 = vrot.lane.b32.xlu0 %v5742_v12, %s5255_s11  ;;  %v1198_v58 = vrot.slane %v5438_v23, 2 }
 0x107   : > { %v6027_v51 = vsel %vm1152_vm2, %v1198_v58, %v1199_v6 }
 0x108   : > { %v1712_v24 = vpack.c.bf16 %v6030_v35, %v6027_v51 }
 0x10c   : > { %4236 = vrot.lane.b32.xlu2 %v5703_v45, %s5255_s11 }
 0x10d   : > { %4216 = vrot.lane.b32.xlu1 %v4215_v26, %s5255_s11  ;;  %4241 = vrot.lane.b32.xlu0 %v5750_v18, %s5255_s11 }
 0x10e   : > { %v6078_v15 = vpop.permute.xlu0 %4071 }
 0x10f   : > { %v6034_v23 = vpop.permute.xlu2 %4096 }
 0x110   : > { %8295 = vst [vmem:[#allocation17_spill] sm:$0xff] %v6034_v23  ;;  %3951 = vmatmul.msk.bf16.gmra.mxu1 %vm281_vm0, %v1712_v24 }
 0x114   : > { %4251 = vrot.lane.b32.xlu2 %v5790_v7, %s5255_s11 }
 0x115   : > { %4231 = vrot.lane.b32.xlu1 %v5705_v46, %s5255_s11  ;;  %4256 = vrot.lane.b32.xlu0 %v6040_v9, %s5255_s11 }
 0x117   : > { %v6051_v1 = vpop.permute.xlu2 %4106 }
 0x118   : > { %8296 = vst [vmem:[#allocation18_spill] sm:$0xff] %v6051_v1 }
 0x11c   : > { %4266 = vrot.lane.b32.xlu2 %v5859_v28, %s5255_s11 }
 0x11d   : > { %4246 = vrot.lane.b32.xlu1 %v5807_v33, %s5255_s11  ;;  %4271 = vrot.lane.b32.xlu0 %v5867_v22, %s5255_s11  ;;  %v6139_v20 = vpop.f32.mrf.mxu1 }
 0x11e   : > { %v6085_v32 = vpop.permute.xlu1 %4091  ;;  %8306 = vst [vmem:[#allocation28_spill] sm:$0xff] %v6139_v20 }
 0x11f   : > { %v6089_v31 = vpop.permute.xlu0 %4086 }
 0x120   : > { %3952 = vmatmul.msk.bf16.gmra.mxu1 %vm281_vm0, %v1714_v14 }
 0x124   : > { %4281 = vrot.lane.b32.xlu2 %v5917_v29, %s5255_s11 }
 0x125   : > { %4261 = vrot.lane.b32.xlu1 %v5818_v59, %s5255_s11  ;;  %4286 = vrot.lane.b32.xlu0 %v5919_v30, %s5255_s11  ;;  %v6160_v52 = vpop.f32.mrf.mxu1 }
 0x126   : > { %v6063_v36 = vpop.permute.xlu2 %4121  ;;  %8311 = vst [vmem:[#allocation29_spill] sm:$0xff] %v6160_v52 }
 0x127   : > { %8298 = vst [vmem:[#allocation20_spill] sm:$0xff] %v6063_v36  ;;  %v8331_v36 = vld [vmem:[#allocation9_spill] sm:$0xff] }
 0x12c   : > { %4296 = vrot.lane.b32.xlu2 %v5695_v42, %s5254_s10 }
 0x12d   : > { %4276 = vrot.lane.b32.xlu1 %v5886_v17, %s5255_s11  ;;  %4301 = vrot.lane.b32.xlu0 %v5742_v12, %s5254_s10 }
 0x12e   : > { %v6076_v27 = vpop.permute.xlu2 %4136 }
 0x130   : > { %3953 = vmatmul.msk.bf16.gmra.mxu1 %vm281_vm0, %v1716_v3 }
 0x134   : > { %4311 = vrot.lane.b32.xlu2 %v5703_v45, %s5254_s10 }
 0x135   : > { %4291 = vrot.lane.b32.xlu1 %v4215_v26, %s5254_s10  ;;  %4316 = vrot.lane.b32.xlu0 %v5750_v18, %s5254_s10  ;;  %v6100_v26 = vpop.permute.xlu1 %4101 }
 0x136   : > { %v6087_v54 = vpop.permute.xlu2 %4151  ;;  %8299 = vst [vmem:[#allocation21_spill] sm:$0xff] %v6100_v26 }
 0x137   : > { %v6104_v58 = vpop.permute.xlu0 %4111 }
 0x138   : > { %8300 = vst [vmem:[#allocation22_spill] sm:$0xff] %v6104_v58 }
 0x13c   : > { %4326 = vrot.lane.b32.xlu2 %v5790_v7, %s5254_s10 }
 0x13d   : > { %4306 = vrot.lane.b32.xlu1 %v5705_v46, %s5254_s10  ;;  %4331 = vrot.lane.b32.xlu0 %v6040_v9, %s5254_s10 }
 0x13e   : > { %v6102_v38 = vpop.permute.xlu2 %4166 }
 0x13f   : > { %v6112_v43 = vpop.permute.xlu1 %4116 }
 0x140   : > { %8301 = vst [vmem:[#allocation23_spill] sm:$0xff] %v6112_v43  ;;  %3954 = vmatmul.msk.bf16.gmra.mxu1 %vm281_vm0, %v1718_v21 }
 0x144   : > { %4341 = vrot.lane.b32.xlu2 %v5859_v28, %s5254_s10 }
 0x145   : > { %4321 = vrot.lane.b32.xlu1 %v5807_v33, %s5254_s10  ;;  %4346 = vrot.lane.b32.xlu0 %v5867_v22, %s5254_s10 }
 0x146   : > { %v6116_v6 = vpop.permute.xlu2 %4176 }
 0x147   : > { %8302 = vst [vmem:[#allocation24_spill] sm:$0xff] %v6116_v6  ;;  %v6118_v40 = vpop.permute.xlu0 %4126 }
 0x148   : > { %8303 = vst [vmem:[#allocation25_spill] sm:$0xff] %v6118_v40  ;;  %v4495_v40 = vpack.i.bf16 %v6030_v35, %v6027_v51  ;;  %v8336_v51 = vld [vmem:[#allocation13_spill] sm:$0xff] }
 0x14c   : > { %4356 = vrot.lane.b32.xlu2 %v5917_v29, %s5254_s10 }
 0x14d   : > { %4336 = vrot.lane.b32.xlu1 %v5818_v59, %s5254_s10  ;;  %4361 = vrot.lane.b32.xlu0 %v5919_v30, %s5254_s10 }
 0x14e   : > { %v6133_v19 = vpop.permute.xlu2 %4191 }
 0x14f   : > { %v6127_v61 = vpop.permute.xlu0 %4141  ;;  %v6129_v63 = vpop.permute.xlu1 %4131  ;;  %8305 = vst [vmem:[#allocation27_spill] sm:$0xff] %v6133_v19 }
 0x150   : > { %8304 = vst [vmem:[#allocation26_spill] sm:$0xff] %v6129_v63  ;;  %3955 = vmatmul.msk.bf16.gmra.mxu1 %vm281_vm0, %v1720_v62  ;;  %v1052_v62 = vrot.slane %v5988_v60, 1 }
 0x154   : > { %4371 = vrot.lane.b32.xlu2 %v5695_v42, %s5251_s7  ;;  %v1051_v42 = vrot.slane %v5986_v0, 1  ;;  %v6185_v0 = vpop.f32.mrf.mxu1 }
 0x155   : > { %4351 = vrot.lane.b32.xlu1 %v5886_v17, %s5254_s10  ;;  %4376 = vrot.lane.b32.xlu0 %v5742_v12, %s5251_s7  ;;  %8313 = vst [vmem:[#allocation31_spill] sm:$0xff] %v6185_v0 }
 0x156   : > { %v6152_v3 = vpop.permute.xlu2 %4206  ;;  %v1053_v16 = vsel %vm771_vm3, %v1051_v42, %v1052_v62 }
 0x157   : > { %v6143_v24 = vpop.permute.xlu0 %4156  ;;  %v6145_v14 = vpop.permute.xlu1 %4146  ;;  %8309 = vst [vmem:[#allocation14_spill] sm:$0xff] %v6152_v3  ;;  %v1722_v3 = vpack.c.bf16 %v5922_v5, %v5915_v8 }
 0x15c   : > { %4386 = vrot.lane.b32.xlu2 %v5703_v45, %s5251_s7  ;;  %v1054_v45 = vrot.slane %v526_v48, 1 }
 0x15d   : > { %4366 = vrot.lane.b32.xlu1 %v5935_v41, %s5254_s10  ;;  %4391 = vrot.lane.b32.xlu0 %v5750_v18, %s5251_s7 }
 0x15e   : > { %v6168_v12 = vpop.permute.xlu2 %4221  ;;  %v1055_v18 = vsel %vm771_vm3, %v1052_v62, %v1054_v45 }
 0x15f   : > { %v6156_v21 = vpop.permute.xlu1 %4161  ;;  %v6158_v50 = vpop.permute.xlu0 %4181  ;;  %v4445_v8 = vpack.i.bf16 %v1055_v18, %v1053_v16  ;;  %v6233_v18 = vld [vmem:[#allocation2 + $0x20] sm:$0xff] }
 0x160   : > { %8310 = vst [vmem:[#allocation15_spill] sm:$0xff] %v6158_v50  ;;  %3956 = vmatmul.msk.bf16.gmra.mxu1 %vm281_vm0, %v1722_v3  ;;  %v1153_v3 = vrot.slane %v5974_v34, 2 }
 0x164   : > { %4401 = vrot.lane.b32.xlu2 %v5790_v7, %s5251_s7 }
 0x165   : > { %4381 = vrot.lane.b32.xlu1 %v5705_v46, %s5251_s7  ;;  %4406 = vrot.lane.b32.xlu0 %v6040_v9, %s5251_s7  ;;  %v6203_v9 = vpop.f32.mrf.mxu1 }
 0x166   : > { %v6187_v60 = vpop.permute.xlu2 %4236  ;;  %8315 = vst [vmem:[#allocation33_spill] sm:$0xff] %v6203_v9 }
 0x167   : > { %v6175_v63 = vpop.permute.xlu1 %4171  ;;  %v6183_v46 = vpop.permute.xlu0 %4196 }
 0x168   : > { %8312 = vst [vmem:[#allocation30_spill] sm:$0xff] %v6183_v46 }
 0x16c   : > { %4416 = vrot.lane.b32.xlu2 %v5859_v28, %s5251_s7  ;;  %v1154_v28 = vrot.slane %v5976_v2, 2 }
 0x16d   : > { %4396 = vrot.lane.b32.xlu1 %v5807_v33, %s5251_s7  ;;  %4421 = vrot.lane.b32.xlu0 %v5867_v22, %s5251_s7  ;;  %v1724_v33 = vpack.c.bf16 %v5928_v10, %v5925_v53  ;;  %v1156_v22 = vrot.slane %v5979_v44, 2  ;;  %v6225_v42 = vpop.f32.mrf.mxu1 }
 0x16e   : > { %v6197_v7 = vpop.permute.xlu2 %4251  ;;  %8318 = vst [vmem:[#allocation36_spill] sm:$0xff] %v6225_v42  ;;  %v8335_v42 = vld [vmem:[#allocation12_spill] sm:$0xff] }
 0x16f   : > { %v6191_v5 = vpop.permute.xlu1 %4186  ;;  %v6199_v48 = vpop.permute.xlu0 %4211  ;;  %v1157_v10 = vsel %vm1152_vm2, %v1154_v28, %v1156_v22 }
 0x170   : > { %8314 = vst [vmem:[#allocation32_spill] sm:$0xff] %v6191_v5  ;;  %3957 = vmatmul.msk.bf16.gmra.mxu1 %vm281_vm0, %v1724_v33  ;;  %v1159_v33 = vrot.slane %v6233_v18, 2 }
 0x174   : > { %4431 = vrot.lane.b32.xlu2 %v5917_v29, %s5251_s7  ;;  %v6230_v29 = vld [vmem:[#allocation2 + $0x18] sm:$0xff] }
 0x175   : > { %4411 = vrot.lane.b32.xlu1 %v5818_v59, %s5251_s7  ;;  %4436 = vrot.lane.b32.xlu0 %v5919_v30, %s5251_s7  ;;  %v1155_v59 = vsel %vm1152_vm2, %v1153_v3, %v1154_v28  ;;  %v1158_v30 = vrot.slane %v6230_v29, 2  ;;  %v1161_v3 = vrot.slane %v5992_v55, 2  ;;  %v8321_v55 = vpack.c.bf16 %v5938_v37, %v5933_v13 }
 0x176   : > { %v6223_v62 = vpop.permute.xlu2 %4266  ;;  %v4450_v44 = vpack.i.bf16 %v1157_v10, %v1155_v59 }
 0x177   : > { %v6207_v16 = vpop.permute.xlu1 %4201  ;;  %v6219_v53 = vpop.permute.xlu0 %4226  ;;  %8317 = vst [vmem:[#allocation35_spill] sm:$0xff] %v6223_v62  ;;  %v1160_v28 = vsel %vm1152_vm2, %v1158_v30, %v1159_v33  ;;  %v8337_v62 = vld [vmem:[#allocation11_spill] sm:$0xff] }
 0x178   : > { %8316 = vst [vmem:[#allocation34_spill] sm:$0xff] %v6207_v16  ;;  %v6248_v16 = vpop.f32.mrf.mxu1 }
 0x179   : > { %8320 = vst [vmem:[#allocation38_spill] sm:$0xff] %v6248_v16  ;;  %v8333_v16 = vld [vmem:[#allocation10_spill] sm:$0xff] }
 0x17c   : > { %4446 = vrot.lane.b32.xlu2 %v4445_v8, %s5251_s7  ;;  %v1162_v8 = vsel %vm1152_vm2, %v1159_v33, %v1161_v3 }
 0x17d   : > { %4426 = vrot.lane.b32.xlu1 %v5886_v17, %s5251_s7  ;;  %4451 = vrot.lane.b32.xlu0 %v4450_v44, %s5252_s8  ;;  %v4455_v10 = vpack.i.bf16 %v1162_v8, %v1160_v28  ;;  %v8322_v44 = vld [vmem:[#allocation4_spill] sm:$0xff]  ;;  %v8326_v28 = vld [vmem:[#allocation5_spill] sm:$0xff] }
 0x17e   : > { %v6244_v22 = vpop.permute.xlu2 %4281  ;;  %v8327_v8 = vld [vmem:[#allocation8_spill] sm:$0xff] }
 0x17f   : > { %v6227_v45 = vpop.permute.xlu1 %4216  ;;  %v6238_v17 = vpop.permute.xlu0 %4241  ;;  %8319 = vst [vmem:[#allocation37_spill] sm:$0xff] %v6244_v22  ;;  %v8329_v22 = vld [vmem:[#allocation6_spill] sm:$0xff] }
 0x180   : > { %3958 = vmatmul.msk.bf16.gmra.mxu1 %vm281_vm0, %v8321_v55 }
 0x184   : > { %4461 = vrot.lane.b32.xlu2 %v8322_v44, %s5252_s8 }
 0x185   : > { %4441 = vrot.lane.b32.xlu1 %v5935_v41, %s5251_s7  ;;  %v8323_v41 = vld [vmem:[#allocation7_spill] sm:$0xff] }
 0x186   : > { %4466 = vrot.lane.b32.xlu0 %v8323_v41, %s5252_s8  ;;  %v6263_v3 = vpop.permute.xlu2 %4296 }
 0x187   : > { %v6246_v59 = vpop.permute.xlu1 %4231  ;;  %v6258_v30 = vpop.permute.xlu0 %4256 }
 0x188   : > { %8324 = vst [vmem:[#allocation4_spill] sm:$0xff] %v6258_v30 }
 0x18c   : > { %4476 = vrot.lane.b32.xlu2 %v8326_v28, %s5252_s8 }
 0x18d   : > { %4456 = vrot.lane.b32.xlu1 %v4455_v10, %s5252_s8 }
 0x18e   : > { %4481 = vrot.lane.b32.xlu0 %v8327_v8, %s5252_s8  ;;  %v6280_v19 = vpop.permute.xlu2 %4311 }
 0x18f   : > { %v6261_v33 = vpop.permute.xlu1 %4246  ;;  %v6269_v55 = vpop.permute.xlu0 %4271 }
 0x190   : > { %8325 = vst [vmem:[#allocation7_spill] sm:$0xff] %v6261_v33 }
 0x191   : > { %8328 = vst [vmem:[#allocation5_spill] sm:$0xff] %v6269_v55 }
 0x194   : > { %4491 = vrot.lane.b32.xlu2 %v8331_v36, %s5252_s8 }
 0x195   : > { %4471 = vrot.lane.b32.xlu1 %v8329_v22, %s5252_s8 }
 0x196   : > { %4496 = vrot.lane.b32.xlu0 %v4495_v40, %s5252_s8  ;;  %v6296_v5 = vpop.permute.xlu2 %4326 }
 0x197   : > { %v6275_v46 = vpop.permute.xlu1 %4261  ;;  %v6282_v43 = vpop.permute.xlu0 %4286  ;;  %8338 = vst [vmem:[#allocation10_spill] sm:$0xff] %v6296_v5  ;;  %v4138_v5 = vunpack.i.l.bf16 %v6076_v27 }
 0x198   : > { %8330 = vst [vmem:[#allocation8_spill] sm:$0xff] %v6275_v46 }
 0x199   : > { %8332 = vst [vmem:[#allocation6_spill] sm:$0xff] %v6282_v43 }
 0x19c   : > { %4506 = vrot.lane.b32.xlu2 %v8335_v42, %s5252_s8 }
 0x19d   : > { %4486 = vrot.lane.b32.xlu1 %v8333_v16, %s5252_s8 }
 0x19e   : > { %4511 = vrot.lane.b32.xlu0 %v8336_v51, %s5252_s8  ;;  %v6308_v9 = vpop.permute.xlu2 %4341 }
 0x19f   : > { %v6286_v55 = vpop.permute.xlu1 %4276  ;;  %v6292_v35 = vpop.permute.xlu0 %4301  ;;  %8340 = vst [vmem:[#allocation12_spill] sm:$0xff] %v6308_v9 }
 0x1a0   : > { %8334 = vst [vmem:[#allocation9_spill] sm:$0xff] %v6286_v55  ;;  %v8339_v55 = vld [vmem:[#allocation16_spill] sm:$0xff] }
 0x1a4   : > { %4521 = vrot.lane.b32.xlu2 %v5942_v49, %s5252_s8 }
 0x1a5   : > { %4501 = vrot.lane.b32.xlu1 %v8337_v62, %s5252_s8 }
 0x1a6   : > { %4526 = vrot.lane.b32.xlu0 %v5948_v11, %s5252_s8  ;;  %v6321_v1 = vpop.permute.xlu2 %4356 }
 0x1a7   : > { %v6298_v58 = vpop.permute.xlu1 %4291  ;;  %v6304_v43 = vpop.permute.xlu0 %4316  ;;  %8341 = vst [vmem:[#allocation13_spill] sm:$0xff] %v6321_v1 }
 0x1a8   : > { %v4294_v25 = vunpack.i.h.bf16 %v6298_v58 }
 0x1ac   : > { %4536 = vrot.lane.b32.xlu2 %v8322_v44, %s5253_s9 }
 0x1ad   : > { %4516 = vrot.lane.b32.xlu1 %v8339_v55, %s5252_s8 }
 0x1ae   : > { %4541 = vrot.lane.b32.xlu0 %v8323_v41, %s5253_s9 }
 0x1af   : > { %v6310_v0 = vpop.permute.xlu1 %4306  ;;  %v6316_v46 = vpop.permute.xlu0 %4331 }
 0x1b4   : > { %4551 = vrot.lane.b32.xlu2 %v8326_v28, %s5253_s9 }
 0x1b5   : > { %4531 = vrot.lane.b32.xlu1 %v4455_v10, %s5253_s9  ;;  %v6336_v10 = vpop.permute.xlu2 %4371 }
 0x1b6   : > { %4556 = vrot.lane.b32.xlu0 %v8327_v8, %s5253_s9  ;;  %v4374_v23 = vunpack.i.h.bf16 %v6336_v10 }
 0x1b7   : > { %v6319_v50 = vpop.permute.xlu1 %4321  ;;  %v6327_v9 = vpop.permute.xlu0 %4346 }
 0x1b8   : > { %8342 = vst [vmem:[#allocation11_spill] sm:$0xff] %v6327_v9 }
 0x1bc   : > { %4566 = vrot.lane.b32.xlu2 %v8331_v36, %s5253_s9 }
 0x1bd   : > { %4546 = vrot.lane.b32.xlu1 %v8329_v22, %s5253_s9  ;;  %v6352_v36 = vpop.permute.xlu2 %4386 }
 0x1be   : > { %4571 = vrot.lane.b32.xlu0 %v4495_v40, %s5253_s9 }
 0x1bf   : > { %v6331_v44 = vpop.permute.xlu1 %4336  ;;  %v6338_v41 = vpop.permute.xlu0 %4361 }
 0x1c0   : > { %8343 = vst [vmem:[#allocation16_spill] sm:$0xff] %v6331_v44 }
 0x1c1   : > { %8344 = vst [vmem:[#allocation39_spill] sm:$0xff] %v6338_v41 }
 0x1c4   : > { %4581 = vrot.lane.b32.xlu2 %v8335_v42, %s5253_s9 }
 0x1c5   : > { %4561 = vrot.lane.b32.xlu1 %v8333_v16, %s5253_s9  ;;  %v6364_v42 = vpop.permute.xlu2 %4401 }
 0x1c6   : > { %4586 = vrot.lane.b32.xlu0 %v8336_v51, %s5253_s9  ;;  %8347 = vst [vmem:[#allocation42_spill] sm:$0xff] %v6364_v42  ;;  %v8349_v51 = vpack.i.bf16 %v5938_v37, %v5933_v13 }
 0x1c7   : > { %v6342_v28 = vpop.permute.xlu1 %4351  ;;  %v6348_v22 = vpop.permute.xlu0 %4376 }
 0x1c8   : > { %8345 = vst [vmem:[#allocation40_spill] sm:$0xff] %v6342_v28  ;;  %v4023_v28 = vld [vmem:[%s8215_s3 + $0x38] sm:$0xff] }
 0x1c9   : > { %1853 = vmatpush.bf16.msra.mxu0 %v4023_v28  ;;  %v4020_v28 = vld [vmem:[%s8215_s3 + $0x20] sm:$0xff] }
 0x1cc   : > { %4596 = vrot.lane.b32.xlu2 %v5942_v49, %s5253_s9 }
 0x1cd   : > { %4576 = vrot.lane.b32.xlu1 %v8337_v62, %s5253_s9 }
 0x1ce   : > { %4601 = vrot.lane.b32.xlu0 %v5948_v11, %s5253_s9 }
 0x1cf   : > { %v6354_v40 = vpop.permute.xlu1 %4366  ;;  %v6360_v16 = vpop.permute.xlu0 %4391 }
 0x1d0   : > { %8346 = vst [vmem:[#allocation41_spill] sm:$0xff] %v6354_v40  ;;  %v6376_v40 = vpop.permute.xlu2 %4416 }
 0x1d1   : > { %8350 = vst [vmem:[#allocation44_spill] sm:$0xff] %v6376_v40  ;;  %v4017_v40 = vld [vmem:[%s8215_s3 + $0x8] sm:$0xff] }
 0x1d5   : > { %4591 = vrot.lane.b32.xlu1 %v8339_v55, %s5253_s9 }
 0x1d7   : > { %v6366_v8 = vpop.permute.xlu1 %4381  ;;  %v6368_v62 = vpop.permute.xlu0 %4406 }
 0x1d8   : > { %8348 = vst [vmem:[#allocation43_spill] sm:$0xff] %v6368_v62  ;;  %v6382_v55 = vpop.permute.xlu2 %4431 }
 0x1d9   : > { %8352 = vst [vmem:[#allocation46_spill] sm:$0xff] %v6382_v55 }
 0x1dd   : > { %4606 = vrot.lane.b32.xlu1 %v8349_v51, %s5253_s9  ;;  %v4022_v51 = vld [vmem:[%s8215_s3 + $0x30] sm:$0xff] }
 0x1de   : > { %1854 = vmatpush.bf16.msra.mxu0 %v4022_v51  ;;  %v4019_v51 = vld [vmem:[%s8215_s3 + $0x18] sm:$0xff] }
 0x1df   : > { %v6374_v49 = vpop.permute.xlu1 %4396  ;;  %v6378_v11 = vpop.permute.xlu0 %4421 }
 0x1e0   : > { %8351 = vst [vmem:[#allocation45_spill] sm:$0xff] %v6378_v11  ;;  %v6393_v37 = vpop.permute.xlu2 %4446 }
 0x1e1   : > { %8355 = vst [vmem:[#allocation49_spill] sm:$0xff] %v6393_v37 }
 0x1e7   : > { %v6380_v41 = vpop.permute.xlu1 %4411  ;;  %v6384_v1 = vpop.permute.xlu0 %4436 }
 0x1e8   : > { %8353 = vst [vmem:[#allocation47_spill] sm:$0xff] %v6384_v1  ;;  %v4021_v1 = vld [vmem:[%s8215_s3 + $0x28] sm:$0xff] }
 0x1e9   : > { %1855 = vmatpush.bf16.msra.mxu0 %v4021_v1  ;;  %v4018_v1 = vld [vmem:[%s8215_s3 + $0x10] sm:$0xff] }
 0x1ed   : > { %1856 = vmatpush.bf16.msra.mxu0 %v4020_v28 }
 0x1ef   : > { %v6389_v9 = vpop.permute.xlu1 %4426  ;;  %v6391_v13 = vpop.permute.xlu0 %4451 }
 0x1f0   : > { %8354 = vst [vmem:[#allocation48_spill] sm:$0xff] %v6389_v9  ;;  %v6408_v9 = vpop.permute.xlu2 %4461 }
 0x1f1   : > { %1857 = vmatpush.bf16.msra.mxu0 %v4019_v51  ;;  %v4016_v51 = vld [vmem:[%s8215_s3] sm:$0xff] }
 0x1f5   : > { %1858 = vmatpush.bf16.msra.mxu0 %v4018_v1 }
 0x1f7   : > { %v6398_v11 = vpop.permute.xlu1 %4441 }
 0x1f8   : > { %8356 = vst [vmem:[#allocation50_spill] sm:$0xff] %v6398_v11  ;;  %v6403_v55 = vpop.permute.xlu0 %4466  ;;  %v6425_v44 = vpop.permute.xlu2 %4476 }
 0x1f9   : > { %1859 = vmatpush.bf16.msra.mxu0 %v4017_v40  ;;  %v4053_v40 = vunpack.i.l.bf16 %v6057_v57 }
 0x1fd   : > { %1860 = vmatpush.bf16.msra.mxu0 %v4016_v51  ;;  %v4139_v51 = vunpack.i.h.bf16 %v6076_v27 }
 0x1ff   : > { %v6410_v37 = vpop.permute.xlu1 %4456 }
 0x200   : > { %v6415_v11 = vpop.permute.xlu0 %4481  ;;  %v6434_v6 = vpop.permute.xlu2 %4491 }
 0x201   : > { %8357 = vst [vmem:[#allocation51_spill] sm:$0xff] %v6415_v11 }
 0x207   : > { %v6420_v52 = vpop.permute.xlu1 %4471 }
 0x208   : > { %v6427_v28 = vpop.permute.xlu0 %4496  ;;  %v6442_v62 = vpop.permute.xlu2 %4506 }
 0x209   : > { %8358 = vst [vmem:[#allocation52_spill] sm:$0xff] %v6427_v28  ;;  %v4054_v28 = vunpack.i.h.bf16 %v6057_v57 }
 0x20a   : > { %8363 = vst [vmem:[#allocation57_spill] sm:$0xff] %v6442_v62  ;;  %v4293_v62 = vunpack.i.l.bf16 %v6298_v58 }
 0x20f   : > { %v6432_v30 = vpop.permute.xlu1 %4486 }
 0x210   : > { %8359 = vst [vmem:[#allocation53_spill] sm:$0xff] %v6432_v30  ;;  %v6436_v20 = vpop.permute.xlu0 %4511  ;;  %v4213_v30 = vunpack.i.l.bf16 %v6199_v48 }
 0x211   : > { %8360 = vst [vmem:[#allocation54_spill] sm:$0xff] %v6436_v20  ;;  %v1467_v20 = vsel %vm281_vm0, %v5974_v34, %v4053_v40  ;;  %v4454_v40 = vunpack.i.h.bf16 %v6391_v13 }
 0x212   : > { %v1500_v57 = vsel %vm1499_vm4, %v1467_v20, %v4138_v5  ;;  %v4059_v20 = vunpack.i.h.bf16 %v6049_v56 }
 0x217   : > { %v6438_v1 = vpop.permute.xlu1 %4501 }
 0x218   : > { %8361 = vst [vmem:[#allocation55_spill] sm:$0xff] %v6438_v1  ;;  %v6440_v26 = vpop.permute.xlu0 %4526  ;;  %v1468_v1 = vsel %vm281_vm0, %v5976_v2, %v4054_v28  ;;  %v4453_v2 = vunpack.i.l.bf16 %v6391_v13  ;;  %v4058_v28 = vunpack.i.l.bf16 %v6049_v56 }
 0x219   : > { %8362 = vst [vmem:[#allocation56_spill] sm:$0xff] %v6440_v26  ;;  %v4214_v26 = vunpack.i.h.bf16 %v6199_v48  ;;  %v1501_v27 = vsel %vm1499_vm4, %v1468_v1, %v4139_v51  ;;  %v1533_v48 = vsel %vm1532_vm5, %v1500_v57, %v4213_v30  ;;  %v6473_v51 = vpop.permute.xlu2 %4521 }
 0x21a   : > { %v1566_v5 = vsel %vm1565_vm7, %v1533_v48, %v4293_v62 }
 0x21b   : > { %v1534_v58 = vsel %vm1532_vm5, %v1501_v27, %v4214_v26  ;;  %v4068_v26 = vunpack.i.l.bf16 %v6000_v47  ;;  %v4144_v27 = vunpack.i.h.bf16 %v6127_v61 }
 0x21c   : > { %v1567_v1 = vsel %vm1565_vm7, %v1534_v58, %v4294_v25  ;;  %v4143_v25 = vunpack.i.l.bf16 %v6127_v61  ;;  %v4174_v58 = vunpack.i.h.bf16 %v6175_v63 }
 0x21d   : > { %v1600_v13 = vsel %vm1598_vm6, %v1567_v1, %v4374_v23  ;;  %v4173_v23 = vunpack.i.l.bf16 %v6175_v63 }
 0x21e   : > { %v1633_v56 = vsel %vm1631_vm8, %v1600_v13, %v4454_v40  ;;  %v1469_v40 = vsel %vm281_vm0, %v6230_v29, %v4068_v26 }
 0x21f   : > { %v6447_v33 = vpop.permute.xlu1 %4516 }
 0x220   : > { %8364 = vst [vmem:[#allocation58_spill] sm:$0xff] %v6447_v33  ;;  %v4373_v33 = vunpack.i.l.bf16 %v6336_v10  ;;  %v6462_v34 = vpop.permute.xlu0 %4541  ;;  %v4069_v10 = vunpack.i.h.bf16 %v6000_v47  ;;  %v4254_v47 = vunpack.i.h.bf16 %v6197_v7 }
 0x222   : > { %v1599_v57 = vsel %vm1598_vm6, %v1566_v5, %v4373_v33  ;;  %v1470_v61 = vsel %vm281_vm0, %v6233_v18, %v4069_v10  ;;  %v4299_v18 = vunpack.i.h.bf16 %v6263_v3  ;;  %v4298_v10 = vunpack.i.l.bf16 %v6263_v3 }
 0x223   : > { %v1632_v62 = vsel %vm1631_vm8, %v1599_v57, %v4453_v2  ;;  %v4253_v2 = vunpack.i.l.bf16 %v6197_v7  ;;  %v5174_v57 = vld [vmem:[#allocation2 + $0xc0] sm:$0xff]  ;;  %v1502_v7 = vsel %vm1499_vm4, %v1469_v40, %v4143_v25  ;;  %v4378_v3 = vunpack.i.l.bf16 %v6348_v22 }
 0x224   : > { %v1483_v13 = vsel %vm281_vm0, %v5174_v57, %v4058_v28  ;;  %v4333_v28 = vunpack.i.l.bf16 %v6316_v46  ;;  %v4459_v40 = vunpack.i.h.bf16 %v6410_v37 }
 0x225   : > { %v1516_v26 = vsel %vm1499_vm4, %v1483_v13, %v4173_v23  ;;  %v4379_v23 = vunpack.i.h.bf16 %v6348_v22 }
 0x227   : > { %v4532_v30 = vpop.permute.xlu1 %4531 }
 0x228   : > { %v4534_v11 = vunpack.i.h.bf16 %v4532_v30  ;;  %v4533_v42 = vunpack.i.l.bf16 %v4532_v30  ;;  %v6488_v1 = vpop.permute.xlu0 %4556  ;;  %v5173_v30 = vld [vmem:[#allocation2 + $0xc8] sm:$0xff] }
 0x229   : > { %v1484_v63 = vsel %vm281_vm0, %v5173_v30, %v4059_v20  ;;  %v4334_v20 = vunpack.i.h.bf16 %v6316_v46 }
 0x22a   : > { %v1665_v48 = vsel %vm1664_vm9, %v1632_v62, %v4533_v42  ;;  %v1666_v33 = vsel %vm1664_vm9, %v1633_v56, %v4534_v11  ;;  %v4219_v42 = vunpack.i.h.bf16 %v6227_v45  ;;  %v4218_v11 = vunpack.i.l.bf16 %v6227_v45 }
 0x22b   : > { %v1697_v5 = vpack.c.bf16 %v1666_v33, %v1665_v48  ;;  %v1503_v62 = vsel %vm1499_vm4, %v1470_v61, %v4144_v27  ;;  %v1517_v29 = vsel %vm1499_vm4, %v1484_v63, %v4174_v58  ;;  %v1549_v45 = vsel %vm1532_vm5, %v1516_v26, %v4253_v2  ;;  %v4537_v58 = vpop.permute.xlu2 %4536 }
 0x22c   : > { %v1550_v56 = vsel %vm1532_vm5, %v1517_v29, %v4254_v47  ;;  %v1536_v25 = vsel %vm1532_vm5, %v1503_v62, %v4219_v42  ;;  %v1535_v27 = vsel %vm1532_vm5, %v1502_v7, %v4218_v11  ;;  %v4414_v48 = vunpack.i.h.bf16 %v6380_v41 }
 0x22d   : > { %1861 = vmatmul.bf16.vlgmr.msra.gmra.mxu0 %v1697_v5  ;;  %v4413_v33 = vunpack.i.l.bf16 %v6380_v41  ;;  %v4494_v5 = vunpack.i.h.bf16 %v6434_v6  ;;  %v4493_v47 = vunpack.i.l.bf16 %v6434_v6  ;;  %v1568_v2 = vsel %vm1565_vm7, %v1535_v27, %v4298_v10 }
 0x22e   : > { %v1569_v46 = vsel %vm1565_vm7, %v1536_v25, %v4299_v18  ;;  %v4458_v61 = vunpack.i.l.bf16 %v6410_v37  ;;  %v1582_v42 = vsel %vm1565_vm7, %v1549_v45, %v4333_v28  ;;  %v1583_v41 = vsel %vm1565_vm7, %v1550_v56, %v4334_v20 }
 0x22f   : > { %v4539_v11 = vunpack.i.h.bf16 %v4537_v58  ;;  %v4538_v30 = vunpack.i.l.bf16 %v4537_v58  ;;  %v1615_v13 = vsel %vm1598_vm6, %v1582_v42, %v4413_v33  ;;  %v1616_v6 = vsel %vm1598_vm6, %v1583_v41, %v4414_v48 }
 0x230   : > { %v4572_v63 = vpop.permute.xlu0 %4571  ;;  %v1601_v7 = vsel %vm1598_vm6, %v1568_v2, %v4378_v3  ;;  %v1602_v62 = vsel %vm1598_vm6, %v1569_v46, %v4379_v23  ;;  %v1648_v29 = vsel %vm1631_vm8, %v1615_v13, %v4493_v47  ;;  %v1649_v37 = vsel %vm1631_vm8, %v1616_v6, %v4494_v5  ;;  %v5175_v2 = vld [vmem:[#allocation2 + $0x38] sm:$0xff] }
 0x231   : > { %v4574_v22 = vunpack.i.h.bf16 %v4572_v63  ;;  %v4573_v57 = vunpack.i.l.bf16 %v4572_v63  ;;  %v1634_v26 = vsel %vm1631_vm8, %v1601_v7, %v4458_v61  ;;  %v1635_v18 = vsel %vm1631_vm8, %v1602_v62, %v4459_v40  ;;  %v5176_v40 = vld [vmem:[#allocation2 + $0x30] sm:$0xff] }
 0x232   : > { %v1667_v56 = vsel %vm1664_vm9, %v1634_v26, %v4538_v30  ;;  %v1668_v20 = vsel %vm1664_vm9, %v1635_v18, %v4539_v11  ;;  %v4074_v27 = vunpack.i.h.bf16 %v6078_v15  ;;  %v4073_v48 = vunpack.i.l.bf16 %v6078_v15 }
 0x233   : > { %v6531_v10 = vsel %vm1664_vm9, %v1648_v29, %v4573_v57  ;;  %v6534_v45 = vsel %vm1664_vm9, %v1649_v37, %v4574_v22  ;;  %v1699_v25 = vpack.c.bf16 %v1668_v20, %v1667_v56  ;;  %v4149_v33 = vunpack.i.h.bf16 %v6145_v14 }
 0x234   : > { %v1713_v28 = vpack.c.bf16 %v6534_v45, %v6531_v10  ;;  %v4148_v58 = vunpack.i.l.bf16 %v6145_v14  ;;  %v4224_v23 = vunpack.i.h.bf16 %v6168_v12  ;;  %v4223_v3 = vunpack.i.l.bf16 %v6168_v12 }
 0x235   : > { %v4304_v5 = vunpack.i.h.bf16 %v6292_v35  ;;  %v4303_v47 = vunpack.i.l.bf16 %v6292_v35  ;;  %v1472_v46 = vsel %vm281_vm0, %v5175_v2, %v4074_v27  ;;  %v1471_v61 = vsel %vm281_vm0, %v5176_v40, %v4073_v48 }
 0x236   : > { %v4384_v15 = vunpack.i.h.bf16 %v6366_v8  ;;  %v4383_v42 = vunpack.i.l.bf16 %v6366_v8  ;;  %v1505_v14 = vsel %vm1499_vm4, %v1472_v46, %v4149_v33  ;;  %v1504_v41 = vsel %vm1499_vm4, %v1471_v61, %v4148_v58  ;;  %v4547_v33 = vpop.permute.xlu1 %4546  ;;  %v5177_v58 = vld [vmem:[#allocation2 + $0x50] sm:$0xff] }
 0x237   : > { %v4464_v12 = vunpack.i.h.bf16 %v6408_v9  ;;  %v4463_v11 = vunpack.i.l.bf16 %v6408_v9  ;;  %v1537_v35 = vsel %vm1532_vm5, %v1504_v41, %v4223_v3  ;;  %v1538_v30 = vsel %vm1532_vm5, %v1505_v14, %v4224_v23  ;;  %v5178_v3 = vld [vmem:[#allocation2 + $0x48] sm:$0xff] }
 0x238   : > { %v4544_v63 = vunpack.i.h.bf16 %v6462_v34  ;;  %v4543_v22 = vunpack.i.l.bf16 %v6462_v34  ;;  %v1570_v57 = vsel %vm1565_vm7, %v1537_v35, %v4303_v47  ;;  %v1571_v8 = vsel %vm1565_vm7, %v1538_v30, %v4304_v5 }
 0x239   : > { %v1603_v13 = vsel %vm1598_vm6, %v1570_v57, %v4383_v42  ;;  %v1604_v6 = vsel %vm1598_vm6, %v1571_v8, %v4384_v15  ;;  %v4079_v34 = vunpack.i.h.bf16 %v6074_v4  ;;  %v4078_v26 = vunpack.i.l.bf16 %v6074_v4 }
 0x23a   : > { %v1636_v7 = vsel %vm1631_vm8, %v1603_v13, %v4463_v11  ;;  %v1637_v9 = vsel %vm1631_vm8, %v1604_v6, %v4464_v12  ;;  %v4154_v18 = vunpack.i.h.bf16 %v6087_v54  ;;  %v4153_v56 = vunpack.i.l.bf16 %v6087_v54 }
 0x23b   : > { %v1669_v62 = vsel %vm1664_vm9, %v1636_v7, %v4543_v22  ;;  %v1670_v29 = vsel %vm1664_vm9, %v1637_v9, %v4544_v63  ;;  %v4229_v20 = vunpack.i.h.bf16 %v6219_v53  ;;  %v4309_v27 = vunpack.i.h.bf16 %v6310_v0 }
 0x23c   : > { %v1701_v37 = vpack.c.bf16 %v1670_v29, %v1669_v62  ;;  %v4308_v48 = vunpack.i.l.bf16 %v6310_v0  ;;  %v1474_v23 = vsel %vm281_vm0, %v5177_v58, %v4079_v34  ;;  %v1473_v5 = vsel %vm281_vm0, %v5178_v3, %v4078_v26  ;;  %v4552_v62 = vpop.permute.xlu2 %4551  ;;  %v5179_v29 = vld [vmem:[#allocation2 + $0x68] sm:$0xff]  ;;  %v5180_v34 = vld [vmem:[#allocation2 + $0x60] sm:$0xff] }
 0x23d   : > { %1866 = vmatmul.bf16.gmra.mxu0 %v1699_v25  ;;  %v4228_v25 = vunpack.i.l.bf16 %v6219_v53  ;;  %v4389_v4 = vunpack.i.h.bf16 %v6352_v36  ;;  %v4388_v47 = vunpack.i.l.bf16 %v6352_v36  ;;  %v1506_v54 = vsel %vm1499_vm4, %v1473_v5, %v4153_v56 }
 0x23e   : > { %v1507_v2 = vsel %vm1499_vm4, %v1474_v23, %v4154_v18  ;;  %v4469_v53 = vunpack.i.h.bf16 %v6403_v55  ;;  %v4468_v46 = vunpack.i.l.bf16 %v6403_v55  ;;  %v4549_v61 = vunpack.i.h.bf16 %v4547_v33 }
 0x23f   : > { %v1539_v0 = vsel %vm1532_vm5, %v1506_v54, %v4228_v25  ;;  %v1540_v40 = vsel %vm1532_vm5, %v1507_v2, %v4229_v20  ;;  %v4548_v15 = vunpack.i.l.bf16 %v4547_v33  ;;  %v4084_v63 = vunpack.i.h.bf16 %v6015_v39 }
 0x240   : > { %v1573_v42 = vsel %vm1565_vm7, %v1540_v40, %v4309_v27  ;;  %v1572_v14 = vsel %vm1565_vm7, %v1539_v0, %v4308_v48  ;;  %v4083_v22 = vunpack.i.l.bf16 %v6015_v39  ;;  %v4159_v57 = vunpack.i.h.bf16 %v6143_v24 }
 0x241   : > { %v1605_v36 = vsel %vm1598_vm6, %v1572_v14, %v4388_v47  ;;  %v1606_v41 = vsel %vm1598_vm6, %v1573_v42, %v4389_v4  ;;  %v4158_v8 = vunpack.i.l.bf16 %v6143_v24  ;;  %v4234_v13 = vunpack.i.h.bf16 %v6246_v59  ;;  %v5181_v42 = vld [vmem:[#allocation2 + $0x80] sm:$0xff] }
 0x242   : > { %v1638_v12 = vsel %vm1631_vm8, %v1605_v36, %v4468_v46  ;;  %v1639_v11 = vsel %vm1631_vm8, %v1606_v41, %v4469_v53  ;;  %v4233_v6 = vunpack.i.l.bf16 %v6246_v59  ;;  %v4314_v7 = vunpack.i.h.bf16 %v6280_v19  ;;  %v5182_v36 = vld [vmem:[#allocation2 + $0x78] sm:$0xff] }
 0x243   : > { %v1671_v55 = vsel %vm1664_vm9, %v1638_v12, %v4548_v15  ;;  %v1672_v35 = vsel %vm1664_vm9, %v1639_v11, %v4549_v61  ;;  %v4313_v9 = vunpack.i.l.bf16 %v6280_v19  ;;  %v1475_v26 = vsel %vm281_vm0, %v5180_v34, %v4083_v22 }
 0x244   : > { %v1703_v30 = vpack.c.bf16 %v1672_v35, %v1671_v55  ;;  %v4394_v39 = vunpack.i.h.bf16 %v6360_v16  ;;  %v4393_v18 = vunpack.i.l.bf16 %v6360_v16  ;;  %v1508_v56 = vsel %vm1499_vm4, %v1475_v26, %v4158_v8 }
 0x245   : > { %v4474_v59 = vunpack.i.h.bf16 %v6420_v52  ;;  %v4473_v20 = vunpack.i.l.bf16 %v6420_v52  ;;  %v1541_v25 = vsel %vm1532_vm5, %v1508_v56, %v4233_v6  ;;  %v4554_v27 = vunpack.i.h.bf16 %v4552_v62  ;;  %v5183_v56 = vld [vmem:[#allocation2 + $0x98] sm:$0xff] }
 0x246   : > { %v4553_v48 = vunpack.i.l.bf16 %v4552_v62  ;;  %v1574_v33 = vsel %vm1565_vm7, %v1541_v25, %v4313_v9  ;;  %v4089_v54 = vunpack.i.h.bf16 %v6089_v31  ;;  %v4088_v2 = vunpack.i.l.bf16 %v6089_v31 }
 0x247   : > { %v1607_v16 = vsel %vm1598_vm6, %v1574_v33, %v4393_v18  ;;  %v4164_v53 = vunpack.i.h.bf16 %v6156_v21  ;;  %v4163_v46 = vunpack.i.l.bf16 %v6156_v21  ;;  %v4239_v0 = vunpack.i.h.bf16 %v6187_v60 }
 0x248   : > { %v1640_v3 = vsel %vm1631_vm8, %v1607_v16, %v4473_v20  ;;  %v4238_v40 = vunpack.i.l.bf16 %v6187_v60  ;;  %v4319_v61 = vunpack.i.h.bf16 %v6304_v43  ;;  %v4318_v15 = vunpack.i.l.bf16 %v6304_v43  ;;  %v5184_v20 = vld [vmem:[#allocation2 + $0x90] sm:$0xff] }
 0x249   : > { %v1673_v52 = vsel %vm1664_vm9, %v1640_v3, %v4553_v48  ;;  %v1478_v14 = vsel %vm281_vm0, %v5181_v42, %v4089_v54  ;;  %v1477_v41 = vsel %vm281_vm0, %v5182_v36, %v4088_v2  ;;  %v4399_v31 = vunpack.i.h.bf16 %v6374_v49  ;;  %v8368_v42 = vld [vmem:[#allocation19_spill] sm:$0xff] }
 0x24a   : > { %v4398_v12 = vunpack.i.l.bf16 %v6374_v49  ;;  %v1511_v21 = vsel %vm1499_vm4, %v1478_v14, %v4164_v53  ;;  %v1510_v11 = vsel %vm1499_vm4, %v1477_v41, %v4163_v46  ;;  %v4479_v60 = vunpack.i.h.bf16 %v6425_v44  ;;  %v5185_v41 = vld [vmem:[#allocation2 + $0xb0] sm:$0xff] }
 0x24b   : > { %v4478_v55 = vunpack.i.l.bf16 %v6425_v44  ;;  %v1543_v43 = vsel %vm1532_vm5, %v1510_v11, %v4238_v40  ;;  %v1544_v35 = vsel %vm1532_vm5, %v1511_v21, %v4239_v0  ;;  %v4093_v62 = vunpack.i.l.bf16 %v6085_v32  ;;  %v8367_v40 = vld [vmem:[#allocation17_spill] sm:$0xff]  ;;  %v8369_v11 = vld [vmem:[#allocation7_spill] sm:$0xff] }
 0x24c   : > { %v1576_v22 = vsel %vm1565_vm7, %v1543_v43, %v4318_v15  ;;  %v1577_v49 = vsel %vm1565_vm7, %v1544_v35, %v4319_v61  ;;  %v4244_v34 = vunpack.i.h.bf16 %v6238_v17  ;;  %v4243_v26 = vunpack.i.l.bf16 %v6238_v17  ;;  %v8366_v17 = vld [vmem:[#allocation51_spill] sm:$0xff]  ;;  %v8370_v43 = vld [vmem:[#allocation10_spill] sm:$0xff] }
 0x24d   : > { %1871 = vmatmul.bf16.gmra.mxu0 %v1701_v37  ;;  %v1476_v37 = vsel %vm281_vm0, %v5179_v29, %v4084_v63  ;;  %v4558_v63 = vunpack.i.l.bf16 %v6488_v1  ;;  %v1610_v8 = vsel %vm1598_vm6, %v1577_v49, %v4399_v31  ;;  %v4169_v29 = vunpack.i.h.bf16 %v6102_v38 }
 0x24e   : > { %v1509_v24 = vsel %vm1499_vm4, %v1476_v37, %v4159_v57  ;;  %v1609_v57 = vsel %vm1598_vm6, %v1576_v22, %v4398_v12  ;;  %v1643_v44 = vsel %vm1631_vm8, %v1610_v8, %v4479_v60  ;;  %v4168_v37 = vunpack.i.l.bf16 %v6102_v38  ;;  %v5186_v12 = vld [vmem:[#allocation2 + $0xa8] sm:$0xff]  ;;  %v8371_v22 = vld [vmem:[#allocation43_spill] sm:$0xff] }
 0x24f   : > { %v1542_v19 = vsel %vm1532_vm5, %v1509_v24, %v4234_v13  ;;  %v1642_v13 = vsel %vm1631_vm8, %v1609_v57, %v4478_v55  ;;  %v4323_v18 = vunpack.i.l.bf16 %v6319_v50  ;;  %v4562_v24 = vpop.permute.xlu1 %4561  ;;  %v4484_v33 = vunpack.i.h.bf16 %v8366_v17 }
 0x250   : > { %v1575_v58 = vsel %vm1565_vm7, %v1542_v19, %v4314_v7  ;;  %v1675_v6 = vsel %vm1664_vm9, %v1642_v13, %v4558_v63  ;;  %v1479_v19 = vsel %vm281_vm0, %v5184_v20, %v4093_v62  ;;  %v4563_v3 = vunpack.i.l.bf16 %v4562_v24  ;;  %v4567_v63 = vpop.permute.xlu2 %4566 }
 0x251   : > { %v1608_v23 = vsel %vm1598_vm6, %v1575_v58, %v4394_v39  ;;  %v4324_v39 = vunpack.i.h.bf16 %v6319_v50  ;;  %v1512_v38 = vsel %vm1499_vm4, %v1479_v19, %v4168_v37  ;;  %v4483_v58 = vunpack.i.l.bf16 %v8366_v17  ;;  %v6703_v19 = vld [vmem:[%s8216_s4] ss:$0 sm:$0xff] }
 0x252   : > { %v1641_v5 = vsel %vm1631_vm8, %v1608_v23, %v4474_v59  ;;  %v1545_v50 = vsel %vm1532_vm5, %v1512_v38, %v4243_v26  ;;  %v4564_v23 = vunpack.i.h.bf16 %v4562_v24  ;;  %v4099_v61 = vunpack.i.h.bf16 %v8367_v40  ;;  %v8373_v38 = vld [vmem:[#allocation21_spill] sm:$0xff] }
 0x253   : > { %v1674_v4 = vsel %vm1664_vm9, %v1641_v5, %v4554_v27  ;;  %v4098_v15 = vunpack.i.l.bf16 %v8367_v40  ;;  %v4064_v14 = vunpack.i.h.bf16 %v8368_v42  ;;  %v4063_v36 = vunpack.i.l.bf16 %v8368_v42  ;;  %v2202_v40 = vld [vmem:[#allocation3 + $0x1a0] sm:$0xff]  ;;  %v8378_v42 = vld [vmem:[#allocation44_spill] sm:$0xff] }
 0x254   : > { %v1705_v47 = vpack.c.bf16 %v1674_v4, %v1673_v52  ;;  %v1578_v52 = vsel %vm1565_vm7, %v1545_v50, %v4323_v18  ;;  %v1482_v31 = vsel %vm281_vm0, %v5185_v41, %v4099_v61  ;;  %v4249_v60 = vunpack.i.h.bf16 %v8369_v11  ;;  %v8375_v50 = vld [vmem:[#allocation24_spill] sm:$0xff] }
 0x255   : > { %v1481_v21 = vsel %vm281_vm0, %v5186_v12, %v4098_v15  ;;  %v4248_v55 = vunpack.i.l.bf16 %v8369_v11  ;;  %v4329_v35 = vunpack.i.h.bf16 %v8370_v43  ;;  %v4409_v49 = vunpack.i.h.bf16 %v8371_v22 }
 0x256   : > { %v4408_v57 = vunpack.i.l.bf16 %v8371_v22  ;;  %v1514_v8 = vsel %vm1499_vm4, %v1481_v21, %v4063_v36  ;;  %v1515_v13 = vsel %vm1499_vm4, %v1482_v31, %v4064_v14  ;;  %v4569_v62 = vunpack.i.h.bf16 %v4567_v63  ;;  %v8379_v21 = vld [vmem:[#allocation52_spill] sm:$0xff] }
 0x257   : > { %v4103_v17 = vunpack.i.l.bf16 %v8373_v38  ;;  %v4577_v45 = vpop.permute.xlu1 %4576  ;;  %v4419_v14 = vunpack.i.h.bf16 %v8378_v42  ;;  %v4418_v36 = vunpack.i.l.bf16 %v8378_v42  ;;  %v4499_v11 = vunpack.i.h.bf16 %v8379_v21 }
 0x25d   : > { %1876 = vmatmul.bf16.gmra.mxu0 %v1703_v30  ;;  %v4559_v30 = vunpack.i.h.bf16 %v6488_v1  ;;  %v4094_v1 = vunpack.i.h.bf16 %v6085_v32  ;;  %v8365_v32 = vld [vmem:[#allocation42_spill] sm:$0xff] }
 0x25e   : > { %v4404_v25 = vunpack.i.h.bf16 %v8365_v32  ;;  %v4403_v27 = vunpack.i.l.bf16 %v8365_v32  ;;  %v6705_v32 = vpop.f32.mrf.mxu1 }
 0x25f   : > { %v1676_v7 = vsel %vm1664_vm9, %v1643_v44, %v4559_v30  ;;  %v1480_v59 = vsel %vm281_vm0, %v5183_v56, %v4094_v1  ;;  %v4328_v30 = vunpack.i.l.bf16 %v8370_v43  ;;  %v8372_v44 = vld [vmem:[#allocation53_spill] sm:$0xff]  ;;  %v1547_v1 = vsel %vm1532_vm5, %v1514_v8, %v4248_v55 }
 0x260   : > { %v1707_v9 = vpack.c.bf16 %v1676_v7, %v1675_v6  ;;  %v1513_v48 = vsel %vm1499_vm4, %v1480_v59, %v4169_v29  ;;  %v1611_v4 = vsel %vm1598_vm6, %v1578_v52, %v4403_v27  ;;  %v4489_v6 = vunpack.i.h.bf16 %v8372_v44 }
 0x261   : > { %v1546_v16 = vsel %vm1532_vm5, %v1513_v48, %v4244_v34  ;;  %v1644_v54 = vsel %vm1631_vm8, %v1611_v4, %v4483_v58  ;;  %v4488_v7 = vunpack.i.l.bf16 %v8372_v44  ;;  %v4568_v29 = vunpack.i.l.bf16 %v4567_v63 }
 0x262   : > { %v1579_v5 = vsel %vm1565_vm7, %v1546_v16, %v4324_v39  ;;  %v1677_v53 = vsel %vm1664_vm9, %v1644_v54, %v4563_v3  ;;  %v1580_v37 = vsel %vm1565_vm7, %v1547_v1, %v4328_v30  ;;  %v4104_v48 = vunpack.i.h.bf16 %v8373_v38 }
 0x263   : > { %v1613_v26 = vsel %vm1598_vm6, %v1580_v37, %v4408_v57  ;;  %v4178_v16 = vunpack.i.l.bf16 %v8375_v50  ;;  %v4579_v30 = vunpack.i.h.bf16 %v4577_v45  ;;  %v4578_v63 = vunpack.i.l.bf16 %v4577_v45  ;;  %v8380_v57 = vld [vmem:[#allocation29_spill] sm:$0xff] }
 0x264   : > { %v1646_v18 = vsel %vm1631_vm8, %v1613_v26, %v4488_v7  ;;  %v2150_v26 = vld [vmem:[#allocation3] sm:$0xff] }
 0x265   : > { %v1679_v56 = vsel %vm1664_vm9, %v1646_v18, %v4568_v29  ;;  %v8381_v29 = vld [vmem:[#allocation18_spill] sm:$0xff] }
 0x266   : > { %v6724_v15 = vpop.f32.mrf.mxu1  ;;  %v4109_v37 = vunpack.i.h.bf16 %v8381_v29  ;;  %v4108_v18 = vunpack.i.l.bf16 %v8381_v29 }
 0x26d   : > { %1881 = vmatmul.bf16.gmra.mxu0 %v1705_v47  ;;  %v1612_v47 = vsel %vm1598_vm6, %v1579_v5, %v4404_v25  ;;  %v8376_v5 = vld [vmem:[#allocation4_spill] sm:$0xff] }
 0x26e   : > { %v1645_v2 = vsel %vm1631_vm8, %v1612_v47, %v4484_v33  ;;  %v8374_v33 = vld [vmem:[#allocation28_spill] sm:$0xff]  ;;  %v4259_v52 = vunpack.i.h.bf16 %v8376_v5  ;;  %v4258_v4 = vunpack.i.l.bf16 %v8376_v5  ;;  %v8384_v5 = vld [vmem:[#allocation31_spill] sm:$0xff] }
 0x26f   : > { %v1678_v46 = vsel %vm1664_vm9, %v1645_v2, %v4564_v23  ;;  %v4179_v23 = vunpack.i.h.bf16 %v8375_v50  ;;  %v5187_v47 = vld [vmem:[#allocation2 + $0xe0] sm:$0xff]  ;;  %v5188_v2 = vld [vmem:[#allocation2 + $0xd8] sm:$0xff] }
 0x270   : > { %v1709_v0 = vpack.c.bf16 %v1678_v46, %v1677_v53  ;;  %v1486_v54 = vsel %vm281_vm0, %v5187_v47, %v4104_v48  ;;  %v1485_v53 = vsel %vm281_vm0, %v5188_v2, %v4103_v17  ;;  %v8377_v46 = vld [vmem:[#allocation16_spill] sm:$0xff]  ;;  %v5189_v47 = vld [vmem:[#allocation2 + $0xf0] sm:$0xff]  ;;  %v5190_v2 = vld [vmem:[#allocation2 + $0xf8] sm:$0xff] }
 0x271   : > { %v4338_v10 = vunpack.i.l.bf16 %v8377_v46  ;;  %v1518_v61 = vsel %vm1499_vm4, %v1485_v53, %v4178_v16  ;;  %v1519_v12 = vsel %vm1499_vm4, %v1486_v54, %v4179_v23  ;;  %v8383_v50 = vld [vmem:[#allocation8_spill] sm:$0xff]  ;;  %v1487_v54 = vsel %vm281_vm0, %v5189_v47, %v4108_v18  ;;  %v8391_v47 = vld [vmem:[#allocation35_spill] sm:$0xff] }
 0x272   : > { %v1551_v43 = vsel %vm1532_vm5, %v1518_v61, %v4258_v4  ;;  %v4264_v16 = vunpack.i.h.bf16 %v8383_v50  ;;  %v4263_v23 = vunpack.i.l.bf16 %v8383_v50  ;;  %v1488_v53 = vsel %vm281_vm0, %v5190_v2, %v4109_v37  ;;  %v8385_v61 = vld [vmem:[#allocation12_spill] sm:$0xff] }
 0x273   : > { %v4344_v42 = vunpack.i.h.bf16 %v8385_v61  ;;  %v4268_v2 = vunpack.i.l.bf16 %v8391_v47 }
 0x27d   : > { %1886 = vmatmul.bf16.gmra.mxu0 %v1707_v9  ;;  %v1548_v9 = vsel %vm1532_vm5, %v1515_v13, %v4249_v60  ;;  %v4498_v60 = vunpack.i.l.bf16 %v8379_v21  ;;  %v8386_v21 = vld [vmem:[#allocation45_spill] sm:$0xff] }
 0x27e   : > { %v1581_v34 = vsel %vm1565_vm7, %v1548_v9, %v4329_v35  ;;  %v1552_v35 = vsel %vm1532_vm5, %v1519_v12, %v4259_v52 }
 0x27f   : > { %v1614_v39 = vsel %vm1598_vm6, %v1581_v34, %v4409_v49  ;;  %v1584_v49 = vsel %vm1565_vm7, %v1551_v43, %v4338_v10  ;;  %v4033_v34 = vld [vmem:[%s8217_s5 + $0x40] sm:$0xff] }
 0x280   : > { %v1647_v24 = vsel %vm1631_vm8, %v1614_v39, %v4489_v6  ;;  %v1617_v13 = vsel %vm1598_vm6, %v1584_v49, %v4418_v36  ;;  %v2151_v39 = vld [vmem:[#allocation3 + $0x8] sm:$0xff]  ;;  %3614 = vmatpush.bf16.msra.mxu3 %v4033_v34  ;;  %v4582_v36 = vpop.permute.xlu2 %4581  ;;  %v8388_v34 = vld [vmem:[#allocation33_spill] sm:$0xff] }
 0x281   : > { %v1680_v59 = vsel %vm1664_vm9, %v1647_v24, %v4569_v62  ;;  %v1650_v7 = vsel %vm1631_vm8, %v1617_v13, %v4498_v60  ;;  %v8382_v24 = vld [vmem:[#allocation15_spill] sm:$0xff]  ;;  %v4423_v60 = vunpack.i.l.bf16 %v8386_v21 }
 0x282   : > { %v1711_v20 = vpack.c.bf16 %v1680_v59, %v1679_v56  ;;  %v1683_v1 = vsel %vm1664_vm9, %v1650_v7, %v4578_v63  ;;  %v4184_v56 = vunpack.i.h.bf16 %v8382_v24  ;;  %v4183_v38 = vunpack.i.l.bf16 %v8382_v24 }
 0x283   : > { %v2828_v63 = vrot.slane %v2150_v26, 2  ;;  %v4583_v7 = vunpack.i.l.bf16 %v4582_v36 }
 0x284   : > { %v1520_v10 = vsel %vm1499_vm4, %v1487_v54, %v4183_v38  ;;  %v4269_v54 = vunpack.i.h.bf16 %v8391_v47 }
 0x28d   : > { %1891 = vmatmul.bf16.gmra.mxu0 %v1709_v0  ;;  %v4339_v0 = vunpack.i.h.bf16 %v8377_v46 }
 0x28f   : > { %v1585_v22 = vsel %vm1565_vm7, %v1552_v35, %v4339_v0  ;;  %v1521_v0 = vsel %vm1499_vm4, %v1488_v53, %v4184_v56 }
 0x290   : > { %v1618_v44 = vsel %vm1598_vm6, %v1585_v22, %v4419_v14  ;;  %v4343_v14 = vunpack.i.l.bf16 %v8385_v61  ;;  %v2829_v22 = vrot.slane %v2151_v39, 2 }
 0x291   : > { %v1651_v9 = vsel %vm1631_vm8, %v1618_v44, %v4499_v11  ;;  %v4424_v11 = vunpack.i.h.bf16 %v8386_v21  ;;  %v4584_v44 = vunpack.i.h.bf16 %v4582_v36 }
 0x292   : > { %v1684_v62 = vsel %vm1664_vm9, %v1651_v9, %v4579_v30 }
 0x293   : > { %v1715_v17 = vpack.c.bf16 %v1684_v62, %v1683_v1  ;;  %v2830_v1 = vsel %vm1152_vm2, %v2828_v63, %v2829_v22  ;;  %v8394_v63 = vld [vmem:[#allocation48_spill] sm:$0xff] }
 0x29d   : > { %1896 = vmatmul.bf16.gmra.mxu0 %v1711_v20  ;;  %v2152_v20 = vld [vmem:[#allocation3 + $0x10] sm:$0x3] }
 0x29e   : > { %v2831_v49 = vrot.slane %v2152_v20, 2 }
 0x2a0   : > { %v2832_v62 = vsel %vm1152_vm2, %v2829_v22, %v2831_v49  ;;  %v4429_v22 = vunpack.i.h.bf16 %v8394_v63 }
 0x2aa   : > { %v1862_v25 = vpop.f32.mrf.mxu0 }
 0x2ab   : > { %v1863_v27 = vadd.f32 %v6703_v19, %v1862_v25  ;;  %v2448_v25 = vrot.slane %v2150_v26, 1 }
 0x2ad   : > { %v1952_v58 = vadd.f32 %v8374_v33, %v1863_v27  ;;  %1901 = vmatmul.bf16.gmra.mxu0 %v1713_v28  ;;  %v2201_v28 = vld [vmem:[#allocation3 + $0x198] sm:$0xff]  ;;  %v2449_v27 = vrot.slane %v2151_v39, 1  ;;  %v2451_v33 = vrot.slane %v2152_v20, 1  ;;  %v4620_v39 = vpack.i.bf16 %v2832_v62, %v2830_v1 }
 0x2ae   : > { %v4610_v31 = vpack.i.bf16 %v2202_v40, %v2201_v28  ;;  %v1554_v28 = vsel %vm1532_vm5, %v1521_v0, %v4264_v16  ;;  %v1553_v40 = vsel %vm1532_vm5, %v1520_v10, %v4263_v23  ;;  %v5191_v0 = vld [vmem:[#allocation2 + $0x110] sm:$0xff]  ;;  %v8395_v1 = vld [vmem:[#allocation57_spill] sm:$0xff] }
 0x2af   : > { %v2031_v3 = vmax.f32 %v1952_v58, 0.0  ;;  %v6753_v58 = vpop.f32.mrf.mxu1  ;;  %v2452_v4 = vsel %vm771_vm3, %v2449_v27, %v2451_v33  ;;  %v1586_v29 = vsel %vm1565_vm7, %v1553_v40, %v4343_v14  ;;  %v1587_v37 = vsel %vm1565_vm7, %v1554_v28, %v4344_v42  ;;  %v8389_v33 = vld [vmem:[#allocation22_spill] sm:$0xff]  ;;  %v8392_v40 = vld [vmem:[#allocation36_spill] sm:$0xff] }
 0x2b0   : > { %4611 = vrot.lane.b32.xlu0 %v4610_v31, %s5256_s12  ;;  %v1620_v20 = vsel %vm1598_vm6, %v1587_v37, %v4424_v11  ;;  %v4114_v50 = vunpack.i.h.bf16 %v8389_v33  ;;  %v4113_v16 = vunpack.i.l.bf16 %v8389_v33  ;;  %v4509_v62 = vunpack.i.h.bf16 %v8395_v1 }
 0x2b1   : > { %2118 = vst.msk [vmem:[#allocation3 + $0x19] sm:$0xff] %vm281_vm0, %v2031_v3  ;;  %v2450_v3 = vsel %vm771_vm3, %v2448_v25, %v2449_v27 }
 0x2b2   : > { %v1864_v41 = vpop.f32.mrf.mxu0  ;;  %v4615_v46 = vpack.i.bf16 %v2452_v4, %v2450_v3  ;;  %v8390_v3 = vld [vmem:[#allocation32_spill] sm:$0xff]  ;;  %v1490_v10 = vsel %vm281_vm0, %v5191_v0, %v4114_v50 }
 0x2b3   : > { %v1865_v55 = vadd.f32 %v6703_v19, %v1864_v41 }
 0x2b4   : > { %4616 = vrot.lane.b32.xlu1 %v4615_v46, %s5255_s11 }
 0x2b5   : > { %v1954_v8 = vadd.f32 %v8380_v57, %v1865_v55  ;;  %v8387_v57 = vld [vmem:[#allocation55_spill] sm:$0xff] }
 0x2b6   : > { %v4503_v13 = vunpack.i.l.bf16 %v8387_v57 }
 0x2b7   : > { %v2032_v6 = vmax.f32 %v1954_v8, 0.0  ;;  %v4504_v8 = vunpack.i.h.bf16 %v8387_v57  ;;  %v6792_v18 = vpop.f32.mrf.mxu1 }
 0x2b8   : > { %v6768_v41 = vld [vmem:[#allocation3 + $0x18] sm:$0xff] }
 0x2b9   : > { %2119 = vst.msk [vmem:[#allocation3 + $0x21] sm:$0xff] %vm281_vm0, %v2032_v6  ;;  %v2453_v9 = vrot.slane %v6768_v41, 1  ;;  %v1653_v38 = vsel %vm1631_vm8, %v1620_v20, %v4504_v8  ;;  %v4587_v8 = vpop.permute.xlu0 %4586 }
 0x2ba   : > { %v1867_v59 = vpop.f32.mrf.mxu0  ;;  %v4588_v20 = vunpack.i.l.bf16 %v4587_v8 }
 0x2bb   : > { %v1868_v48 = vadd.f32 %v6703_v19, %v1867_v59  ;;  %v1619_v59 = vsel %vm1598_vm6, %v1586_v29, %v4423_v60 }
 0x2bc   : > { %v1652_v27 = vsel %vm1631_vm8, %v1619_v59, %v4503_v13  ;;  %4621 = vrot.lane.b32.xlu1 %v4620_v39, %s5252_s8  ;;  %v4589_v59 = vunpack.i.h.bf16 %v4587_v8 }
 0x2bd   : > { %v1957_v52 = vadd.f32 %v8384_v5, %v1868_v48  ;;  %1906 = vmatmul.bf16.gmra.mxu0 %v1715_v17  ;;  %v1685_v48 = vsel %vm1664_vm9, %v1652_v27, %v4583_v7  ;;  %v1686_v17 = vsel %vm1664_vm9, %v1653_v38, %v4584_v44  ;;  %v4189_v5 = vunpack.i.h.bf16 %v8390_v3  ;;  %v8396_v38 = vld [vmem:[#allocation38_spill] sm:$0xff] }
 0x2be   : > { %v1717_v46 = vpack.c.bf16 %v1686_v17, %v1685_v48 }
 0x2bf   : > { %v2033_v45 = vmax.f32 %v1957_v52, 0.0  ;;  %v4188_v52 = vunpack.i.l.bf16 %v8390_v3  ;;  %v1523_v42 = vsel %vm1499_vm4, %v1490_v10, %v4189_v5 }
 0x2c0   : > { %v6770_v31 = vld [vmem:[#allocation3 + $0x20] sm:$0xff]  ;;  %v6772_v12 = vld [vmem:[#allocation3 + $0x28] sm:$0x3]  ;;  %v1556_v11 = vsel %vm1532_vm5, %v1523_v42, %v4269_v54 }
 0x2c1   : > { %2120 = vst.msk [vmem:[#allocation3 + $0x31] sm:$0xff] %vm281_vm0, %v2033_v45  ;;  %v4625_v55 = vpack.i.bf16 %v6770_v31, %v6768_v41  ;;  %v2454_v43 = vrot.slane %v6770_v31, 1  ;;  %v2456_v30 = vrot.slane %v6772_v12, 1  ;;  %v5192_v45 = vld [vmem:[#allocation2 + $0x108] sm:$0xff]  ;;  %v2834_v29 = vrot.slane %v6770_v31, 2 }
 0x2c2   : > { %v1869_v35 = vpop.f32.mrf.mxu0  ;;  %v1489_v28 = vsel %vm281_vm0, %v5192_v45, %v4113_v16  ;;  %v2836_v37 = vrot.slane %v6772_v12, 2  ;;  %v2833_v31 = vrot.slane %v6768_v41, 2 }
 0x2c3   : > { %v1870_v6 = vadd.f32 %v6703_v19, %v1869_v35  ;;  %4626 = vrot.lane.b32.xlu2 %v4625_v55, %s5257_s13  ;;  %v2455_v24 = vsel %vm771_vm3, %v2453_v9, %v2454_v43  ;;  %v2457_v56 = vsel %vm771_vm3, %v2454_v43, %v2456_v30  ;;  %v1522_v14 = vsel %vm1499_vm4, %v1489_v28, %v4188_v52  ;;  %v6821_v55 = vpop.f32.mrf.mxu1  ;;  %v8393_v43 = vld [vmem:[#allocation11_spill] sm:$0xff] }
 0x2c4   : > { %v4630_v23 = vpack.i.bf16 %v2457_v56, %v2455_v24  ;;  %v1555_v21 = vsel %vm1532_vm5, %v1522_v14, %v4268_v2  ;;  %v4349_v35 = vunpack.i.h.bf16 %v8393_v43  ;;  %v4348_v30 = vunpack.i.l.bf16 %v8393_v43  ;;  %v8399_v14 = vld [vmem:[#allocation5_spill] sm:$0xff]  ;;  %v5194_v43 = vld [vmem:[#allocation2 + $0x120] sm:$0xff] }
 0x2c5   : > { %v1959_v26 = vadd.f32 %v8388_v34, %v1870_v6  ;;  %v4428_v9 = vunpack.i.l.bf16 %v8394_v63  ;;  %v2835_v17 = vsel %vm1152_vm2, %v2833_v31, %v2834_v29  ;;  %v2837_v33 = vsel %vm1152_vm2, %v2834_v29, %v2836_v37  ;;  %v4592_v29 = vpop.permute.xlu1 %4591 }
 0x2c6   : > { %v1589_v27 = vsel %vm1565_vm7, %v1556_v11, %v4349_v35  ;;  %v4640_v2 = vpack.i.bf16 %v2837_v33, %v2835_v17  ;;  %v5193_v11 = vld [vmem:[#allocation2 + $0x128] sm:$0xff] }
 0x2c7   : > { %v2034_v25 = vmax.f32 %v1959_v26, 0.0  ;;  %v4508_v26 = vunpack.i.l.bf16 %v8395_v1  ;;  %v1622_v16 = vsel %vm1598_vm6, %v1589_v27, %v4429_v22 }
 0x2c8   : > { %v6817_v36 = vld [vmem:[#allocation3 + $0x30] sm:$0xff]  ;;  %v1655_v3 = vsel %vm1631_vm8, %v1622_v16, %v4509_v62 }
 0x2c9   : > { %2121 = vst.msk [vmem:[#allocation3 + $0x39] sm:$0xff] %vm281_vm0, %v2034_v25  ;;  %v2838_v44 = vrot.slane %v6817_v36, 2  ;;  %v1588_v25 = vsel %vm1565_vm7, %v1555_v21, %v4348_v30  ;;  %v1688_v52 = vsel %vm1664_vm9, %v1655_v3, %v4589_v59  ;;  %v4273_v21 = vunpack.i.l.bf16 %v8399_v14  ;;  %v8401_v59 = vld [vmem:[#allocation46_spill] sm:$0xff] }
 0x2ca   : > { %v1872_v4 = vpop.f32.mrf.mxu0  ;;  %v1621_v50 = vsel %vm1598_vm6, %v1588_v25, %v4428_v9  ;;  %v2458_v63 = vrot.slane %v6817_v36, 1  ;;  %v8400_v9 = vld [vmem:[#allocation40_spill] sm:$0xff]  ;;  %v4433_v31 = vunpack.i.l.bf16 %v8401_v59  ;;  %v4593_v3 = vunpack.i.l.bf16 %v4592_v29 }
 0x2cb   : > { %v1873_v53 = vadd.f32 %v6703_v19, %v1872_v4  ;;  %4631 = vrot.lane.b32.xlu2 %v4630_v23, %s5255_s11  ;;  %v8397_v4 = vld [vmem:[#allocation23_spill] sm:$0xff]  ;;  %v6870_v10 = vpop.f32.mrf.mxu1  ;;  %v4354_v1 = vunpack.i.h.bf16 %v8400_v9 }
 0x2cc   : > { %v4119_v47 = vunpack.i.h.bf16 %v8397_v4  ;;  %v4118_v54 = vunpack.i.l.bf16 %v8397_v4 }
 0x2cd   : > { %v1962_v61 = vadd.f32 %v8392_v40, %v1873_v53  ;;  %1911 = vmatmul.bf16.gmra.mxu0 %v1717_v46  ;;  %v8398_v53 = vld [vmem:[#allocation27_spill] sm:$0xff] }
 0x2ce   : > { %v4194_v46 = vunpack.i.h.bf16 %v8398_v53  ;;  %v4193_v0 = vunpack.i.l.bf16 %v8398_v53  ;;  %v1491_v35 = vsel %vm281_vm0, %v5194_v43, %v4118_v54 }
 0x2cf   : > { %v2035_v60 = vmax.f32 %v1962_v61, 0.0 }
 0x2d0   : > { %v6826_v49 = vld [vmem:[#allocation3 + $0x38] sm:$0xff]  ;;  %v6828_v57 = vld [vmem:[#allocation3 + $0x40] sm:$0x3]  ;;  %v1524_v22 = vsel %vm1499_vm4, %v1491_v35, %v4193_v0 }
 0x2d1   : > { %2122 = vst.msk [vmem:[#allocation3 + $0x49] sm:$0xff] %vm281_vm0, %v2035_v60  ;;  %v4650_v13 = vpack.i.bf16 %v6826_v49, %v6817_v36  ;;  %v2839_v6 = vrot.slane %v6826_v49, 2  ;;  %v2841_v7 = vrot.slane %v6828_v57, 2  ;;  %v2461_v28 = vrot.slane %v6828_v57, 1 }
 0x2d2   : > { %v1874_v34 = vpop.f32.mrf.mxu0  ;;  %v2459_v42 = vrot.slane %v6826_v49, 1  ;;  %v1492_v60 = vsel %vm281_vm0, %v5193_v11, %v4119_v47  ;;  %v4274_v49 = vunpack.i.h.bf16 %v8399_v14 }
 0x2d3   : > { %v1875_v39 = vadd.f32 %v6703_v19, %v1874_v34  ;;  %4636 = vrot.lane.b32.xlu2 %v4630_v23, %s5254_s10  ;;  %4651 = vrot.lane.b32.xlu0 %v4650_v13, %s5257_s13  ;;  %v6845_v24 = vsel %vm1152_vm2, %v2838_v44, %v2839_v6  ;;  %v6848_v56 = vsel %vm1152_vm2, %v2839_v6, %v2841_v7  ;;  %v6906_v16 = vpop.f32.mrf.mxu1 }
 0x2d4   : > { %v3367_v12 = vpack.c.bf16 %v6848_v56, %v6845_v24  ;;  %v1654_v23 = vsel %vm1631_vm8, %v1621_v50, %v4508_v26  ;;  %v1525_v57 = vsel %vm1499_vm4, %v1492_v60, %v4194_v46  ;;  %v2460_v44 = vsel %vm771_vm3, %v2458_v63, %v2459_v42 }
 0x2d5   : > { %v1964_v48 = vadd.f32 %v8396_v38, %v1875_v39  ;;  %v1687_v5 = vsel %vm1664_vm9, %v1654_v23, %v4588_v20  ;;  %v2462_v6 = vsel %vm771_vm3, %v2459_v42, %v2461_v28  ;;  %v1557_v7 = vsel %vm1532_vm5, %v1524_v22, %v4273_v21  ;;  %v8404_v21 = vld [vmem:[#allocation30_spill] sm:$0xff]  ;;  %v8405_v22 = vld [vmem:[#allocation9_spill] sm:$0xff] }
 0x2d6   : > { %3996 = vmatmul.msk.bf16.vlgmr.msra.gmra.mxu3 %vm281_vm0, %v3367_v12  ;;  %v1719_v61 = vpack.c.bf16 %v1688_v52, %v1687_v5  ;;  %v4434_v20 = vunpack.i.h.bf16 %v8401_v59  ;;  %v8402_v12 = vld [vmem:[#allocation54_spill] sm:$0xff]  ;;  %v6894_v38 = vpack.i.bf16 %v2462_v6, %v2460_v44  ;;  %v4594_v23 = vunpack.i.h.bf16 %v4592_v29  ;;  %v5195_v6 = vld [vmem:[#allocation2 + $0x138] sm:$0xff] }
 0x2d7   : > { %v2036_v41 = vmax.f32 %v1964_v48, 0.0  ;;  %v4514_v25 = vunpack.i.h.bf16 %v8402_v12  ;;  %v4513_v48 = vunpack.i.l.bf16 %v8402_v12  ;;  %v4199_v11 = vunpack.i.h.bf16 %v8404_v21  ;;  %v4597_v12 = vpop.permute.xlu2 %4596 }
 0x2d8   : > { %v2159_v8 = vld [vmem:[#allocation3 + $0x48] sm:$0xff]  ;;  %v4198_v43 = vunpack.i.l.bf16 %v8404_v21 }
 0x2d9   : > { %2123 = vst.msk [vmem:[#allocation3 + $0x51] sm:$0xff] %vm281_vm0, %v2036_v41  ;;  %v2843_v34 = vrot.slane %v2159_v8, 2  ;;  %v1558_v41 = vsel %vm1532_vm5, %v1525_v57, %v4274_v49  ;;  %v2463_v63 = vrot.slane %v2159_v8, 1  ;;  %v4279_v57 = vunpack.i.h.bf16 %v8405_v22 }
 0x2da   : > { %v1877_v45 = vpop.f32.mrf.mxu0  ;;  %v1591_v52 = vsel %vm1565_vm7, %v1558_v41, %v4354_v1  ;;  %v8407_v41 = vld [vmem:[#allocation47_spill] sm:$0xff] }
 0x2db   : > { %v1878_v40 = vadd.f32 %v6703_v19, %v1877_v45  ;;  %4641 = vrot.lane.b32.xlu2 %v4640_v2, %s5253_s9  ;;  %4656 = vrot.lane.b32.xlu0 %v4650_v13, %s5256_s12 }
 0x2dd   : > { %v1967_v30 = vadd.f32 %v6705_v32, %v1878_v40  ;;  %1916 = vmatmul.bf16.gmra.mxu0 %v1719_v61  ;;  %v4353_v32 = vunpack.i.l.bf16 %v8400_v9  ;;  %v5196_v9 = vld [vmem:[#allocation2 + $0x140] sm:$0xff] }
 0x2df   : > { %v2037_v13 = vmax.f32 %v1967_v30, 0.0  ;;  %v1590_v4 = vsel %vm1565_vm7, %v1557_v7, %v4353_v32  ;;  %v6938_v32 = vpop.f32.mrf.mxu1 }
 0x2e0   : > { %v2160_v62 = vld [vmem:[#allocation3 + $0x50] sm:$0xff]  ;;  %v2161_v36 = vld [vmem:[#allocation3 + $0x58] sm:$0x3]  ;;  %v1623_v54 = vsel %vm1598_vm6, %v1590_v4, %v4433_v31 }
 0x2e1   : > { %2124 = vst.msk [vmem:[#allocation3 + $0x61] sm:$0xff] %vm281_vm0, %v2037_v13  ;;  %v4685_v37 = vpack.i.bf16 %v2160_v62, %v2159_v8  ;;  %v2844_v26 = vrot.slane %v2160_v62, 2  ;;  %v2846_v39 = vrot.slane %v2161_v36, 2  ;;  %v1656_v46 = vsel %vm1631_vm8, %v1623_v54, %v4513_v48 }
 0x2e2   : > { %v1879_v27 = vpop.f32.mrf.mxu0  ;;  %v1689_v45 = vsel %vm1664_vm9, %v1656_v46, %v4593_v3  ;;  %v2466_v40 = vrot.slane %v2161_v36, 1  ;;  %v2464_v61 = vrot.slane %v2160_v62, 1  ;;  %v4438_v3 = vunpack.i.l.bf16 %v8407_v41 }
 0x2e3   : > { %v1880_v17 = vadd.f32 %v6703_v19, %v1879_v27  ;;  %4646 = vrot.lane.b32.xlu2 %v4640_v2, %s5252_s8  ;;  %4686 = vrot.lane.b32.xlu1 %v4685_v37, %s5257_s13  ;;  %v6901_v33 = vsel %vm1152_vm2, %v2843_v34, %v2844_v26  ;;  %v6904_v50 = vsel %vm1152_vm2, %v2844_v26, %v2846_v39  ;;  %v8406_v34 = vld [vmem:[#allocation13_spill] sm:$0xff] }
 0x2e4   : > { %4661 = vrot.lane.b32.xlu0 %v6894_v38, %s5255_s11  ;;  %v3369_v5 = vpack.c.bf16 %v6904_v50, %v6901_v33  ;;  %v1624_v2 = vsel %vm1598_vm6, %v1591_v52, %v4434_v20  ;;  %v2465_v13 = vsel %vm771_vm3, %v2463_v63, %v2464_v61  ;;  %v2467_v44 = vsel %vm771_vm3, %v2464_v61, %v2466_v40 }
 0x2e5   : > { %v1969_v47 = vadd.f32 %v6724_v15, %v1880_v17  ;;  %v1657_v0 = vsel %vm1631_vm8, %v1624_v2, %v4514_v25  ;;  %v8403_v15 = vld [vmem:[#allocation20_spill] sm:$0xff]  ;;  %v4359_v26 = vunpack.i.h.bf16 %v8406_v34  ;;  %v4358_v39 = vunpack.i.l.bf16 %v8406_v34  ;;  %v5198_v34 = vld [vmem:[#allocation2 + $0x198] sm:$0xff] }
 0x2e6   : > { %3997 = vmatmul.msk.bf16.gmra.mxu3 %vm281_vm0, %v3369_v5  ;;  %v1690_v28 = vsel %vm1664_vm9, %v1657_v0, %v4594_v23  ;;  %v4124_v42 = vunpack.i.h.bf16 %v8403_v15  ;;  %v4123_v14 = vunpack.i.l.bf16 %v8403_v15  ;;  %v6950_v20 = vpack.i.bf16 %v2467_v44, %v2465_v13  ;;  %v8408_v5 = vld [vmem:[#allocation58_spill] sm:$0xff] }
 0x2e7   : > { %v2038_v53 = vmax.f32 %v1969_v47, 0.0  ;;  %v1721_v30 = vpack.c.bf16 %v1690_v28, %v1689_v45  ;;  %v4439_v23 = vunpack.i.h.bf16 %v8407_v41  ;;  %v4519_v52 = vunpack.i.h.bf16 %v8408_v5 }
 0x2e8   : > { %v1493_v7 = vsel %vm281_vm0, %v5195_v6, %v4123_v14  ;;  %v1494_v1 = vsel %vm281_vm0, %v5196_v9, %v4124_v42  ;;  %v6940_v8 = vld [vmem:[#allocation3 + $0x60] sm:$0xff]  ;;  %v4518_v47 = vunpack.i.l.bf16 %v8408_v5  ;;  %v4599_v0 = vunpack.i.h.bf16 %v4597_v12  ;;  %v8411_v9 = vld [vmem:[#allocation37_spill] sm:$0xff] }
 0x2e9   : > { %2125 = vst.msk [vmem:[#allocation3 + $0x69] sm:$0xff] %vm281_vm0, %v2038_v53  ;;  %v1527_v62 = vsel %vm1499_vm4, %v1494_v1, %v4199_v11  ;;  %v1526_v36 = vsel %vm1499_vm4, %v1493_v7, %v4198_v43  ;;  %v2848_v27 = vrot.slane %v6940_v8, 2  ;;  %v4598_v45 = vunpack.i.l.bf16 %v4597_v12  ;;  %v5201_v12 = vld [vmem:[#allocation2 + $0x1a8] sm:$0x3] }
 0x2ea   : > { %v1882_v60 = vpop.f32.mrf.mxu0  ;;  %v4675_v6 = vpack.i.bf16 %v6848_v56, %v6845_v24  ;;  %v4284_v1 = vunpack.i.h.bf16 %v8411_v9  ;;  %v2468_v24 = vrot.slane %v6940_v8, 1  ;;  %v5199_v56 = vld [vmem:[#allocation2 + $0x158] sm:$0xff] }
 0x2eb   : > { %v1883_v35 = vadd.f32 %v6703_v19, %v1882_v60  ;;  %4691 = vrot.lane.b32.xlu1 %v4685_v37, %s5256_s12  ;;  %v1560_v37 = vsel %vm1532_vm5, %v1527_v62, %v4279_v57  ;;  %v8409_v60 = vld [vmem:[#allocation25_spill] sm:$0xff]  ;;  %v4283_v62 = vunpack.i.l.bf16 %v8411_v9 }
 0x2ec   : > { %4666 = vrot.lane.b32.xlu0 %v6894_v38, %s5251_s7  ;;  %v1593_v61 = vsel %vm1565_vm7, %v1560_v37, %v4359_v26  ;;  %v4129_v43 = vunpack.i.h.bf16 %v8409_v60  ;;  %v1430_v26 = vrot.slane %v5198_v34, 2 }
 0x2ed   : > { %v1972_v49 = vadd.f32 %v6753_v58, %v1883_v35  ;;  %1921 = vmatmul.bf16.gmra.mxu0 %v1721_v30  ;;  %v4278_v58 = vunpack.i.l.bf16 %v8405_v22  ;;  %v1626_v14 = vsel %vm1598_vm6, %v1593_v61, %v4439_v23  ;;  %v6988_v35 = vpop.f32.mrf.mxu1  ;;  %v8410_v22 = vld [vmem:[#allocation34_spill] sm:$0xff] }
 0x2ee   : > { %v4204_v57 = vunpack.i.h.bf16 %v8410_v22 }
 0x2ef   : > { %v2039_v29 = vmax.f32 %v1972_v49, 0.0  ;;  %v1559_v46 = vsel %vm1532_vm5, %v1526_v36, %v4278_v58  ;;  %v4203_v49 = vunpack.i.l.bf16 %v8410_v22 }
 0x2f0   : > { %v6948_v59 = vld [vmem:[#allocation3 + $0x68] sm:$0xff]  ;;  %v6952_v31 = vld [vmem:[#allocation3 + $0x70] sm:$0x3]  ;;  %v1592_v40 = vsel %vm1565_vm7, %v1559_v46, %v4358_v39  ;;  %v1496_v39 = vsel %vm281_vm0, %v5199_v56, %v4129_v43 }
 0x2f1   : > { %2126 = vst.msk [vmem:[#allocation3 + $0x79] sm:$0xff] %vm281_vm0, %v2039_v29  ;;  %v4720_v25 = vpack.i.bf16 %v6948_v59, %v6940_v8  ;;  %v2849_v48 = vrot.slane %v6948_v59, 2  ;;  %v2851_v17 = vrot.slane %v6952_v31, 2  ;;  %v1625_v42 = vsel %vm1598_vm6, %v1592_v40, %v4438_v3  ;;  %v5197_v29 = vld [vmem:[#allocation2 + $0x1a0] sm:$0xff]  ;;  %v4602_v40 = vpop.permute.xlu0 %4601 }
 0x2f2   : > { %v1884_v4 = vpop.f32.mrf.mxu0  ;;  %v1658_v11 = vsel %vm1631_vm8, %v1625_v42, %v4518_v47  ;;  %v2471_v13 = vrot.slane %v6952_v31, 1  ;;  %v2469_v7 = vrot.slane %v6948_v59, 1  ;;  %v1431_v37 = vrot.slane %v5197_v29, 2  ;;  %v5200_v59 = vld [vmem:[#allocation2 + $0x150] sm:$0xff] }
 0x2f3   : > { %v1885_v54 = vadd.f32 %v6703_v19, %v1884_v4  ;;  %4721 = vrot.lane.b32.xlu2 %v4720_v25, %s5257_s13  ;;  %4696 = vrot.lane.b32.xlu1 %v6950_v20, %s5255_s11  ;;  %v6969_v2 = vsel %vm1152_vm2, %v2848_v27, %v2849_v48  ;;  %v6972_v53 = vsel %vm1152_vm2, %v2849_v48, %v2851_v17 }
 0x2f4   : > { %4671 = vrot.lane.b32.xlu0 %v6894_v38, %s5254_s10  ;;  %v3371_v28 = vpack.c.bf16 %v6972_v53, %v6969_v2  ;;  %v1659_v38 = vsel %vm1631_vm8, %v1626_v14, %v4519_v52  ;;  %v1691_v30 = vsel %vm1664_vm9, %v1658_v11, %v4598_v45  ;;  %v1529_v48 = vsel %vm1499_vm4, %v1496_v39, %v4204_v57  ;;  %v8412_v52 = vld [vmem:[#allocation39_spill] sm:$0xff] }
 0x2f5   : > { %v1974_v15 = vadd.f32 %v6792_v18, %v1885_v54  ;;  %v1692_v63 = vsel %vm1664_vm9, %v1659_v38, %v4599_v0  ;;  %v4128_v18 = vunpack.i.l.bf16 %v8409_v60  ;;  %v2470_v41 = vsel %vm771_vm3, %v2468_v24, %v2469_v7  ;;  %v8413_v54 = vld [vmem:[#allocation50_spill] sm:$0xff] }
 0x2f6   : > { %3998 = vmatmul.msk.bf16.gmra.mxu3 %vm281_vm0, %v3371_v28  ;;  %v1723_v58 = vpack.c.bf16 %v1692_v63, %v1691_v30  ;;  %v2472_v23 = vsel %vm771_vm3, %v2469_v7, %v2471_v13  ;;  %v1562_v5 = vsel %vm1532_vm5, %v1529_v48, %v4284_v1  ;;  %v4364_v4 = vunpack.i.h.bf16 %v8412_v52  ;;  %v8415_v24 = vld [vmem:[#allocation14_spill] sm:$0xff] }
 0x2f7   : > { %v2040_v21 = vmax.f32 %v1974_v15, 0.0  ;;  %v1495_v31 = vsel %vm281_vm0, %v5200_v59, %v4128_v18  ;;  %v4444_v46 = vunpack.i.h.bf16 %v8413_v54  ;;  %v4443_v0 = vunpack.i.l.bf16 %v8413_v54 }
 0x2f8   : > { %v1528_v17 = vsel %vm1499_vm4, %v1495_v31, %v4203_v49  ;;  %v7015_v8 = vld [vmem:[#allocation3 + $0x78] sm:$0xff]  ;;  %v7028_v61 = vpack.i.bf16 %v2472_v23, %v2470_v41  ;;  %v4524_v11 = vunpack.i.h.bf16 %v6473_v51  ;;  %v1432_v60 = vsel %vm1152_vm2, %v1430_v26, %v1431_v37 }
 0x2f9   : > { %2127 = vst.msk [vmem:[#allocation3 + $0x81] sm:$0xff] %vm281_vm0, %v2040_v21  ;;  %v1561_v3 = vsel %vm1532_vm5, %v1528_v17, %v4283_v62  ;;  %v2853_v15 = vrot.slane %v7015_v8, 2  ;;  %v7033_v21 = vpop.f32.mrf.mxu1  ;;  %v4523_v30 = vunpack.i.l.bf16 %v6473_v51  ;;  %v4604_v57 = vunpack.i.h.bf16 %v4602_v40  ;;  %v5202_v17 = vld [vmem:[#allocation2 + $0x170] sm:$0xff]  ;;  %v5203_v23 = vld [vmem:[#allocation2 + $0x168] sm:$0xff] }
 0x2fa   : > { %v1887_v44 = vpop.f32.mrf.mxu0  ;;  %v4603_v49 = vunpack.i.l.bf16 %v4602_v40  ;;  %v1595_v7 = vsel %vm1565_vm7, %v1562_v5, %v4364_v4  ;;  %v4710_v26 = vpack.i.bf16 %v6904_v50, %v6901_v33  ;;  %v4209_v56 = vunpack.i.h.bf16 %v8415_v24 }
 0x2fb   : > { %v1888_v36 = vadd.f32 %v6703_v19, %v1887_v44  ;;  %4726 = vrot.lane.b32.xlu2 %v4720_v25, %s5256_s12  ;;  %4701 = vrot.lane.b32.xlu1 %v6950_v20, %s5251_s7  ;;  %v1433_v25 = vrot.slane %v5201_v12, 2  ;;  %v1628_v9 = vsel %vm1598_vm6, %v1595_v7, %v4444_v46  ;;  %v4208_v39 = vunpack.i.l.bf16 %v8415_v24  ;;  %v8416_v12 = vld [vmem:[#allocation6_spill] sm:$0xff]  ;;  %v8417_v46 = vld [vmem:[#allocation41_spill] sm:$0xff] }
 0x2fc   : > { %4676 = vrot.lane.b32.xlu0 %v4675_v6, %s5253_s9 }
 0x2fd   : > { %v1977_v27 = vadd.f32 %v6821_v55, %v1888_v36  ;;  %1926 = vmatmul.bf16.gmra.mxu0 %v1723_v58  ;;  %v4363_v55 = vunpack.i.l.bf16 %v8412_v52  ;;  %v1434_v43 = vsel %vm1152_vm2, %v1431_v37, %v1433_v25  ;;  %v1661_v36 = vsel %vm1631_vm8, %v1628_v9, %v4524_v11  ;;  %v8414_v37 = vld [vmem:[#allocation26_spill] sm:$0xff] }
 0x2fe   : > { %v1728_v13 = vpack.c.bf16 %v1434_v43, %v1432_v60  ;;  %v1694_v29 = vsel %vm1664_vm9, %v1661_v36, %v4604_v57  ;;  %v4134_v34 = vunpack.i.h.bf16 %v8414_v37  ;;  %v4289_v25 = vunpack.i.h.bf16 %v8416_v12  ;;  %v4607_v60 = vpop.permute.xlu1 %4606  ;;  %v8419_v57 = vld [vmem:[#allocation56_spill] sm:$0xff] }
 0x2ff   : > { %v2041_v47 = vmax.f32 %v1977_v27, 0.0  ;;  %v1594_v44 = vsel %vm1565_vm7, %v1561_v3, %v4363_v55  ;;  %v4288_v27 = vunpack.i.l.bf16 %v8416_v12 }
 0x300   : > { %v7023_v45 = vld [vmem:[#allocation3 + $0x80] sm:$0xff]  ;;  %v7025_v28 = vld [vmem:[#allocation3 + $0x88] sm:$0x3]  ;;  %v1627_v1 = vsel %vm1598_vm6, %v1594_v44, %v4443_v0  ;;  %3959 = vmatmul.msk.bf16.gmra.mxu1 %vm281_vm0, %v1728_v13  ;;  %v1498_v41 = vsel %vm281_vm0, %v5202_v17, %v4134_v34  ;;  %v4369_v0 = vunpack.i.h.bf16 %v8417_v46 }
 0x301   : > { %2128 = vst.msk [vmem:[#allocation3 + $0x91] sm:$0xff] %vm281_vm0, %v2041_v47  ;;  %v2854_v42 = vrot.slane %v7023_v45, 2  ;;  %v2856_v14 = vrot.slane %v7025_v28, 2  ;;  %v4755_v31 = vpack.i.bf16 %v7023_v45, %v7015_v8  ;;  %v7079_v50 = vpop.f32.mrf.mxu1  ;;  %v1531_v4 = vsel %vm1499_vm4, %v1498_v41, %v4209_v56 }
 0x302   : > { %v1889_v38 = vpop.f32.mrf.mxu0  ;;  %v1564_v54 = vsel %vm1532_vm5, %v1531_v4, %v4289_v25  ;;  %v2476_v13 = vrot.slane %v7025_v28, 1  ;;  %v4608_v28 = vunpack.i.l.bf16 %v4607_v60 }
 0x303   : > { %v1890_v63 = vadd.f32 %v6703_v19, %v1889_v38  ;;  %4731 = vrot.lane.b32.xlu2 %v7028_v61, %s5255_s11  ;;  %4706 = vrot.lane.b32.xlu1 %v6950_v20, %s5254_s10  ;;  %v7045_v18 = vsel %vm1152_vm2, %v2853_v15, %v2854_v42  ;;  %v7048_v22 = vsel %vm1152_vm2, %v2854_v42, %v2856_v14  ;;  %v4368_v15 = vunpack.i.l.bf16 %v8417_v46  ;;  %v8418_v42 = vld [vmem:[#allocation49_spill] sm:$0xff] }
 0x304   : > { %4681 = vrot.lane.b32.xlu0 %v4675_v6, %s5252_s8  ;;  %v3373_v51 = vpack.c.bf16 %v7048_v22, %v7045_v18  ;;  %v1660_v6 = vsel %vm1631_vm8, %v1627_v1, %v4523_v30  ;;  %v4449_v14 = vunpack.i.h.bf16 %v8418_v42  ;;  %v2474_v1 = vrot.slane %v7023_v45, 1 }
 0x305   : > { %v1979_v20 = vadd.f32 %v6870_v10, %v1890_v63  ;;  %v1693_v58 = vsel %vm1664_vm9, %v1660_v6, %v4603_v49  ;;  %v4133_v10 = vunpack.i.l.bf16 %v8414_v37  ;;  %v4529_v49 = vunpack.i.h.bf16 %v8419_v57 }
 0x306   : > { %3999 = vmatmul.msk.bf16.gmra.mxu3 %vm281_vm0, %v3373_v51  ;;  %v1725_v33 = vpack.c.bf16 %v1694_v29, %v1693_v58  ;;  %v4528_v51 = vunpack.i.l.bf16 %v8419_v57  ;;  %v4609_v6 = vunpack.i.h.bf16 %v4607_v60  ;;  %v2473_v37 = vrot.slane %v7015_v8, 1 }
 0x307   : > { %v2042_v62 = vmax.f32 %v1979_v20, 0.0  ;;  %v1497_v3 = vsel %vm281_vm0, %v5203_v23, %v4133_v10  ;;  %v2477_v56 = vsel %vm771_vm3, %v2474_v1, %v2476_v13  ;;  %v4745_v8 = vpack.i.bf16 %v6972_v53, %v6969_v2 }
 0x308   : > { %v1530_v52 = vsel %vm1499_vm4, %v1497_v3, %v4208_v39  ;;  %v7087_v47 = vld [vmem:[#allocation3 + $0x90] sm:$0xff]  ;;  %v2475_v24 = vsel %vm771_vm3, %v2473_v37, %v2474_v1 }
 0x309   : > { %2129 = vst.msk [vmem:[#allocation3 + $0x99] sm:$0xff] %vm281_vm0, %v2042_v62  ;;  %v1563_v55 = vsel %vm1532_vm5, %v1530_v52, %v4288_v27  ;;  %v2858_v43 = vrot.slane %v7087_v47, 2  ;;  %v7125_v34 = vpop.f32.mrf.mxu1  ;;  %v4765_v25 = vpack.i.bf16 %v2477_v56, %v2475_v24  ;;  %v4030_v24 = vld [vmem:[%s8217_s5 + $0x28] sm:$0xff] }
 0x30a   : > { %v1892_v59 = vpop.f32.mrf.mxu0  ;;  %v1596_v62 = vsel %vm1565_vm7, %v1563_v55, %v4368_v15 }
 0x30b   : > { %v1893_v48 = vadd.f32 %v6703_v19, %v1892_v59  ;;  %4736 = vrot.lane.b32.xlu2 %v7028_v61, %s5251_s7  ;;  %4711 = vrot.lane.b32.xlu1 %v4710_v26, %s5253_s9 }
 0x30c   : > { %4756 = vrot.lane.b32.xlu0 %v4755_v31, %s5257_s13 }
 0x30d   : > { %v1982_v5 = vadd.f32 %v6906_v16, %v1893_v48  ;;  %1931 = vmatmul.bf16.gmra.mxu0 %v1725_v33  ;;  %v4448_v16 = vunpack.i.l.bf16 %v8418_v42  ;;  %v2478_v42 = vrot.slane %v7087_v47, 1 }
 0x30f   : > { %v2043_v40 = vmax.f32 %v1982_v5, 0.0  ;;  %v1629_v58 = vsel %vm1598_vm6, %v1596_v62, %v4448_v16 }
 0x310   : > { %v7095_v11 = vld [vmem:[#allocation3 + $0x98] sm:$0xff]  ;;  %v7097_v38 = vld [vmem:[#allocation3 + $0xa0] sm:$0x3]  ;;  %v1662_v10 = vsel %vm1631_vm8, %v1629_v58, %v4528_v51  ;;  %v4780_v58 = vpack.i.bf16 %v7048_v22, %v7045_v18 }
 0x311   : > { %2130 = vst.msk [vmem:[#allocation3 + $0xa9] sm:$0xff] %vm281_vm0, %v2043_v40  ;;  %v2859_v30 = vrot.slane %v7095_v11, 2  ;;  %v2861_v63 = vrot.slane %v7097_v38, 2  ;;  %v1695_v59 = vsel %vm1664_vm9, %v1662_v10, %v4608_v28  ;;  %v7149_v41 = vpop.f32.mrf.mxu1  ;;  %v2481_v4 = vrot.slane %v7097_v38, 1 }
 0x312   : > { %v1894_v44 = vpop.f32.mrf.mxu0 }
 0x313   : > { %v1895_v7 = vadd.f32 %v6703_v19, %v1894_v44  ;;  %4741 = vrot.lane.b32.xlu2 %v7028_v61, %s5254_s10  ;;  %4716 = vrot.lane.b32.xlu1 %v4710_v26, %s5252_s8  ;;  %v7111_v20 = vsel %vm1152_vm2, %v2858_v43, %v2859_v30  ;;  %v7114_v9 = vsel %vm1152_vm2, %v2859_v30, %v2861_v63  ;;  %v7191_v63 = vld [vmem:[%s8216_s4] ss:$0 sm:$0xff] }
 0x314   : > { %4761 = vrot.lane.b32.xlu0 %v4755_v31, %s5256_s12  ;;  %v3375_v36 = vpack.c.bf16 %v7114_v9, %v7111_v20  ;;  %v1597_v61 = vsel %vm1565_vm7, %v1564_v54, %v4369_v0  ;;  %v4790_v31 = vpack.i.bf16 %v7095_v11, %v7087_v47  ;;  %v2479_v54 = vrot.slane %v7095_v11, 1  ;;  %v4032_v47 = vld [vmem:[%s8217_s5 + $0x38] sm:$0xff] }
 0x315   : > { %v1984_v29 = vadd.f32 %v6938_v32, %v1895_v7  ;;  %v1630_v45 = vsel %vm1598_vm6, %v1597_v61, %v4449_v14  ;;  %3518 = vmatpush.bf16.msra.mxu2 %v4032_v47 }
 0x316   : > { %4000 = vmatmul.msk.bf16.gmra.mxu3 %vm281_vm0, %v3375_v36  ;;  %v1663_v39 = vsel %vm1631_vm8, %v1630_v45, %v4529_v49  ;;  %v2482_v16 = vsel %vm771_vm3, %v2479_v54, %v2481_v4 }
 0x317   : > { %v2044_v26 = vmax.f32 %v1984_v29, 0.0  ;;  %v1696_v32 = vsel %vm1664_vm9, %v1663_v39, %v4609_v6 }
 0x318   : > { %v1727_v48 = vpack.c.bf16 %v1696_v32, %v1695_v59  ;;  %v7147_v2 = vld [vmem:[#allocation3 + $0xa8] sm:$0xff] }
 0x319   : > { %2131 = vst.msk [vmem:[#allocation3 + $0xb1] sm:$0xff] %vm281_vm0, %v2044_v26  ;;  %v2863_v5 = vrot.slane %v7147_v2, 2  ;;  %v2483_v22 = vrot.slane %v7147_v2, 1 }
 0x31a   : > { %v1897_v12 = vpop.f32.mrf.mxu0 }
 0x31b   : > { %v1898_v27 = vadd.f32 %v6703_v19, %v1897_v12  ;;  %4746 = vrot.lane.b32.xlu2 %v4745_v8, %s5253_s9  ;;  %4791 = vrot.lane.b32.xlu1 %v4790_v31, %s5257_s13 }
 0x31c   : > { %4766 = vrot.lane.b32.xlu0 %v4765_v25, %s5255_s11 }
 0x31d   : > { %v1987_v33 = vadd.f32 %v6988_v35, %v1898_v27  ;;  %v7145_v17 = vpop.permute.xlu2 %4626  ;;  %1936 = vmatmul.bf16.gmra.mxu0 %v1727_v48  ;;  %v4028_v48 = vld [vmem:[%s8217_s5 + $0x18] sm:$0xff] }
 0x31f   : > { %v2045_v53 = vmax.f32 %v1987_v33, 0.0 }
 0x320   : > { %v7151_v23 = vld [vmem:[#allocation3 + $0xb0] sm:$0xff]  ;;  %v7153_v3 = vld [vmem:[#allocation3 + $0xb8] sm:$0x3] }
 0x321   : > { %2132 = vst.msk [vmem:[#allocation3 + $0xc1] sm:$0xff] %vm281_vm0, %v2045_v53  ;;  %v2864_v52 = vrot.slane %v7151_v23, 2  ;;  %v2866_v35 = vrot.slane %v7153_v3, 2  ;;  %v4825_v60 = vpack.i.bf16 %v7151_v23, %v7147_v2  ;;  %v2486_v36 = vrot.slane %v7153_v3, 1 }
 0x322   : > { %v1899_v55 = vpop.f32.mrf.mxu0  ;;  %v2484_v29 = vrot.slane %v7151_v23, 1  ;;  %v7248_v27 = vpop.permute.xlu0 %4611  ;;  %v4815_v3 = vpack.i.bf16 %v7114_v9, %v7111_v20 }
 0x323   : > { %v1900_v46 = vadd.f32 %v6703_v19, %v1899_v55  ;;  %4751 = vrot.lane.b32.xlu2 %v4745_v8, %s5252_s8  ;;  %4796 = vrot.lane.b32.xlu1 %v4790_v31, %s5256_s12  ;;  %v7165_v0 = vsel %vm1152_vm2, %v2863_v5, %v2864_v52  ;;  %v7168_v40 = vsel %vm1152_vm2, %v2864_v52, %v2866_v35  ;;  %v4029_v31 = vld [vmem:[%s8217_s5 + $0x20] sm:$0xff] }
 0x324   : > { %4771 = vrot.lane.b32.xlu0 %v4765_v25, %s5251_s7  ;;  %v3377_v15 = vpack.c.bf16 %v7168_v40, %v7165_v0  ;;  %v2480_v19 = vsel %vm771_vm3, %v2478_v42, %v2479_v54  ;;  %v2485_v39 = vsel %vm771_vm3, %v2483_v22, %v2484_v29  ;;  %v2487_v59 = vsel %vm771_vm3, %v2484_v29, %v2486_v36  ;;  %v4027_v54 = vld [vmem:[%s8217_s5 + $0x10] sm:$0xff] }
 0x325   : > { %v1989_v14 = vadd.f32 %v7033_v21, %v1900_v46  ;;  %v7178_v38 = vpop.permute.xlu2 %4631  ;;  %v4800_v43 = vpack.i.bf16 %v2482_v16, %v2480_v19  ;;  %v7186_v21 = vpop.f32.mrf.mxu1  ;;  %v4835_v8 = vpack.i.bf16 %v2487_v59, %v2485_v39  ;;  %v4026_v19 = vld [vmem:[%s8217_s5 + $0x8] sm:$0xff] }
 0x326   : > { %4001 = vmatmul.msk.bf16.gmra.mxu3 %vm281_vm0, %v3377_v15  ;;  %v7266_v35 = vpop.permute.xlu1 %4616 }
 0x327   : > { %v2046_v11 = vmax.f32 %v1989_v14, 0.0 }
 0x328   : > { %v7198_v51 = vld [vmem:[#allocation3 + $0xc0] sm:$0xff] }
 0x329   : > { %2133 = vst.msk [vmem:[#allocation3 + $0xc9] sm:$0xff] %vm281_vm0, %v2046_v11  ;;  %v2868_v62 = vrot.slane %v7198_v51, 2 }
 0x32a   : > { %v1902_v30 = vpop.f32.mrf.mxu0 }
 0x32b   : > { %v1903_v57 = vadd.f32 %v7191_v63, %v1902_v30  ;;  %4826 = vrot.lane.b32.xlu2 %v4825_v60, %s5257_s13  ;;  %4801 = vrot.lane.b32.xlu1 %v4800_v43, %s5255_s11  ;;  %v4025_v30 = vld [vmem:[%s8217_s5] sm:$0xff] }
 0x32c   : > { %4776 = vrot.lane.b32.xlu0 %v4765_v25, %s5254_s10 }
 0x32d   : > { %v1992_v49 = vadd.f32 %v7079_v50, %v1903_v57  ;;  %v7205_v1 = vpop.permute.xlu2 %4636  ;;  %v4031_v50 = vld [vmem:[%s8217_s5 + $0x30] sm:$0xff]  ;;  %v7226_v26 = vpop.f32.mrf.mxu1 }
 0x32e   : > { %3519 = vmatpush.bf16.msra.mxu2 %v4031_v50 }
 0x32f   : > { %v2047_v13 = vmax.f32 %v1992_v49, 0.0 }
 0x330   : > { %v7200_v44 = vld [vmem:[#allocation3 + $0xc8] sm:$0xff]  ;;  %v7202_v7 = vld [vmem:[#allocation3 + $0xd0] sm:$0x3] }
 0x331   : > { %2134 = vst.msk [vmem:[#allocation3 + $0xd9] sm:$0xff] %vm281_vm0, %v2047_v13  ;;  %v2869_v6 = vrot.slane %v7200_v44, 2  ;;  %v2871_v28 = vrot.slane %v7202_v7, 2  ;;  %v4855_v9 = vpack.i.bf16 %v7200_v44, %v7198_v51  ;;  %v2491_v49 = vrot.slane %v7202_v7, 1 }
 0x332   : > { %v1904_v61 = vpop.f32.mrf.mxu0  ;;  %3520 = vmatpush.bf16.msra.mxu2 %v4030_v24  ;;  %v2488_v7 = vrot.slane %v7198_v51, 1 }
 0x333   : > { %v1905_v37 = vadd.f32 %v7191_v63, %v1904_v61  ;;  %4831 = vrot.lane.b32.xlu2 %v4825_v60, %s5256_s12  ;;  %4806 = vrot.lane.b32.xlu1 %v4800_v43, %s5251_s7  ;;  %v7221_v45 = vsel %vm1152_vm2, %v2868_v62, %v2869_v6  ;;  %v7224_v10 = vsel %vm1152_vm2, %v2869_v6, %v2871_v28  ;;  %v2489_v62 = vrot.slane %v7200_v44, 1 }
 0x334   : > { %4781 = vrot.lane.b32.xlu0 %v4780_v58, %s5253_s9  ;;  %v3379_v18 = vpack.c.bf16 %v7224_v10, %v7221_v45 }
 0x335   : > { %v1994_v56 = vadd.f32 %v7125_v34, %v1905_v37  ;;  %v7243_v25 = vpop.permute.xlu2 %4641  ;;  %v7255_v2 = vpop.f32.mrf.mxu1  ;;  %v2492_v29 = vsel %vm771_vm3, %v2489_v62, %v2491_v49 }
 0x336   : > { %4002 = vmatmul.msk.bf16.gmra.mxu3 %vm281_vm0, %v3379_v18  ;;  %3521 = vmatpush.bf16.msra.mxu2 %v4029_v31  ;;  %v4628_v31 = vunpack.i.l.bf16 %v7145_v17 }
 0x337   : > { %v2048_v32 = vmax.f32 %v1994_v56, 0.0 }
 0x338   : > { %v7257_v53 = vld [vmem:[#allocation3 + $0xd8] sm:$0xff] }
 0x339   : > { %2135 = vst.msk [vmem:[#allocation3 + $0xe1] sm:$0xff] %vm281_vm0, %v2048_v32  ;;  %v2873_v4 = vrot.slane %v7257_v53, 2  ;;  %v2493_v49 = vrot.slane %v7257_v53, 1 }
 0x33a   : > { %v1907_v12 = vpop.f32.mrf.mxu0  ;;  %3522 = vmatpush.bf16.msra.mxu2 %v4028_v48 }
 0x33b   : > { %v1908_v34 = vadd.f32 %v7191_v63, %v1907_v12  ;;  %4836 = vrot.lane.b32.xlu2 %v4835_v8, %s5255_s11  ;;  %4811 = vrot.lane.b32.xlu1 %v4800_v43, %s5254_s10 }
 0x33c   : > { %4786 = vrot.lane.b32.xlu0 %v4780_v58, %s5252_s8  ;;  %v2490_v58 = vsel %vm771_vm3, %v2488_v7, %v2489_v62  ;;  %v4644_v7 = vunpack.i.h.bf16 %v7243_v25 }
 0x33d   : > { %v1997_v33 = vadd.f32 %v7149_v41, %v1908_v34  ;;  %v7291_v16 = vpop.permute.xlu2 %4646  ;;  %v7297_v47 = vpop.f32.mrf.mxu1  ;;  %v7332_v39 = vpack.i.bf16 %v2492_v29, %v2490_v58 }
 0x33e   : > { %3523 = vmatpush.bf16.msra.mxu2 %v4027_v54 }
 0x33f   : > { %v2049_v23 = vmax.f32 %v1997_v33, 0.0 }
 0x340   : > { %v7261_v5 = vld [vmem:[#allocation3 + $0xe0] sm:$0xff]  ;;  %v7263_v52 = vld [vmem:[#allocation3 + $0xe8] sm:$0x3] }
 0x341   : > { %2136 = vst.msk [vmem:[#allocation3 + $0xf1] sm:$0xff] %vm281_vm0, %v2049_v23  ;;  %v2874_v41 = vrot.slane %v7261_v5, 2  ;;  %v2876_v55 = vrot.slane %v7263_v52, 2  ;;  %v4895_v18 = vpack.i.bf16 %v7261_v5, %v7257_v53 }
 0x342   : > { %v1909_v20 = vpop.f32.mrf.mxu0  ;;  %3524 = vmatpush.bf16.msra.mxu2 %v4026_v19  ;;  %v2494_v19 = vrot.slane %v7261_v5, 1  ;;  %v4638_v5 = vunpack.i.l.bf16 %v7205_v1 }
 0x343   : > { %v1910_v46 = vadd.f32 %v7191_v63, %v1909_v20  ;;  %4841 = vrot.lane.b32.xlu2 %v4835_v8, %s5251_s7  ;;  %4816 = vrot.lane.b32.xlu1 %v4815_v3, %s5253_s9  ;;  %v7280_v15 = vsel %vm1152_vm2, %v2873_v4, %v2874_v41  ;;  %v7283_v42 = vsel %vm1152_vm2, %v2874_v41, %v2876_v55  ;;  %v5205_v55 = vld [vmem:[#allocation3 + $0x8] sm:$0xff]  ;;  %v2496_v20 = vrot.slane %v7263_v52, 1 }
 0x344   : > { %4856 = vrot.lane.b32.xlu0 %v4855_v9, %s5257_s13  ;;  %v3381_v14 = vpack.c.bf16 %v7283_v42, %v7280_v15  ;;  %v4639_v52 = vunpack.i.h.bf16 %v7205_v1  ;;  %v2495_v29 = vsel %vm771_vm3, %v2493_v49, %v2494_v19 }
 0x345   : > { %v1999_v11 = vadd.f32 %v7186_v21, %v1910_v46  ;;  %v7294_v60 = vpop.permute.xlu0 %4651  ;;  %v7307_v21 = vpop.permute.xlu1 %4621  ;;  %v2497_v53 = vsel %vm771_vm3, %v2494_v19, %v2496_v20 }
 0x346   : > { %4003 = vmatmul.msk.bf16.gmra.mxu3 %vm281_vm0, %v3381_v14  ;;  %3525 = vmatpush.bf16.msra.mxu2 %v4025_v30  ;;  %v7330_v24 = vpop.f32.mrf.mxu1  ;;  %v4653_v19 = vunpack.i.l.bf16 %v7294_v60 }
 0x347   : > { %v2050_v43 = vmax.f32 %v1999_v11, 0.0  ;;  %v4619_v11 = vunpack.i.h.bf16 %v7266_v35 }
 0x348   : > { %v7315_v36 = vld [vmem:[#allocation3 + $0xf0] sm:$0xff] }
 0x349   : > { %2137 = vst.msk [vmem:[#allocation3 + $0xf9] sm:$0xff] %vm281_vm0, %v2050_v43  ;;  %v2878_v51 = vrot.slane %v7315_v36, 2  ;;  %v4618_v43 = vunpack.i.l.bf16 %v7266_v35 }
 0x34a   : > { %v1912_v57 = vpop.f32.mrf.mxu0 }
 0x34b   : > { %v1913_v13 = vadd.f32 %v7191_v63, %v1912_v57  ;;  %4846 = vrot.lane.b32.xlu2 %v4835_v8, %s5254_s10  ;;  %4821 = vrot.lane.b32.xlu1 %v4815_v3, %s5252_s8 }
 0x34c   : > { %4861 = vrot.lane.b32.xlu0 %v4855_v9, %s5256_s12 }
 0x34d   : > { %v2002_v6 = vadd.f32 %v7226_v26, %v1913_v13  ;;  %v7312_v28 = vpop.permute.xlu2 %4721  ;;  %v4657_v50 = vpop.permute.xlu0 %4656  ;;  %v4850_v26 = vpack.i.bf16 %v7168_v40, %v7165_v0  ;;  %v4629_v40 = vunpack.i.h.bf16 %v7145_v17  ;;  %v5206_v17 = vld [vmem:[#allocation3] sm:$0xff] }
 0x34e   : > { %v4659_v23 = vunpack.i.h.bf16 %v4657_v50  ;;  %v4658_v3 = vunpack.i.l.bf16 %v4657_v50  ;;  %v7370_v57 = vpop.f32.mrf.mxu1 }
 0x34f   : > { %v2051_v61 = vmax.f32 %v2002_v6, 0.0  ;;  %v3143_v54 = vsel %vm281_vm0, %v5205_v55, %v4629_v40 }
 0x350   : > { %v7319_v37 = vld [vmem:[#allocation3 + $0xf8] sm:$0xff]  ;;  %v7321_v44 = vld [vmem:[#allocation3 + $0x100] sm:$0x3]  ;;  %v3175_v9 = vsel %vm1499_vm4, %v3143_v54, %v4659_v23 }
 0x351   : > { %2138 = vst.msk [vmem:[#allocation3 + $0x109] sm:$0xff] %vm281_vm0, %v2051_v61  ;;  %v2879_v22 = vrot.slane %v7319_v37, 2  ;;  %v2881_v59 = vrot.slane %v7321_v44, 2  ;;  %v3207_v13 = vsel %vm1532_vm5, %v3175_v9, %v4619_v11  ;;  %v4643_v61 = vunpack.i.l.bf16 %v7243_v25 }
 0x352   : > { %v1914_v56 = vpop.f32.mrf.mxu0 }
 0x353   : > { %v1915_v32 = vadd.f32 %v7191_v63, %v1914_v56  ;;  %4851 = vrot.lane.b32.xlu2 %v4850_v26, %s5253_s9  ;;  %4896 = vrot.lane.b32.xlu1 %v4895_v18, %s5257_s13  ;;  %v7339_v0 = vsel %vm1152_vm2, %v2878_v51, %v2879_v22  ;;  %v7345_v8 = vsel %vm1152_vm2, %v2879_v22, %v2881_v59  ;;  %v4623_v22 = vunpack.i.l.bf16 %v7307_v21 }
 0x354   : > { %4866 = vrot.lane.b32.xlu0 %v7332_v39, %s5255_s11  ;;  %v3383_v33 = vpack.c.bf16 %v7345_v8, %v7339_v0  ;;  %v3239_v59 = vsel %vm1565_vm7, %v3207_v13, %v4639_v52 }
 0x355   : > { %v2004_v12 = vadd.f32 %v7255_v2, %v1915_v32  ;;  %v7349_v34 = vpop.permute.xlu2 %4726  ;;  %v7351_v48 = vpop.permute.xlu1 %4686  ;;  %v3142_v2 = vsel %vm281_vm0, %v5206_v17, %v4628_v31 }
 0x356   : > { %v7355_v4 = vpop.permute.xlu0 %4661  ;;  %4004 = vmatmul.msk.bf16.gmra.mxu3 %vm281_vm0, %v3383_v33  ;;  %v3174_v46 = vsel %vm1499_vm4, %v3142_v2, %v4658_v3  ;;  %v7403_v33 = vpack.i.bf16 %v2497_v53, %v2495_v29  ;;  %v7427_v49 = vpop.f32.mrf.mxu1  ;;  %v2501_v29 = vrot.slane %v7321_v44, 1 }
 0x357   : > { %v2052_v41 = vmax.f32 %v2004_v12, 0.0  ;;  %v3206_v35 = vsel %vm1532_vm5, %v3174_v46, %v4618_v43  ;;  %v4925_v12 = vpack.i.bf16 %v7319_v37, %v7315_v36 }
 0x358   : > { %v7388_v51 = vld [vmem:[#allocation3 + $0x108] sm:$0xff]  ;;  %v3238_v56 = vsel %vm1565_vm7, %v3206_v35, %v4638_v5  ;;  %v4633_v5 = vunpack.i.l.bf16 %v7178_v38 }
 0x359   : > { %2139 = vst.msk [vmem:[#allocation3 + $0x111] sm:$0xff] %vm281_vm0, %v2052_v41  ;;  %v2883_v41 = vrot.slane %v7388_v51, 2 }
 0x35a   : > { %v1917_v14 = vpop.f32.mrf.mxu0 }
 0x35b   : > { %v1918_v30 = vadd.f32 %v7191_v63, %v1917_v14  ;;  %4881 = vrot.lane.b32.xlu2 %v4850_v26, %s5252_s8  ;;  %4901 = vrot.lane.b32.xlu1 %v4895_v18, %s5256_s12  ;;  %v4634_v14 = vunpack.i.h.bf16 %v7178_v38  ;;  %v2499_v38 = vrot.slane %v7319_v37, 1  ;;  %v2498_v37 = vrot.slane %v7315_v36, 1 }
 0x35c   : > { %4871 = vrot.lane.b32.xlu0 %v7332_v39, %s5251_s7 }
 0x35d   : > { %v2007_v62 = vadd.f32 %v7297_v47, %v1918_v30  ;;  %v7380_v6 = vpop.permute.xlu2 %4731  ;;  %v7382_v50 = vpop.permute.xlu1 %4691  ;;  %v4624_v47 = vunpack.i.h.bf16 %v7307_v21  ;;  %v2502_v36 = vsel %vm771_vm3, %v2499_v38, %v2501_v29 }
 0x35e   : > { %v4667_v58 = vpop.permute.xlu0 %4666  ;;  %v4693_v13 = vunpack.i.l.bf16 %v7382_v50 }
 0x35f   : > { %v2053_v1 = vmax.f32 %v2007_v62, 0.0  ;;  %v4669_v26 = vunpack.i.h.bf16 %v4667_v58  ;;  %v4668_v18 = vunpack.i.l.bf16 %v4667_v58  ;;  %v7434_v62 = vpack.i.bf16 %v7224_v10, %v7221_v45  ;;  %v5208_v10 = vld [vmem:[#allocation3 + $0x20] sm:$0xff] }
 0x360   : > { %v7394_v32 = vld [vmem:[#allocation3 + $0x110] sm:$0xff]  ;;  %v7396_v25 = vld [vmem:[#allocation3 + $0x118] sm:$0x3]  ;;  %v4649_v58 = vunpack.i.h.bf16 %v7291_v16  ;;  %v4648_v45 = vunpack.i.l.bf16 %v7291_v16  ;;  %v4729_v16 = vunpack.i.h.bf16 %v7349_v34 }
 0x361   : > { %2140 = vst.msk [vmem:[#allocation3 + $0x121] sm:$0xff] %vm281_vm0, %v2053_v1  ;;  %v3271_v40 = vsel %vm1598_vm6, %v3239_v59, %v4669_v26  ;;  %v3270_v31 = vsel %vm1598_vm6, %v3238_v56, %v4668_v18  ;;  %v2884_v55 = vrot.slane %v7394_v32, 2  ;;  %v2886_v20 = vrot.slane %v7396_v25, 2 }
 0x362   : > { %v1919_v21 = vpop.f32.mrf.mxu0  ;;  %v3302_v23 = vsel %vm1631_vm8, %v3270_v31, %v4623_v22  ;;  %v3303_v3 = vsel %vm1631_vm8, %v3271_v40, %v4624_v47  ;;  %v4688_v26 = vunpack.i.l.bf16 %v7351_v48  ;;  %v2500_v40 = vsel %vm771_vm3, %v2498_v37, %v2499_v38  ;;  %v5210_v38 = vld [vmem:[#allocation3 + $0x38] sm:$0xff] }
 0x363   : > { %v1920_v54 = vadd.f32 %v7191_v63, %v1919_v21  ;;  %4926 = vrot.lane.b32.xlu2 %v4925_v12, %s5257_s13  ;;  %4906 = vrot.lane.b32.xlu1 %v7403_v33, %s5255_s11  ;;  %v3334_v17 = vsel %vm1664_vm9, %v3302_v23, %v4643_v61  ;;  %v3335_v2 = vsel %vm1664_vm9, %v3303_v3, %v4644_v7  ;;  %v4728_v31 = vunpack.i.l.bf16 %v7349_v34  ;;  %v5209_v23 = vld [vmem:[#allocation3 + $0x30] sm:$0xff] }
 0x364   : > { %4876 = vrot.lane.b32.xlu0 %v7332_v39, %s5254_s10  ;;  %v3366_v9 = vpack.c.bf16 %v3335_v2, %v3334_v17  ;;  %v2885_v46 = vsel %vm1152_vm2, %v2883_v41, %v2884_v55  ;;  %v2887_v52 = vsel %vm1152_vm2, %v2884_v55, %v2886_v20  ;;  %v4654_v39 = vunpack.i.h.bf16 %v7294_v60  ;;  %v5207_v60 = vld [vmem:[#allocation3 + $0x18] sm:$0xff] }
 0x365   : > { %v2009_v11 = vadd.f32 %v7330_v24, %v1920_v54  ;;  %v7422_v43 = vpop.permute.xlu2 %4736  ;;  %v7424_v30 = vpop.permute.xlu1 %4696  ;;  %v4694_v24 = vunpack.i.h.bf16 %v7382_v50  ;;  %v3385_v61 = vpack.c.bf16 %v2887_v52, %v2885_v46  ;;  %v7440_v53 = vpack.i.bf16 %v2887_v52, %v2885_v46 }
 0x366   : > { %v4672_v35 = vpop.permute.xlu0 %4671  ;;  %3526 = vmatmul.bf16.vlgmr.msra.gmra.mxu2 %v3366_v9  ;;  %v3144_v1 = vsel %vm281_vm0, %v5207_v60, %v4653_v19  ;;  %v3145_v50 = vsel %vm281_vm0, %v5208_v10, %v4654_v39  ;;  %v4689_v21 = vunpack.i.h.bf16 %v7351_v48  ;;  %v3146_v3 = vsel %vm281_vm0, %v5209_v23, %v4688_v26 }
 0x367   : > { %v2054_v7 = vmax.f32 %v2009_v11, 0.0  ;;  %4005 = vmatmul.msk.bf16.gmra.mxu3 %vm281_vm0, %v3385_v61  ;;  %v3176_v44 = vsel %vm1499_vm4, %v3144_v1, %v4693_v13  ;;  %v3177_v47 = vsel %vm1499_vm4, %v3145_v50, %v4694_v24  ;;  %v4674_v22 = vunpack.i.h.bf16 %v4672_v35 }
 0x368   : > { %v4673_v56 = vunpack.i.l.bf16 %v4672_v35  ;;  %v3208_v54 = vsel %vm1532_vm5, %v3176_v44, %v4633_v5  ;;  %v3209_v17 = vsel %vm1532_vm5, %v3177_v47, %v4634_v14  ;;  %v7468_v46 = vld [vmem:[#allocation3 + $0x120] sm:$0xff]  ;;  %v7472_v11 = vpack.i.bf16 %v2502_v36, %v2500_v40 }
 0x369   : > { %2141 = vst.msk [vmem:[#allocation3 + $0x129] sm:$0xff] %vm281_vm0, %v2054_v7  ;;  %v3241_v34 = vsel %vm1565_vm7, %v3209_v17, %v4674_v22  ;;  %v2888_v61 = vrot.slane %v7468_v46, 2  ;;  %v3147_v60 = vsel %vm281_vm0, %v5210_v38, %v4689_v21  ;;  %v4664_v23 = vunpack.i.h.bf16 %v7355_v4 }
 0x36a   : > { %v1922_v18 = vpop.f32.mrf.mxu0  ;;  %v3240_v48 = vsel %vm1565_vm7, %v3208_v54, %v4673_v56  ;;  %v3179_v40 = vsel %vm1499_vm4, %v3147_v60, %v4729_v16 }
 0x36b   : > { %v1923_v59 = vadd.f32 %v7191_v63, %v1922_v18  ;;  %4931 = vrot.lane.b32.xlu2 %v4925_v12, %s5256_s12  ;;  %4911 = vrot.lane.b32.xlu1 %v7403_v33, %s5251_s7 }
 0x36c   : > { %4886 = vrot.lane.b32.xlu0 %v7434_v62, %s5253_s9 }
 0x36d   : > { %v2012_v12 = vadd.f32 %v7370_v57, %v1923_v59  ;;  %v7464_v41 = vpop.permute.xlu2 %4741  ;;  %v4702_v55 = vpop.permute.xlu1 %4701  ;;  %v3178_v59 = vsel %vm1499_vm4, %v3146_v3, %v4728_v31 }
 0x36e   : > { %v4704_v2 = vunpack.i.h.bf16 %v4702_v55  ;;  %v4703_v20 = vunpack.i.l.bf16 %v4702_v55  ;;  %v4677_v9 = vpop.permute.xlu0 %4676  ;;  %v2016_v57 = vpop.f32.mrf.mxu1  ;;  %v3211_v55 = vsel %vm1532_vm5, %v3179_v40, %v4664_v23 }
 0x36f   : > { %v2055_v19 = vmax.f32 %v2012_v12, 0.0  ;;  %v4679_v5 = vunpack.i.h.bf16 %v4677_v9  ;;  %v4678_v13 = vunpack.i.l.bf16 %v4677_v9  ;;  %v7558_v23 = vpop.f32.mrf.mxu3 }
 0x370   : > { %v3272_v52 = vsel %vm1598_vm6, %v3240_v48, %v4703_v20  ;;  %v3273_v39 = vsel %vm1598_vm6, %v3241_v34, %v4704_v2  ;;  %v7476_v14 = vld [vmem:[#allocation3 + $0x128] sm:$0xff]  ;;  %v7478_v35 = vld [vmem:[#allocation3 + $0x130] sm:$0x3]  ;;  %v4739_v2 = vunpack.i.h.bf16 %v7422_v43 }
 0x371   : > { %2142 = vst.msk [vmem:[#allocation3 + $0x139] sm:$0xff] %vm281_vm0, %v2055_v19  ;;  %v3304_v24 = vsel %vm1631_vm8, %v3272_v52, %v4648_v45  ;;  %v3305_v7 = vsel %vm1631_vm8, %v3273_v39, %v4649_v58  ;;  %v2889_v29 = vrot.slane %v7476_v14, 2  ;;  %v2891_v50 = vrot.slane %v7478_v35, 2 }
 0x372   : > { %v1924_v1 = vpop.f32.mrf.mxu0  ;;  %v3336_v26 = vsel %vm1664_vm9, %v3304_v24, %v4678_v13  ;;  %v3337_v10 = vsel %vm1664_vm9, %v3305_v7, %v4679_v5 }
 0x373   : > { %v1925_v44 = vadd.f32 %v7191_v63, %v1924_v1  ;;  %4936 = vrot.lane.b32.xlu2 %v7472_v11, %s5255_s11  ;;  %4916 = vrot.lane.b32.xlu1 %v7403_v33, %s5254_s10  ;;  %v3368_v58 = vpack.c.bf16 %v3337_v10, %v3336_v26  ;;  %v2890_v45 = vsel %vm1152_vm2, %v2888_v61, %v2889_v29 }
 0x374   : > { %4891 = vrot.lane.b32.xlu0 %v7434_v62, %s5252_s8  ;;  %v2892_v18 = vsel %vm1152_vm2, %v2889_v29, %v2891_v50  ;;  %v4663_v62 = vunpack.i.l.bf16 %v7355_v4  ;;  %v4950_v4 = vpack.i.bf16 %v7394_v32, %v7388_v51 }
 0x375   : > { %v2014_v37 = vadd.f32 %v7427_v49, %v1925_v44  ;;  %v7499_v47 = vpop.permute.xlu2 %4746  ;;  %v4707_v22 = vpop.permute.xlu1 %4706  ;;  %v3387_v56 = vpack.c.bf16 %v2892_v18, %v2890_v45  ;;  %v4920_v49 = vpack.i.bf16 %v7283_v42, %v7280_v15  ;;  %v4738_v15 = vunpack.i.l.bf16 %v7422_v43 }
 0x376   : > { %v4709_v36 = vunpack.i.h.bf16 %v4707_v22  ;;  %v4708_v33 = vunpack.i.l.bf16 %v4707_v22  ;;  %v4682_v21 = vpop.permute.xlu0 %4681  ;;  %3531 = vmatmul.bf16.gmra.mxu2 %v3368_v58  ;;  %v3210_v54 = vsel %vm1532_vm5, %v3178_v59, %v4663_v62  ;;  %v2018_v16 = vpop.f32.mrf.mxu1  ;;  %v7521_v20 = vpack.i.bf16 %v2892_v18, %v2890_v45 }
 0x377   : > { %v2056_v12 = vmax.f32 %v2014_v37, 0.0  ;;  %4006 = vmatmul.msk.bf16.gmra.mxu3 %vm281_vm0, %v3387_v56  ;;  %v4684_v43 = vunpack.i.h.bf16 %v4682_v21  ;;  %v4683_v39 = vunpack.i.l.bf16 %v4682_v21  ;;  %v2506_v45 = vrot.slane %v7396_v25, 1 }
 0x378   : > { %v3242_v31 = vsel %vm1565_vm7, %v3210_v54, %v4708_v33  ;;  %v3243_v3 = vsel %vm1565_vm7, %v3211_v55, %v4709_v36  ;;  %v7530_v61 = vld [vmem:[#allocation3 + $0x138] sm:$0xff]  ;;  %v2504_v37 = vrot.slane %v7394_v32, 1  ;;  %v4975_v55 = vpack.i.bf16 %v7345_v8, %v7339_v0 }
 0x379   : > { %2143 = vst.msk [vmem:[#allocation3 + $0x141] sm:$0xff] %vm281_vm0, %v2056_v12  ;;  %v3274_v19 = vsel %vm1598_vm6, %v3242_v31, %v4738_v15  ;;  %v3275_v52 = vsel %vm1598_vm6, %v3243_v3, %v4739_v2  ;;  %v2893_v50 = vrot.slane %v7530_v61, 2  ;;  %v4995_v54 = vpack.i.bf16 %v7476_v14, %v7468_v46 }
 0x37a   : > { %v1927_v17 = vpop.f32.mrf.mxu0  ;;  %v3306_v29 = vsel %vm1631_vm8, %v3274_v19, %v4683_v39  ;;  %v4724_v31 = vunpack.i.h.bf16 %v7312_v28  ;;  %v4723_v3 = vunpack.i.l.bf16 %v7312_v28  ;;  %v2511_v15 = vrot.slane %v7478_v35, 1  ;;  %v5212_v39 = vld [vmem:[#allocation3 + $0x50] sm:$0xff] }
 0x37b   : > { %v1928_v42 = vadd.f32 %v7191_v63, %v1927_v17  ;;  %4941 = vrot.lane.b32.xlu2 %v7472_v11, %s5251_s7  ;;  %4921 = vrot.lane.b32.xlu1 %v4920_v49, %s5253_s9  ;;  %v2509_v19 = vrot.slane %v7476_v14, 1  ;;  %v4699_v35 = vunpack.i.h.bf16 %v7424_v30 }
 0x37c   : > { %4951 = vrot.lane.b32.xlu0 %v4950_v4, %s5257_s13 }
 0x37d   : > { %v2017_v9 = vadd.f32 %v2016_v57, %v1928_v42  ;;  %v7524_v34 = vpop.permute.xlu2 %4751  ;;  %v4712_v48 = vpop.permute.xlu1 %4711  ;;  %v3307_v57 = vsel %vm1631_vm8, %v3275_v52, %v4684_v43  ;;  %v5211_v52 = vld [vmem:[#allocation3 + $0x48] sm:$0xff] }
 0x37e   : > { %v4714_v5 = vunpack.i.h.bf16 %v4712_v48  ;;  %v4713_v13 = vunpack.i.l.bf16 %v4712_v48  ;;  %v7528_v24 = vpop.permute.xlu0 %4756  ;;  %v2021_v22 = vpop.f32.mrf.mxu1  ;;  %v3148_v43 = vsel %vm281_vm0, %v5211_v52, %v4723_v3 }
 0x37f   : > { %v2057_v7 = vmax.f32 %v2017_v9, 0.0 }
 0x380   : > { %v7534_v38 = vld [vmem:[#allocation3 + $0x140] sm:$0xff]  ;;  %v7536_v60 = vld [vmem:[#allocation3 + $0x148] sm:$0x3]  ;;  %v3338_v1 = vsel %vm1664_vm9, %v3306_v29, %v4713_v13  ;;  %v3339_v26 = vsel %vm1664_vm9, %v3307_v57, %v4714_v5  ;;  %v3149_v5 = vsel %vm281_vm0, %v5212_v39, %v4724_v31  ;;  %v7591_v29 = vpop.f32.mrf.mxu3 }
 0x381   : > { %2144 = vst.msk [vmem:[#allocation3 + $0x151] sm:$0xff] %vm281_vm0, %v2057_v7  ;;  %v2894_v44 = vrot.slane %v7534_v38, 2  ;;  %v2896_v58 = vrot.slane %v7536_v60, 2  ;;  %v3370_v56 = vpack.c.bf16 %v3339_v26, %v3338_v1  ;;  %v2508_v26 = vrot.slane %v7468_v46, 1 }
 0x382   : > { %v1929_v10 = vpop.f32.mrf.mxu0 }
 0x383   : > { %v1930_v18 = vadd.f32 %v7191_v63, %v1929_v10  ;;  %4946 = vrot.lane.b32.xlu2 %v7472_v11, %s5254_s10  ;;  %4971 = vrot.lane.b32.xlu1 %v4920_v49, %s5252_s8  ;;  %v2895_v59 = vsel %vm1152_vm2, %v2893_v50, %v2894_v44  ;;  %v2897_v40 = vsel %vm1152_vm2, %v2894_v44, %v2896_v58  ;;  %v2503_v11 = vrot.slane %v7388_v51, 1 }
 0x384   : > { %4956 = vrot.lane.b32.xlu0 %v4950_v4, %s5256_s12  ;;  %v3389_v21 = vpack.c.bf16 %v2897_v40, %v2895_v59  ;;  %v2507_v49 = vsel %vm771_vm3, %v2504_v37, %v2506_v45  ;;  %v7577_v0 = vpack.i.bf16 %v2897_v40, %v2895_v59 }
 0x385   : > { %v2019_v36 = vadd.f32 %v2018_v16, %v1930_v18  ;;  %v7553_v33 = vpop.permute.xlu2 %4826  ;;  %v7555_v25 = vpop.permute.xlu1 %4716  ;;  %v2505_v12 = vsel %vm771_vm3, %v2503_v11, %v2504_v37  ;;  %v2510_v18 = vsel %vm771_vm3, %v2508_v26, %v2509_v19  ;;  %v2512_v37 = vsel %vm771_vm3, %v2509_v19, %v2511_v15 }
 0x386   : > { %v4762_v62 = vpop.permute.xlu0 %4761  ;;  %3536 = vmatmul.bf16.gmra.mxu2 %v3370_v56  ;;  %v7568_v16 = vpack.i.bf16 %v2507_v49, %v2505_v12  ;;  %v2023_v7 = vpop.f32.mrf.mxu1  ;;  %v4743_v12 = vunpack.i.l.bf16 %v7464_v41  ;;  %v4749_v49 = vunpack.i.h.bf16 %v7499_v47 }
 0x387   : > { %v2058_v32 = vmax.f32 %v2019_v36, 0.0  ;;  %4007 = vmatmul.msk.bf16.gmra.mxu3 %vm281_vm0, %v3389_v21  ;;  %v4764_v42 = vunpack.i.h.bf16 %v4762_v62  ;;  %v4763_v28 = vunpack.i.l.bf16 %v4762_v62 }
 0x388   : > { %v7586_v48 = vld [vmem:[#allocation3 + $0x150] sm:$0xff]  ;;  %v7639_v39 = vpop.f32.mrf.mxu3 }
 0x389   : > { %2145 = vst.msk [vmem:[#allocation3 + $0x159] sm:$0xff] %vm281_vm0, %v2058_v32  ;;  %v2898_v14 = vrot.slane %v7586_v48, 2  ;;  %v3181_v44 = vsel %vm1499_vm4, %v3149_v5, %v4764_v42  ;;  %v3180_v58 = vsel %vm1499_vm4, %v3148_v43, %v4763_v28  ;;  %v4744_v32 = vunpack.i.h.bf16 %v7464_v41 }
 0x38a   : > { %v1932_v51 = vpop.f32.mrf.mxu0  ;;  %v3213_v40 = vsel %vm1532_vm5, %v3181_v44, %v4699_v35  ;;  %v4748_v41 = vunpack.i.l.bf16 %v7499_v47  ;;  %v4759_v47 = vunpack.i.h.bf16 %v7528_v24  ;;  %v2514_v44 = vrot.slane %v7534_v38, 1 }
 0x38b   : > { %v1933_v17 = vadd.f32 %v7191_v63, %v1932_v51  ;;  %4976 = vrot.lane.b32.xlu2 %v4975_v55, %s5253_s9  ;;  %4996 = vrot.lane.b32.xlu1 %v4995_v54, %s5257_s13  ;;  %v4719_v51 = vunpack.i.h.bf16 %v7555_v25  ;;  %v3245_v42 = vsel %vm1565_vm7, %v3213_v40, %v4744_v32  ;;  %v5213_v40 = vld [vmem:[#allocation3 + $0x68] sm:$0xff] }
 0x38c   : > { %4961 = vrot.lane.b32.xlu0 %v7568_v16, %s5255_s11 }
 0x38d   : > { %v2022_v8 = vadd.f32 %v2021_v22, %v1933_v17  ;;  %v7579_v4 = vpop.permute.xlu2 %4831  ;;  %v7581_v2 = vpop.permute.xlu1 %4791  ;;  %v4698_v22 = vunpack.i.l.bf16 %v7424_v30 }
 0x38e   : > { %v7584_v9 = vpop.permute.xlu0 %4766  ;;  %v2026_v28 = vpop.f32.mrf.mxu1 }
 0x38f   : > { %v2059_v13 = vmax.f32 %v2022_v8, 0.0  ;;  %v3212_v36 = vsel %vm1532_vm5, %v3180_v58, %v4698_v22  ;;  %v4718_v8 = vunpack.i.l.bf16 %v7555_v25  ;;  %v5020_v25 = vpack.i.bf16 %v7534_v38, %v7530_v61 }
 0x390   : > { %v7594_v57 = vld [vmem:[#allocation3 + $0x158] sm:$0xff]  ;;  %v7596_v1 = vld [vmem:[#allocation3 + $0x160] sm:$0x3]  ;;  %v3244_v15 = vsel %vm1565_vm7, %v3212_v36, %v4743_v12  ;;  %v2516_v58 = vrot.slane %v7536_v60, 1  ;;  %v4734_v22 = vunpack.i.h.bf16 %v7380_v6  ;;  %v4733_v38 = vunpack.i.l.bf16 %v7380_v6 }
 0x391   : > { %2146 = vst.msk [vmem:[#allocation3 + $0x169] sm:$0xff] %vm281_vm0, %v2059_v13  ;;  %v2899_v10 = vrot.slane %v7594_v57, 2  ;;  %v2901_v50 = vrot.slane %v7596_v1, 2  ;;  %v3151_v36 = vsel %vm281_vm0, %v5213_v40, %v4759_v47 }
 0x392   : > { %v1934_v45 = vpop.f32.mrf.mxu0 }
 0x393   : > { %v1935_v46 = vadd.f32 %v7191_v63, %v1934_v45  ;;  %4986 = vrot.lane.b32.xlu2 %v4975_v55, %s5252_s8  ;;  %5001 = vrot.lane.b32.xlu1 %v4995_v54, %s5256_s12  ;;  %v2900_v56 = vsel %vm1152_vm2, %v2898_v14, %v2899_v10  ;;  %v2902_v59 = vsel %vm1152_vm2, %v2899_v10, %v2901_v50  ;;  %v4758_v10 = vunpack.i.l.bf16 %v7528_v24 }
 0x394   : > { %4966 = vrot.lane.b32.xlu0 %v7568_v16, %s5251_s7  ;;  %v3391_v62 = vpack.c.bf16 %v2902_v59, %v2900_v56  ;;  %v7624_v54 = vpack.i.bf16 %v2512_v37, %v2510_v18  ;;  %v7630_v19 = vpack.i.bf16 %v2902_v59, %v2900_v56 }
 0x395   : > { %v2024_v21 = vadd.f32 %v2023_v7, %v1935_v46  ;;  %v7617_v11 = vpop.permute.xlu2 %4836  ;;  %v7619_v30 = vpop.permute.xlu1 %4796 }
 0x396   : > { %v4772_v55 = vpop.permute.xlu0 %4771  ;;  %v4799_v46 = vunpack.i.h.bf16 %v7619_v30  ;;  %v4798_v56 = vunpack.i.l.bf16 %v7619_v30 }
 0x397   : > { %v2060_v31 = vmax.f32 %v2024_v21, 0.0  ;;  %v4774_v3 = vunpack.i.h.bf16 %v4772_v55  ;;  %v4773_v17 = vunpack.i.l.bf16 %v4772_v55  ;;  %4008 = vmatmul.msk.bf16.gmra.mxu3 %vm281_vm0, %v3391_v62  ;;  %v5214_v21 = vld [vmem:[#allocation3 + $0x60] sm:$0xff]  ;;  %v2517_v55 = vsel %vm771_vm3, %v2514_v44, %v2516_v58 }
 0x398   : > { %v7662_v59 = vld [vmem:[#allocation3 + $0x168] sm:$0xff]  ;;  %v3150_v62 = vsel %vm281_vm0, %v5214_v21, %v4758_v10 }
 0x399   : > { %2147 = vst.msk [vmem:[#allocation3 + $0x171] sm:$0xff] %vm281_vm0, %v2060_v31  ;;  %v3276_v52 = vsel %vm1598_vm6, %v3244_v15, %v4773_v17  ;;  %v3277_v43 = vsel %vm1598_vm6, %v3245_v42, %v4774_v3  ;;  %v3183_v31 = vsel %vm1499_vm4, %v3151_v36, %v4799_v46  ;;  %v5215_v36 = vld [vmem:[#allocation3 + $0x80] sm:$0xff] }
 0x39a   : > { %v1937_v5 = vpop.f32.mrf.mxu0  ;;  %v3308_v13 = vsel %vm1631_vm8, %v3276_v52, %v4718_v8  ;;  %v3309_v7 = vsel %vm1631_vm8, %v3277_v43, %v4719_v51  ;;  %v3182_v51 = vsel %vm1499_vm4, %v3150_v62, %v4798_v56  ;;  %v2028_v8 = vpop.f32.mrf.mxu1  ;;  %v4754_v43 = vunpack.i.h.bf16 %v7524_v34 }
 0x39b   : > { %v1938_v35 = vadd.f32 %v7191_v63, %v1937_v5  ;;  %5021 = vrot.lane.b32.xlu2 %v5020_v25, %s5257_s13  ;;  %5006 = vrot.lane.b32.xlu1 %v7624_v54, %s5255_s11  ;;  %v3340_v26 = vsel %vm1664_vm9, %v3308_v13, %v4748_v41  ;;  %v3341_v14 = vsel %vm1664_vm9, %v3309_v7, %v4749_v49  ;;  %v2903_v49 = vrot.slane %v7662_v59, 2  ;;  %v7686_v52 = vpop.f32.mrf.mxu3 }
 0x39c   : > { %4981 = vrot.lane.b32.xlu0 %v7568_v16, %s5254_s10  ;;  %v3372_v50 = vpack.c.bf16 %v3341_v14, %v3340_v26  ;;  %v2513_v16 = vrot.slane %v7530_v61, 1  ;;  %v4753_v5 = vunpack.i.l.bf16 %v7524_v34  ;;  %v4834_v13 = vunpack.i.h.bf16 %v7579_v4 }
 0x39d   : > { %v2027_v45 = vadd.f32 %v2026_v28, %v1938_v35  ;;  %v7655_v18 = vpop.permute.xlu2 %4841  ;;  %v7657_v37 = vpop.permute.xlu1 %4801  ;;  %v4793_v7 = vunpack.i.l.bf16 %v7581_v2  ;;  %v3214_v10 = vsel %vm1532_vm5, %v3182_v51, %v4733_v38  ;;  %v3215_v34 = vsel %vm1532_vm5, %v3183_v31, %v4734_v22 }
 0x39e   : > { %v4777_v24 = vpop.permute.xlu0 %4776  ;;  %3541 = vmatmul.bf16.gmra.mxu2 %v3372_v50  ;;  %v2515_v30 = vsel %vm771_vm3, %v2513_v16, %v2514_v44  ;;  %v4833_v38 = vunpack.i.l.bf16 %v7579_v4 }
 0x39f   : > { %v2061_v60 = vmax.f32 %v2027_v45, 0.0  ;;  %v4779_v3 = vunpack.i.h.bf16 %v4777_v24  ;;  %v4778_v15 = vunpack.i.l.bf16 %v4777_v24 }
 0x3a0   : > { %v7668_v32 = vld [vmem:[#allocation3 + $0x170] sm:$0xff]  ;;  %v7670_v12 = vld [vmem:[#allocation3 + $0x178] sm:$0x3] }
 0x3a1   : > { %2148 = vst.msk [vmem:[#allocation3 + $0x181] sm:$0xff] %vm281_vm0, %v2061_v60  ;;  %v2904_v61 = vrot.slane %v7668_v32, 2  ;;  %v2906_v6 = vrot.slane %v7670_v12, 2  ;;  %v3246_v45 = vsel %vm1565_vm7, %v3214_v10, %v4778_v15  ;;  %v3247_v46 = vsel %vm1565_vm7, %v3215_v34, %v4779_v3 }
 0x3a2   : > { %v1939_v17 = vpop.f32.mrf.mxu0  ;;  %v4768_v15 = vunpack.i.l.bf16 %v7584_v9  ;;  %v2519_v34 = vrot.slane %v7594_v57, 1 }
 0x3a3   : > { %v1940_v42 = vadd.f32 %v7191_v63, %v1939_v17  ;;  %5026 = vrot.lane.b32.xlu2 %v5020_v25, %s5256_s12  ;;  %5011 = vrot.lane.b32.xlu1 %v7624_v54, %s5251_s7  ;;  %v2905_v28 = vsel %vm1152_vm2, %v2903_v49, %v2904_v61  ;;  %v2907_v41 = vsel %vm1152_vm2, %v2904_v61, %v2906_v6  ;;  %v4794_v25 = vunpack.i.h.bf16 %v7581_v2 }
 0x3a4   : > { %4991 = vrot.lane.b32.xlu0 %v7440_v53, %s5253_s9  ;;  %v7693_v63 = vpack.i.bf16 %v2517_v55, %v2515_v30  ;;  %v3393_v14 = vpack.c.bf16 %v2907_v41, %v2905_v28  ;;  %v7705_v40 = vpack.i.bf16 %v2907_v41, %v2905_v28  ;;  %v5216_v30 = vld [vmem:[#allocation3 + $0x78] sm:$0xff]  ;;  %v5040_v61 = vpack.i.bf16 %v7594_v57, %v7586_v48 }
 0x3a5   : > { %v2029_v47 = vadd.f32 %v2028_v8, %v1940_v42  ;;  %v7697_v35 = vpop.permute.xlu2 %4846  ;;  %v4807_v26 = vpop.permute.xlu1 %4806  ;;  %v3153_v22 = vsel %vm281_vm0, %v5215_v36, %v4794_v25  ;;  %v3152_v49 = vsel %vm281_vm0, %v5216_v30, %v4793_v7  ;;  %v4769_v8 = vunpack.i.h.bf16 %v7584_v9 }
 0x3a6   : > { %v4809_v50 = vunpack.i.h.bf16 %v4807_v26  ;;  %v4808_v44 = vunpack.i.l.bf16 %v4807_v26  ;;  %v4782_v58 = vpop.permute.xlu0 %4781  ;;  %v3184_v51 = vsel %vm1499_vm4, %v3152_v49, %v4833_v38  ;;  %v3185_v31 = vsel %vm1499_vm4, %v3153_v22, %v4834_v13 }
 0x3a7   : > { %v2062_v56 = vmax.f32 %v2029_v47, 0.0  ;;  %v4784_v24 = vunpack.i.h.bf16 %v4782_v58  ;;  %v4783_v60 = vunpack.i.l.bf16 %v4782_v58  ;;  %4009 = vmatmul.msk.bf16.gmra.mxu3 %vm281_vm0, %v3393_v14  ;;  %v3216_v25 = vsel %vm1532_vm5, %v3184_v51, %v4768_v15 }
 0x3a8   : > { %v3278_v2 = vsel %vm1598_vm6, %v3246_v45, %v4808_v44  ;;  %v3279_v16 = vsel %vm1598_vm6, %v3247_v46, %v4809_v50  ;;  %v2521_v50 = vrot.slane %v7596_v1, 1  ;;  %v4844_v44 = vunpack.i.h.bf16 %v7655_v18 }
 0x3a9   : > { %2149 = vst.msk [vmem:[#allocation3 + $0x189] sm:$0xff] %vm281_vm0, %v2062_v56  ;;  %v3310_v21 = vsel %vm1631_vm8, %v3278_v2, %v4753_v5  ;;  %v3311_v62 = vsel %vm1631_vm8, %v3279_v16, %v4754_v43  ;;  %v7729_v43 = vld [vmem:[#allocation3 + $0x180] sm:$0xff]  ;;  %v3217_v5 = vsel %vm1532_vm5, %v3185_v31, %v4769_v8  ;;  %v4843_v58 = vunpack.i.l.bf16 %v7655_v18 }
 0x3aa   : > { %v3342_v6 = vsel %vm1664_vm9, %v3310_v21, %v4783_v60  ;;  %v3343_v4 = vsel %vm1664_vm9, %v3311_v62, %v4784_v24  ;;  %v3004_v47 = vrot.slane %v7729_v43, 2  ;;  %v2518_v56 = vrot.slane %v7586_v48, 1 }
 0x3ab   : > { %5031 = vrot.lane.b32.xlu2 %v7693_v63, %s5255_s11  ;;  %5016 = vrot.lane.b32.xlu1 %v7624_v54, %s5254_s10  ;;  %v3374_v55 = vpack.c.bf16 %v3343_v4, %v3342_v6  ;;  %v7731_v54 = vpop.f32.mrf.mxu3  ;;  %v2522_v62 = vsel %vm771_vm3, %v2519_v34, %v2521_v50  ;;  %v5090_v8 = vpack.i.bf16 %v7668_v32, %v7662_v59 }
 0x3ac   : > { %5041 = vrot.lane.b32.xlu0 %v5040_v61, %s5257_s13  ;;  %v2520_v21 = vsel %vm771_vm3, %v2518_v56, %v2519_v34 }
 0x3ad   : > { %v7725_v3 = vpop.permute.xlu2 %4851  ;;  %v4812_v17 = vpop.permute.xlu1 %4811  ;;  %v7777_v4 = vpack.i.bf16 %v2522_v62, %v2520_v21 }
 0x3ae   : > { %v4814_v42 = vunpack.i.h.bf16 %v4812_v17  ;;  %v4813_v28 = vunpack.i.l.bf16 %v4812_v17  ;;  %v4787_v41 = vpop.permute.xlu0 %4786  ;;  %3546 = vmatmul.bf16.gmra.mxu2 %v3374_v55 }
 0x3af   : > { %v4789_v16 = vunpack.i.h.bf16 %v4787_v41  ;;  %v4788_v60 = vunpack.i.l.bf16 %v4787_v41 }
 0x3b0   : > { %v7735_v13 = vld [vmem:[#allocation3 + $0x188] sm:$0xff]  ;;  %v7737_v7 = vld [vmem:[#allocation3 + $0x190] sm:$0x3]  ;;  %v3248_v14 = vsel %vm1565_vm7, %v3216_v25, %v4813_v28  ;;  %v3249_v10 = vsel %vm1565_vm7, %v3217_v5, %v4814_v42  ;;  %v2524_v5 = vrot.slane %v7668_v32, 1  ;;  %v2526_v25 = vrot.slane %v7670_v12, 1 }
 0x3b1   : > { %v3005_v9 = vrot.slane %v7735_v13, 2  ;;  %v3007_v26 = vrot.slane %v7737_v7, 2  ;;  %v3280_v24 = vsel %vm1598_vm6, %v3248_v14, %v4843_v58  ;;  %v3281_v2 = vsel %vm1598_vm6, %v3249_v10, %v4844_v44  ;;  %v5219_v14 = vld [vmem:[#allocation3 + $0x98] sm:$0xff]  ;;  %v5220_v10 = vld [vmem:[#allocation3 + $0x90] sm:$0xff] }
 0x3b2   : > { %v3312_v30 = vsel %vm1631_vm8, %v3280_v24, %v4788_v60  ;;  %v3313_v49 = vsel %vm1631_vm8, %v3281_v2, %v4789_v16  ;;  %v2523_v32 = vrot.slane %v7662_v59, 1  ;;  %v4804_v58 = vunpack.i.h.bf16 %v7657_v37  ;;  %v7824_v59 = vld [vmem:[#allocation3 + $0x1a8] sm:$0x3] }
 0x3b3   : > { %5036 = vrot.lane.b32.xlu2 %v7693_v63, %s5251_s7  ;;  %5061 = vrot.lane.b32.xlu1 %v7521_v20, %s5253_s9  ;;  %v7753_v45 = vsel %vm1152_vm2, %v3004_v47, %v3005_v9  ;;  %v7756_v46 = vsel %vm1152_vm2, %v3005_v9, %v3007_v26  ;;  %v7802_v47 = vld [vmem:[#allocation3 + $0x1a0] sm:$0xff]  ;;  %v7805_v26 = vld [vmem:[#allocation3 + $0x198] sm:$0xff]  ;;  %v2527_v56 = vsel %vm771_vm3, %v2524_v5, %v2526_v25  ;;  %v4849_v60 = vunpack.i.h.bf16 %v7697_v35 }
 0x3b4   : > { %5046 = vrot.lane.b32.xlu0 %v5040_v61, %s5256_s12  ;;  %v3395_v18 = vpack.c.bf16 %v7756_v46, %v7753_v45  ;;  %v7772_v61 = vpop.f32.mrf.mxu3  ;;  %v2728_v9 = vrot.slane %v7802_v47, 1 }
 0x3b5   : > { %v7759_v57 = vpop.permute.xlu2 %4881  ;;  %v4817_v1 = vpop.permute.xlu1 %4816 }
 0x3b6   : > { %v4819_v38 = vunpack.i.h.bf16 %v4817_v1  ;;  %v4818_v36 = vunpack.i.l.bf16 %v4817_v1  ;;  %v7766_v22 = vpop.permute.xlu0 %4856  ;;  %v4803_v1 = vunpack.i.l.bf16 %v7657_v37 }
 0x3b7   : > { %4010 = vmatmul.msk.bf16.gmra.mxu3 %vm281_vm0, %v3395_v18  ;;  %v2525_v18 = vsel %vm771_vm3, %v2523_v32, %v2524_v5 }
 0x3b8   : > { %v3344_v48 = vsel %vm1664_vm9, %v3312_v30, %v4818_v36  ;;  %v3345_v6 = vsel %vm1664_vm9, %v3313_v49, %v4819_v38  ;;  %v4848_v38 = vunpack.i.l.bf16 %v7697_v35  ;;  %v4854_v36 = vunpack.i.h.bf16 %v7725_v3 }
 0x3b9   : > { %v3376_v55 = vpack.c.bf16 %v3345_v6, %v3344_v48  ;;  %v7835_v62 = vpack.i.bf16 %v2527_v56, %v2525_v18  ;;  %v4853_v35 = vunpack.i.l.bf16 %v7725_v3  ;;  %v5222_v56 = vld [vmem:[#allocation3 + $0xa8] sm:$0xff] }
 0x3bb   : > { %5066 = vrot.lane.b32.xlu2 %v7693_v63, %s5254_s10  ;;  %5076 = vrot.lane.b32.xlu1 %v7521_v20, %s5252_s8  ;;  %v4829_v20 = vunpack.i.h.bf16 %v7553_v33  ;;  %v4828_v63 = vunpack.i.l.bf16 %v7553_v33 }
 0x3bc   : > { %5051 = vrot.lane.b32.xlu0 %v7777_v4, %s5255_s11 }
 0x3bd   : > { %v4822_v51 = vpop.permute.xlu1 %4821  ;;  %v7785_v17 = vpop.permute.xlu2 %4926  ;;  %v3155_v33 = vsel %vm281_vm0, %v5219_v14, %v4829_v20  ;;  %v3154_v34 = vsel %vm281_vm0, %v5220_v10, %v4828_v63  ;;  %v4858_v10 = vunpack.i.l.bf16 %v7766_v22 }
 0x3be   : > { %v4862_v31 = vpop.permute.xlu0 %4861  ;;  %3551 = vmatmul.bf16.gmra.mxu2 %v3376_v55  ;;  %v4824_v30 = vunpack.i.h.bf16 %v4822_v51  ;;  %v4823_v55 = vunpack.i.l.bf16 %v4822_v51 }
 0x3bf   : > { %v4864_v42 = vunpack.i.h.bf16 %v4862_v31  ;;  %v4863_v28 = vunpack.i.l.bf16 %v4862_v31 }
 0x3c1   : > { %v3187_v12 = vsel %vm1499_vm4, %v3155_v33, %v4864_v42  ;;  %v3186_v44 = vsel %vm1499_vm4, %v3154_v34, %v4863_v28  ;;  %v5125_v28 = vpack.i.bf16 %v7735_v13, %v7729_v43  ;;  %v4859_v33 = vunpack.i.h.bf16 %v7766_v22 }
 0x3c2   : > { %v3219_v2 = vsel %vm1532_vm5, %v3187_v12, %v4804_v58  ;;  %v3218_v37 = vsel %vm1532_vm5, %v3186_v44, %v4803_v1  ;;  %v2626_v44 = vrot.slane %v7735_v13, 1  ;;  %v2628_v58 = vrot.slane %v7737_v7, 1  ;;  %v5221_v1 = vld [vmem:[#allocation3 + $0xb0] sm:$0xff] }
 0x3c3   : > { %5081 = vrot.lane.b32.xlu2 %v7577_v0, %s5253_s9  ;;  %5091 = vrot.lane.b32.xlu1 %v5090_v8, %s5257_s13  ;;  %v3250_v31 = vsel %vm1565_vm7, %v3218_v37, %v4848_v38  ;;  %v3157_v18 = vsel %vm281_vm0, %v5221_v1, %v4859_v33  ;;  %v4839_v13 = vunpack.i.h.bf16 %v7617_v11  ;;  %v4838_v7 = vunpack.i.l.bf16 %v7617_v11 }
 0x3c4   : > { %5056 = vrot.lane.b32.xlu0 %v7440_v53, %s5252_s8  ;;  %v2727_v53 = vrot.slane %v7805_v26, 1 }
 0x3c5   : > { %v7796_v15 = vpop.permute.xlu1 %4896  ;;  %v7810_v50 = vpop.permute.xlu2 %4931 }
 0x3c6   : > { %v7798_v41 = vpop.permute.xlu0 %4866  ;;  %v7827_v24 = vsel %vm771_vm3, %v2727_v53, %v2728_v9  ;;  %v4934_v33 = vunpack.i.h.bf16 %v7810_v50 }
 0x3cb   : > { %5111 = vrot.lane.b32.xlu2 %v7577_v0, %s5252_s8  ;;  %5096 = vrot.lane.b32.xlu1 %v5090_v8, %s5256_s12  ;;  %v2730_v0 = vrot.slane %v7824_v59, 1  ;;  %v3251_v8 = vsel %vm1565_vm7, %v3219_v2, %v4849_v60  ;;  %v2625_v2 = vrot.slane %v7729_v43, 1  ;;  %v4884_v43 = vunpack.i.h.bf16 %v7759_v57 }
 0x3cc   : > { %5071 = vrot.lane.b32.xlu0 %v7777_v4, %s5251_s7 }
 0x3cd   : > { %v4902_v16 = vpop.permute.xlu1 %4901  ;;  %v7838_v6 = vsel %vm771_vm3, %v2728_v9, %v2730_v0  ;;  %v7851_v25 = vpop.permute.xlu2 %4936 }
 0x3ce   : > { %v4872_v21 = vpop.permute.xlu0 %4871  ;;  %v5155_v20 = vpack.i.bf16 %v7838_v6, %v7827_v24  ;;  %v4904_v32 = vunpack.i.h.bf16 %v4902_v16  ;;  %v4903_v12 = vunpack.i.l.bf16 %v4902_v16  ;;  %v4883_v16 = vunpack.i.l.bf16 %v7759_v57 }
 0x3cf   : > { %v4874_v49 = vunpack.i.h.bf16 %v4872_v21  ;;  %v4873_v48 = vunpack.i.l.bf16 %v4872_v21  ;;  %v2627_v21 = vsel %vm771_vm3, %v2625_v2, %v2626_v44  ;;  %v5165_v24 = vpack.i.bf16 %v7756_v46, %v7753_v45 }
 0x3d0   : > { %v3189_v22 = vsel %vm1499_vm4, %v3157_v18, %v4904_v32  ;;  %v5223_v32 = vld [vmem:[#allocation3 + $0xc8] sm:$0xff]  ;;  %v4929_v45 = vunpack.i.h.bf16 %v7785_v17  ;;  %v4928_v46 = vunpack.i.l.bf16 %v7785_v17 }
 0x3d1   : > { %v3282_v63 = vsel %vm1598_vm6, %v3250_v31, %v4873_v48  ;;  %v3283_v42 = vsel %vm1598_vm6, %v3251_v8, %v4874_v49  ;;  %v3221_v48 = vsel %vm1532_vm5, %v3189_v22, %v4839_v13  ;;  %v4899_v8 = vunpack.i.h.bf16 %v7796_v15 }
 0x3d2   : > { %v3314_v5 = vsel %vm1631_vm8, %v3282_v63, %v4823_v55  ;;  %v3315_v51 = vsel %vm1631_vm8, %v3283_v42, %v4824_v30  ;;  %v2629_v30 = vsel %vm771_vm3, %v2626_v44, %v2628_v58  ;;  %v5224_v44 = vld [vmem:[#allocation3 + $0xc0] sm:$0xff]  ;;  %v4869_v22 = vunpack.i.h.bf16 %v7798_v41 }
 0x3d3   : > { %5126 = vrot.lane.b32.xlu2 %v5125_v28, %s5257_s13  ;;  %5101 = vrot.lane.b32.xlu1 %v7835_v62, %s5255_s11  ;;  %v3346_v3 = vsel %vm1664_vm9, %v3314_v5, %v4853_v35  ;;  %v3347_v9 = vsel %vm1664_vm9, %v3315_v51, %v4854_v36  ;;  %v4898_v35 = vunpack.i.l.bf16 %v7796_v15 }
 0x3d4   : > { %5086 = vrot.lane.b32.xlu0 %v7777_v4, %s5254_s10  ;;  %v3378_v53 = vpack.c.bf16 %v3347_v9, %v3346_v3  ;;  %v3156_v4 = vsel %vm281_vm0, %v5222_v56, %v4858_v10  ;;  %v5135_v3 = vpack.i.bf16 %v2629_v30, %v2627_v21  ;;  %v4933_v10 = vunpack.i.l.bf16 %v7810_v50 }
 0x3d5   : > { %v7860_v14 = vpop.permute.xlu1 %4906  ;;  %v3188_v37 = vsel %vm1499_vm4, %v3156_v4, %v4903_v12  ;;  %v4942_v38 = vpop.permute.xlu2 %4941  ;;  %v3159_v12 = vsel %vm281_vm0, %v5223_v32, %v4899_v8  ;;  %v3158_v58 = vsel %vm281_vm0, %v5224_v44, %v4898_v35 }
 0x3d6   : > { %v4877_v34 = vpop.permute.xlu0 %4876  ;;  %3556 = vmatmul.bf16.gmra.mxu2 %v3378_v53  ;;  %v3220_v49 = vsel %vm1532_vm5, %v3188_v37, %v4838_v7  ;;  %v3190_v18 = vsel %vm1499_vm4, %v3158_v58, %v4933_v10  ;;  %v3191_v56 = vsel %vm1499_vm4, %v3159_v12, %v4934_v33  ;;  %v5225_v10 = vld [vmem:[#allocation3 + $0xe0] sm:$0xff]  ;;  %v4909_v17 = vunpack.i.h.bf16 %v7860_v14 }
 0x3d7   : > { %v4879_v0 = vunpack.i.h.bf16 %v4877_v34  ;;  %v4878_v60 = vunpack.i.l.bf16 %v4877_v34 }
 0x3d9   : > { %v3252_v63 = vsel %vm1565_vm7, %v3220_v49, %v4878_v60  ;;  %v3253_v57 = vsel %vm1565_vm7, %v3221_v48, %v4879_v0  ;;  %v4868_v0 = vunpack.i.l.bf16 %v7798_v41 }
 0x3db   : > { %5131 = vrot.lane.b32.xlu2 %v5125_v28, %s5256_s12  ;;  %5106 = vrot.lane.b32.xlu1 %v7835_v62, %s5251_s7  ;;  %v3222_v13 = vsel %vm1532_vm5, %v3190_v18, %v4868_v0 }
 0x3dc   : > { %5116 = vrot.lane.b32.xlu0 %v7630_v19, %s5253_s9 }
 0x3dd   : > { %v4912_v36 = vpop.permute.xlu1 %4911  ;;  %v7907_v60 = vpop.permute.xlu2 %4946 }
 0x3de   : > { %v4914_v55 = vunpack.i.h.bf16 %v4912_v36  ;;  %v4913_v31 = vunpack.i.l.bf16 %v4912_v36  ;;  %v4887_v11 = vpop.permute.xlu0 %4886  ;;  %v4943_v36 = vunpack.i.l.bf16 %v4942_v38 }
 0x3df   : > { %v4889_v5 = vunpack.i.h.bf16 %v4887_v11  ;;  %v4888_v51 = vunpack.i.l.bf16 %v4887_v11 }
 0x3e0   : > { %v3284_v42 = vsel %vm1598_vm6, %v3252_v63, %v4913_v31  ;;  %v3285_v28 = vsel %vm1598_vm6, %v3253_v57, %v4914_v55 }
 0x3e1   : > { %v3316_v9 = vsel %vm1631_vm8, %v3284_v42, %v4883_v16  ;;  %v3317_v53 = vsel %vm1631_vm8, %v3285_v28, %v4884_v43  ;;  %v4944_v16 = vunpack.i.h.bf16 %v4942_v38 }
 0x3e2   : > { %v3348_v15 = vsel %vm1664_vm9, %v3316_v9, %v4888_v51  ;;  %v3349_v34 = vsel %vm1664_vm9, %v3317_v53, %v4889_v5 }
 0x3e3   : > { %5136 = vrot.lane.b32.xlu2 %v5135_v3, %s5251_s7  ;;  %5121 = vrot.lane.b32.xlu1 %v7835_v62, %s5254_s10  ;;  %v3380_v1 = vpack.c.bf16 %v3349_v34, %v3348_v15  ;;  %v3223_v62 = vsel %vm1532_vm5, %v3191_v56, %v4869_v22  ;;  %v3161_v15 = vsel %vm281_vm0, %v5225_v10, %v4929_v45  ;;  %v5226_v34 = vld [vmem:[#allocation3 + $0xd8] sm:$0xff] }
 0x3e4   : > { %5141 = vrot.lane.b32.xlu0 %v7630_v19, %s5252_s8 }
 0x3e5   : > { %v4917_v50 = vpop.permute.xlu1 %4916  ;;  %v4977_v35 = vpop.permute.xlu2 %4976 }
 0x3e6   : > { %v4919_v4 = vunpack.i.h.bf16 %v4917_v50  ;;  %v4918_v2 = vunpack.i.l.bf16 %v4917_v50  ;;  %v4892_v37 = vpop.permute.xlu0 %4891  ;;  %3561 = vmatmul.bf16.gmra.mxu2 %v3380_v1  ;;  %v4908_v1 = vunpack.i.l.bf16 %v7860_v14 }
 0x3e7   : > { %v4894_v49 = vunpack.i.h.bf16 %v4892_v37  ;;  %v4893_v48 = vunpack.i.l.bf16 %v4892_v37  ;;  %v4948_v37 = vunpack.i.l.bf16 %v7907_v60 }
 0x3e8   : > { %v3254_v7 = vsel %vm1565_vm7, %v3222_v13, %v4918_v2  ;;  %v3255_v43 = vsel %vm1565_vm7, %v3223_v62, %v4919_v4  ;;  %v4949_v2 = vunpack.i.h.bf16 %v7907_v60 }
 0x3e9   : > { %v7911_v19 = vpop.f32.mrf.mxu2  ;;  %v3286_v21 = vsel %vm1598_vm6, %v3254_v7, %v4943_v36  ;;  %v3287_v30 = vsel %vm1598_vm6, %v3255_v43, %v4944_v16  ;;  %v4979_v43 = vunpack.i.h.bf16 %v4977_v35  ;;  %v4978_v16 = vunpack.i.l.bf16 %v4977_v35 }
 0x3ea   : > { %v3318_v11 = vsel %vm1631_vm8, %v3286_v21, %v4893_v48  ;;  %v3319_v8 = vsel %vm1631_vm8, %v3287_v30, %v4894_v49 }
 0x3eb   : > { %5151 = vrot.lane.b32.xlu2 %v5135_v3, %s5254_s10  ;;  %5146 = vrot.lane.b32.xlu1 %v7705_v40, %s5253_s9 }
 0x3ec   : > { %5156 = vrot.lane.b32.xlu0 %v5155_v20, %s5251_s7 }
 0x3ed   : > { %v4922_v41 = vpop.permute.xlu1 %4921  ;;  %v7938_v3 = vpop.permute.xlu2 %4986 }
 0x3ee   : > { %v4924_v55 = vunpack.i.h.bf16 %v4922_v41  ;;  %v4923_v31 = vunpack.i.l.bf16 %v4922_v41  ;;  %v7924_v38 = vpop.permute.xlu0 %4951 }
 0x3ef   : > { %v4954_v35 = vunpack.i.h.bf16 %v7924_v38 }
 0x3f0   : > { %v3350_v6 = vsel %vm1664_vm9, %v3318_v11, %v4923_v31  ;;  %v3351_v20 = vsel %vm1664_vm9, %v3319_v8, %v4924_v55  ;;  %v3631_v8 = vpop.f32.mrf.mxu3 }
 0x3f1   : > { %v7928_v63 = vpop.f32.mrf.mxu2  ;;  %v3382_v57 = vpack.c.bf16 %v3351_v20, %v3350_v6 }
 0x3f3   : > { %5166 = vrot.lane.b32.xlu2 %v5165_v24, %s5253_s9  ;;  %5161 = vrot.lane.b32.xlu1 %v7705_v40, %s5252_s8  ;;  %v4953_v24 = vunpack.i.l.bf16 %v7924_v38 }
 0x3f5   : > { %v4972_v42 = vpop.permute.xlu1 %4971  ;;  %v7955_v50 = vpop.permute.xlu2 %5021 }
 0x3f6   : > { %v4957_v28 = vpop.permute.xlu0 %4956  ;;  %3566 = vmatmul.bf16.gmra.mxu2 %v3382_v57  ;;  %v4974_v62 = vunpack.i.h.bf16 %v4972_v42  ;;  %v4973_v13 = vunpack.i.l.bf16 %v4972_v42 }
 0x3f7   : > { %v4959_v53 = vunpack.i.h.bf16 %v4957_v28  ;;  %v4958_v33 = vunpack.i.l.bf16 %v4957_v28  ;;  %v5227_v28 = vld [vmem:[#allocation3 + $0xf8] sm:$0xff] }
 0x3f9   : > { %v3532_v5 = vpop.f32.mrf.mxu2  ;;  %v3193_v12 = vsel %vm1499_vm4, %v3161_v15, %v4959_v53  ;;  %v4939_v15 = vunpack.i.h.bf16 %v7851_v25 }
 0x3fa   : > { %v3622_v51 = vadd.f32 %v7639_v39, %v3532_v5  ;;  %v3160_v39 = vsel %vm281_vm0, %v5226_v34, %v4928_v46  ;;  %v3225_v18 = vsel %vm1532_vm5, %v3193_v12, %v4909_v17  ;;  %v3163_v5 = vsel %vm281_vm0, %v5227_v28, %v4954_v35  ;;  %v5230_v28 = vld [vmem:[#allocation3 + $0x108] sm:$0xff] }
 0x3fb   : > { %v3192_v44 = vsel %vm1499_vm4, %v3160_v39, %v4958_v33  ;;  %v3257_v7 = vsel %vm1565_vm7, %v3225_v18, %v4949_v2  ;;  %v4938_v34 = vunpack.i.l.bf16 %v7851_v25  ;;  %v4989_v17 = vunpack.i.h.bf16 %v7938_v3 }
 0x3fc   : > { %3698 = vrot.lane.b32.xlu0 %v3622_v51, %s5257_s13  ;;  %v3224_v56 = vsel %vm1532_vm5, %v3192_v44, %v4908_v1  ;;  %v5228_v51 = vld [vmem:[#allocation3 + $0xf0] sm:$0xff]  ;;  %v4988_v1 = vunpack.i.l.bf16 %v7938_v3 }
 0x3fd   : > { %v7943_v9 = vpop.permute.xlu1 %4996  ;;  %v3256_v14 = vsel %vm1565_vm7, %v3224_v56, %v4948_v37  ;;  %v3162_v45 = vsel %vm281_vm0, %v5228_v51, %v4953_v24 }
 0x3fe   : > { %v7945_v40 = vpop.permute.xlu0 %4961 }
 0x401   : > { %v3534_v32 = vpop.f32.mrf.mxu2 }
 0x402   : > { %v3624_v58 = vadd.f32 %v7686_v52, %v3534_v32 }
 0x404   : > { %3700 = vrot.lane.b32.xlu1 %v3624_v58, %s5257_s13 }
 0x405   : > { %v5002_v4 = vpop.permute.xlu1 %5001 }
 0x406   : > { %v4967_v22 = vpop.permute.xlu0 %4966  ;;  %v5004_v20 = vunpack.i.h.bf16 %v5002_v4  ;;  %v5003_v57 = vunpack.i.l.bf16 %v5002_v4  ;;  %v3633_v4 = vpop.f32.mrf.mxu3 }
 0x407   : > { %v4969_v0 = vunpack.i.h.bf16 %v4967_v22  ;;  %v4968_v52 = vunpack.i.l.bf16 %v4967_v22 }
 0x408   : > { %v3194_v53 = vsel %vm1499_vm4, %v3162_v45, %v5003_v57  ;;  %v3195_v33 = vsel %vm1499_vm4, %v3163_v5, %v5004_v20  ;;  %v5229_v57 = vld [vmem:[#allocation3 + $0x110] sm:$0xff] }
 0x409   : > { %v3288_v36 = vsel %vm1598_vm6, %v3256_v14, %v4968_v52  ;;  %v3289_v41 = vsel %vm1598_vm6, %v3257_v7, %v4969_v0  ;;  %v3537_v21 = vpop.f32.mrf.mxu2  ;;  %v3226_v32 = vsel %vm1532_vm5, %v3194_v53, %v4938_v34  ;;  %v3227_v12 = vsel %vm1532_vm5, %v3195_v33, %v4939_v15 }
 0x40a   : > { %v3627_v30 = vadd.f32 %v7731_v54, %v3537_v21  ;;  %v3320_v60 = vsel %vm1631_vm8, %v3288_v36, %v4973_v13  ;;  %v3321_v49 = vsel %vm1631_vm8, %v3289_v41, %v4974_v62  ;;  %v7975_v54 = vpop.permute.xlu2 %5026 }
 0x40b   : > { %v3352_v48 = vsel %vm1664_vm9, %v3320_v60, %v4978_v16  ;;  %v3353_v55 = vsel %vm1664_vm9, %v3321_v49, %v4979_v43  ;;  %v5029_v24 = vunpack.i.h.bf16 %v7975_v54 }
 0x40c   : > { %3706 = vrot.lane.b32.xlu2 %v3627_v30, %s5256_s12  ;;  %v3384_v31 = vpack.c.bf16 %v3353_v55, %v3352_v48  ;;  %v4999_v48 = vunpack.i.h.bf16 %v7943_v9  ;;  %v4998_v55 = vunpack.i.l.bf16 %v7943_v9 }
 0x40d   : > { %v7971_v11 = vpop.permute.xlu1 %5006 }
 0x40e   : > { %v4982_v6 = vpop.permute.xlu0 %4981  ;;  %3571 = vmatmul.bf16.gmra.mxu2 %v3384_v31  ;;  %v3636_v36 = vpop.f32.mrf.mxu3  ;;  %v3164_v5 = vsel %vm281_vm0, %v5230_v28, %v4998_v55  ;;  %v5009_v55 = vunpack.i.h.bf16 %v7971_v11 }
 0x40f   : > { %v4984_v38 = vunpack.i.h.bf16 %v4982_v6  ;;  %v4983_v10 = vunpack.i.l.bf16 %v4982_v6  ;;  %v5028_v6 = vunpack.i.l.bf16 %v7975_v54  ;;  %v4964_v54 = vunpack.i.h.bf16 %v7945_v40 }
 0x411   : > { %v3539_v42 = vpop.f32.mrf.mxu2  ;;  %v3258_v18 = vsel %vm1565_vm7, %v3226_v32, %v4983_v10  ;;  %v3259_v56 = vsel %vm1565_vm7, %v3227_v12, %v4984_v38  ;;  %v3196_v9 = vsel %vm1499_vm4, %v3164_v5, %v5028_v6  ;;  %v4963_v38 = vunpack.i.l.bf16 %v7945_v40 }
 0x412   : > { %v3629_v46 = vadd.f32 %v7772_v61, %v3539_v42  ;;  %v7993_v0 = vpop.permute.xlu2 %5031  ;;  %v3165_v42 = vsel %vm281_vm0, %v5229_v57, %v4999_v48 }
 0x413   : > { %v3197_v45 = vsel %vm1499_vm4, %v3165_v42, %v5029_v24  ;;  %v3228_v34 = vsel %vm1532_vm5, %v3196_v9, %v4963_v38 }
 0x414   : > { %3708 = vrot.lane.b32.xlu0 %v3629_v46, %s5256_s12  ;;  %v3229_v15 = vsel %vm1532_vm5, %v3197_v45, %v4964_v54 }
 0x415   : > { %v5012_v39 = vpop.permute.xlu1 %5011 }
 0x416   : > { %v5014_v44 = vunpack.i.h.bf16 %v5012_v39  ;;  %v5013_v58 = vunpack.i.l.bf16 %v5012_v39  ;;  %v4992_v61 = vpop.permute.xlu0 %4991  ;;  %v3638_v35 = vpop.f32.mrf.mxu3  ;;  %v5024_v39 = vunpack.i.h.bf16 %v7955_v50 }
 0x417   : > { %v4994_v37 = vunpack.i.h.bf16 %v4992_v61  ;;  %v4993_v22 = vunpack.i.l.bf16 %v4992_v61  ;;  %v5023_v61 = vunpack.i.l.bf16 %v7955_v50 }
 0x418   : > { %v3290_v25 = vsel %vm1598_vm6, %v3258_v18, %v5013_v58  ;;  %v3291_v2 = vsel %vm1598_vm6, %v3259_v56, %v5014_v44 }
 0x419   : > { %v3322_v52 = vsel %vm1631_vm8, %v3290_v25, %v4988_v1  ;;  %v3323_v62 = vsel %vm1631_vm8, %v3291_v2, %v4989_v17 }
 0x41a   : > { %v3354_v13 = vsel %vm1664_vm9, %v3322_v52, %v4993_v22  ;;  %v3355_v3 = vsel %vm1664_vm9, %v3323_v62, %v4994_v37  ;;  %v5037_v21 = vpop.permute.xlu2 %5036 }
 0x41b   : > { %v3386_v14 = vpack.c.bf16 %v3355_v3, %v3354_v13  ;;  %v5039_v17 = vunpack.i.h.bf16 %v5037_v21  ;;  %v5038_v40 = vunpack.i.l.bf16 %v5037_v21  ;;  %v5231_v13 = vld [vmem:[#allocation3 + $0x128] sm:$0xff] }
 0x41c   : > { %v3167_v3 = vsel %vm281_vm0, %v5231_v13, %v5024_v39  ;;  %v5233_v13 = vld [vmem:[#allocation3 + $0x140] sm:$0xff] }
 0x41d   : > { %v5017_v7 = vpop.permute.xlu1 %5016 }
 0x41e   : > { %v7999_v43 = vpop.permute.xlu0 %5041  ;;  %3576 = vmatmul.bf16.gmra.mxu2 %v3386_v14  ;;  %v5019_v46 = vunpack.i.h.bf16 %v5017_v7  ;;  %v5018_v53 = vunpack.i.l.bf16 %v5017_v7  ;;  %v3641_v58 = vpop.f32.mrf.mxu3 }
 0x420   : > { %v3260_v32 = vsel %vm1565_vm7, %v3228_v34, %v5018_v53  ;;  %v3261_v12 = vsel %vm1565_vm7, %v3229_v15, %v5019_v46 }
 0x421   : > { %v3542_v16 = vpop.f32.mrf.mxu2  ;;  %v3292_v52 = vsel %vm1598_vm6, %v3260_v32, %v5038_v40  ;;  %v3293_v62 = vsel %vm1598_vm6, %v3261_v12, %v5039_v17  ;;  %v5044_v17 = vunpack.i.h.bf16 %v7999_v43  ;;  %v5043_v40 = vunpack.i.l.bf16 %v7999_v43 }
 0x422   : > { %v3632_v41 = vadd.f32 %v3631_v8, %v3542_v16  ;;  %v8007_v20 = vpop.permute.xlu2 %5066  ;;  %v5232_v16 = vld [vmem:[#allocation3 + $0x120] sm:$0xff] }
 0x423   : > { %v5069_v42 = vunpack.i.h.bf16 %v8007_v20  ;;  %v5068_v28 = vunpack.i.l.bf16 %v8007_v20  ;;  %v3169_v43 = vsel %vm281_vm0, %v5233_v13, %v5044_v17  ;;  %v5236_v17 = vld [vmem:[#allocation3 + $0x150] sm:$0xff] }
 0x424   : > { %3714 = vrot.lane.b32.xlu1 %v3632_v41, %s5255_s11 }
 0x425   : > { %v5062_v30 = vpop.permute.xlu1 %5061 }
 0x426   : > { %v5047_v60 = vpop.permute.xlu0 %5046  ;;  %v5064_v37 = vunpack.i.h.bf16 %v5062_v30  ;;  %v5063_v22 = vunpack.i.l.bf16 %v5062_v30  ;;  %v3643_v45 = vpop.f32.mrf.mxu3 }
 0x427   : > { %v5049_v56 = vunpack.i.h.bf16 %v5047_v60 }
 0x429   : > { %v3544_v49 = vpop.f32.mrf.mxu2 }
 0x42a   : > { %v3634_v31 = vadd.f32 %v3633_v4, %v3544_v49  ;;  %v5082_v18 = vpop.permute.xlu2 %5081  ;;  %v5048_v4 = vunpack.i.l.bf16 %v5047_v60  ;;  %v3199_v60 = vsel %vm1499_vm4, %v3167_v3, %v5049_v56  ;;  %v5234_v3 = vld [vmem:[#allocation3 + $0x138] sm:$0xff] }
 0x42b   : > { %v3231_v6 = vsel %vm1532_vm5, %v3199_v60, %v5009_v55  ;;  %v5084_v12 = vunpack.i.h.bf16 %v5082_v18 }
 0x42c   : > { %3716 = vrot.lane.b32.xlu2 %v3634_v31, %s5255_s11  ;;  %v5008_v31 = vunpack.i.l.bf16 %v7971_v11  ;;  %v3263_v11 = vsel %vm1565_vm7, %v3231_v6, %v5069_v42 }
 0x42d   : > { %v8009_v8 = vpop.permute.xlu1 %5076 }
 0x42e   : > { %v8013_v51 = vpop.permute.xlu0 %5051  ;;  %v5079_v15 = vunpack.i.h.bf16 %v8009_v8  ;;  %v5078_v34 = vunpack.i.l.bf16 %v8009_v8 }
 0x431   : > { %v3547_v33 = vpop.f32.mrf.mxu2 }
 0x432   : > { %v3637_v10 = vadd.f32 %v3636_v36, %v3547_v33  ;;  %v3166_v36 = vsel %vm281_vm0, %v5232_v16, %v5023_v61  ;;  %v5112_v46 = vpop.permute.xlu2 %5111  ;;  %v5083_v61 = vunpack.i.l.bf16 %v5082_v18  ;;  %v3105_v18 = vrot.slane %v7805_v26, 2 }
 0x433   : > { %v3198_v49 = vsel %vm1499_vm4, %v3166_v36, %v5048_v4  ;;  %v5033_v26 = vunpack.i.l.bf16 %v7993_v0 }
 0x434   : > { %3722 = vrot.lane.b32.xlu0 %v3637_v10, %s5254_s10 }
 0x435   : > { %v8025_v44 = vpop.permute.xlu1 %5091 }
 0x436   : > { %v5057_v1 = vpop.permute.xlu0 %5056 }
 0x437   : > { %v5059_v25 = vunpack.i.h.bf16 %v5057_v1  ;;  %v5058_v2 = vunpack.i.l.bf16 %v5057_v1 }
 0x439   : > { %v3549_v14 = vpop.f32.mrf.mxu2  ;;  %v3324_v50 = vsel %vm1631_vm8, %v3292_v52, %v5058_v2  ;;  %v3325_v7 = vsel %vm1631_vm8, %v3293_v62, %v5059_v25  ;;  %v3646_v2 = vpop.f32.mrf.mxu3  ;;  %v3106_v62 = vrot.slane %v7802_v47, 2  ;;  %v5034_v47 = vunpack.i.h.bf16 %v7993_v0 }
 0x43a   : > { %v3639_v41 = vadd.f32 %v3638_v35, %v3549_v14  ;;  %v3356_v21 = vsel %vm1664_vm9, %v3324_v50, %v5063_v22  ;;  %v3357_v30 = vsel %vm1664_vm9, %v3325_v7, %v5064_v37  ;;  %v3230_v35 = vsel %vm1532_vm5, %v3198_v49, %v5008_v31  ;;  %v8060_v22 = vpop.permute.xlu2 %5126 }
 0x43b   : > { %v3388_v48 = vpack.c.bf16 %v3357_v30, %v3356_v21  ;;  %v3262_v53 = vsel %vm1565_vm7, %v3230_v35, %v5068_v28  ;;  %v3168_v14 = vsel %vm281_vm0, %v5234_v3, %v5043_v40  ;;  %v3107_v6 = vsel %vm1152_vm2, %v3105_v18, %v3106_v62 }
 0x43c   : > { %3724 = vrot.lane.b32.xlu1 %v3639_v41, %s5254_s10  ;;  %v3108_v35 = vrot.slane %v7824_v59, 2  ;;  %v5113_v0 = vunpack.i.l.bf16 %v5112_v46 }
 0x43d   : > { %3581 = vmatmul.bf16.gmra.mxu2 %v3388_v48  ;;  %v5097_v24 = vpop.permute.xlu1 %5096 }
 0x43e   : > { %v5072_v57 = vpop.permute.xlu0 %5071  ;;  %v5099_v56 = vunpack.i.h.bf16 %v5097_v24  ;;  %v5098_v8 = vunpack.i.l.bf16 %v5097_v24 }
 0x43f   : > { %v5074_v5 = vunpack.i.h.bf16 %v5072_v57  ;;  %v5073_v9 = vunpack.i.l.bf16 %v5072_v57  ;;  %v5114_v57 = vunpack.i.h.bf16 %v5112_v46 }
 0x440   : > { %v3200_v50 = vsel %vm1499_vm4, %v3168_v14, %v5098_v8  ;;  %v3201_v7 = vsel %vm1499_vm4, %v3169_v43, %v5099_v56 }
 0x441   : > { %v3552_v33 = vpop.f32.mrf.mxu2  ;;  %v3294_v54 = vsel %vm1598_vm6, %v3262_v53, %v5073_v9  ;;  %v3295_v38 = vsel %vm1598_vm6, %v3263_v11, %v5074_v5  ;;  %v3232_v60 = vsel %vm1532_vm5, %v3200_v50, %v5033_v26  ;;  %v3233_v49 = vsel %vm1532_vm5, %v3201_v7, %v5034_v47  ;;  %v3648_v28 = vpop.f32.mrf.mxu3 }
 0x442   : > { %v3642_v10 = vadd.f32 %v3641_v58, %v3552_v33  ;;  %v3326_v39 = vsel %vm1631_vm8, %v3294_v54, %v5078_v34  ;;  %v3327_v32 = vsel %vm1631_vm8, %v3295_v38, %v5079_v15  ;;  %v3109_v5 = vsel %vm1152_vm2, %v3106_v62, %v3108_v35  ;;  %v5132_v9 = vpop.permute.xlu2 %5131 }
 0x443   : > { %v3358_v58 = vsel %vm1664_vm9, %v3326_v39, %v5083_v61  ;;  %v3359_v1 = vsel %vm1664_vm9, %v3327_v32, %v5084_v12  ;;  %v3397_v11 = vpack.c.bf16 %v3109_v5, %v3107_v6  ;;  %v5094_v33 = vunpack.i.h.bf16 %v8025_v44  ;;  %v5235_v12 = vld [vmem:[#allocation3 + $0x158] sm:$0xff] }
 0x444   : > { %3730 = vrot.lane.b32.xlu2 %v3642_v10, %s5251_s7  ;;  %v3390_v52 = vpack.c.bf16 %v3359_v1, %v3358_v58  ;;  %v5093_v54 = vunpack.i.l.bf16 %v8025_v44  ;;  %v5134_v34 = vunpack.i.h.bf16 %v5132_v9  ;;  %v5133_v39 = vunpack.i.l.bf16 %v5132_v9  ;;  %v5238_v9 = vld [vmem:[#allocation3 + $0x168] sm:$0xff] }
 0x445   : > { %v8052_v20 = vpop.permute.xlu1 %5101  ;;  %4011 = vmatmul.msk.bf16.gmra.mxu3 %vm281_vm0, %v3397_v11  ;;  %v3171_v61 = vsel %vm281_vm0, %v5235_v12, %v5094_v33  ;;  %v4613_v33 = vunpack.i.l.bf16 %v7248_v27 }
 0x446   : > { %v5087_v4 = vpop.permute.xlu0 %5086  ;;  %v3170_v40 = vsel %vm281_vm0, %v5236_v17, %v5093_v54  ;;  %v3203_v1 = vsel %vm1499_vm4, %v3171_v61, %v5134_v34  ;;  %v5103_v11 = vunpack.i.l.bf16 %v8052_v20 }
 0x447   : > { %v5089_v16 = vunpack.i.h.bf16 %v5087_v4  ;;  %v5088_v36 = vunpack.i.l.bf16 %v5087_v4  ;;  %v3202_v56 = vsel %vm1499_vm4, %v3170_v40, %v5133_v39 }
 0x449   : > { %v3554_v25 = vpop.f32.mrf.mxu2  ;;  %v3264_v48 = vsel %vm1565_vm7, %v3232_v60, %v5088_v36  ;;  %v3265_v55 = vsel %vm1565_vm7, %v3233_v49, %v5089_v16 }
 0x44a   : > { %v3644_v37 = vadd.f32 %v3643_v45, %v3554_v25  ;;  %v3651_v25 = vpop.f32.mrf.mxu3  ;;  %v5137_v62 = vpop.permute.xlu2 %5136 }
 0x44b   : > { %v5139_v50 = vunpack.i.h.bf16 %v5137_v62  ;;  %v5138_v7 = vunpack.i.l.bf16 %v5137_v62 }
 0x44c   : > { %3732 = vrot.lane.b32.xlu0 %v3644_v37, %s5251_s7  ;;  %v5054_v37 = vunpack.i.h.bf16 %v8013_v51 }
 0x44d   : > { %3586 = vmatmul.bf16.gmra.mxu2 %v3390_v52  ;;  %v5107_v41 = vpop.permute.xlu1 %5106  ;;  %v5053_v52 = vunpack.i.l.bf16 %v8013_v51 }
 0x44e   : > { %v5109_v21 = vunpack.i.h.bf16 %v5107_v41  ;;  %v5108_v30 = vunpack.i.l.bf16 %v5107_v41  ;;  %v5117_v42 = vpop.permute.xlu0 %5116 }
 0x44f   : > { %v5119_v38 = vunpack.i.h.bf16 %v5117_v42  ;;  %v5118_v10 = vunpack.i.l.bf16 %v5117_v42  ;;  %v3234_v18 = vsel %vm1532_vm5, %v3202_v56, %v5053_v52 }
 0x450   : > { %v3296_v31 = vsel %vm1598_vm6, %v3264_v48, %v5108_v30  ;;  %v3297_v24 = vsel %vm1598_vm6, %v3265_v55, %v5109_v21  ;;  %v5129_v55 = vunpack.i.h.bf16 %v8060_v22 }
 0x451   : > { %v3328_v45 = vsel %vm1631_vm8, %v3296_v31, %v5113_v0  ;;  %v3329_v53 = vsel %vm1631_vm8, %v3297_v24, %v5114_v57  ;;  %v5128_v31 = vunpack.i.l.bf16 %v8060_v22  ;;  %v4614_v22 = vunpack.i.h.bf16 %v7248_v27 }
 0x452   : > { %v3360_v59 = vsel %vm1664_vm9, %v3328_v45, %v5118_v10  ;;  %v3361_v46 = vsel %vm1664_vm9, %v3329_v53, %v5119_v38  ;;  %v8103_v48 = vpop.f32.mrf.mxu3  ;;  %v5152_v35 = vpop.permute.xlu2 %5151  ;;  %v5104_v53 = vunpack.i.h.bf16 %v8052_v20 }
 0x453   : > { %v3392_v44 = vpack.c.bf16 %v3361_v46, %v3360_v59  ;;  %v3172_v45 = vsel %vm281_vm0, %v5238_v9, %v5128_v31  ;;  %v5154_v10 = vunpack.i.h.bf16 %v5152_v35 }
 0x454   : > { %v3204_v59 = vsel %vm1499_vm4, %v3172_v45, %v4613_v33 }
 0x455   : > { %v5122_v15 = vpop.permute.xlu1 %5121  ;;  %v3236_v39 = vsel %vm1532_vm5, %v3204_v59, %v5103_v11 }
 0x456   : > { %v5124_v8 = vunpack.i.h.bf16 %v5122_v15  ;;  %v5123_v4 = vunpack.i.l.bf16 %v5122_v15  ;;  %v5142_v16 = vpop.permute.xlu0 %5141  ;;  %v5153_v15 = vunpack.i.l.bf16 %v5152_v35 }
 0x457   : > { %v5144_v21 = vunpack.i.h.bf16 %v5142_v16  ;;  %v5143_v30 = vunpack.i.l.bf16 %v5142_v16 }
 0x458   : > { %v3266_v13 = vsel %vm1565_vm7, %v3234_v18, %v5123_v4  ;;  %v3268_v40 = vsel %vm1565_vm7, %v3236_v39, %v5153_v15 }
 0x459   : > { %v3557_v32 = vpop.f32.mrf.mxu2  ;;  %v3298_v41 = vsel %vm1598_vm6, %v3266_v13, %v5138_v7 }
 0x45a   : > { %v3647_v58 = vadd.f32 %v3646_v2, %v3557_v32  ;;  %v3235_v2 = vsel %vm1532_vm5, %v3203_v1, %v5054_v37  ;;  %v3330_v60 = vsel %vm1631_vm8, %v3298_v41, %v5143_v30  ;;  %v8120_v17 = vpop.f32.mrf.mxu3  ;;  %v5167_v27 = vpop.permute.xlu2 %5166 }
 0x45b   : > { %v3267_v43 = vsel %vm1565_vm7, %v3235_v2, %v5124_v8  ;;  %v5168_v37 = vunpack.i.l.bf16 %v5167_v27 }
 0x45c   : > { %3738 = vrot.lane.b32.xlu1 %v3647_v58, %s5252_s8  ;;  %v3299_v47 = vsel %vm1598_vm6, %v3267_v43, %v5139_v50  ;;  %v3619_v50 = vadd.f32 %v7591_v29, %v7928_v63 }
 0x45d   : > { %3591 = vmatmul.bf16.gmra.mxu2 %v3392_v44  ;;  %v5147_v3 = vpop.permute.xlu1 %5146  ;;  %v3331_v49 = vsel %vm1631_vm8, %v3299_v47, %v5144_v21 }
 0x45e   : > { %v5149_v51 = vunpack.i.h.bf16 %v5147_v3  ;;  %v5148_v26 = vunpack.i.l.bf16 %v5147_v3  ;;  %v5157_v54 = vpop.permute.xlu0 %5156 }
 0x45f   : > { %v5159_v20 = vunpack.i.h.bf16 %v5157_v54  ;;  %v5158_v32 = vunpack.i.l.bf16 %v5157_v54 }
 0x460   : > { %v3362_v24 = vsel %vm1664_vm9, %v3330_v60, %v5148_v26  ;;  %v3363_v6 = vsel %vm1664_vm9, %v3331_v49, %v5149_v51 }
 0x461   : > { %v3559_v14 = vpop.f32.mrf.mxu2  ;;  %v3394_v42 = vpack.c.bf16 %v3363_v6, %v3362_v24  ;;  %v3300_v1 = vsel %vm1598_vm6, %v3268_v40, %v5158_v32 }
 0x462   : > { %v3649_v36 = vadd.f32 %v3648_v28, %v3559_v14  ;;  %v5237_v28 = vld [vmem:[#allocation3 + $0x170] sm:$0xff]  ;;  %v8132_v2 = vpop.f32.mrf.mxu3 }
 0x463   : > { %v3173_v5 = vsel %vm281_vm0, %v5237_v28, %v5129_v55 }
 0x464   : > { %3740 = vrot.lane.b32.xlu2 %v3649_v36, %s5252_s8  ;;  %v3205_v46 = vsel %vm1499_vm4, %v3173_v5, %v4614_v22 }
 0x465   : > { %v5162_v38 = vpop.permute.xlu1 %5161  ;;  %v3237_v34 = vsel %vm1532_vm5, %v3205_v46, %v5104_v53  ;;  %v3617_v46 = vadd.f32 %v7558_v23, %v7911_v19 }
 0x466   : > { %v5164_v12 = vunpack.i.h.bf16 %v5162_v38  ;;  %v5163_v61 = vunpack.i.l.bf16 %v5162_v38  ;;  %v3269_v58 = vsel %vm1565_vm7, %v3237_v34, %v5154_v10  ;;  %v3707_v13 = vpop.permute.xlu2 %3706 }
 0x467   : > { %v3301_v44 = vsel %vm1598_vm6, %v3269_v58, %v5159_v20 }
 0x468   : > { %v3332_v56 = vsel %vm1631_vm8, %v3300_v1, %v5163_v61  ;;  %v3333_v8 = vsel %vm1631_vm8, %v3301_v44, %v5164_v12 }
 0x469   : > { %v3562_v57 = vpop.f32.mrf.mxu2  ;;  %v3364_v52 = vsel %vm1664_vm9, %v3332_v56, %v5168_v37  ;;  %v5239_v56 = vld [vmem:[%s5316_s30] sm:$0xff] }
 0x46a   : > { %v3652_v0 = vadd.f32 %v3651_v25, %v3562_v57  ;;  %v5169_v25 = vunpack.i.h.bf16 %v5167_v27  ;;  %v3661_v47 = vpop.f32.mrf.mxu3 }
 0x46c   : > { %3746 = vrot.lane.b32.xlu0 %v3652_v0, %s5253_s9  ;;  %v3365_v62 = vsel %vm1664_vm9, %v3333_v8, %v5169_v25 }
 0x46d   : > { %3596 = vmatmul.bf16.gmra.mxu2 %v3394_v42  ;;  %v3396_v18 = vpack.c.bf16 %v3365_v62, %v3364_v52 }
 0x46e   : > { %v3699_v43 = vpop.permute.xlu0 %3698 }
 0x46f   : > { %v3808_v34 = vsel %vm281_vm0, %v3617_v46, %v3699_v43 }
 0x470   : > { %v3810_v20 = vsel %vm1499_vm4, %v3808_v34, %v3707_v13 }
 0x471   : > { %v8128_v4 = vpop.f32.mrf.mxu2 }
 0x472   : > { %v3663_v30 = vpop.f32.mrf.mxu3 }
 0x476   : > { %v3701_v14 = vpop.permute.xlu1 %3700 }
 0x477   : > { %v3809_v7 = vsel %vm281_vm0, %v3619_v50, %v3701_v14 }
 0x479   : > { %v8134_v3 = vpop.f32.mrf.mxu2 }
 0x47a   : > { %v3666_v31 = vpop.f32.mrf.mxu3 }
 0x47d   : > { %3601 = vmatmul.bf16.gmra.mxu2 %v3396_v18 }
 0x481   : > { %v8141_v26 = vpop.f32.mrf.mxu2 }
 0x482   : > { %v3668_v24 = vpop.f32.mrf.mxu3  ;;  %v3659_v34 = vadd.f32 %v8132_v2, %v8141_v26 }
 0x486   : > { %v3709_v16 = vpop.permute.xlu0 %3708  ;;  %v3717_v36 = vpop.permute.xlu2 %3716 }
 0x487   : > { %v3811_v41 = vsel %vm1499_vm4, %v3809_v7, %v3709_v16  ;;  %v3654_v16 = vadd.f32 %v8103_v48, %v8128_v4 }
 0x488   : > { %v3813_v51 = vsel %vm1532_vm5, %v3811_v41, %v3717_v36 }
 0x48a   : > { %v3671_v28 = vpop.f32.mrf.mxu3 }
 0x491   : > { %v3572_v21 = vpop.f32.mrf.mxu2 }
 0x492   : > { %v3662_v60 = vadd.f32 %v3661_v47, %v3572_v21  ;;  %v3673_v9 = vpop.f32.mrf.mxu3 }
 0x494   : > { %3754 = vrot.lane.b32.xlu0 %v3662_v60, %s5257_s13 }
 0x496   : > { %v3715_v6 = vpop.permute.xlu1 %3714 }
 0x497   : > { %v3812_v12 = vsel %vm1532_vm5, %v3810_v20, %v3715_v6  ;;  %v3657_v6 = vadd.f32 %v8120_v17, %v8134_v3  ;;  %v5240_v3 = vld [vmem:[%s5316_s30 + $0x8] sm:$0xff] }
 0x499   : > { %v3574_v49 = vpop.f32.mrf.mxu2 }
 0x49a   : > { %v3664_v55 = vadd.f32 %v3663_v30, %v3574_v49  ;;  %v3676_v33 = vpop.f32.mrf.mxu3 }
 0x49c   : > { %3756 = vrot.lane.b32.xlu1 %v3664_v55, %s5257_s13  ;;  %s8168_s13 = scalar_lea.vmem %s8218_s6, %s4014_s27 }
 0x49e   : > { %v3731_v58 = vpop.permute.xlu2 %3730 }
 0x4a1   : > { %v3577_v29 = vpop.f32.mrf.mxu2 }
 0x4a2   : > { %v3667_v63 = vadd.f32 %v3666_v31, %v3577_v29  ;;  %v3678_v10 = vpop.f32.mrf.mxu3 }
 0x4a4   : > { %3762 = vrot.lane.b32.xlu2 %v3667_v63, %s5256_s12 }
 0x4a6   : > { %v3723_v5 = vpop.permute.xlu0 %3722 }
 0x4a7   : > { %v3814_v27 = vsel %vm1565_vm7, %v3812_v12, %v3723_v5 }
 0x4a8   : > { %v3816_v23 = vsel %vm1598_vm6, %v3814_v27, %v3731_v58 }
 0x4a9   : > { %v3579_v35 = vpop.f32.mrf.mxu2 }
 0x4aa   : > { %v3669_v57 = vadd.f32 %v3668_v24, %v3579_v35  ;;  %v3681_v39 = vpop.f32.mrf.mxu3 }
 0x4ac   : > { %3764 = vrot.lane.b32.xlu0 %v3669_v57, %s5256_s12 }
 0x4ae   : > { %v3725_v0 = vpop.permute.xlu1 %3724 }
 0x4af   : > { %v3815_v42 = vsel %vm1565_vm7, %v3813_v51, %v3725_v0 }
 0x4b2   : > { %v3683_v52 = vpop.f32.mrf.mxu3 }
 0x4ba   : > { %v3686_v13 = vpop.f32.mrf.mxu3 }
 0x4be   : > { %v3733_v45 = vpop.permute.xlu0 %3732  ;;  %v3741_v49 = vpop.permute.xlu2 %3740 }
 0x4bf   : > { %v8149_v53 = vsel %vm1598_vm6, %v3815_v42, %v3733_v45 }
 0x4c0   : > { %v3582_v11 = vpop.f32.mrf.mxu2 }
 0x4c1   : > { %v3672_v22 = vadd.f32 %v3671_v28, %v3582_v11 }
 0x4c2   : > { %v3688_v50 = vpop.f32.mrf.mxu3 }
 0x4c3   : > { %3770 = vrot.lane.b32.xlu1 %v3672_v22, %s5255_s11 }
 0x4c8   : > { %v3584_v54 = vpop.f32.mrf.mxu2 }
 0x4c9   : > { %v3674_v38 = vadd.f32 %v3673_v9, %v3584_v54 }
 0x4ca   : > { %v3691_v41 = vpop.f32.mrf.mxu3 }
 0x4cb   : > { %3772 = vrot.lane.b32.xlu2 %v3674_v38, %s5255_s11  ;;  %v3819_v38 = vsel %vm1631_vm8, %v8149_v53, %v3741_v49 }
 0x4ce   : > { %v3739_v40 = vpop.permute.xlu1 %3738 }
 0x4cf   : > { %v3818_v19 = vsel %vm1631_vm8, %v3816_v23, %v3739_v40  ;;  %v5242_v23 = vld [vmem:[%s5316_s30 + $0x18] sm:$0xff] }
 0x4d0   : > { %v3587_v15 = vpop.f32.mrf.mxu2 }
 0x4d1   : > { %v3677_v59 = vadd.f32 %v3676_v33, %v3587_v15 }
 0x4d2   : > { %v3693_v21 = vpop.f32.mrf.mxu3 }
 0x4d3   : > { %3778 = vrot.lane.b32.xlu0 %v3677_v59, %s5254_s10  ;;  %v5241_v59 = vld [vmem:[%s5316_s30 + $0x10] sm:$0xff] }
 0x4d8   : > { %v3589_v32 = vpop.f32.mrf.mxu2 }
 0x4d9   : > { %v3679_v61 = vadd.f32 %v3678_v10, %v3589_v32 }
 0x4db   : > { %3780 = vrot.lane.b32.xlu1 %v3679_v61, %s5254_s10 }
 0x4de   : > { %v3747_v44 = vpop.permute.xlu0 %3746 }
 0x4df   : > { %v3820_v1 = vsel %vm1664_vm9, %v3818_v19, %v3747_v44 }
 0x4e0   : > { %v3836_v8 = vadd.f32 %v5239_v56, %v3820_v1  ;;  %v3592_v25 = vpop.f32.mrf.mxu2 }
 0x4e1   : > { %v3682_v37 = vadd.f32 %v3681_v39, %v3592_v25 }
 0x4e2   : > { %3840 = vst [vmem:[%s8168_s13] sm:$0xff] %v3836_v8 }
 0x4e3   : > { %3786 = vrot.lane.b32.xlu2 %v3682_v37, %s5251_s7 }
 0x4e8   : > { %v3594_v62 = vpop.f32.mrf.mxu2 }
 0x4e9   : > { %v3684_v18 = vadd.f32 %v3683_v52, %v3594_v62 }
 0x4eb   : > { %3788 = vrot.lane.b32.xlu0 %v3684_v18, %s5251_s7 }
 0x4f0   : > { %v3597_v43 = vpop.f32.mrf.mxu2 }
 0x4f1   : > { %v3687_v14 = vadd.f32 %v3686_v13, %v3597_v43 }
 0x4f3   : > { %3794 = vrot.lane.b32.xlu1 %v3687_v14, %s5252_s8 }
 0x4f8   : > { %v3599_v7 = vpop.f32.mrf.mxu2 }
 0x4f9   : > { %v3689_v36 = vadd.f32 %v3688_v50, %v3599_v7 }
 0x4fb   : > { %3748 = vrot.lane.b32.xlu1 %v3654_v16, %s5253_s9  ;;  %3796 = vrot.lane.b32.xlu2 %v3689_v36, %s5252_s8 }
 0x4fe   : > { %v3763_v55 = vpop.permute.xlu2 %3762 }
 0x500   : > { %v3602_v47 = vpop.f32.mrf.mxu2 }
 0x501   : > { %v3692_v51 = vadd.f32 %v3691_v41, %v3602_v47 }
 0x503   : > { %3802 = vrot.lane.b32.xlu2 %v3692_v51, %s5253_s9 }
 0x506   : > { %v3755_v48 = vpop.permute.xlu0 %3754 }
 0x507   : > { %v3822_v57 = vsel %vm281_vm0, %v3657_v6, %v3755_v48 }
 0x508   : > { %v3604_v30 = vpop.f32.mrf.mxu2  ;;  %v3824_v28 = vsel %vm1499_vm4, %v3822_v57, %v3763_v55 }
 0x509   : > { %v3694_v60 = vadd.f32 %v3693_v21, %v3604_v30 }
 0x50b   : > { %3804 = vrot.lane.b32.xlu0 %v3694_v60, %s5253_s9 }
 0x50e   : > { %v3757_v29 = vpop.permute.xlu1 %3756 }
 0x50f   : > { %v3823_v20 = vsel %vm281_vm0, %v3659_v34, %v3757_v29 }
 0x51e   : > { %v3765_v24 = vpop.permute.xlu0 %3764 }
 0x51f   : > { %v3825_v32 = vsel %vm1499_vm4, %v3823_v20, %v3765_v24 }
 0x525   : > { %v3773_v31 = vpop.permute.xlu2 %3772 }
 0x526   : > { %v3827_v12 = vsel %vm1532_vm5, %v3825_v32, %v3773_v31 }
 0x535   : > { %v3771_v63 = vpop.permute.xlu1 %3770 }
 0x536   : > { %v3826_v5 = vsel %vm1532_vm5, %v3824_v28, %v3771_v63 }
 0x53d   : > { %v3787_v4 = vpop.permute.xlu2 %3786 }
 0x545   : > { %v3779_v42 = vpop.permute.xlu0 %3778 }
 0x546   : > { %v3828_v9 = vsel %vm1565_vm7, %v3826_v5, %v3779_v42 }
 0x547   : > { %v3830_v45 = vsel %vm1598_vm6, %v3828_v9, %v3787_v4 }
 0x54d   : > { %v3781_v0 = vpop.permute.xlu1 %3780 }
 0x54e   : > { %v3829_v53 = vsel %vm1565_vm7, %v3827_v12, %v3781_v0 }
 0x555   : > { %v3797_v35 = vpop.permute.xlu2 %3796 }
 0x55d   : > { %v3803_v22 = vpop.permute.xlu2 %3802  ;;  %v3789_v39 = vpop.permute.xlu0 %3788 }
 0x55e   : > { %v3831_v61 = vsel %vm1598_vm6, %v3829_v53, %v3789_v39 }
 0x55f   : > { %v3833_v27 = vsel %vm1631_vm8, %v3831_v61, %v3797_v35 }
 0x565   : > { %v3795_v11 = vpop.permute.xlu1 %3794 }
 0x566   : > { %v3832_v33 = vsel %vm1631_vm8, %v3830_v45, %v3795_v11 }
 0x567   : > { %v3834_v17 = vsel %vm1664_vm9, %v3832_v33, %v3803_v22 }
 0x568   : > { %v3837_v54 = vadd.f32 %v5240_v3, %v3834_v17 }
 0x56a   : > { %3841 = vst [vmem:[%s8168_s13 + $0x8] sm:$0xff] %v3837_v54 }
 0x56d   : > { %v3749_v10 = vpop.permute.xlu1 %3748 }
 0x56e   : > { %v3821_v15 = vsel %vm1664_vm9, %v3819_v38, %v3749_v10 }
 0x56f   : > { %v3838_v46 = vadd.f32 %v5241_v59, %v3821_v15 }
 0x571   : > { %3842 = vst [vmem:[%s8168_s13 + $0x10] sm:$0xff] %v3838_v46 }
 0x57d   : > { %v3805_v40 = vpop.permute.xlu0 %3804 }
 0x57e   : > { %v3835_v58 = vsel %vm1664_vm9, %v3833_v27, %v3805_v40 }
 0x57f   : > { %v3839_v19 = vadd.f32 %v5242_v23, %v3835_v58 }
 0x581   : > { %3843 = vst [vmem:[%s8168_s13 + $0x18] sm:$0xff] %v3839_v19 }
 0x582 PF: > { %s16_s21 = sadd.s32 1, %s5249_s21  }
 0x583   : > { %p13_p4 = scmp.ge.s32.totalorder %s16_s21, 4  }
 0x585   :  { %15 = sbr.rel (!%p13_p4) target bundleno = 1 (0x1), region = 91 }

// kernel: preact_resnet_forward.7
= control target key start
LH: loop header
LB: loop body
LE: loop exit
PB: predicated region body
PF: predicated region fallthrough
CT: control target
= control target key end

     0   :  { %s2058_s27 = smov 0   ;;  %s2571_s0 = inlined_call_operand.vmem [shape: f32[2,8,512], index: 0, kind: input, shape index: {}]   ;;  %s2572_s1 = inlined_call_operand.vmem [shape: f32[1,512], index: 1, kind: input, shape index: {}]   ;;  %s2573_s2 = inlined_call_operand.vmem [shape: f32[1,512], index: 2, kind: input, shape index: {}]   ;;  %s2574_s3 = inlined_call_operand.vmem [shape: bf16[144,32], index: 3, kind: input, shape index: {}]   ;;  %s2575_s4 = inlined_call_operand.vmem [shape: f32[1,32], index: 4, kind: input, shape index: {}]   ;;  %s2576_s5 = inlined_call_operand.vmem [shape: bf16[16,32], index: 5, kind: input, shape index: {}]   ;;  %s2577_s6 = inlined_call_operand.vmem [shape: f32[1,32], index: 6, kind: input, shape index: {}]   ;;  %s2578_s7 = inlined_call_operand.vmem [shape: bf16[288,32], index: 7, kind: input, shape index: {}]   ;;  %s2579_s8 = inlined_call_operand.vmem [shape: f32[2,8,256], index: 8, kind: output, shape index: {}]  }
   0x1 LB: > { %s1573_s28 = sadd.s32 4294967295, %s2004_s27   ;;  %p1577_p0 = scmp.ge.s32.totalorder %s2004_s27, 1  ;;  %s2004_s27 = sphi %s2058_s27, %s18_s27  }
   0x2   : > { %p262_p1 = scmp.lt.s32.totalorder %s2004_s27, 3 }
   0x4   : > { %p263_p2 = pnand %p1577_p0, %p262_p1 }
   0x5   : > { %p296_p3 = scmp.lt.s32.totalorder (!%p263_p2), %s1573_s28, 1  ;;  %s2007_s15 = smov (!%p263_p2), 64  }
   0x6   : > { %266 = sbr.rel (%p263_p2) target bundleno = 918 (0x396), region = 52  ;;  %s2008_s16 = smov (!%p263_p2), 80  }
   0x7   : > { %s2009_s17 = smov (!%p263_p2), 32   ;;  %s2010_s20 = smov (!%p263_p2), 112  }
   0x8   : > { %s2011_s21 = smov (!%p263_p2), 48   ;;  %s2012_s30 = smov (!%p263_p2), 96  }
   0xb   : > { %v311_v0 = vld [vmem:[%s2572_s1] sm:$0xf]  ;;  %vm343_vm0 = vcmask 523264   ;;  %vm345_vm1 = vcmask 516096   ;;  %s2581_s28 = smov (!%p296_p3, %s1573_s28), 1  ;;  %v2006_v2 = vmov 0.0  }
   0xc   : > { %v325_v1 = vld [vmem:[%s2573_s2] sm:$0xf]  ;;  %347 = vst.msk [vmem:[#allocation2 + $0x10] sm:$0xff] %vm343_vm0, %v2006_v2  ;;  %v313_v3 = vperm.slane %v311_v0, 0  ;;  %v315_v4 = vperm.slane %v311_v0, 2  ;;  %v316_v5 = vperm.slane %v311_v0, 3 }
   0xd   : > { %348 = vst.msk [vmem:[#allocation2 + $0x18] sm:$0x1] %vm345_vm1, %v2006_v2  ;;  %s1708_s11 = sshll.u32 %s2581_s28, 5  ;;  %v327_v6 = vperm.slane %v325_v1, 0  ;;  %v314_v7 = vperm.slane %v311_v0, 1  ;;  %v329_v8 = vperm.slane %v325_v1, 2 }
   0xe   : > { %344 = vst.msk [vmem:[#allocation2] sm:$0xff] %vm343_vm0, %v2006_v2  ;;  %s300_s14 = scalar_lea.vmem %s2571_s0, %s1708_s11  ;;  %v330_v12 = vperm.slane %v325_v1, 3  ;;  %v328_v19 = vperm.slane %v325_v1, 1  ;;  %vm478_vm2 = vcmask 1046528   ;;  %v2132_v39 = vld [vmem:[%s2576_s5] sm:$0xff]  ;;  %vm603_vm3 = vcmask 130048  }
   0xf   : > { %346 = vst.msk [vmem:[#allocation2 + $0x8] sm:$0x1] %vm345_vm1, %v2006_v2  ;;  %v307_v9 = vld [vmem:[%s300_s14] sm:$0xff]  ;;  %v308_v10 = vld [vmem:[%s300_s14 + $0x8] sm:$0xff]  ;;  %v309_v11 = vld [vmem:[%s300_s14 + $0x10] sm:$0xff]  ;;  %1740 = vmatpush.bf16.msra.mxu3 %v2132_v39  ;;  %vm612_vm4 = vcmask 261120  }
  0x10   : > { %349 = vst.msk [vmem:[#allocation2 + $0x20] sm:$0xff] %vm343_vm0, %v2006_v2  ;;  %v321_v13 = vmul.f32 %v313_v3, %v307_v9  ;;  %v323_v14 = vmul.f32 %v315_v4, %v309_v11  ;;  %v310_v15 = vld [vmem:[%s300_s14 + $0x18] sm:$0xff]  ;;  %v322_v18 = vmul.f32 %v314_v7, %v308_v10  ;;  %vm621_vm5 = vcmask 392192  }
  0x11   : > { %350 = vst.msk [vmem:[#allocation2 + $0x28] sm:$0x1] %vm345_vm1, %v2006_v2  ;;  %v324_v16 = vmul.f32 %v316_v5, %v310_v15  ;;  %vm638_vm6 = vcmask 654336   ;;  %vm647_vm7 = vcmask 785408   ;;  %vm656_vm8 = vcmask 916480  }
  0x12   : > { %351 = vst.msk [vmem:[#allocation2 + $0x30] sm:$0xff] %vm343_vm0, %v2006_v2  ;;  %v335_v17 = vadd.f32 %v327_v6, %v321_v13  ;;  %v337_v20 = vadd.f32 %v329_v8, %v323_v14  ;;  %v336_v25 = vadd.f32 %v328_v19, %v322_v18  ;;  %vm893_vm9 = vcmask 254976  }
  0x13   : > { %352 = vst.msk [vmem:[#allocation2 + $0x38] sm:$0x1] %vm345_vm1, %v2006_v2  ;;  %v338_v21 = vadd.f32 %v330_v12, %v324_v16  ;;  %vm1096_vm10 = vcmask 1045504  }
  0x14   : > { %353 = vst.msk [vmem:[#allocation2 + $0x40] sm:$0xff] %vm343_vm0, %v2006_v2  ;;  %v339_v22 = vmax.f32 %v335_v17, 0.0  ;;  %v341_v23 = vmax.f32 %v337_v20, 0.0  ;;  %v340_v28 = vmax.f32 %v336_v25, 0.0 }
  0x15   : > { %354 = vst.msk [vmem:[#allocation2 + $0x48] sm:$0x1] %vm345_vm1, %v2006_v2  ;;  %v342_v24 = vmax.f32 %v338_v21, 0.0  ;;  %v395_v26 = vld [vmem:[#allocation2] sm:$0xff] }
  0x16   : > { %355 = vst.msk [vmem:[#allocation2 + $0x50] sm:$0xff] %vm343_vm0, %v2006_v2  ;;  %366 = vrot.lane.b32.xlu0 %v339_v22, %s2007_s15  ;;  %382 = vrot.lane.b32.xlu1 %v341_v23, %s2007_s15  ;;  %v396_v27 = vld [vmem:[#allocation2 + $0x8] sm:$0x1]  ;;  %v479_v29 = vrot.slane %v395_v26, 1 }
  0x17   : > { %364 = vst.msk [vmem:[#allocation2 + $0x11] sm:$0xff] %vm343_vm0, %v339_v22  ;;  %390 = vrot.lane.b32.xlu2 %v342_v24, %s2007_s15  ;;  %v480_v30 = vrot.slane %v396_v27, 1 }
  0x18   : > { %356 = vst.msk [vmem:[#allocation2 + $0x58] sm:$0x1] %vm345_vm1, %v2006_v2 }
  0x19   : > { %357 = vst.msk [vmem:[#allocation2 + $0x60] sm:$0xff] %vm343_vm0, %v2006_v2  ;;  %v481_v36 = vsel %vm478_vm2, %v479_v29, %v480_v30 }
  0x1a   : > { %358 = vst.msk [vmem:[#allocation2 + $0x68] sm:$0x1] %vm345_vm1, %v2006_v2 }
  0x1b   : > { %359 = vst.msk [vmem:[#allocation2 + $0x70] sm:$0xff] %vm343_vm0, %v2006_v2 }
  0x1c   : > { %360 = vst.msk [vmem:[#allocation2 + $0x78] sm:$0x1] %vm345_vm1, %v2006_v2 }
  0x1d   : > { %361 = vst.msk [vmem:[#allocation2 + $0x80] sm:$0xff] %vm343_vm0, %v2006_v2 }
  0x1e   : > { %362 = vst.msk [vmem:[#allocation2 + $0x88] sm:$0x1] %vm345_vm1, %v2006_v2  ;;  %v397_v31 = vld [vmem:[#allocation2 + $0x10] sm:$0xff]  ;;  %v398_v32 = vld [vmem:[#allocation2 + $0x18] sm:$0x1]  ;;  %374 = vrot.lane.b32.xlu0 %v340_v28, %s2007_s15 }
  0x1f   : > { %372 = vst.msk [vmem:[#allocation2 + $0x31] sm:$0xff] %vm343_vm0, %v340_v28  ;;  %v1756_v33 = vpack.i.bf16 %v397_v31, %v395_v26  ;;  %v482_v34 = vrot.slane %v397_v31, 1  ;;  %v483_v35 = vrot.slane %v398_v32, 1 }
  0x20   : > { %380 = vst.msk [vmem:[#allocation2 + $0x51] sm:$0xff] %vm343_vm0, %v341_v23 }
  0x21   : > { %388 = vst.msk [vmem:[#allocation2 + $0x71] sm:$0xff] %vm343_vm0, %v342_v24  ;;  %1757 = vrot.lane.b32.xlu1 %v1756_v33, %s2008_s16  ;;  %v2125_v37 = vsel %vm478_vm2, %v482_v34, %v483_v35  ;;  %v1717_v33 = vld [vmem:[%s2574_s3 + $0x38] sm:$0xff]  ;;  %v1716_v34 = vld [vmem:[%s2574_s3 + $0x30] sm:$0xff]  ;;  %v1715_v35 = vld [vmem:[%s2574_s3 + $0x28] sm:$0xff] }
  0x22   : > { %v1761_v38 = vpack.i.bf16 %v2125_v37, %v481_v36  ;;  %892 = vst.msk [vmem:[#allocation3] sm:$0xff] %vm612_vm4, %v2006_v2  ;;  %761 = vmatpush.bf16.msra.mxu0 %v1717_v33  ;;  %v1714_v36 = vld [vmem:[%s2574_s3 + $0x20] sm:$0xff] }
  0x23   : > { %895 = vst.msk [vmem:[#allocation3 + $0x10] sm:$0xff] %vm612_vm4, %v2006_v2 }
  0x24   : > { %897 = vst.msk [vmem:[#allocation3 + $0x20] sm:$0xff] %vm612_vm4, %v2006_v2 }
  0x25   : > { %899 = vst.msk [vmem:[#allocation3 + $0x30] sm:$0xff] %vm612_vm4, %v2006_v2 }
  0x26   : > { %1762 = vrot.lane.b32.xlu0 %v1761_v38, %s2009_s17  ;;  %v401_v50 = vld [vmem:[#allocation2 + $0x30] sm:$0xff]  ;;  %v402_v51 = vld [vmem:[#allocation2 + $0x38] sm:$0x1]  ;;  %901 = vst.msk [vmem:[#allocation3 + $0x40] sm:$0xff] %vm612_vm4, %v2006_v2  ;;  %762 = vmatpush.bf16.msra.mxu0 %v1716_v34 }
  0x27   : > { %v488_v53 = vrot.slane %v401_v50, 1  ;;  %v489_v54 = vrot.slane %v402_v51, 1  ;;  %v405_v5 = vld [vmem:[#allocation2 + $0x50] sm:$0xff]  ;;  %v406_v6 = vld [vmem:[#allocation2 + $0x58] sm:$0x1]  ;;  %903 = vst.msk [vmem:[#allocation3 + $0x50] sm:$0xff] %vm612_vm4, %v2006_v2 }
  0x28   : > { %v494_v9 = vrot.slane %v405_v5, 1  ;;  %v495_v10 = vrot.slane %v406_v6, 1  ;;  %v409_v20 = vld [vmem:[#allocation2 + $0x70] sm:$0xff]  ;;  %v410_v21 = vld [vmem:[#allocation2 + $0x78] sm:$0x1]  ;;  %905 = vst.msk [vmem:[#allocation3 + $0x60] sm:$0xff] %vm612_vm4, %v2006_v2 }
  0x29   : > { %v490_v59 = vsel %vm478_vm2, %v488_v53, %v489_v54  ;;  %v500_v24 = vrot.slane %v409_v20, 1  ;;  %v501_v25 = vrot.slane %v410_v21, 1  ;;  %907 = vst.msk [vmem:[#allocation3 + $0x70] sm:$0xff] %vm612_vm4, %v2006_v2 }
  0x2a   : > { %v496_v12 = vsel %vm478_vm2, %v494_v9, %v495_v10  ;;  %909 = vst.msk [vmem:[#allocation3 + $0x80] sm:$0xff] %vm612_vm4, %v2006_v2  ;;  %763 = vmatpush.bf16.msra.mxu0 %v1715_v35 }
  0x2b   : > { %v502_v27 = vsel %vm478_vm2, %v500_v24, %v501_v25  ;;  %911 = vst.msk [vmem:[#allocation3 + $0x90] sm:$0xff] %vm612_vm4, %v2006_v2 }
  0x2c   : > { %900 = vst.msk [vmem:[#allocation3 + $0x38] sm:$0x3] %vm893_vm9, %v2006_v2 }
  0x2d   : > { %894 = vst.msk [vmem:[#allocation3 + $0x8] sm:$0x3] %vm893_vm9, %v2006_v2 }
  0x2e   : > { %764 = vmatpush.bf16.msra.mxu0 %v1714_v36  ;;  %896 = vst.msk [vmem:[#allocation3 + $0x18] sm:$0x3] %vm893_vm9, %v2006_v2 }
  0x2f   : > { %898 = vst.msk [vmem:[#allocation3 + $0x28] sm:$0x3] %vm893_vm9, %v2006_v2 }
  0x30   : > { %902 = vst.msk [vmem:[#allocation3 + $0x48] sm:$0x3] %vm893_vm9, %v2006_v2 }
  0x31   : > { %904 = vst.msk [vmem:[#allocation3 + $0x58] sm:$0x3] %vm893_vm9, %v2006_v2 }
  0x32   : > { %906 = vst.msk [vmem:[#allocation3 + $0x68] sm:$0x3] %vm893_vm9, %v2006_v2 }
  0x33   : > { %908 = vst.msk [vmem:[#allocation3 + $0x78] sm:$0x3] %vm893_vm9, %v2006_v2 }
  0x34   : > { %910 = vst.msk [vmem:[#allocation3 + $0x88] sm:$0x3] %vm893_vm9, %v2006_v2 }
  0x35   : > { %912 = vst.msk [vmem:[#allocation3 + $0x98] sm:$0x3] %vm893_vm9, %v2006_v2 }
  0x71   : > { %v391_v42 = vpop.permute.xlu2 %390 }
  0x72   : > { %394 = vst.msk [vmem:[#allocation2 + $0x81] sm:$0xff] %vm343_vm0, %v391_v42  ;;  %v1710_v42 = vld [vmem:[%s2574_s3] sm:$0xff] }
  0x79   : > { %v411_v17 = vld [vmem:[#allocation2 + $0x80] sm:$0xff]  ;;  %v412_v18 = vld [vmem:[#allocation2 + $0x88] sm:$0x1] }
  0x7a   : > { %v528_v22 = vrot.slane %v411_v17, 1  ;;  %v529_v23 = vrot.slane %v412_v18, 1 }
  0x7c   : > { %v530_v26 = vsel %vm478_vm2, %v528_v22, %v529_v23 }
  0x7d   : > { %v838_v28 = vpack.c.bf16 %v530_v26, %v502_v27  ;;  %v1861_v32 = vpack.i.bf16 %v530_v26, %v502_v27 }
  0x88   : > { %v367_v40 = vpop.permute.xlu0 %366  ;;  %v383_v41 = vpop.permute.xlu1 %382 }
  0x89   : > { %370 = vst.msk [vmem:[#allocation2 + $0x21] sm:$0xff] %vm343_vm0, %v367_v40  ;;  %v1712_v40 = vld [vmem:[%s2574_s3 + $0x10] sm:$0xff] }
  0x8a   : > { %386 = vst.msk [vmem:[#allocation2 + $0x61] sm:$0xff] %vm343_vm0, %v383_v41  ;;  %v1711_v41 = vld [vmem:[%s2574_s3 + $0x8] sm:$0xff] }
  0x90   : > { %v375_v43 = vpop.permute.xlu0 %374  ;;  %v399_v44 = vld [vmem:[#allocation2 + $0x20] sm:$0xff]  ;;  %v400_v45 = vld [vmem:[#allocation2 + $0x28] sm:$0x1] }
  0x91   : > { %378 = vst.msk [vmem:[#allocation2 + $0x41] sm:$0xff] %vm343_vm0, %v375_v43  ;;  %v485_v46 = vrot.slane %v399_v44, 1  ;;  %v1766_v47 = vpack.i.bf16 %v399_v44, %v397_v31  ;;  %v486_v48 = vrot.slane %v400_v45, 1  ;;  %v1781_v62 = vpack.i.bf16 %v401_v50, %v399_v44  ;;  %v407_v1 = vld [vmem:[#allocation2 + $0x60] sm:$0xff]  ;;  %v408_v3 = vld [vmem:[#allocation2 + $0x68] sm:$0x1] }
  0x92   : > { %v497_v7 = vrot.slane %v407_v1, 1  ;;  %v498_v8 = vrot.slane %v408_v3, 1  ;;  %v1816_v16 = vpack.i.bf16 %v407_v1, %v405_v5  ;;  %v1836_v29 = vpack.i.bf16 %v409_v20, %v407_v1  ;;  %v1718_v44 = vld [vmem:[%s2574_s3 + $0x40] sm:$0xff] }
  0x93   : > { %1767 = vrot.lane.b32.xlu2 %v1766_v47, %s2010_s20  ;;  %v2141_v49 = vsel %vm478_vm2, %v485_v46, %v486_v48  ;;  %v1846_v31 = vpack.i.bf16 %v411_v17, %v409_v20  ;;  %1738 = vmatpush.bf16.msra.mxu1 %v1718_v44  ;;  %v1758_v46 = vpop.permute.xlu1 %1757 }
  0x94   : > { %v1776_v52 = vpack.i.bf16 %v2141_v49, %v2125_v37  ;;  %v1796_v63 = vpack.i.bf16 %v490_v59, %v2141_v49  ;;  %v499_v11 = vsel %vm478_vm2, %v497_v7, %v498_v8  ;;  %1739 = vmatpush.bf16.msra.mxu2 %v1718_v44  ;;  %v1759_v51 = vunpack.i.l.bf16 %v1758_v46 }
  0x95   : > { %v837_v13 = vpack.c.bf16 %v499_v11, %v496_v12  ;;  %v1831_v19 = vpack.i.bf16 %v499_v11, %v496_v12  ;;  %v1856_v30 = vpack.i.bf16 %v502_v27, %v499_v11 }
  0x96   : > { %1777 = vrot.lane.b32.xlu1 %v1776_v52, %s2007_s15  ;;  %1792 = vrot.lane.b32.xlu0 %v1776_v52, %s2008_s16 }
  0x98   : > { %v403_v55 = vld [vmem:[#allocation2 + $0x40] sm:$0xff]  ;;  %v404_v56 = vld [vmem:[#allocation2 + $0x48] sm:$0x1]  ;;  %870 = vmatpush.bf16.msrb.mxu2 %v2132_v39  ;;  %v1763_v52 = vpop.permute.xlu0 %1762 }
  0x99   : > { %v491_v57 = vrot.slane %v403_v55, 1  ;;  %v492_v58 = vrot.slane %v404_v56, 1  ;;  %v1786_v0 = vpack.i.bf16 %v403_v55, %v401_v50  ;;  %v1806_v14 = vpack.i.bf16 %v405_v5, %v403_v55 }
  0x9a   : > { %v1760_v50 = vunpack.i.h.bf16 %v1758_v46  ;;  %v1765_v55 = vunpack.i.h.bf16 %v1763_v52  ;;  %v1764_v56 = vunpack.i.l.bf16 %v1763_v52 }
  0x9b   : > { %1772 = vrot.lane.b32.xlu2 %v1761_v38, %s2011_s21  ;;  %v493_v60 = vsel %vm478_vm2, %v491_v57, %v492_v58  ;;  %v1713_v38 = vld [vmem:[%s2574_s3 + $0x18] sm:$0xff] }
  0x9c   : > { %v836_v61 = vpack.c.bf16 %v493_v60, %v490_v59  ;;  %v1801_v4 = vpack.i.bf16 %v493_v60, %v490_v59  ;;  %v1826_v15 = vpack.i.bf16 %v496_v12, %v493_v60  ;;  %765 = vmatpush.bf16.msra.mxu0 %v1713_v38 }
  0x9e   : > { %1627 = vmatmul.msk.bf16.vlgmr.msra.gmra.mxu3 %vm603_vm3, %v836_v61  ;;  %1782 = vrot.lane.b32.xlu1 %v1781_v62, %s2008_s16 }
  0x9f   : > { %1797 = vrot.lane.b32.xlu0 %v1796_v63, %s2009_s17 }
  0xa0   : > { %766 = vmatpush.bf16.msra.mxu0 %v1712_v40 }
  0xa3   : > { %1787 = vrot.lane.b32.xlu2 %v1786_v0, %s2010_s20 }
  0xa4   : > { %767 = vmatpush.bf16.msra.mxu0 %v1711_v41 }
  0xa6   : > { %1802 = vrot.lane.b32.xlu1 %v1801_v4, %s2007_s15 }
  0xa7   : > { %1822 = vrot.lane.b32.xlu0 %v1801_v4, %s2008_s16 }
  0xa8   : > { %768 = vmatpush.bf16.msra.mxu0 %v1710_v42 }
  0xab   : > { %1812 = vrot.lane.b32.xlu2 %v1796_v63, %s2011_s21 }
  0xac   : > { %797 = vmatpush.bf16.msrb.mxu0 %v1718_v44 }
  0xae   : > { %1628 = vmatmul.msk.bf16.gmra.mxu3 %vm603_vm3, %v837_v13  ;;  %1807 = vrot.lane.b32.xlu1 %v1806_v14, %s2008_s16 }
  0xaf   : > { %1827 = vrot.lane.b32.xlu0 %v1826_v15, %s2009_s17 }
  0xb3   : > { %1817 = vrot.lane.b32.xlu2 %v1816_v16, %s2010_s20 }
  0xb6   : > { %1832 = vrot.lane.b32.xlu1 %v1831_v19, %s2007_s15 }
  0xb7   : > { %1852 = vrot.lane.b32.xlu0 %v1831_v19, %s2008_s16 }
  0xbb   : > { %1842 = vrot.lane.b32.xlu2 %v1826_v15, %s2011_s21 }
  0xbe   : > { %1629 = vmatmul.msk.bf16.gmra.mxu3 %vm603_vm3, %v838_v28  ;;  %1837 = vrot.lane.b32.xlu1 %v1836_v29, %s2008_s16 }
  0xbf   : > { %1857 = vrot.lane.b32.xlu0 %v1856_v30, %s2009_s17 }
  0xc3   : > { %1847 = vrot.lane.b32.xlu2 %v1846_v31, %s2010_s20 }
  0xc6   : > { %1862 = vrot.lane.b32.xlu1 %v1861_v32, %s2007_s15 }
  0xc7   : > { %1872 = vrot.lane.b32.xlu0 %v1861_v32, %s2008_s16 }
  0xcb   : > { %1867 = vrot.lane.b32.xlu2 %v1856_v30, %s2011_s21 }
  0xed   : > { %v1768_v43 = vpop.permute.xlu2 %1767 }
  0xee   : > { %v1770_v47 = vunpack.i.h.bf16 %v1768_v43  ;;  %v1769_v48 = vunpack.i.l.bf16 %v1768_v43 }
  0xf0   : > { %v605_v53 = vsel %vm603_vm3, %v1760_v50, %v1770_v47  ;;  %v604_v54 = vsel %vm603_vm3, %v1759_v51, %v1769_v48 }
  0xf1   : > { %v613_v58 = vsel %vm612_vm4, %v604_v54, %v1769_v48  ;;  %v614_v59 = vsel %vm612_vm4, %v605_v53, %v1770_v47 }
  0xf2   : > { %v623_v4 = vsel %vm621_vm5, %v614_v59, %v1765_v55  ;;  %v622_v5 = vsel %vm621_vm5, %v613_v58, %v1764_v56 }
  0xf5   : > { %v1773_v45 = vpop.permute.xlu2 %1772 }
  0xf6   : > { %v1775_v39 = vunpack.i.h.bf16 %v1773_v45  ;;  %v1774_v60 = vunpack.i.l.bf16 %v1773_v45 }
  0xfd   : > { %v1788_v57 = vpop.permute.xlu2 %1787 }
  0xfe   : > { %v1790_v21 = vunpack.i.h.bf16 %v1788_v57  ;;  %v1789_v22 = vunpack.i.l.bf16 %v1788_v57 }
 0x105   : > { %v1813_v16 = vpop.permute.xlu2 %1812 }
 0x106   : > { %v1815_v40 = vunpack.i.h.bf16 %v1813_v16  ;;  %v1814_v41 = vunpack.i.l.bf16 %v1813_v16 }
 0x108   : > { %v1778_v61 = vpop.permute.xlu1 %1777  ;;  %v1793_v62 = vpop.permute.xlu0 %1792 }
 0x109   : > { %v1780_v63 = vunpack.i.h.bf16 %v1778_v61  ;;  %v1779_v0 = vunpack.i.l.bf16 %v1778_v61  ;;  %v1795_v1 = vunpack.i.h.bf16 %v1793_v62  ;;  %v1794_v3 = vunpack.i.l.bf16 %v1793_v62 }
 0x10b   : > { %v630_v6 = vsel %vm343_vm0, %v622_v5, %v1779_v0  ;;  %v631_v7 = vsel %vm343_vm0, %v623_v4, %v1780_v63  ;;  %v2232_v8 = vpack.c.bf16 %v1795_v1, %v1794_v3 }
 0x10c   : > { %v639_v9 = vsel %vm638_vm6, %v630_v6, %v1779_v0  ;;  %v640_v10 = vsel %vm638_vm6, %v631_v7, %v1780_v63 }
 0x10d   : > { %v648_v11 = vsel %vm647_vm7, %v639_v9, %v1774_v60  ;;  %v649_v12 = vsel %vm647_vm7, %v640_v10, %v1775_v39  ;;  %v1818_v33 = vpop.permute.xlu2 %1817 }
 0x10e   : > { %v657_v13 = vsel %vm656_vm8, %v648_v11, %v1794_v3  ;;  %v658_v14 = vsel %vm656_vm8, %v649_v12, %v1795_v1  ;;  %v1820_v57 = vunpack.i.h.bf16 %v1818_v33  ;;  %v1819_v58 = vunpack.i.l.bf16 %v1818_v33 }
 0x10f   : > { %v665_v15 = vpack.c.bf16 %v658_v14, %v657_v13 }
 0x110   : > { %v1783_v17 = vpop.permute.xlu1 %1782 }
 0x111   : > { %v1785_v18 = vunpack.i.h.bf16 %v1783_v17  ;;  %v1784_v19 = vunpack.i.l.bf16 %v1783_v17  ;;  %v1798_v20 = vpop.permute.xlu0 %1797  ;;  %769 = vmatmul.bf16.vlgmr.msra.gmra.mxu0 %v665_v15 }
 0x112   : > { %v1800_v27 = vunpack.i.h.bf16 %v1798_v20  ;;  %v1799_v28 = vunpack.i.l.bf16 %v1798_v20 }
 0x113   : > { %v606_v23 = vsel %vm603_vm3, %v1784_v19, %v1789_v22  ;;  %v607_v24 = vsel %vm603_vm3, %v1785_v18, %v1790_v21 }
 0x114   : > { %v615_v25 = vsel %vm612_vm4, %v606_v23, %v1789_v22  ;;  %v616_v26 = vsel %vm612_vm4, %v607_v24, %v1790_v21 }
 0x115   : > { %v625_v34 = vsel %vm621_vm5, %v616_v26, %v1800_v27  ;;  %v624_v35 = vsel %vm621_vm5, %v615_v25, %v1799_v28  ;;  %v1843_v59 = vpop.permute.xlu2 %1842 }
 0x116   : > { %v1845_v11 = vunpack.i.h.bf16 %v1843_v59  ;;  %v1844_v12 = vunpack.i.l.bf16 %v1843_v59 }
 0x118   : > { %v1803_v29 = vpop.permute.xlu1 %1802 }
 0x119   : > { %v1805_v30 = vunpack.i.h.bf16 %v1803_v29  ;;  %v1804_v31 = vunpack.i.l.bf16 %v1803_v29  ;;  %v1823_v32 = vpop.permute.xlu0 %1822 }
 0x11a   : > { %v1825_v36 = vunpack.i.h.bf16 %v1823_v32  ;;  %v1824_v38 = vunpack.i.l.bf16 %v1823_v32 }
 0x11b   : > { %v632_v42 = vsel %vm343_vm0, %v624_v35, %v1804_v31  ;;  %v633_v43 = vsel %vm343_vm0, %v625_v34, %v1805_v30 }
 0x11c   : > { %v641_v44 = vsel %vm638_vm6, %v632_v42, %v1804_v31  ;;  %v642_v45 = vsel %vm638_vm6, %v633_v43, %v1805_v30  ;;  %v668_v46 = vpack.c.bf16 %v1825_v36, %v1824_v38 }
 0x11d   : > { %v650_v47 = vsel %vm647_vm7, %v641_v44, %v1814_v41  ;;  %v651_v48 = vsel %vm647_vm7, %v642_v45, %v1815_v40  ;;  %v1848_v20 = vpop.permute.xlu2 %1847 }
 0x11e   : > { %1619 = vmatmul.msk.bf16.vlgmr.msra.gmra.mxu1 %vm603_vm3, %v668_v46  ;;  %v659_v50 = vsel %vm656_vm8, %v650_v47, %v1824_v38  ;;  %v660_v51 = vsel %vm656_vm8, %v651_v48, %v1825_v36  ;;  %v1850_v28 = vunpack.i.h.bf16 %v1848_v20  ;;  %v1849_v29 = vunpack.i.l.bf16 %v1848_v20 }
 0x11f   : > { %v667_v52 = vpack.c.bf16 %v660_v51, %v659_v50 }
 0x120   : > { %v1808_v53 = vpop.permute.xlu1 %1807 }
 0x121   : > { %v1810_v54 = vunpack.i.h.bf16 %v1808_v53  ;;  %v1809_v55 = vunpack.i.l.bf16 %v1808_v53  ;;  %v1828_v56 = vpop.permute.xlu0 %1827  ;;  %774 = vmatmul.bf16.gmra.mxu0 %v667_v52 }
 0x122   : > { %v1830_v63 = vunpack.i.h.bf16 %v1828_v56  ;;  %v1829_v0 = vunpack.i.l.bf16 %v1828_v56 }
 0x123   : > { %v608_v39 = vsel %vm603_vm3, %v1809_v55, %v1819_v58  ;;  %v609_v60 = vsel %vm603_vm3, %v1810_v54, %v1820_v57 }
 0x124   : > { %v617_v61 = vsel %vm612_vm4, %v608_v39, %v1819_v58  ;;  %v618_v62 = vsel %vm612_vm4, %v609_v60, %v1820_v57  ;;  %v835_v39 = vpack.c.bf16 %v2141_v49, %v2125_v37  ;;  %v1997_v60 = vld [vmem:[%s2575_s4] ss:$0 sm:$0xff] }
 0x125   : > { %v627_v6 = vsel %vm621_vm5, %v618_v62, %v1830_v63  ;;  %v626_v7 = vsel %vm621_vm5, %v617_v61, %v1829_v0  ;;  %v1868_v34 = vpop.permute.xlu2 %1867 }
 0x126   : > { %v1870_v47 = vunpack.i.h.bf16 %v1868_v34  ;;  %v1869_v48 = vunpack.i.l.bf16 %v1868_v34  ;;  %v923_v34 = vld [vmem:[#allocation3 + $0x8] sm:$0x3] }
 0x128   : > { %v1833_v1 = vpop.permute.xlu1 %1832 }
 0x129   : > { %v1835_v3 = vunpack.i.h.bf16 %v1833_v1  ;;  %v1834_v4 = vunpack.i.l.bf16 %v1833_v1  ;;  %v1853_v5 = vpop.permute.xlu0 %1852 }
 0x12a   : > { %v1855_v9 = vunpack.i.h.bf16 %v1853_v5  ;;  %v1854_v10 = vunpack.i.l.bf16 %v1853_v5 }
 0x12b   : > { %v634_v13 = vsel %vm343_vm0, %v626_v7, %v1834_v4  ;;  %v635_v14 = vsel %vm343_vm0, %v627_v6, %v1835_v3 }
 0x12c   : > { %v643_v15 = vsel %vm638_vm6, %v634_v13, %v1834_v4  ;;  %v644_v16 = vsel %vm638_vm6, %v635_v14, %v1835_v3  ;;  %v670_v17 = vpack.c.bf16 %v1855_v9, %v1854_v10 }
 0x12d   : > { %v652_v18 = vsel %vm647_vm7, %v643_v15, %v1844_v12  ;;  %v653_v19 = vsel %vm647_vm7, %v644_v16, %v1845_v11 }
 0x12e   : > { %1620 = vmatmul.msk.bf16.gmra.mxu1 %vm603_vm3, %v670_v17  ;;  %v661_v21 = vsel %vm656_vm8, %v652_v18, %v1854_v10  ;;  %v662_v22 = vsel %vm656_vm8, %v653_v19, %v1855_v9  ;;  %v1737_v19 = vld [vmem:[%s2578_s7 + $0x88] sm:$0xff] }
 0x12f   : > { %v669_v23 = vpack.c.bf16 %v662_v22, %v661_v21  ;;  %v1736_v22 = vld [vmem:[%s2578_s7 + $0x80] sm:$0xff] }
 0x130   : > { %v1838_v24 = vpop.permute.xlu1 %1837 }
 0x131   : > { %v1840_v25 = vunpack.i.h.bf16 %v1838_v24  ;;  %v1839_v26 = vunpack.i.l.bf16 %v1838_v24  ;;  %v1858_v27 = vpop.permute.xlu0 %1857  ;;  %779 = vmatmul.bf16.gmra.mxu0 %v669_v23 }
 0x132   : > { %v1860_v35 = vunpack.i.h.bf16 %v1858_v27  ;;  %v1859_v36 = vunpack.i.l.bf16 %v1858_v27 }
 0x133   : > { %v610_v30 = vsel %vm603_vm3, %v1839_v26, %v1849_v29  ;;  %v611_v31 = vsel %vm603_vm3, %v1840_v25, %v1850_v28 }
 0x134   : > { %v619_v32 = vsel %vm612_vm4, %v610_v30, %v1849_v29  ;;  %v620_v33 = vsel %vm612_vm4, %v611_v31, %v1850_v28 }
 0x135   : > { %v629_v43 = vsel %vm621_vm5, %v620_v33, %v1860_v35  ;;  %v628_v44 = vsel %vm621_vm5, %v619_v32, %v1859_v36  ;;  %v2316_v33 = vld [vmem:[#allocation3] sm:$0xff] }
 0x138   : > { %v1863_v38 = vpop.permute.xlu1 %1862 }
 0x139   : > { %v1865_v40 = vunpack.i.h.bf16 %v1863_v38  ;;  %v1864_v41 = vunpack.i.l.bf16 %v1863_v38  ;;  %v1873_v42 = vpop.permute.xlu0 %1872 }
 0x13a   : > { %v1875_v45 = vunpack.i.h.bf16 %v1873_v42  ;;  %v1874_v46 = vunpack.i.l.bf16 %v1873_v42 }
 0x13b   : > { %v636_v50 = vsel %vm343_vm0, %v628_v44, %v1864_v41  ;;  %v637_v51 = vsel %vm343_vm0, %v629_v43, %v1865_v40 }
 0x13c   : > { %v645_v52 = vsel %vm638_vm6, %v636_v50, %v1864_v41  ;;  %v646_v53 = vsel %vm638_vm6, %v637_v51, %v1865_v40  ;;  %v672_v54 = vpack.c.bf16 %v1875_v45, %v1874_v46  ;;  %v1008_v40 = vrot.slane %v2316_v33, 1 }
 0x13d   : > { %v654_v55 = vsel %vm647_vm7, %v645_v52, %v1869_v48  ;;  %v655_v56 = vsel %vm647_vm7, %v646_v53, %v1870_v47  ;;  %v1009_v41 = vrot.slane %v923_v34, 1 }
 0x13e   : > { %1621 = vmatmul.msk.bf16.vlgmr.msra.gmra.mxu2 %vm603_vm3, %v672_v54  ;;  %v663_v57 = vsel %vm656_vm8, %v654_v55, %v1874_v46  ;;  %v664_v58 = vsel %vm656_vm8, %v655_v56, %v1875_v45 }
 0x13f   : > { %v671_v59 = vpack.c.bf16 %v664_v58, %v663_v57  ;;  %1463 = vmatpush.bf16.msra.mxu2 %v1737_v19  ;;  %v1010_v45 = vsel %vm478_vm2, %v1008_v40, %v1009_v41  ;;  %v1727_v41 = vld [vmem:[%s2578_s7 + $0x38] sm:$0xff] }
 0x140   : > { %1399 = vmatpush.bf16.msrb.mxu3 %v1727_v41  ;;  %v1731_v41 = vld [vmem:[%s2578_s7 + $0x58] sm:$0xff] }
 0x141   : > { %784 = vmatmul.bf16.gmra.mxu0 %v671_v59 }
 0x143   : > { %1464 = vmatpush.bf16.msra.mxu2 %v1736_v22 }
 0x14e   : > { %1626 = vmatmul.msk.bf16.vlgmr.msrb.gmra.mxu2 %vm603_vm3, %v835_v39 }
 0x151   : > { %1618 = vmatmul.msk.bf16.vlgmr.msrb.gmra.mxu0 %vm603_vm3, %v2232_v8 }
 0x18e   : > { %v770_v37 = vpop.f32.mrf.mxu0 }
 0x18f   : > { %v771_v29 = vadd.f32 %v1997_v60, %v770_v37 }
 0x196   : > { %v772_v49 = vpop.f32.mrf.mxu0 }
 0x197   : > { %v773_v35 = vadd.f32 %v1997_v60, %v772_v49 }
 0x19b   : > { %v804_v8 = vpop.f32.mrf.mxu1 }
 0x19e   : > { %v775_v61 = vpop.f32.mrf.mxu0 }
 0x19f   : > { %v776_v62 = vadd.f32 %v1997_v60, %v775_v61  ;;  %v1097_v61 = vrot.slane %v2316_v33, 2 }
 0x1a1   : > { %v805_v63 = vadd.f32 %v804_v8, %v776_v62  ;;  %v1098_v62 = vrot.slane %v923_v34, 2 }
 0x1a3   : > { %v821_v0 = vmax.f32 %v805_v63, 0.0  ;;  %v806_v1 = vpop.f32.mrf.mxu1 }
 0x1a5   : > { %916 = vst.msk [vmem:[#allocation3 + $0x31] sm:$0xff] %vm612_vm4, %v821_v0 }
 0x1a6   : > { %v777_v3 = vpop.f32.mrf.mxu0 }
 0x1a7   : > { %v778_v4 = vadd.f32 %v1997_v60, %v777_v3 }
 0x1a9   : > { %v807_v5 = vadd.f32 %v806_v1, %v778_v4 }
 0x1ab   : > { %v822_v6 = vmax.f32 %v807_v5, 0.0  ;;  %v809_v2 = vpop.f32.mrf.mxu1 }
 0x1ac   : > { %v2328_v51 = vld [vmem:[#allocation3 + $0x30] sm:$0xff]  ;;  %v929_v52 = vld [vmem:[#allocation3 + $0x38] sm:$0x3] }
 0x1ad   : > { %917 = vst.msk [vmem:[#allocation3 + $0x41] sm:$0xff] %vm612_vm4, %v822_v6  ;;  %v1106_v55 = vrot.slane %v2328_v51, 2  ;;  %v1107_v56 = vrot.slane %v929_v52, 2  ;;  %v1017_v5 = vrot.slane %v2328_v51, 1  ;;  %v1018_v6 = vrot.slane %v929_v52, 1 }
 0x1ae   : > { %v780_v7 = vpop.f32.mrf.mxu0 }
 0x1af   : > { %v781_v9 = vadd.f32 %v1997_v60, %v780_v7  ;;  %v1108_v1 = vsel %vm1096_vm10, %v1106_v55, %v1107_v56  ;;  %v1099_v7 = vsel %vm1096_vm10, %v1097_v61, %v1098_v62  ;;  %v1725_v55 = vld [vmem:[%s2578_s7 + $0x28] sm:$0xff] }
 0x1b1   : > { %v810_v10 = vadd.f32 %v809_v2, %v781_v9  ;;  %v2355_v9 = vsel %vm478_vm2, %v1017_v5, %v1018_v6 }
 0x1b3   : > { %v823_v11 = vmax.f32 %v810_v10, 0.0  ;;  %v811_v14 = vpop.f32.mrf.mxu1 }
 0x1b5   : > { %918 = vst.msk [vmem:[#allocation3 + $0x51] sm:$0xff] %vm612_vm4, %v823_v11 }
 0x1b6   : > { %v782_v12 = vpop.f32.mrf.mxu0 }
 0x1b7   : > { %v783_v13 = vadd.f32 %v1997_v60, %v782_v12  ;;  %v2359_v12 = vld [vmem:[#allocation3 + $0x40] sm:$0xff] }
 0x1b9   : > { %v812_v15 = vadd.f32 %v811_v14, %v783_v13  ;;  %v931_v14 = vld [vmem:[#allocation3 + $0x48] sm:$0x3] }
 0x1bb   : > { %v824_v16 = vmax.f32 %v812_v15, 0.0 }
 0x1bc   : > { %v2361_v13 = vld [vmem:[#allocation3 + $0x50] sm:$0xff]  ;;  %v933_v15 = vld [vmem:[#allocation3 + $0x58] sm:$0x3] }
 0x1bd   : > { %919 = vst.msk [vmem:[#allocation3 + $0x61] sm:$0xff] %vm612_vm4, %v824_v16  ;;  %v1109_v16 = vrot.slane %v2359_v12, 2  ;;  %v1113_v19 = vrot.slane %v933_v15, 2 }
 0x1be   : > { %v785_v17 = vpop.f32.mrf.mxu0 }
 0x1bf   : > { %v786_v18 = vadd.f32 %v1997_v60, %v785_v17  ;;  %v1110_v17 = vrot.slane %v931_v14, 2 }
 0x1c1   : > { %v814_v20 = vpop.f32.mrf.mxu2  ;;  %v1111_v22 = vsel %vm1096_vm10, %v1109_v16, %v1110_v17 }
 0x1c2   : > { %v815_v21 = vadd.f32 %v814_v20, %v786_v18  ;;  %v1112_v18 = vrot.slane %v2361_v13, 2  ;;  %v1901_v20 = vpack.i.bf16 %v2359_v12, %v2328_v51 }
 0x1c4   : > { %v825_v23 = vmax.f32 %v815_v21, 0.0  ;;  %v1906_v21 = vpack.i.bf16 %v2361_v13, %v2359_v12 }
 0x1c6   : > { %920 = vst.msk [vmem:[#allocation3 + $0x71] sm:$0xff] %vm612_vm4, %v825_v23  ;;  %v787_v24 = vpop.f32.mrf.mxu0  ;;  %v1114_v23 = vsel %vm1096_vm10, %v1112_v18, %v1113_v19 }
 0x1c7   : > { %v788_v25 = vadd.f32 %v1997_v60, %v787_v24  ;;  %v1023_v24 = vrot.slane %v2361_v13, 1  ;;  %v1956_v62 = vpack.i.bf16 %v1114_v23, %v1111_v22 }
 0x1c9   : > { %v816_v26 = vpop.f32.mrf.mxu2 }
 0x1ca   : > { %v817_v27 = vadd.f32 %v816_v26, %v788_v25  ;;  %v1024_v25 = vrot.slane %v933_v15, 1  ;;  %v1926_v26 = vpack.i.bf16 %v1111_v22, %v1108_v1 }
 0x1cc   : > { %v826_v28 = vmax.f32 %v817_v27, 0.0  ;;  %v1236_v27 = vpack.c.bf16 %v1114_v23, %v1111_v22 }
 0x1cd   : > { %v937_v40 = vld [vmem:[#allocation3 + $0x78] sm:$0x3] }
 0x1ce   : > { %921 = vst.msk [vmem:[#allocation3 + $0x81] sm:$0xff] %vm612_vm4, %v826_v28  ;;  %v799_v30 = vpop.f32.mrf.mxu0  ;;  %v1020_v28 = vrot.slane %v2359_v12, 1 }
 0x1cf   : > { %v800_v31 = vadd.f32 %v799_v30, %v771_v29  ;;  %v1021_v29 = vrot.slane %v931_v14, 1  ;;  %v2381_v30 = vsel %vm478_vm2, %v1023_v24, %v1024_v25 }
 0x1d1   : > { %v819_v32 = vmax.f32 %v800_v31, 0.0  ;;  %v2384_v31 = vsel %vm478_vm2, %v1020_v28, %v1021_v29  ;;  %v1723_v28 = vld [vmem:[%s2578_s7 + $0x18] sm:$0xff]  ;;  %v1734_v29 = vld [vmem:[%s2578_s7 + $0x70] sm:$0xff] }
 0x1d3   : > { %914 = vst.msk [vmem:[#allocation3 + $0x11] sm:$0xff] %vm612_vm4, %v819_v32  ;;  %v1911_v32 = vpack.i.bf16 %v2381_v30, %v2384_v31 }
 0x1d6   : > { %v801_v36 = vpop.f32.mrf.mxu0 }
 0x1d7   : > { %v802_v38 = vadd.f32 %v801_v36, %v773_v35  ;;  %v2388_v35 = vld [vmem:[#allocation3 + $0x60] sm:$0xff]  ;;  %v2390_v36 = vld [vmem:[#allocation3 + $0x70] sm:$0xff] }
 0x1d8   : > { %v1941_v52 = vpack.i.bf16 %v2390_v36, %v2388_v35  ;;  %v1029_v56 = vrot.slane %v2390_v36, 1 }
 0x1d9   : > { %v820_v42 = vmax.f32 %v802_v38, 0.0  ;;  %v935_v38 = vld [vmem:[#allocation3 + $0x68] sm:$0x3] }
 0x1da   : > { %v2319_v43 = vld [vmem:[#allocation3 + $0x10] sm:$0xff]  ;;  %v925_v44 = vld [vmem:[#allocation3 + $0x18] sm:$0x3] }
 0x1db   : > { %915 = vst.msk [vmem:[#allocation3 + $0x21] sm:$0xff] %vm612_vm4, %v820_v42  ;;  %v1011_v46 = vrot.slane %v2319_v43, 1  ;;  %v1012_v47 = vrot.slane %v925_v44, 1  ;;  %v1100_v53 = vrot.slane %v2319_v43, 2  ;;  %v1101_v54 = vrot.slane %v925_v44, 2 }
 0x1dc   : > { %v1115_v42 = vrot.slane %v2388_v35, 2  ;;  %v1116_v44 = vrot.slane %v935_v38, 2 }
 0x1dd   : > { %v2325_v48 = vsel %vm478_vm2, %v1011_v46, %v1012_v47  ;;  %v1102_v63 = vsel %vm1096_vm10, %v1100_v53, %v1101_v54  ;;  %v1119_v46 = vrot.slane %v937_v40, 2  ;;  %v1726_v47 = vld [vmem:[%s2578_s7 + $0x30] sm:$0xff] }
 0x1de   : > { %v1876_v50 = vpack.i.bf16 %v2325_v48, %v1010_v45  ;;  %v1891_v11 = vpack.i.bf16 %v1102_v63, %v1099_v7  ;;  %v1118_v45 = vrot.slane %v2390_v36, 2  ;;  %v1117_v53 = vsel %vm1096_vm10, %v1115_v42, %v1116_v44  ;;  %1400 = vmatpush.bf16.msrb.mxu3 %v1726_v47  ;;  %v1720_v42 = vld [vmem:[%s2578_s7] sm:$0xff]  ;;  %v1730_v44 = vld [vmem:[%s2578_s7 + $0x50] sm:$0xff] }
 0x1e0   : > { %1877 = vrot.lane.b32.xlu0 %v1876_v50, %s2012_s30  ;;  %v1931_v50 = vpack.i.bf16 %v2388_v35, %v2361_v13  ;;  %v1120_v54 = vsel %vm1096_vm10, %v1118_v45, %v1119_v46  ;;  %v1729_v45 = vld [vmem:[%s2578_s7 + $0x48] sm:$0xff]  ;;  %v1728_v46 = vld [vmem:[%s2578_s7 + $0x40] sm:$0xff] }
 0x1e1   : > { %v1986_v25 = vpack.i.bf16 %v1120_v54, %v1117_v53 }
 0x1e2   : > { %v2333_v57 = vld [vmem:[#allocation3 + $0x20] sm:$0xff]  ;;  %v927_v58 = vld [vmem:[#allocation3 + $0x28] sm:$0x3]  ;;  %1401 = vmatpush.bf16.msrb.mxu3 %v1725_v55 }
 0x1e3   : > { %v1886_v59 = vpack.i.bf16 %v2328_v51, %v2333_v57  ;;  %v1881_v39 = vpack.i.bf16 %v2333_v57, %v2319_v43  ;;  %v1103_v37 = vrot.slane %v2333_v57, 2  ;;  %v1104_v49 = vrot.slane %v927_v58, 2 }
 0x1e4   : > { %v1014_v8 = vrot.slane %v2333_v57, 1  ;;  %v1015_v60 = vrot.slane %v927_v58, 1  ;;  %v1030_v58 = vrot.slane %v937_v40, 1  ;;  %v1732_v40 = vld [vmem:[%s2578_s7 + $0x60] sm:$0xff] }
 0x1e5   : > { %1887 = vrot.lane.b32.xlu2 %v1886_v59, %s2007_s15  ;;  %1882 = vrot.lane.b32.xlu1 %v1881_v39, %s2009_s17  ;;  %v1105_v0 = vsel %vm1096_vm10, %v1103_v37, %v1104_v49  ;;  %v1961_v59 = vpack.i.bf16 %v1117_v53, %v1114_v23  ;;  %v1239_v39 = vpack.c.bf16 %v1120_v54, %v1117_v53  ;;  %v1026_v37 = vrot.slane %v2388_v35, 1 }
 0x1e6   : > { %v1233_v3 = vpack.c.bf16 %v1108_v1, %v1105_v0  ;;  %v1916_v4 = vpack.i.bf16 %v1105_v0, %v1102_v63  ;;  %v2351_v2 = vsel %vm478_vm2, %v1014_v8, %v1015_v60  ;;  %v1936_v34 = vpack.i.bf16 %v1108_v1, %v1105_v0  ;;  %v940_v63 = vld [vmem:[#allocation3 + $0x90] sm:$0xff]  ;;  %v938_v0 = vld [vmem:[#allocation3 + $0x80] sm:$0xff]  ;;  %v939_v1 = vld [vmem:[#allocation3 + $0x88] sm:$0x3] }
 0x1e7   : > { %v1896_v10 = vpack.i.bf16 %v2355_v9, %v2351_v2  ;;  %v1027_v49 = vrot.slane %v935_v38, 1  ;;  %v2419_v8 = vsel %vm478_vm2, %v1029_v56, %v1030_v58  ;;  %v1145_v5 = vrot.slane %v938_v0, 2  ;;  %v1721_v38 = vld [vmem:[%s2578_s7 + $0x8] sm:$0xff] }
 0x1e8   : > { %1917 = vrot.lane.b32.xlu0 %v1916_v4, %s2012_s30  ;;  %1702 = vmatmul.msk.bf16.vlgmr.msra.gmra.mxu2 %vm612_vm4, %v1233_v3  ;;  %v941_v3 = vld [vmem:[#allocation3 + $0x98] sm:$0x3]  ;;  %v1172_v4 = vrot.slane %v940_v63, 2  ;;  %v1146_v6 = vrot.slane %v939_v1, 2  ;;  %v1069_v16 = vrot.slane %v940_v63, 1  ;;  %v1057_v17 = vrot.slane %v938_v0, 1 }
 0x1e9   : > { %v2422_v60 = vsel %vm478_vm2, %v1026_v37, %v1027_v49  ;;  %v1173_v7 = vrot.slane %v941_v3, 2  ;;  %v1058_v18 = vrot.slane %v939_v1, 1  ;;  %v1070_v19 = vrot.slane %v941_v3, 1 }
 0x1ea   : > { %v1951_v61 = vpack.i.bf16 %v2419_v8, %v2422_v60  ;;  %v1147_v14 = vsel %vm1096_vm10, %v1145_v5, %v1146_v6 }
 0x1eb   : > { %v1174_v15 = vsel %vm1096_vm10, %v1172_v4, %v1173_v7  ;;  %v2437_v22 = vsel %vm478_vm2, %v1057_v17, %v1058_v18  ;;  %v1071_v23 = vsel %vm478_vm2, %v1069_v16, %v1070_v19 }
 0x1ec   : > { %v1981_v24 = vpack.i.bf16 %v1071_v23, %v2437_v22 }
 0x1ed   : > { %1897 = vrot.lane.b32.xlu1 %v1896_v10, %s2009_s17  ;;  %1892 = vrot.lane.b32.xlu2 %v1891_v11, %s2007_s15  ;;  %v1971_v11 = vpack.i.bf16 %v940_v63, %v938_v0 }
 0x1f0   : > { %1922 = vrot.lane.b32.xlu0 %v1896_v10, %s2012_s30  ;;  %v1966_v10 = vpack.i.bf16 %v938_v0, %v2390_v36 }
 0x1f5   : > { %1902 = vrot.lane.b32.xlu1 %v1901_v20, %s2009_s17  ;;  %1907 = vrot.lane.b32.xlu2 %v1906_v21, %s2007_s15  ;;  %v1991_v20 = vpack.i.bf16 %v1147_v14, %v1120_v54  ;;  %v1242_v21 = vpack.c.bf16 %v1174_v15, %v1147_v14 }
 0x1f8   : > { %1927 = vrot.lane.b32.xlu0 %v1926_v26, %s2012_s30  ;;  %1703 = vmatmul.msk.bf16.gmra.mxu2 %vm612_vm4, %v1236_v27  ;;  %v1724_v26 = vld [vmem:[%s2578_s7 + $0x20] sm:$0xff]  ;;  %v1735_v27 = vld [vmem:[%s2578_s7 + $0x78] sm:$0xff] }
 0x1f9   : > { %1402 = vmatpush.bf16.msrb.mxu3 %v1724_v26  ;;  %1428 = vmatpush.bf16.msrb.mxu1 %v1735_v27 }
 0x1fd   : > { %1912 = vrot.lane.b32.xlu1 %v1911_v32, %s2009_s17  ;;  %1937 = vrot.lane.b32.xlu2 %v1936_v34, %s2007_s15  ;;  %v1733_v34 = vld [vmem:[%s2578_s7 + $0x68] sm:$0xff] }
 0x1fe   : > { %1403 = vmatpush.bf16.msrb.mxu3 %v1723_v28  ;;  %1429 = vmatpush.bf16.msrb.mxu1 %v1734_v29 }
 0x200   : > { %1947 = vrot.lane.b32.xlu0 %v1911_v32, %s2012_s30  ;;  %v1722_v32 = vld [vmem:[%s2578_s7 + $0x10] sm:$0xff] }
 0x202   : > { %1404 = vmatpush.bf16.msrb.mxu3 %v1722_v32  ;;  %1430 = vmatpush.bf16.msrb.mxu1 %v1733_v34 }
 0x205   : > { %1932 = vrot.lane.b32.xlu1 %v1931_v50, %s2009_s17  ;;  %1942 = vrot.lane.b32.xlu2 %v1941_v52, %s2007_s15 }
 0x206   : > { %1405 = vmatpush.bf16.msrb.mxu3 %v1721_v38  ;;  %1431 = vmatpush.bf16.msrb.mxu1 %v1732_v40 }
 0x208   : > { %1962 = vrot.lane.b32.xlu0 %v1961_v59, %s2012_s30  ;;  %1704 = vmatmul.msk.bf16.gmra.mxu2 %vm612_vm4, %v1239_v39 }
 0x20a   : > { %1432 = vmatpush.bf16.msrb.mxu1 %v1731_v41  ;;  %1406 = vmatpush.bf16.msrb.mxu3 %v1720_v42 }
 0x20d   : > { %1952 = vrot.lane.b32.xlu1 %v1951_v61, %s2009_s17  ;;  %1957 = vrot.lane.b32.xlu2 %v1956_v62, %s2007_s15 }
 0x20e   : > { %1433 = vmatpush.bf16.msrb.mxu1 %v1730_v44 }
 0x210   : > { %1977 = vrot.lane.b32.xlu0 %v1951_v61, %s2012_s30 }
 0x212   : > { %1434 = vmatpush.bf16.msrb.mxu1 %v1729_v45 }
 0x215   : > { %1967 = vrot.lane.b32.xlu1 %v1966_v10, %s2009_s17  ;;  %1972 = vrot.lane.b32.xlu2 %v1971_v11, %s2007_s15 }
 0x216   : > { %1435 = vmatpush.bf16.msrb.mxu1 %v1728_v46 }
 0x218   : > { %1992 = vrot.lane.b32.xlu0 %v1991_v20, %s2012_s30  ;;  %1705 = vmatmul.msk.bf16.gmra.mxu2 %vm612_vm4, %v1242_v21 }
 0x21d   : > { %1982 = vrot.lane.b32.xlu1 %v1981_v24, %s2009_s17  ;;  %1987 = vrot.lane.b32.xlu2 %v1986_v25, %s2007_s15 }
 0x23f   : > { %v1888_v47 = vpop.permute.xlu2 %1887 }
 0x240   : > { %v1890_v56 = vunpack.i.h.bf16 %v1888_v47  ;;  %v1889_v58 = vunpack.i.l.bf16 %v1888_v47 }
 0x247   : > { %v1893_v50 = vpop.permute.xlu2 %1892 }
 0x248   : > { %v1895_v10 = vunpack.i.h.bf16 %v1893_v50 }
 0x24f   : > { %v1908_v0 = vpop.permute.xlu2 %1907 }
 0x250   : > { %v1910_v27 = vunpack.i.h.bf16 %v1908_v0 }
 0x252   : > { %v1878_v52 = vpop.permute.xlu0 %1877 }
 0x253   : > { %v1880_v59 = vunpack.i.h.bf16 %v1878_v52  ;;  %v1879_v39 = vunpack.i.l.bf16 %v1878_v52 }
 0x257   : > { %v1883_v53 = vpop.permute.xlu1 %1882  ;;  %v1938_v23 = vpop.permute.xlu2 %1937 }
 0x258   : > { %v1885_v54 = vunpack.i.h.bf16 %v1883_v53  ;;  %v1884_v55 = vunpack.i.l.bf16 %v1883_v53  ;;  %v1940_v52 = vunpack.i.h.bf16 %v1938_v23 }
 0x25a   : > { %v1184_v37 = vsel %vm612_vm4, %v2319_v43, %v1885_v54  ;;  %v1183_v49 = vsel %vm612_vm4, %v2316_v33, %v1884_v55  ;;  %v1918_v61 = vpop.permute.xlu0 %1917  ;;  %v1894_v43 = vunpack.i.l.bf16 %v1893_v50 }
 0x25b   : > { %v1191_v62 = vsel %vm343_vm0, %v1183_v49, %v1889_v58  ;;  %v1192_v63 = vsel %vm343_vm0, %v1184_v37, %v1890_v56  ;;  %v1920_v11 = vunpack.i.h.bf16 %v1918_v61  ;;  %v1919_v14 = vunpack.i.l.bf16 %v1918_v61 }
 0x25c   : > { %v1199_v1 = vsel %vm647_vm7, %v1191_v62, %v1879_v39  ;;  %v1200_v3 = vsel %vm647_vm7, %v1192_v63, %v1880_v59 }
 0x25d   : > { %v1231_v4 = vpack.c.bf16 %v1200_v3, %v1199_v1 }
 0x25f   : > { %v1898_v5 = vpop.permute.xlu1 %1897  ;;  %1407 = vmatmul.bf16.vlgmr.msrb.gmra.mxu3 %v1231_v4  ;;  %v1943_v46 = vpop.permute.xlu2 %1942 }
 0x260   : > { %v1900_v6 = vunpack.i.h.bf16 %v1898_v5  ;;  %v1899_v7 = vunpack.i.l.bf16 %v1898_v5  ;;  %v1944_v1 = vunpack.i.l.bf16 %v1943_v46 }
 0x262   : > { %v1208_v33 = vsel %vm612_vm4, %v2351_v2, %v1900_v6  ;;  %v1207_v15 = vsel %vm612_vm4, %v2325_v48, %v1899_v7  ;;  %v1923_v16 = vpop.permute.xlu0 %1922  ;;  %v1909_v2 = vunpack.i.l.bf16 %v1908_v0  ;;  %v1945_v0 = vunpack.i.h.bf16 %v1943_v46 }
 0x263   : > { %v1215_v17 = vsel %vm343_vm0, %v1207_v15, %v1894_v43  ;;  %v1216_v18 = vsel %vm343_vm0, %v1208_v33, %v1895_v10  ;;  %v1925_v28 = vunpack.i.h.bf16 %v1923_v16  ;;  %v1924_v29 = vunpack.i.l.bf16 %v1923_v16 }
 0x264   : > { %v1223_v19 = vsel %vm647_vm7, %v1215_v17, %v1919_v14  ;;  %v1224_v20 = vsel %vm647_vm7, %v1216_v18, %v1920_v11 }
 0x265   : > { %v1232_v21 = vpack.c.bf16 %v1224_v20, %v1223_v19 }
 0x267   : > { %v1903_v24 = vpop.permute.xlu1 %1902  ;;  %1436 = vmatmul.bf16.vlgmr.msrb.gmra.mxu1 %v1232_v21 }
 0x268   : > { %v1905_v25 = vunpack.i.h.bf16 %v1903_v24  ;;  %v1904_v26 = vunpack.i.l.bf16 %v1903_v24 }
 0x26a   : > { %v1186_v48 = vsel %vm612_vm4, %v2328_v51, %v1905_v25  ;;  %v1185_v32 = vsel %vm612_vm4, %v2333_v57, %v1904_v26  ;;  %v1928_v34 = vpop.permute.xlu0 %1927  ;;  %v1939_v51 = vunpack.i.l.bf16 %v1938_v23 }
 0x26b   : > { %v1193_v38 = vsel %vm343_vm0, %v1185_v32, %v1909_v2  ;;  %v1194_v40 = vsel %vm343_vm0, %v1186_v48, %v1910_v27  ;;  %v1930_v53 = vunpack.i.h.bf16 %v1928_v34  ;;  %v1929_v54 = vunpack.i.l.bf16 %v1928_v34 }
 0x26c   : > { %v1201_v41 = vsel %vm647_vm7, %v1193_v38, %v1924_v29  ;;  %v1202_v42 = vsel %vm647_vm7, %v1194_v40, %v1925_v28 }
 0x26d   : > { %v1234_v44 = vpack.c.bf16 %v1202_v42, %v1201_v41 }
 0x26f   : > { %v1913_v45 = vpop.permute.xlu1 %1912  ;;  %1412 = vmatmul.bf16.gmra.mxu3 %v1234_v44 }
 0x270   : > { %v1915_v47 = vunpack.i.h.bf16 %v1913_v45  ;;  %v1914_v50 = vunpack.i.l.bf16 %v1913_v45 }
 0x272   : > { %v1210_v57 = vsel %vm612_vm4, %v2384_v31, %v1915_v47  ;;  %v1209_v55 = vsel %vm612_vm4, %v2355_v9, %v1914_v50  ;;  %v1948_v56 = vpop.permute.xlu0 %1947  ;;  %v1958_v31 = vpop.permute.xlu2 %1957 }
 0x273   : > { %v1217_v58 = vsel %vm343_vm0, %v1209_v55, %v1939_v51  ;;  %v1218_v59 = vsel %vm343_vm0, %v1210_v57, %v1940_v52  ;;  %v1950_v3 = vunpack.i.h.bf16 %v1948_v56  ;;  %v1949_v4 = vunpack.i.l.bf16 %v1948_v56 }
 0x274   : > { %v1225_v39 = vsel %vm647_vm7, %v1217_v58, %v1929_v54  ;;  %v1226_v37 = vsel %vm647_vm7, %v1218_v59, %v1930_v53  ;;  %v1960_v17 = vunpack.i.h.bf16 %v1958_v31  ;;  %v1959_v18 = vunpack.i.l.bf16 %v1958_v31 }
 0x275   : > { %v1235_v49 = vpack.c.bf16 %v1226_v37, %v1225_v39 }
 0x277   : > { %v1933_v61 = vpop.permute.xlu1 %1932  ;;  %1441 = vmatmul.bf16.gmra.mxu1 %v1235_v49 }
 0x278   : > { %v1935_v62 = vunpack.i.h.bf16 %v1933_v61  ;;  %v1934_v63 = vunpack.i.l.bf16 %v1933_v61  ;;  %v877_v61 = vpop.f32.mrf.mxu3 }
 0x27a   : > { %v1188_v9 = vsel %vm612_vm4, %v2361_v13, %v1935_v62  ;;  %v1187_v5 = vsel %vm612_vm4, %v2359_v12, %v1934_v63  ;;  %v1963_v6 = vpop.permute.xlu0 %1962  ;;  %v1973_v24 = vpop.permute.xlu2 %1972 }
 0x27b   : > { %v1195_v7 = vsel %vm343_vm0, %v1187_v5, %v1944_v1  ;;  %v1196_v10 = vsel %vm343_vm0, %v1188_v9, %v1945_v0  ;;  %v1965_v13 = vunpack.i.h.bf16 %v1963_v6  ;;  %v1964_v19 = vunpack.i.l.bf16 %v1963_v6  ;;  %v872_v1 = vpop.f32.mrf.mxu2 }
 0x27c   : > { %v1203_v43 = vsel %vm647_vm7, %v1195_v7, %v1949_v4  ;;  %v1204_v11 = vsel %vm647_vm7, %v1196_v10, %v1950_v3  ;;  %v1975_v32 = vunpack.i.h.bf16 %v1973_v24  ;;  %v1996_v4 = vld [vmem:[%s2577_s6] ss:$0 sm:$0xff] }
 0x27d   : > { %v1237_v14 = vpack.c.bf16 %v1204_v11, %v1203_v43  ;;  %v873_v9 = vadd.f32 %v1996_v4, %v872_v1 }
 0x27f   : > { %v1953_v33 = vpop.permute.xlu1 %1952  ;;  %1417 = vmatmul.bf16.gmra.mxu3 %v1237_v14 }
 0x280   : > { %v1955_v15 = vunpack.i.h.bf16 %v1953_v33  ;;  %v1954_v16 = vunpack.i.l.bf16 %v1953_v33  ;;  %v879_v62 = vpop.f32.mrf.mxu3 }
 0x282   : > { %v1212_v12 = vsel %vm612_vm4, %v2422_v60, %v1955_v15  ;;  %v1211_v20 = vsel %vm612_vm4, %v2381_v30, %v1954_v16  ;;  %v1978_v27 = vpop.permute.xlu0 %1977  ;;  %v1974_v60 = vunpack.i.l.bf16 %v1973_v24  ;;  %v1988_v47 = vpop.permute.xlu2 %1987 }
 0x283   : > { %v1219_v21 = vsel %vm343_vm0, %v1211_v20, %v1959_v18  ;;  %v1220_v23 = vsel %vm343_vm0, %v1212_v12, %v1960_v17  ;;  %v1980_v34 = vunpack.i.h.bf16 %v1978_v27  ;;  %v1979_v38 = vunpack.i.l.bf16 %v1978_v27 }
 0x284   : > { %v1227_v25 = vsel %vm647_vm7, %v1219_v21, %v1964_v19  ;;  %v1228_v26 = vsel %vm647_vm7, %v1220_v23, %v1965_v13  ;;  %v1990_v54 = vunpack.i.h.bf16 %v1988_v47  ;;  %v878_v13 = vadd.f32 %v1996_v4, %v877_v61 }
 0x285   : > { %v1238_v2 = vpack.c.bf16 %v1228_v26, %v1227_v25 }
 0x287   : > { %v1968_v28 = vpop.permute.xlu1 %1967  ;;  %1446 = vmatmul.bf16.gmra.mxu1 %v1238_v2 }
 0x288   : > { %v1970_v29 = vunpack.i.h.bf16 %v1968_v28  ;;  %v1969_v48 = vunpack.i.l.bf16 %v1968_v28  ;;  %v882_v63 = vpop.f32.mrf.mxu3 }
 0x289   : > { %v883_v2 = vadd.f32 %v1996_v4, %v882_v63 }
 0x28a   : > { %v1190_v30 = vsel %vm612_vm4, %v2390_v36, %v1970_v29  ;;  %v1189_v40 = vsel %vm612_vm4, %v2388_v35, %v1969_v48  ;;  %v1993_v50 = vpop.permute.xlu0 %1992  ;;  %v1989_v36 = vunpack.i.l.bf16 %v1988_v47 }
 0x28b   : > { %v1197_v41 = vsel %vm343_vm0, %v1189_v40, %v1974_v60  ;;  %v1198_v42 = vsel %vm343_vm0, %v1190_v30, %v1975_v32  ;;  %v1995_v57 = vunpack.i.h.bf16 %v1993_v50  ;;  %v1994_v55 = vunpack.i.l.bf16 %v1993_v50 }
 0x28c   : > { %v1205_v44 = vsel %vm647_vm7, %v1197_v41, %v1979_v38  ;;  %v1206_v45 = vsel %vm647_vm7, %v1198_v42, %v1980_v34  ;;  %v880_v41 = vadd.f32 %v1996_v4, %v879_v62 }
 0x28d   : > { %v1240_v46 = vpack.c.bf16 %v1206_v45, %v1205_v44 }
 0x28f   : > { %v1983_v52 = vpop.permute.xlu1 %1982  ;;  %1422 = vmatmul.bf16.gmra.mxu3 %v1240_v46 }
 0x290   : > { %v1985_v51 = vunpack.i.h.bf16 %v1983_v52  ;;  %v1984_v53 = vunpack.i.l.bf16 %v1983_v52  ;;  %v884_v0 = vpop.f32.mrf.mxu3 }
 0x291   : > { %v885_v60 = vadd.f32 %v1996_v4, %v884_v0 }
 0x292   : > { %v1214_v35 = vsel %vm612_vm4, %v2437_v22, %v1985_v51  ;;  %v1213_v56 = vsel %vm612_vm4, %v2419_v8, %v1984_v53  ;;  %v874_v22 = vpop.f32.mrf.mxu2 }
 0x293   : > { %v1221_v58 = vsel %vm343_vm0, %v1213_v56, %v1989_v36  ;;  %v1222_v59 = vsel %vm343_vm0, %v1214_v35, %v1990_v54  ;;  %v875_v11 = vadd.f32 %v1996_v4, %v874_v22 }
 0x294   : > { %v1229_v39 = vsel %vm647_vm7, %v1221_v58, %v1994_v55  ;;  %v1230_v37 = vsel %vm647_vm7, %v1222_v59, %v1995_v57 }
 0x295   : > { %v1241_v49 = vpack.c.bf16 %v1230_v37, %v1229_v39 }
 0x297   : > { %1451 = vmatmul.bf16.gmra.mxu1 %v1241_v49 }
 0x298   : > { %v887_v31 = vpop.f32.mrf.mxu3 }
 0x299   : > { %v888_v46 = vadd.f32 %v1996_v4, %v887_v31 }
 0x29a   : > { %v2546_v3 = vpop.f32.mrf.mxu2 }
 0x2a0   : > { %v889_v8 = vpop.f32.mrf.mxu3 }
 0x2a1   : > { %v890_v55 = vadd.f32 %v1996_v4, %v889_v8 }
 0x2a2   : > { %v1468_v5 = vpop.f32.mrf.mxu2 }
 0x2aa   : > { %v1471_v15 = vpop.f32.mrf.mxu2 }
 0x2b2   : > { %v1473_v23 = vpop.f32.mrf.mxu2 }
 0x2ba   : > { %v1476_v27 = vpop.f32.mrf.mxu2 }
 0x2c2   : > { %v1478_v34 = vpop.f32.mrf.mxu2 }
 0x2ca   : > { %v1481_v51 = vpop.f32.mrf.mxu2 }
 0x2d2   : > { %v1483_v39 = vpop.f32.mrf.mxu2 }
 0x2e2   : > { %v1408_v6 = vpop.f32.mrf.mxu3 }
 0x2e3   : > { %v1409_v7 = vadd.f32 %v1408_v6, %v873_v9 }
 0x2e4   : > { %v1437_v10 = vpop.f32.mrf.mxu1 }
 0x2e5   : > { %v1438_v43 = vadd.f32 %v1437_v10, %v1409_v7 }
 0x2e7   : > { %v1467_v62 = vadd.f32 %v2546_v3, %v1438_v43 }
 0x2ea   : > { %v1410_v14 = vpop.f32.mrf.mxu3 }
 0x2eb   : > { %v1411_v33 = vadd.f32 %v1410_v14, %v875_v11 }
 0x2ec   : > { %v1439_v16 = vpop.f32.mrf.mxu1 }
 0x2ed   : > { %v1440_v17 = vadd.f32 %v1439_v16, %v1411_v33 }
 0x2ef   : > { %v1469_v18 = vadd.f32 %v1468_v5, %v1440_v17 }
 0x2f1   : > { %1487 = vrot.lane.b32.xlu1 %v1469_v18, %s2009_s17 }
 0x2f2   : > { %v1413_v19 = vpop.f32.mrf.mxu3 }
 0x2f3   : > { %v1414_v12 = vadd.f32 %v1413_v19, %v878_v13 }
 0x2f4   : > { %v1442_v20 = vpop.f32.mrf.mxu1 }
 0x2f5   : > { %v1443_v21 = vadd.f32 %v1442_v20, %v1414_v12 }
 0x2f7   : > { %v1472_v24 = vadd.f32 %v1471_v15, %v1443_v21 }
 0x2f9   : > { %1491 = vrot.lane.b32.xlu0 %v1472_v24, %s2007_s15 }
 0x2fa   : > { %v1415_v25 = vpop.f32.mrf.mxu3 }
 0x2fb   : > { %v1416_v44 = vadd.f32 %v1415_v25, %v880_v41 }
 0x2fc   : > { %v1444_v26 = vpop.f32.mrf.mxu1 }
 0x2fd   : > { %v1445_v50 = vadd.f32 %v1444_v26, %v1416_v44 }
 0x2ff   : > { %v1474_v36 = vadd.f32 %v1473_v23, %v1445_v50 }
 0x302   : > { %v1418_v28 = vpop.f32.mrf.mxu3 }
 0x303   : > { %v1419_v29 = vadd.f32 %v1418_v28, %v883_v2 }
 0x304   : > { %v1447_v48 = vpop.f32.mrf.mxu1 }
 0x305   : > { %v1448_v32 = vadd.f32 %v1447_v48, %v1419_v29 }
 0x307   : > { %v1477_v8 = vadd.f32 %v1476_v27, %v1448_v32 }
 0x30a   : > { %v1420_v38 = vpop.f32.mrf.mxu3 }
 0x30b   : > { %v1421_v30 = vadd.f32 %v1420_v38, %v885_v60 }
 0x30c   : > { %v1449_v40 = vpop.f32.mrf.mxu1 }
 0x30d   : > { %v1450_v42 = vadd.f32 %v1449_v40, %v1421_v30 }
 0x30f   : > { %v1479_v45 = vadd.f32 %v1478_v34, %v1450_v42 }
 0x311   : > { %1499 = vrot.lane.b32.xlu2 %v1479_v45, %s2009_s17  ;;  %s1709_s17 = sshll.u32 %s2581_s28, 4 }
 0x312   : > { %v1423_v47 = vpop.f32.mrf.mxu3 }
 0x313   : > { %v1424_v52 = vadd.f32 %v1423_v47, %v888_v46 }
 0x314   : > { %v1452_v53 = vpop.f32.mrf.mxu1 }
 0x315   : > { %v1453_v54 = vadd.f32 %v1452_v53, %v1424_v52 }
 0x317   : > { %v1482_v57 = vadd.f32 %v1481_v51, %v1453_v54 }
 0x319   : > { %1495 = vrot.lane.b32.xlu2 %v1474_v36, %s2012_s30  ;;  %1503 = vrot.lane.b32.xlu1 %v1482_v57, %s2007_s15  ;;  %s305_s15 = scalar_lea.vmem %s2579_s8, %s1709_s17 }
 0x31a   : > { %v1425_v35 = vpop.f32.mrf.mxu3 }
 0x31b   : > { %v1426_v56 = vadd.f32 %v1425_v35, %v890_v55 }
 0x31c   : > { %v1454_v58 = vpop.f32.mrf.mxu1 }
 0x31d   : > { %v1455_v59 = vadd.f32 %v1454_v58, %v1426_v56 }
 0x31f   : > { %v1484_v37 = vadd.f32 %v1483_v39, %v1455_v59 }
 0x321   : > { %1507 = vrot.lane.b32.xlu0 %v1484_v37, %s2012_s30 }
 0x363   : > { %v1488_v61 = vpop.permute.xlu1 %1487 }
 0x364   : > { %v1510_v0 = vsel %vm612_vm4, %v1467_v62, %v1488_v61 }
 0x36b   : > { %v1500_v49 = vpop.permute.xlu2 %1499  ;;  %v1492_v63 = vpop.permute.xlu0 %1491 }
 0x36c   : > { %v1511_v1 = vsel %vm343_vm0, %v1510_v0, %v1492_v63  ;;  %v1513_v9 = vsel %vm612_vm4, %v1477_v8, %v1500_v49 }
 0x373   : > { %v1496_v31 = vpop.permute.xlu2 %1495 }
 0x374   : > { %v1512_v22 = vsel %vm647_vm7, %v1511_v1, %v1496_v31 }
 0x375   : > { %1516 = vst [vmem:[%s305_s15] sm:$0xff] %v1512_v22 }
 0x38b   : > { %v1504_v4 = vpop.permute.xlu1 %1503 }
 0x38c   : > { %v1514_v5 = vsel %vm343_vm0, %v1513_v9, %v1504_v4 }
 0x393   : > { %v1508_v3 = vpop.permute.xlu0 %1507 }
 0x394   : > { %v1515_v6 = vsel %vm647_vm7, %v1514_v5, %v1508_v3 }
 0x395   : > { %1517 = vst [vmem:[%s305_s15 + $0x8] sm:$0xff] %v1515_v6 }
 0x396 PF: > { %s18_s27 = sadd.s32 1, %s2004_s27  }
 0x397   : > { %p15_p4 = scmp.ge.s32.totalorder %s18_s27, 4  }
 0x399   :  { %17 = sbr.rel (!%p15_p4) target bundleno = 1 (0x1), region = 91 }

// kernel: preact_resnet_forward.9
= control target key start
LH: loop header
LB: loop body
LE: loop exit
PB: predicated region body
PF: predicated region fallthrough
CT: control target
= control target key end

     0   :  { %v204_v8 = vmov 4.0   ;;  %s345_s0 = inlined_call_operand.vmem [shape: f32[2,4,256], index: 0, kind: input, shape index: {}]   ;;  %s346_s1 = inlined_call_operand.vmem [shape: f32[256,10], index: 1, kind: input, shape index: {}]   ;;  %s347_s2 = inlined_call_operand.vmem [shape: f32[1,10], index: 2, kind: input, shape index: {}]   ;;  %s348_s3 = inlined_call_operand.hbm [shape: f32[2,10], index: 3, kind: output, shape index: {}]  }
   0x1   :  { %v85_v0 = vld [vmem:[%s346_s1 + $0x78] sm:$0xff]  ;;  %v84_v1 = vld [vmem:[%s346_s1 + $0x70] sm:$0xff]  ;;  %v83_v4 = vld [vmem:[%s346_s1 + $0x68] sm:$0xff]  ;;  %176 = vrcp.f32 %v204_v8 }
   0x2   :  { %v101_v2 = vld [vmem:[%s346_s1 + $0xf8] sm:$0xff]  ;;  %115 = vmatpush.msra.mxu0 %v85_v0  ;;  %v100_v3 = vld [vmem:[%s346_s1 + $0xf0] sm:$0xff]  ;;  %v99_v5 = vld [vmem:[%s346_s1 + $0xe8] sm:$0xff] }
   0x3   :  { %135 = vmatpush.msra.mxu1 %v101_v2  ;;  %v82_v6 = vld [vmem:[%s346_s1 + $0x60] sm:$0xff]  ;;  %v81_v9 = vld [vmem:[%s346_s1 + $0x58] sm:$0xff]  ;;  %v80_v11 = vld [vmem:[%s346_s1 + $0x50] sm:$0xff] }
   0x4   :  { %116 = vmatpush.msra.mxu0 %v84_v1  ;;  %v98_v7 = vld [vmem:[%s346_s1 + $0xe0] sm:$0xff]  ;;  %v97_v10 = vld [vmem:[%s346_s1 + $0xd8] sm:$0xff]  ;;  %v96_v12 = vld [vmem:[%s346_s1 + $0xd0] sm:$0xff] }
   0x5   :  { %136 = vmatpush.msra.mxu1 %v100_v3  ;;  %v79_v13 = vld [vmem:[%s346_s1 + $0x48] sm:$0xff]  ;;  %v15_v16 = vld [vmem:[%s345_s0] sm:$0xff] }
   0x6   :  { %117 = vmatpush.msra.mxu0 %v83_v4  ;;  %v95_v15 = vld [vmem:[%s346_s1 + $0xc8] sm:$0xff]  ;;  %19 = vst [vmem:[#allocation1] ss:$2 sm:$0xff] %v15_v16  ;;  %v78_v18 = vld [vmem:[%s346_s1 + $0x40] sm:$0xff] }
   0x7   :  { %137 = vmatpush.msra.mxu1 %v99_v5  ;;  %v265_v14 = vpop.eup %176  ;;  %v16_v17 = vld [vmem:[%s345_s0 + $0x8] sm:$0xff]  ;;  %v94_v19 = vld [vmem:[%s346_s1 + $0xc0] sm:$0xff] }
   0x8   :  { %118 = vmatpush.msra.mxu0 %v82_v6  ;;  %23 = vst [vmem:[#allocation1 + $0x10] ss:$2 sm:$0xff] %v16_v17 }
   0x9   :  { %138 = vmatpush.msra.mxu1 %v98_v7 }
   0xa   :  { %119 = vmatpush.msra.mxu0 %v81_v9 }
   0xb   :  { %139 = vmatpush.msra.mxu1 %v97_v10 }
   0xc   :  { %120 = vmatpush.msra.mxu0 %v80_v11 }
   0xd   :  { %140 = vmatpush.msra.mxu1 %v96_v12 }
   0xe   :  { %8 = vsyncpa [#allocation3], 0  ;;  %121 = vmatpush.msra.mxu0 %v79_v13  ;;  %v60_v20 = vmul.f32 4.0, %v265_v14  ;;  %v77_v21 = vld [vmem:[%s346_s1 + $0x38] sm:$0xff]  ;;  %v76_v23 = vld [vmem:[%s346_s1 + $0x30] sm:$0xff]  ;;  %vm30_vm0 = vcmask 1043456   ;;  %vm64_vm1 = vweird.f32 %v265_v14 }
   0xf   :  { %141 = vmatpush.msra.mxu1 %v95_v15  ;;  %v93_v22 = vld [vmem:[%s346_s1 + $0xb8] sm:$0xff]  ;;  %v92_v24 = vld [vmem:[%s346_s1 + $0xb0] sm:$0xff]  ;;  %v75_v25 = vld [vmem:[%s346_s1 + $0x28] sm:$0xff]  ;;  %vm110_vm2 = vcmask 1041409   ;;  %s205_s25 = smov [#allocation2]   ;;  %s164_s29 = sshll.u32 %s348_s3, 4  ;;  %s165_s29 = int_to_ptr.hbm [resolvable:$true] %s164_s29 }
  0x10   :  { %122 = vmatpush.msra.mxu0 %v78_v18  ;;  %v91_v26 = vld [vmem:[%s346_s1 + $0xa8] sm:$0xff]  ;;  %v61_v27 = vsub.f32 1.0, %v60_v20  ;;  %v74_v28 = vld [vmem:[%s346_s1 + $0x20] sm:$0xff]  ;;  %v24_v32 = vld.sshfl [vmem:[#allocation1 + $0x10] sm:$0xff pattern:$0x75316420] }
  0x11   :  { %142 = vmatpush.msra.mxu1 %v94_v19  ;;  %v20_v29 = vld.sshfl [vmem:[#allocation1] sm:$0xff pattern:$0x75316420]  ;;  %v21_v30 = vld.sshfl [vmem:[#allocation1 + $0x8] sm:$0xff pattern:$0x75316420] }
  0x12   :  { %123 = vmatpush.msra.mxu0 %v77_v21  ;;  %v90_v31 = vld [vmem:[%s346_s1 + $0xa0] sm:$0xff]  ;;  %v31_v33 = vsel %vm30_vm0, %v20_v29, 0.0  ;;  %v38_v34 = vsel %vm30_vm0, %v21_v30, 0.0  ;;  %v45_v36 = vsel %vm30_vm0, %v24_v32, 0.0  ;;  %v62_v40 = vmul.f32 %v265_v14, %v61_v27  ;;  %v73_v42 = vld [vmem:[%s346_s1 + $0x18] sm:$0xff]  ;;  %v72_v48 = vld [vmem:[%s346_s1 + $0x10] sm:$0xff] }
  0x13   :  { %143 = vmatpush.msra.mxu1 %v93_v22  ;;  %v32_v35 = vrot.slane %v31_v33, 4  ;;  %v25_v37 = vld.sshfl [vmem:[#allocation1 + $0x18] sm:$0xff pattern:$0x75316420]  ;;  %v39_v38 = vrot.slane %v38_v34, 4  ;;  %v46_v39 = vrot.slane %v45_v36, 4 }
  0x14   :  { %124 = vmatpush.msra.mxu0 %v76_v23  ;;  %v52_v41 = vsel %vm30_vm0, %v25_v37, 0.0  ;;  %v89_v43 = vld [vmem:[%s346_s1 + $0x98] sm:$0xff]  ;;  %v88_v49 = vld [vmem:[%s346_s1 + $0x90] sm:$0xff]  ;;  %v63_v54 = vadd.f32 %v265_v14, %v62_v40  ;;  %v71_v55 = vld [vmem:[%s346_s1 + $0x8] sm:$0xff]  ;;  %s162_s26 = sshll.u32 %s205_s25, 4  ;;  %vm155_vm3 = vcmask 74752   ;;  %s163_s26 = int_to_ptr.vmem [resolvable:$true] %s162_s26 }
  0x15   :  { %144 = vmatpush.msra.mxu1 %v92_v24  ;;  %v33_v44 = vadd.f32 %v32_v35, %v31_v33  ;;  %v40_v45 = vadd.f32 %v39_v38, %v38_v34  ;;  %v53_v46 = vrot.slane %v52_v41, 4  ;;  %v47_v47 = vadd.f32 %v46_v39, %v45_v36  ;;  %v87_v56 = vld [vmem:[%s346_s1 + $0x88] sm:$0xff]  ;;  %v70_v61 = vld [vmem:[%s346_s1] sm:$0xff] }
  0x16   :  { %125 = vmatpush.msra.mxu0 %v75_v25  ;;  %v86_v63 = vld [vmem:[%s346_s1 + $0x80] sm:$0xff]  ;;  %v65_v3 = vsel %vm64_vm1, %v265_v14, %v63_v54 }
  0x17   :  { %145 = vmatpush.msra.mxu1 %v91_v26  ;;  %v34_v50 = vrot.slane %v33_v44, 2  ;;  %v41_v51 = vrot.slane %v40_v45, 2  ;;  %v54_v52 = vadd.f32 %v53_v46, %v52_v41  ;;  %v48_v53 = vrot.slane %v47_v47, 2  ;;  %v175_v14 = vld [vmem:[%s347_s2] ss:$0 sm:$0xff] }
  0x18   :  { %126 = vmatpush.msra.mxu0 %v74_v28 }
  0x19   :  { %146 = vmatpush.msra.mxu1 %v90_v31  ;;  %v35_v57 = vadd.f32 %v34_v50, %v33_v44  ;;  %v42_v58 = vadd.f32 %v41_v51, %v40_v45  ;;  %v55_v59 = vrot.slane %v54_v52, 2  ;;  %v49_v60 = vadd.f32 %v48_v53, %v47_v47 }
  0x1a   :  { %127 = vmatpush.msra.mxu0 %v73_v42 }
  0x1b   :  { %147 = vmatpush.msra.mxu1 %v89_v43  ;;  %v36_v62 = vrot.slane %v35_v57, 1  ;;  %v43_v0 = vrot.slane %v42_v58, 1  ;;  %v56_v1 = vadd.f32 %v55_v59, %v54_v52  ;;  %v50_v2 = vrot.slane %v49_v60, 1 }
  0x1c   :  { %128 = vmatpush.msra.mxu0 %v72_v48 }
  0x1d   :  { %148 = vmatpush.msra.mxu1 %v88_v49  ;;  %v37_v4 = vadd.f32 %v36_v62, %v35_v57  ;;  %v44_v5 = vadd.f32 %v43_v0, %v42_v58  ;;  %v57_v6 = vrot.slane %v56_v1, 1  ;;  %v51_v7 = vadd.f32 %v50_v2, %v49_v60 }
  0x1e   :  { %129 = vmatpush.msra.mxu0 %v71_v55 }
  0x1f   :  { %149 = vmatpush.msra.mxu1 %v87_v56  ;;  %v66_v8 = vmul.f32 %v65_v3, %v37_v4  ;;  %v58_v9 = vadd.f32 %v57_v6, %v56_v1  ;;  %v67_v10 = vmul.f32 %v65_v3, %v44_v5  ;;  %v68_v11 = vmul.f32 %v65_v3, %v51_v7 }
  0x20   :  { %130 = vmatpush.msra.mxu0 %v70_v61 }
  0x21   :  { %150 = vmatpush.msra.mxu1 %v86_v63  ;;  %v69_v12 = vmul.f32 %v65_v3, %v58_v9  ;;  %v111_v13 = vsel %vm110_vm2, %v68_v11, %v66_v8 }
  0x22   :  { %131 = vmatmul.f32.vlgmr.msra.gmra.mxu0 %v111_v13 }
  0x23   :  { %v112_v15 = vsel %vm110_vm2, %v69_v12, %v67_v10 }
  0x24   :  { %151 = vmatmul.f32.vlgmr.msra.gmra.mxu1 %v112_v15 }
  0x9f   :  { %v132_v16 = vpop.f32.mrf.mxu0 }
  0xa0   :  { %v133_v17 = vadd.f32 %v175_v14, %v132_v16 }
  0xa1   :  { %v152_v18 = vpop.f32.mrf.mxu1 }
  0xa2   :  { %v153_v19 = vadd.f32 %v152_v18, %v133_v17 }
  0xa4   :  { %156 = vst.msk [vmem:[#allocation2] sm:$0x3] %vm155_vm3, %v153_v19 }
  0xa5   :  { %167 = dma.vmem_to_hbm [thread:$0]  %s163_s26, 32, %s165_s29, [#allocation3]  }
  0xa6   :  { %202 = dma.done.wait [#allocation3], 32  }
  0xa7   :  { %203 = vsyncadd [#allocation3], 4294967264 }
  0xa8   :  { %172 = vsyncpa [#allocation3], 1 }

// kernel: preact_resnet_forward.8
= control target key start
LH: loop header
LB: loop body
LE: loop exit
PB: predicated region body
PF: predicated region fallthrough
CT: control target
= control target key end

     0   :  { %s1768_s27 = smov 0   ;;  %s2218_s0 = inlined_call_operand.vmem [shape: f32[2,4,512], index: 0, kind: input, shape index: {}]   ;;  %s2219_s1 = inlined_call_operand.vmem [shape: f32[1,512], index: 1, kind: input, shape index: {}]   ;;  %s2220_s2 = inlined_call_operand.vmem [shape: f32[1,512], index: 2, kind: input, shape index: {}]   ;;  %s2221_s3 = inlined_call_operand.vmem [shape: bf16[288,64], index: 3, kind: input, shape index: {}]   ;;  %s2222_s4 = inlined_call_operand.vmem [shape: f32[1,64], index: 4, kind: input, shape index: {}]   ;;  %s2223_s5 = inlined_call_operand.vmem [shape: bf16[32,64], index: 5, kind: input, shape index: {}]   ;;  %s2224_s6 = inlined_call_operand.vmem [shape: f32[1,64], index: 6, kind: input, shape index: {}]   ;;  %s2225_s7 = inlined_call_operand.vmem [shape: bf16[576,64], index: 7, kind: input, shape index: {}]   ;;  %s2226_s8 = inlined_call_operand.vmem [shape: f32[2,4,256], index: 8, kind: output, shape index: {}]  }
   0x1 LB: > { %s1393_s28 = sadd.s32 4294967295, %s1717_s27   ;;  %p1397_p0 = scmp.ge.s32.totalorder %s1717_s27, 1  ;;  %s1717_s27 = sphi %s1768_s27, %s18_s27  }
   0x2   : > { %p262_p1 = scmp.lt.s32.totalorder %s1717_s27, 3 }
   0x4   : > { %p263_p2 = pnand %p1397_p0, %p262_p1 }
   0x5   : > { %p296_p3 = scmp.lt.s32.totalorder (!%p263_p2), %s1393_s28, 1  ;;  %s1720_s15 = smov (!%p263_p2), 32  }
   0x6   : > { %266 = sbr.rel (%p263_p2) target bundleno = 775 (0x307), region = 52  ;;  %s1721_s16 = smov (!%p263_p2), 96  }
   0x7   : > { %s1722_s17 = smov (!%p263_p2), 64  }
   0xb   : > { %v309_v0 = vld [vmem:[%s2219_s1] sm:$0xf]  ;;  %v1719_v1 = vmov 0.0   ;;  %vm317_vm0 = vcmask 1043456   ;;  %s2228_s28 = smov (!%p296_p3, %s1393_s28), 1  ;;  %v1648_v44 = vld [vmem:[%s2221_s3 + $0x38] sm:$0xff] }
   0xc   : > { %340 = vst [vmem:[#allocation2] sm:$0x1f] %v1719_v1  ;;  %v311_v2 = vperm.slane %v309_v0, 0  ;;  %v312_v3 = vperm.slane %v309_v0, 1  ;;  %v313_v4 = vperm.slane %v309_v0, 2  ;;  %v314_v5 = vperm.slane %v309_v0, 3  ;;  %658 = vmatpush.bf16.msra.mxu0 %v1648_v44 }
   0xd   : > { %341 = vst [vmem:[#allocation2 + $0x8] sm:$0x1f] %v1719_v1  ;;  %v324_v6 = vld [vmem:[%s2220_s2] sm:$0xf]  ;;  %s1639_s11 = sshll.u32 %s2228_s28, 4  ;;  %v1656_v45 = vld [vmem:[%s2221_s3 + $0x78] sm:$0xff] }
   0xe   : > { %342 = vst [vmem:[#allocation2 + $0x10] sm:$0x1f] %v1719_v1  ;;  %v315_v7 = vrot.slane %v312_v3, 4  ;;  %v327_v8 = vperm.slane %v324_v6, 1  ;;  %v316_v9 = vrot.slane %v314_v5, 4  ;;  %v328_v10 = vperm.slane %v324_v6, 2  ;;  %s300_s14 = scalar_lea.vmem %s2218_s0, %s1639_s11  ;;  %672 = vmatpush.bf16.msra.mxu1 %v1656_v45 }
   0xf   : > { %343 = vst [vmem:[#allocation2 + $0x18] sm:$0x1f] %v1719_v1  ;;  %v329_v11 = vperm.slane %v324_v6, 3  ;;  %v326_v12 = vperm.slane %v324_v6, 0  ;;  %v308_v17 = vld [vmem:[%s300_s14 + $0x8] sm:$0xff]  ;;  %v307_v18 = vld [vmem:[%s300_s14] sm:$0xff] }
  0x10   : > { %344 = vst [vmem:[#allocation2 + $0x20] sm:$0x1f] %v1719_v1  ;;  %v318_v13 = vsel %vm317_vm0, %v311_v2, %v315_v7  ;;  %v330_v14 = vrot.slane %v327_v8, 4  ;;  %v319_v15 = vsel %vm317_vm0, %v313_v4, %v316_v9  ;;  %v1647_v48 = vld [vmem:[%s2221_s3 + $0x30] sm:$0xff]  ;;  %v1646_v51 = vld [vmem:[%s2221_s3 + $0x28] sm:$0xff]  ;;  %v1645_v55 = vld [vmem:[%s2221_s3 + $0x20] sm:$0xff] }
  0x11   : > { %v331_v16 = vrot.slane %v329_v11, 4  ;;  %v323_v21 = vmul.f32 %v319_v15, %v308_v17  ;;  %v322_v23 = vmul.f32 %v318_v13, %v307_v18  ;;  %v1655_v49 = vld [vmem:[%s2221_s3 + $0x70] sm:$0xff]  ;;  %659 = vmatpush.bf16.msra.mxu0 %v1647_v48  ;;  %v1654_v52 = vld [vmem:[%s2221_s3 + $0x68] sm:$0xff]  ;;  %v1653_v56 = vld [vmem:[%s2221_s3 + $0x60] sm:$0xff]  ;;  %vm438_vm1 = vcmask 261120   ;;  %s1640_s20 = sshll.u32 %s2228_s28, 3 }
  0x12   : > { %v332_v19 = vsel %vm317_vm0, %v326_v12, %v330_v14  ;;  %673 = vmatpush.bf16.msra.mxu1 %v1655_v49  ;;  %v1658_v53 = vld [vmem:[%s2221_s3 + $0x88] sm:$0xff]  ;;  %v1657_v57 = vld [vmem:[%s2221_s3 + $0x80] sm:$0xff]  ;;  %v1644_v59 = vld [vmem:[%s2221_s3 + $0x18] sm:$0xff]  ;;  %vm443_vm2 = vcmask 523264   ;;  %vm774_vm3 = vcmask 521216   ;;  %vm448_vm4 = vcmask 785408   ;;  %s305_s23 = scalar_lea.vmem %s2226_s8, %s1640_s20 }
  0x13   : > { %v359_v20 = vld [vmem:[#allocation2] sm:$0x1f]  ;;  %v333_v22 = vsel %vm317_vm0, %v328_v10, %v331_v16  ;;  %v336_v26 = vadd.f32 %v332_v19, %v322_v23  ;;  %692 = vmatpush.bf16.msra.mxu2 %v1658_v53  ;;  %v1652_v60 = vld [vmem:[%s2221_s3 + $0x58] sm:$0xff]  ;;  %v1643_v62 = vld [vmem:[%s2221_s3 + $0x10] sm:$0xff]  ;;  %775 = vst.msk [vmem:[#allocation3] sm:$0x3f] %vm774_vm3, %v1719_v1 }
  0x14   : > { %v393_v24 = vrot.slane %v359_v20, 1  ;;  %368 = vrot.lane.b32.xlu2 %v359_v20, %s1720_s15  ;;  %v337_v25 = vadd.f32 %v333_v22, %v323_v21  ;;  %v1651_v63 = vld [vmem:[%s2221_s3 + $0x50] sm:$0xff]  ;;  %v1642_v2 = vld [vmem:[%s2221_s3 + $0x8] sm:$0xff]  ;;  %v1641_v5 = vld [vmem:[%s2221_s3] sm:$0xff]  ;;  %776 = vst.msk [vmem:[#allocation3 + $0x8] sm:$0x3f] %vm774_vm3, %v1719_v1 }
  0x15   : > { %v338_v28 = vmax.f32 %v336_v26, 0.0  ;;  %660 = vmatpush.bf16.msra.mxu0 %v1646_v51  ;;  %v1650_v3 = vld [vmem:[%s2221_s3 + $0x48] sm:$0xff]  ;;  %v1649_v6 = vld [vmem:[%s2221_s3 + $0x40] sm:$0xff]  ;;  %777 = vst.msk [vmem:[#allocation3 + $0x10] sm:$0x3f] %vm774_vm3, %v1719_v1  ;;  %vm788_vm5 = vcmask 519168  }
  0x16   : > { %414 = vrot.lane.b32.xlu0 %v393_v24, %s1721_s16  ;;  %v339_v27 = vmax.f32 %v337_v25, 0.0  ;;  %674 = vmatpush.bf16.msra.mxu1 %v1654_v52  ;;  %778 = vst.msk [vmem:[#allocation3 + $0x18] sm:$0x3f] %vm774_vm3, %v1719_v1 }
  0x17   : > { %v348_v29 = vrot.slane %v338_v28, 4  ;;  %346 = vst [vmem:[#allocation2 + $0x9] sm:$0xf] %v338_v28  ;;  %693 = vmatpush.bf16.msra.mxu2 %v1657_v57 }
  0x18   : > { %353 = vst [vmem:[#allocation2 + $0x19] sm:$0xf] %v339_v27  ;;  %v355_v30 = vrot.slane %v339_v27, 4 }
  0x19   : > { %351 = vst [vmem:[#allocation2 + $0x11] sm:$0xf] %v348_v29  ;;  %661 = vmatpush.bf16.msra.mxu0 %v1645_v55 }
  0x1a   : > { %358 = vst [vmem:[#allocation2 + $0x21] sm:$0xf] %v355_v30  ;;  %675 = vmatpush.bf16.msra.mxu1 %v1653_v56  ;;  %v1940_v25 = vld [vmem:[#allocation3] sm:$0x3f] }
  0x1b   : > { %779 = vst.msk [vmem:[#allocation3 + $0x20] sm:$0x3f] %vm774_vm3, %v1719_v1 }
  0x1c   : > { %780 = vst.msk [vmem:[#allocation3 + $0x28] sm:$0x3f] %vm774_vm3, %v1719_v1 }
  0x1d   : > { %662 = vmatpush.bf16.msra.mxu0 %v1644_v59 }
  0x1e   : > { %v1802_v32 = vld [vmem:[#allocation2 + $0x8] sm:$0x1f]  ;;  %676 = vmatpush.bf16.msra.mxu1 %v1652_v60 }
  0x1f   : > { %v1798_v31 = vld [vmem:[#allocation2 + $0x18] sm:$0x1f]  ;;  %v1805_v33 = vrot.slane %v1802_v32, 1  ;;  %370 = vrot.lane.b32.xlu2 %v1802_v32, %s1720_s15  ;;  %v1475_v49 = vrot.slane %v1802_v32, 9 }
  0x20   : > { %374 = vrot.lane.b32.xlu1 %v1798_v31, %s1720_s15  ;;  %v1811_v34 = vrot.slane %v1798_v31, 1  ;;  %v1814_v35 = vld [vmem:[#allocation2 + $0x10] sm:$0x1f]  ;;  %v1479_v20 = vrot.slane %v1798_v31, 9 }
  0x21   : > { %416 = vrot.lane.b32.xlu0 %v1805_v33, %s1721_s16  ;;  %v1819_v36 = vld [vmem:[#allocation2 + $0x20] sm:$0x1f]  ;;  %v1825_v37 = vrot.slane %v1814_v35, 1  ;;  %663 = vmatpush.bf16.msra.mxu0 %v1643_v62 }
  0x22   : > { %v409_v38 = vrot.slane %v1819_v36, 1  ;;  %677 = vmatpush.bf16.msra.mxu1 %v1651_v63  ;;  %v1481_v23 = vrot.slane %v1819_v36, 9 }
  0x25   : > { %664 = vmatpush.bf16.msra.mxu0 %v1642_v2 }
  0x26   : > { %678 = vmatpush.bf16.msra.mxu1 %v1650_v3 }
  0x27   : > { %381 = vrot.lane.b32.xlu2 %v1802_v32, %s1721_s16 }
  0x28   : > { %420 = vrot.lane.b32.xlu1 %v1811_v34, %s1721_s16 }
  0x29   : > { %372 = vrot.lane.b32.xlu0 %v1814_v35, %s1720_s15  ;;  %665 = vmatpush.bf16.msra.mxu0 %v1641_v5 }
  0x2a   : > { %679 = vmatpush.bf16.msra.mxu1 %v1649_v6 }
  0x2f   : > { %387 = vrot.lane.b32.xlu2 %v1819_v36, %s1721_s16  ;;  %v1477_v36 = vrot.slane %v1814_v35, 9 }
  0x30   : > { %385 = vrot.lane.b32.xlu1 %v1798_v31, %s1721_s16  ;;  %v816_v31 = vrot.slane %v1940_v25, 1 }
  0x31   : > { %383 = vrot.lane.b32.xlu0 %v1814_v35, %s1721_s16  ;;  %v1709_v35 = vld [vmem:[%s2222_s4] ss:$0 sm:$0xff] }
  0x37   : > { %430 = vrot.lane.b32.xlu2 %v1811_v34, %s1720_s15 }
  0x38   : > { %418 = vrot.lane.b32.xlu1 %v1825_v37, %s1721_s16 }
  0x39   : > { %426 = vrot.lane.b32.xlu0 %v1805_v33, %s1720_s15 }
  0x3f   : > { %399 = vrot.lane.b32.xlu2 %v1805_v33, %s1722_s17 }
  0x40   : > { %428 = vrot.lane.b32.xlu1 %v1825_v37, %s1720_s15 }
  0x41   : > { %432 = vrot.lane.b32.xlu0 %v409_v38, %s1720_s15 }
  0x47   : > { %820 = vrot.lane.b32.xlu2 %v816_v31, %s1722_s17  ;;  %v1666_v31 = vld [vmem:[%s2225_s7 + $0x28] sm:$0xff] }
  0x48   : > { %397 = vrot.lane.b32.xlu1 %v393_v24, %s1722_s17 }
  0x49   : > { %401 = vrot.lane.b32.xlu0 %v1825_v37, %s1722_s17 }
  0x50   : > { %403 = vrot.lane.b32.xlu1 %v1811_v34, %s1722_s17 }
  0x6e   : > { %v1845_v39 = vpop.permute.xlu2 %368 }
  0x79   : > { %v371_v40 = vpop.permute.xlu2 %370 }
  0x81   : > { %v1847_v41 = vpop.permute.xlu2 %381 }
  0x82   : > { %v439_v21 = vsel %vm438_vm1, %v1845_v39, %v1847_v41 }
  0x83   : > { %v444_v26 = vsel %vm443_vm2, %v439_v21, %v1847_v41  ;;  %v2025_v21 = vld [vmem:[#allocation3 + $0x28] sm:$0x3f] }
  0x88   : > { %v1849_v42 = vpop.permute.xlu0 %414 }
  0x89   : > { %v1851_v43 = vpop.permute.xlu2 %387  ;;  %v453_v15 = vsel %vm443_vm2, %v1805_v33, %v1849_v42 }
  0x91   : > { %v1861_v47 = vpop.permute.xlu2 %430 }
  0x92   : > { %v1859_v46 = vpop.permute.xlu1 %374  ;;  %489 = vst [vmem:[#allocation1 + $0x30] ss:$2 sm:$0xff] %v1861_v47 }
  0x93   : > { %v417_v50 = vpop.permute.xlu0 %416  ;;  %v442_v45 = vsel %vm438_vm1, %v1859_v46, %v1851_v43 }
  0x94   : > { %v454_v9 = vsel %vm443_vm2, %v1825_v37, %v417_v50 }
  0x99   : > { %v400_v11 = vpop.permute.xlu2 %399 }
  0x9a   : > { %v1879_v54 = vpop.permute.xlu1 %420 }
  0x9b   : > { %v373_v58 = vpop.permute.xlu0 %372  ;;  %v456_v42 = vsel %vm443_vm2, %v409_v38, %v1879_v54  ;;  %v447_v38 = vsel %vm443_vm2, %v442_v45, %v1851_v43  ;;  %v1684_v45 = vld [vmem:[%s2225_s7 + $0xb8] sm:$0xff] }
  0x9c   : > { %1278 = vmatpush.bf16.msrb.mxu0 %v1684_v45 }
  0xa2   : > { %v386_v61 = vpop.permute.xlu1 %385 }
  0xa3   : > { %v384_v0 = vpop.permute.xlu0 %383  ;;  %v441_v27 = vsel %vm438_vm1, %v373_v58, %v386_v61 }
  0xa4   : > { %v440_v8 = vsel %vm438_vm1, %v371_v40, %v384_v0  ;;  %v446_v37 = vsel %vm443_vm2, %v441_v27, %v386_v61  ;;  %v1668_v27 = vld [vmem:[%s2225_s7 + $0x38] sm:$0xff] }
  0xa5   : > { %v445_v10 = vsel %vm443_vm2, %v440_v8, %v384_v0  ;;  %1250 = vmatpush.bf16.msrb.mxu2 %v1668_v27 }
  0xa6   : > { %v450_v16 = vsel %vm448_vm4, %v445_v10, %v400_v11 }
  0xaa   : > { %v419_v4 = vpop.permute.xlu1 %418 }
  0xab   : > { %v427_v7 = vpop.permute.xlu0 %426  ;;  %v455_v22 = vsel %vm443_vm2, %v1811_v34, %v419_v4 }
  0xac   : > { %481 = vst [vmem:[#allocation1 + $0x10] ss:$2 sm:$0xff] %v427_v7  ;;  %v457_v18 = vsel %vm448_vm4, %v453_v15, %v427_v7  ;;  %v459_v28 = vsel %vm448_vm4, %v455_v22, %v1861_v47  ;;  %v838_v22 = vrot.slane %v2025_v21, 1 }
  0xad   : > { %v469_v24 = vrot.slane %v457_v18, 4  ;;  %v471_v39 = vrot.slane %v459_v28, 4  ;;  %v1676_v28 = vld [vmem:[%s2225_s7 + $0x78] sm:$0xff] }
  0xb2   : > { %v429_v12 = vpop.permute.xlu1 %428 }
  0xb3   : > { %v458_v13 = vsel %vm448_vm4, %v454_v9, %v429_v12  ;;  %483 = vst [vmem:[#allocation1 + $0x11] ss:$2 sm:$0xff] %v429_v12  ;;  %v433_v17 = vpop.permute.xlu0 %432 }
  0xb4   : > { %v470_v14 = vrot.slane %v458_v13, 4  ;;  %491 = vst [vmem:[#allocation1 + $0x31] ss:$2 sm:$0xff] %v433_v17  ;;  %v460_v47 = vsel %vm448_vm4, %v456_v42, %v433_v17 }
  0xb5   : > { %v472_v50 = vrot.slane %v460_v47, 4  ;;  %v1692_v47 = vld [vmem:[%s2225_s7 + $0xf8] sm:$0xff] }
  0xb6   : > { %v474_v19 = vsel %vm317_vm0, %v450_v16, %v470_v14  ;;  %1292 = vmatpush.bf16.msrb.mxu1 %v1692_v47 }
  0xb7   : > { %479 = vst [vmem:[#allocation1 + $0x1] ss:$2 sm:$0xff] %v474_v19 }
  0xba   : > { %v494_v29 = vld.sshfl [vmem:[#allocation1 + $0x10] sm:$0xff pattern:$0x75316420]  ;;  %v398_v30 = vpop.permute.xlu1 %397 }
  0xbb   : > { %729 = vst [vmem:[#allocation1 + $0x10] ss:$2 sm:$0xff] %v1479_v20  ;;  %v449_v33 = vsel %vm448_vm4, %v444_v26, %v398_v30  ;;  %v402_v40 = vpop.permute.xlu0 %401  ;;  %v497_v41 = vld.sshfl [vmem:[#allocation1 + $0x30] sm:$0xff pattern:$0x75316420]  ;;  %v1659_v26 = vld [vmem:[%s2223_s5] sm:$0xff] }
  0xbc   : > { %731 = vst [vmem:[#allocation1 + $0x11] ss:$2 sm:$0xff] %v1481_v23  ;;  %v473_v34 = vsel %vm317_vm0, %v449_v33, %v469_v24  ;;  %v451_v1 = vsel %vm448_vm4, %v446_v37, %v402_v40  ;;  %v506_v44 = vpack.c.bf16 %v497_v41, %v494_v29  ;;  %v1660_v24 = vld [vmem:[%s2223_s5 + $0x8] sm:$0xff]  ;;  %v1667_v29 = vld [vmem:[%s2225_s7 + $0x30] sm:$0xff]  ;;  %v1665_v37 = vld [vmem:[%s2225_s7 + $0x20] sm:$0xff] }
  0xbd   : > { %477 = vst [vmem:[#allocation1] ss:$2 sm:$0xff] %v473_v34  ;;  %v475_v48 = vsel %vm317_vm0, %v451_v1, %v471_v39  ;;  %766 = vmatpush.bf16.msra.mxu3 %v1660_v24  ;;  %v1675_v30 = vld [vmem:[%s2225_s7 + $0x70] sm:$0xff]  ;;  %1251 = vmatpush.bf16.msrb.mxu2 %v1667_v29  ;;  %v1674_v33 = vld [vmem:[%s2225_s7 + $0x68] sm:$0xff]  ;;  %v821_v34 = vpop.permute.xlu2 %820  ;;  %v1673_v39 = vld [vmem:[%s2225_s7 + $0x60] sm:$0xff] }
  0xbe   : > { %485 = vst [vmem:[#allocation1 + $0x20] ss:$2 sm:$0xff] %v475_v48  ;;  %1474 = vmatmul.msk.bf16.vlgmr.msra.gmra.mxu2 %vm438_vm1, %v506_v44  ;;  %v1664_v1 = vld [vmem:[%s2225_s7 + $0x18] sm:$0xff]  ;;  %v1686_v24 = vld [vmem:[%s2225_s7 + $0xc8] sm:$0xff] }
  0xbf   : > { %v1672_v44 = vld [vmem:[%s2225_s7 + $0x58] sm:$0xff] }
  0xc1   : > { %767 = vmatpush.bf16.msra.mxu3 %v1659_v26  ;;  %1252 = vmatpush.bf16.msrb.mxu2 %v1666_v31  ;;  %v1677_v26 = vld [vmem:[%s2225_s7 + $0x80] sm:$0xff] }
  0xc2   : > { %v404_v51 = vpop.permute.xlu1 %403 }
  0xc3   : > { %v452_v52 = vsel %vm448_vm4, %v447_v38, %v404_v51  ;;  %v733_v41 = vld.sshfl [vmem:[#allocation1 + $0x10] sm:$0xff pattern:$0x75316420]  ;;  %v1662_v51 = vld [vmem:[%s2225_s7 + $0x8] sm:$0xff] }
  0xc4   : > { %v492_v53 = vld.sshfl [vmem:[#allocation1] sm:$0xff pattern:$0x75316420]  ;;  %v493_v46 = vld.sshfl [vmem:[#allocation1 + $0x8] sm:$0xff pattern:$0x75316420]  ;;  %v476_v54 = vsel %vm317_vm0, %v452_v52, %v472_v50 }
  0xc5   : > { %725 = vst [vmem:[#allocation1] ss:$2 sm:$0xff] %v1475_v49  ;;  %1264 = vmatpush.bf16.msrb.mxu3 %v1676_v28  ;;  %1253 = vmatpush.bf16.msrb.mxu2 %v1665_v37  ;;  %v1663_v49 = vld [vmem:[%s2225_s7 + $0x10] sm:$0xff]  ;;  %v1670_v52 = vld [vmem:[%s2225_s7 + $0x48] sm:$0xff]  ;;  %v1685_v28 = vld [vmem:[%s2225_s7 + $0xc0] sm:$0xff] }
  0xc6   : > { %727 = vst [vmem:[#allocation1 + $0x1] ss:$2 sm:$0xff] %v1477_v36  ;;  %v1671_v36 = vld [vmem:[%s2225_s7 + $0x50] sm:$0xff] }
  0xc7   : > { %487 = vst [vmem:[#allocation1 + $0x21] ss:$2 sm:$0xff] %v476_v54  ;;  %v1683_v38 = vld [vmem:[%s2225_s7 + $0xb0] sm:$0xff] }
  0xc8   : > { %v1691_v50 = vld [vmem:[%s2225_s7 + $0xf0] sm:$0xff]  ;;  %1279 = vmatpush.bf16.msrb.mxu0 %v1683_v38 }
  0xc9   : > { %1265 = vmatpush.bf16.msrb.mxu3 %v1675_v30  ;;  %1254 = vmatpush.bf16.msrb.mxu2 %v1664_v1  ;;  %v845_v1 = vrot.slane %v1940_v25, 2 }
  0xca   : > { %1293 = vmatpush.bf16.msrb.mxu1 %v1691_v50 }
  0xcd   : > { %1266 = vmatpush.bf16.msrb.mxu3 %v1674_v33  ;;  %v732_v40 = vld.sshfl [vmem:[#allocation1] sm:$0xff pattern:$0x75316420]  ;;  %1255 = vmatpush.bf16.msrb.mxu2 %v1663_v49 }
  0xce   : > { %v495_v55 = vld.sshfl [vmem:[#allocation1 + $0x20] sm:$0xff pattern:$0x75316420]  ;;  %v496_v56 = vld.sshfl [vmem:[#allocation1 + $0x28] sm:$0xff pattern:$0x75316420]  ;;  %v736_v42 = vpack.c.bf16 %v733_v41, %v732_v40 }
  0xcf   : > { %v504_v57 = vpack.c.bf16 %v495_v55, %v492_v53  ;;  %v505_v32 = vpack.c.bf16 %v496_v56, %v493_v46  ;;  %v1682_v53 = vld [vmem:[%s2225_s7 + $0xa8] sm:$0xff]  ;;  %v1661_v55 = vld [vmem:[%s2225_s7] sm:$0xff] }
  0xd0   : > { %1491 = vmatmul.msk.bf16.vlgmr.msra.gmra.mxu3 %vm438_vm1, %v736_v42  ;;  %v1690_v46 = vld [vmem:[%s2225_s7 + $0xe8] sm:$0xff]  ;;  %1280 = vmatpush.bf16.msrb.mxu0 %v1682_v53  ;;  %v1669_v56 = vld [vmem:[%s2225_s7 + $0x40] sm:$0xff] }
  0xd1   : > { %666 = vmatmul.bf16.vlgmr.msra.gmra.mxu0 %v504_v57  ;;  %680 = vmatmul.bf16.vlgmr.msra.gmra.mxu1 %v505_v32  ;;  %v1681_v57 = vld [vmem:[%s2225_s7 + $0xa0] sm:$0xff] }
  0xd2   : > { %1267 = vmatpush.bf16.msrb.mxu3 %v1673_v39  ;;  %1256 = vmatpush.bf16.msrb.mxu2 %v1662_v51  ;;  %v1689_v32 = vld [vmem:[%s2225_s7 + $0xe0] sm:$0xff] }
  0xd3   : > { %1294 = vmatpush.bf16.msrb.mxu1 %v1690_v46 }
  0xd4   : > { %1281 = vmatpush.bf16.msrb.mxu0 %v1681_v57 }
  0xd6   : > { %1268 = vmatpush.bf16.msrb.mxu3 %v1672_v44  ;;  %1257 = vmatpush.bf16.msrb.mxu2 %v1661_v55 }
  0xd7   : > { %1295 = vmatpush.bf16.msrb.mxu1 %v1689_v32 }
  0xda   : > { %1269 = vmatpush.bf16.msrb.mxu3 %v1671_v36 }
  0xde   : > { %1270 = vmatpush.bf16.msrb.mxu3 %v1670_v52 }
  0xe2   : > { %1271 = vmatpush.bf16.msrb.mxu3 %v1669_v56 }
 0x141   : > { %v695_v60 = vpop.f32.mrf.mxu2 }
 0x149   : > { %v697_v6 = vpop.f32.mrf.mxu2 }
 0x14e   : > { %v667_v43 = vpop.f32.mrf.mxu0  ;;  %v681_v58 = vpop.f32.mrf.mxu1 }
 0x14f   : > { %v668_v59 = vadd.f32 %v1709_v35, %v667_v43  ;;  %v1696_v43 = vld [vmem:[%s2225_s7 + $0x118] sm:$0xff] }
 0x150   : > { %1310 = vmatpush.bf16.msra.mxu2 %v1696_v43 }
 0x151   : > { %v682_v61 = vadd.f32 %v681_v58, %v668_v59  ;;  %v1680_v58 = vld [vmem:[%s2225_s7 + $0x98] sm:$0xff] }
 0x152   : > { %v1688_v59 = vld [vmem:[%s2225_s7 + $0xd8] sm:$0xff]  ;;  %1282 = vmatpush.bf16.msrb.mxu0 %v1680_v58 }
 0x153   : > { %v696_v62 = vadd.f32 %v695_v60, %v682_v61  ;;  %1296 = vmatpush.bf16.msrb.mxu1 %v1688_v59 }
 0x155   : > { %v700_v63 = vmax.f32 %v696_v62, 0.0 }
 0x156   : > { %v669_v0 = vpop.f32.mrf.mxu0  ;;  %v683_v4 = vpop.f32.mrf.mxu1 }
 0x157   : > { %v783_v2 = vrot.slane %v700_v63, 4  ;;  %789 = vst.msk [vmem:[#allocation3 + $0x9] sm:$0xf] %vm788_vm5, %v700_v63  ;;  %v670_v3 = vadd.f32 %v1709_v35, %v669_v0 }
 0x159   : > { %790 = vst.msk [vmem:[#allocation3 + $0x11] sm:$0xf] %vm788_vm5, %v783_v2  ;;  %v684_v5 = vadd.f32 %v683_v4, %v670_v3  ;;  %v1695_v2 = vld [vmem:[%s2225_s7 + $0x110] sm:$0xff] }
 0x15a   : > { %v1679_v3 = vld [vmem:[%s2225_s7 + $0x90] sm:$0xff]  ;;  %1311 = vmatpush.bf16.msra.mxu2 %v1695_v2 }
 0x15b   : > { %v698_v7 = vadd.f32 %v697_v6, %v684_v5  ;;  %v1687_v4 = vld [vmem:[%s2225_s7 + $0xd0] sm:$0xff]  ;;  %1283 = vmatpush.bf16.msrb.mxu0 %v1679_v3 }
 0x15c   : > { %1297 = vmatpush.bf16.msrb.mxu1 %v1687_v4 }
 0x15d   : > { %v701_v8 = vmax.f32 %v698_v7, 0.0 }
 0x15e   : > { %v1978_v9 = vld [vmem:[#allocation3 + $0x8] sm:$0x3f] }
 0x15f   : > { %v784_v10 = vrot.slane %v701_v8, 4  ;;  %791 = vst.msk [vmem:[#allocation3 + $0x19] sm:$0xf] %vm788_vm5, %v701_v8  ;;  %803 = vrot.lane.b32.xlu0 %v1978_v9, %s1722_s17  ;;  %v817_v13 = vrot.slane %v1978_v9, 1  ;;  %v846_v19 = vrot.slane %v1978_v9, 2 }
 0x160   : > { %v1983_v11 = vld [vmem:[#allocation3 + $0x10] sm:$0x3f]  ;;  %1298 = vmatpush.bf16.msrb.mxu1 %v1686_v24 }
 0x161   : > { %792 = vst.msk [vmem:[#allocation3 + $0x21] sm:$0xf] %vm788_vm5, %v784_v10  ;;  %805 = vrot.lane.b32.xlu1 %v1983_v11, %s1722_s17  ;;  %v1989_v12 = vrot.slane %v1983_v11, 2  ;;  %v818_v15 = vrot.slane %v1983_v11, 1  ;;  %v871_v35 = vsel %vm443_vm2, %v1983_v11, %v821_v34  ;;  %v1694_v10 = vld [vmem:[%s2225_s7 + $0x108] sm:$0xff] }
 0x162   : > { %v899_v60 = vrot.slane %v871_v35, 4  ;;  %1312 = vmatpush.bf16.msra.mxu2 %v1694_v10 }
 0x163   : > { %923 = vst [vmem:[#allocation1 + $0x20] ss:$2 sm:$0xff] %v1989_v12 }
 0x164   : > { %1299 = vmatpush.bf16.msrb.mxu1 %v1685_v28 }
 0x166   : > { %v1993_v14 = vld [vmem:[#allocation3 + $0x18] sm:$0x3f] }
 0x167   : > { %807 = vrot.lane.b32.xlu2 %v1993_v14, %s1722_s17  ;;  %822 = vrot.lane.b32.xlu0 %v817_v13, %s1722_s17  ;;  %v2002_v16 = vrot.slane %v1993_v14, 2  ;;  %v819_v17 = vrot.slane %v1993_v14, 1 }
 0x168   : > { %v2009_v18 = vld [vmem:[#allocation3 + $0x20] sm:$0x3f] }
 0x169   : > { %824 = vrot.lane.b32.xlu1 %v818_v15, %s1722_s17  ;;  %925 = vst [vmem:[#allocation1 + $0x21] ss:$2 sm:$0xff] %v2002_v16  ;;  %v853_v20 = vrot.slane %v2009_v18, 2  ;;  %v832_v23 = vrot.slane %v2009_v18, 1 }
 0x16f   : > { %826 = vrot.lane.b32.xlu2 %v819_v17, %s1722_s17  ;;  %809 = vrot.lane.b32.xlu0 %v2009_v18, %s1722_s17 }
 0x170   : > { %v934_v2 = vld.sshfl [vmem:[#allocation1 + $0x20] sm:$0xff pattern:$0x75316420] }
 0x171   : > { %854 = vrot.lane.b32.xlu1 %v846_v19, %s1722_s17 }
 0x177   : > { %858 = vrot.lane.b32.xlu0 %v2002_v16, %s1722_s17  ;;  %856 = vrot.lane.b32.xlu2 %v1989_v12, %s1722_s17 }
 0x179   : > { %860 = vrot.lane.b32.xlu1 %v853_v20, %s1722_s17 }
 0x17f   : > { %841 = vrot.lane.b32.xlu0 %v838_v22, %s1722_s17  ;;  %839 = vrot.lane.b32.xlu2 %v832_v23, %s1722_s17 }
 0x1c1   : > { %v2079_v48 = vpop.permute.xlu2 %807 }
 0x1c2   : > { %v869_v40 = vsel %vm443_vm2, %v1983_v11, %v2079_v48 }
 0x1c9   : > { %v827_v54 = vpop.permute.xlu2 %826 }
 0x1ca   : > { %v876_v8 = vsel %vm443_vm2, %v818_v15, %v827_v54  ;;  %v1693_v15 = vld [vmem:[%s2225_s7 + $0x100] sm:$0xff]  ;;  %v874_v41 = vsel %vm443_vm2, %v2025_v21, %v827_v54 }
 0x1cb   : > { %1313 = vmatpush.bf16.msra.mxu2 %v1693_v15  ;;  %v905_v44 = vrot.slane %v874_v41, 4 }
 0x1d1   : > { %v804_v61 = vpop.permute.xlu0 %803  ;;  %v857_v62 = vpop.permute.xlu2 %856 }
 0x1d2   : > { %v867_v63 = vsel %vm443_vm2, %v1940_v25, %v804_v61  ;;  %v880_v0 = vsel %vm443_vm2, %v846_v19, %v857_v62  ;;  %v1678_v19 = vld [vmem:[%s2225_s7 + $0x88] sm:$0xff] }
 0x1d3   : > { %v907_v5 = vsel %vm317_vm0, %v867_v63, %v899_v60  ;;  %v902_v6 = vrot.slane %v880_v0, 4  ;;  %v806_v7 = vpop.permute.xlu1 %805  ;;  %1284 = vmatpush.bf16.msrb.mxu0 %v1678_v19 }
 0x1d4   : > { %915 = vst [vmem:[#allocation1] ss:$2 sm:$0xff] %v907_v5  ;;  %v868_v33 = vsel %vm443_vm2, %v1978_v9, %v806_v7 }
 0x1d5   : > { %v910_v22 = vsel %vm317_vm0, %v876_v8, %v902_v6 }
 0x1d6   : > { %921 = vst [vmem:[#allocation1 + $0x11] ss:$2 sm:$0xff] %v910_v22 }
 0x1d7   : > { %1285 = vmatpush.bf16.msrb.mxu0 %v1677_v26 }
 0x1d9   : > { %v823_v27 = vpop.permute.xlu0 %822  ;;  %v840_v25 = vpop.permute.xlu2 %839 }
 0x1da   : > { %v872_v29 = vsel %vm443_vm2, %v1993_v14, %v823_v27  ;;  %v877_v56 = vsel %vm443_vm2, %v819_v17, %v840_v25 }
 0x1db   : > { %v901_v30 = vrot.slane %v872_v29, 4  ;;  %v825_v31 = vpop.permute.xlu1 %824 }
 0x1dc   : > { %v873_v34 = vsel %vm443_vm2, %v2009_v18, %v825_v31  ;;  %v875_v38 = vsel %vm443_vm2, %v817_v13, %v825_v31  ;;  %v866_v13 = vrot.slane %v2025_v21, 2  ;;  %v1710_v18 = vld [vmem:[%s2224_s6] ss:$0 sm:$0xff] }
 0x1dd   : > { %v909_v37 = vsel %vm317_vm0, %v868_v33, %v901_v30  ;;  %v903_v39 = vrot.slane %v873_v34, 4 }
 0x1de   : > { %917 = vst [vmem:[#allocation1 + $0x1] ss:$2 sm:$0xff] %v909_v37 }
 0x1df   : > { %v911_v42 = vsel %vm317_vm0, %v869_v40, %v903_v39 }
 0x1e0   : > { %927 = vst [vmem:[#allocation1 + $0x30] ss:$2 sm:$0xff] %v911_v42 }
 0x1e1   : > { %v810_v45 = vpop.permute.xlu0 %809 }
 0x1e2   : > { %v870_v47 = vsel %vm443_vm2, %v1993_v14, %v810_v45 }
 0x1e3   : > { %v913_v49 = vsel %vm317_vm0, %v870_v47, %v905_v44  ;;  %v855_v36 = vpop.permute.xlu1 %854 }
 0x1e4   : > { %929 = vst [vmem:[#allocation1 + $0x31] ss:$2 sm:$0xff] %v913_v49  ;;  %v879_v11 = vsel %vm443_vm2, %v845_v1, %v855_v36 }
 0x1e5   : > { %v900_v48 = vrot.slane %v879_v11, 4  ;;  %v930_v53 = vld.sshfl [vmem:[#allocation1] sm:$0xff pattern:$0x75316420] }
 0x1e6   : > { %v931_v9 = vld.sshfl [vmem:[#allocation1 + $0x8] sm:$0xff pattern:$0x75316420] }
 0x1e7   : > { %v908_v50 = vsel %vm317_vm0, %v875_v38, %v900_v48 }
 0x1e8   : > { %919 = vst [vmem:[#allocation1 + $0x10] ss:$2 sm:$0xff] %v908_v50 }
 0x1e9   : > { %v859_v51 = vpop.permute.xlu0 %858 }
 0x1ea   : > { %v881_v52 = vsel %vm443_vm2, %v1989_v12, %v859_v51 }
 0x1eb   : > { %v904_v46 = vrot.slane %v881_v52, 4  ;;  %v861_v54 = vpop.permute.xlu1 %860  ;;  %v935_v55 = vld.sshfl [vmem:[#allocation1 + $0x30] sm:$0xff pattern:$0x75316420] }
 0x1ec   : > { %v954_v57 = vpack.c.bf16 %v935_v55, %v930_v53  ;;  %v936_v32 = vld.sshfl [vmem:[#allocation1 + $0x38] sm:$0xff pattern:$0x75316420]  ;;  %v882_v58 = vsel %vm443_vm2, %v2002_v16, %v861_v54 }
 0x1ed   : > { %v912_v35 = vsel %vm317_vm0, %v877_v56, %v904_v46  ;;  %v955_v43 = vpack.c.bf16 %v936_v32, %v931_v9  ;;  %v906_v14 = vrot.slane %v882_v58, 4 }
 0x1ee   : > { %1258 = vmatmul.bf16.vlgmr.msrb.gmra.mxu2 %v954_v57  ;;  %937 = vst [vmem:[#allocation1] ss:$2 sm:$0xff] %v912_v35 }
 0x1ef   : > { %1272 = vmatmul.bf16.vlgmr.msrb.gmra.mxu3 %v955_v43  ;;  %v932_v12 = vld.sshfl [vmem:[#allocation1 + $0x10] sm:$0xff pattern:$0x75316420]  ;;  %v933_v59 = vld.sshfl [vmem:[#allocation1 + $0x18] sm:$0xff pattern:$0x75316420] }
 0x1f0   : > { %939 = vst [vmem:[#allocation1 + $0x10] ss:$2 sm:$0xff] %v853_v20  ;;  %v769_v20 = vpop.f32.mrf.mxu3 }
 0x1f1   : > { %v842_v17 = vpop.permute.xlu0 %841  ;;  %940 = vst [vmem:[#allocation1 + $0x11] ss:$2 sm:$0xff] %v866_v13  ;;  %v770_v5 = vadd.f32 %v1710_v18, %v769_v20 }
 0x1f2   : > { %v878_v21 = vsel %vm443_vm2, %v832_v23, %v842_v17 }
 0x1f3   : > { %v914_v60 = vsel %vm317_vm0, %v878_v21, %v906_v14 }
 0x1f4   : > { %938 = vst [vmem:[#allocation1 + $0x1] ss:$2 sm:$0xff] %v914_v60 }
 0x1f8   : > { %v943_v61 = vld.sshfl [vmem:[#allocation1 + $0x10] sm:$0xff pattern:$0x75316420]  ;;  %v771_v4 = vpop.f32.mrf.mxu3 }
 0x1f9   : > { %v958_v3 = vpack.c.bf16 %v943_v61, %v934_v2  ;;  %v772_v22 = vadd.f32 %v1710_v18, %v771_v4 }
 0x1fb   : > { %v941_v16 = vld.sshfl [vmem:[#allocation1] sm:$0xff pattern:$0x75316420]  ;;  %v942_v62 = vld.sshfl [vmem:[#allocation1 + $0x8] sm:$0xff pattern:$0x75316420] }
 0x1fc   : > { %v956_v63 = vpack.c.bf16 %v941_v16, %v932_v12  ;;  %v957_v0 = vpack.c.bf16 %v942_v62, %v933_v59 }
 0x1fe   : > { %1286 = vmatmul.bf16.vlgmr.msrb.gmra.mxu0 %v956_v63  ;;  %1300 = vmatmul.bf16.vlgmr.msrb.gmra.mxu1 %v957_v0 }
 0x1ff   : > { %1636 = vmatmul.msk.bf16.vlgmr.msra.gmra.mxu2 %vm443_vm2, %v958_v3 }
 0x271   : > { %v1259_v23 = vpop.f32.mrf.mxu2 }
 0x272   : > { %v1260_v6 = vadd.f32 %v1259_v23, %v770_v5  ;;  %v1273_v7 = vpop.f32.mrf.mxu3 }
 0x274   : > { %v1274_v10 = vadd.f32 %v1273_v7, %v1260_v6 }
 0x279   : > { %v1261_v8 = vpop.f32.mrf.mxu2 }
 0x27a   : > { %v1262_v26 = vadd.f32 %v1261_v8, %v772_v22  ;;  %v1275_v28 = vpop.f32.mrf.mxu3 }
 0x27b   : > { %v1287_v19 = vpop.f32.mrf.mxu0  ;;  %v1301_v15 = vpop.f32.mrf.mxu1 }
 0x27c   : > { %v1288_v24 = vadd.f32 %v1287_v19, %v1274_v10  ;;  %v1276_v30 = vadd.f32 %v1275_v28, %v1262_v26 }
 0x27e   : > { %v1302_v27 = vadd.f32 %v1301_v15, %v1288_v24 }
 0x282   : > { %v1315_v29 = vpop.f32.mrf.mxu2 }
 0x283   : > { %v1316_v31 = vadd.f32 %v1315_v29, %v1302_v27  ;;  %v1289_v33 = vpop.f32.mrf.mxu0  ;;  %v1303_v39 = vpop.f32.mrf.mxu1 }
 0x284   : > { %v1290_v37 = vadd.f32 %v1289_v33, %v1276_v30 }
 0x285   : > { %v1321_v34 = vrot.slane %v1316_v31, 4 }
 0x286   : > { %v1304_v40 = vadd.f32 %v1303_v39, %v1290_v37 }
 0x287   : > { %1322 = vrot.lane.b32.xlu2 %v1321_v34, %s1722_s17 }
 0x28a   : > { %v1317_v41 = vpop.f32.mrf.mxu2 }
 0x28b   : > { %v1318_v42 = vadd.f32 %v1317_v41, %v1304_v40 }
 0x28d   : > { %v1326_v1 = vrot.slane %v1318_v42, 4 }
 0x28f   : > { %1327 = vrot.lane.b32.xlu1 %v1326_v1, %s1722_s17 }
 0x2e1   : > { %v1323_v44 = vpop.permute.xlu2 %1322 }
 0x2e2   : > { %v1330_v36 = vsel %vm443_vm2, %v1316_v31, %v1323_v44 }
 0x301   : > { %v1328_v45 = vpop.permute.xlu1 %1327 }
 0x302   : > { %v1331_v47 = vsel %vm443_vm2, %v1318_v42, %v1328_v45 }
 0x303   : > { %v1334_v49 = vrot.slane %v1331_v47, 4 }
 0x305   : > { %v1335_v11 = vsel %vm317_vm0, %v1330_v36, %v1334_v49 }
 0x306   : > { %1337 = vst [vmem:[%s305_s23] sm:$0xff] %v1335_v11 }
 0x307 PF: > { %s18_s27 = sadd.s32 1, %s1717_s27  }
 0x308   : > { %p15_p4 = scmp.ge.s32.totalorder %s18_s27, 4  }
 0x30a   :  { %17 = sbr.rel (!%p15_p4) target bundleno = 1 (0x1), region = 104 }

</bundles_post_ra>
